<compile_context>
chip_gen: v7x
topology: tpu7x:2x2x1
jax: 0.10.0
libtpu: 0.0.40
codegen_flags: <defaults>
</compile_context>

<pallas_src>
import numpy as np
import jax
import jax.numpy as jnp
from jax import lax
from jax.experimental import pallas as pl
from jax.experimental.pallas import tpu as pltpu

PAD = 5  # halo needed by the dilation-5 conv (the depthwise conv uses an inner window)


# ----------------------------------------------------------------------------
# Bilinear 2x upsample (align_corners=False) as an explicit 1-D linear operator.
# The 2-D upsample is separable: kron(Uh, Uw) is never materialized.
# ----------------------------------------------------------------------------
def _up1d(n):
    U = np.zeros((2 * n, n), dtype=np.float32)
    for k in range(n):
        U[2 * k, max(k - 1, 0)] += 0.25
        U[2 * k, k] += 0.75
        U[2 * k + 1, k] += 0.75
        U[2 * k + 1, min(k + 1, n - 1)] += 0.25
    return U


def _up_matrix(out_size, in_size):
    U = np.eye(in_size, dtype=np.float32)
    n = in_size
    while n < out_size:
        U = _up1d(n) @ U
        n *= 2
    assert n == out_size
    return U


def _largest_divisor(n, unit, cap):
    """Largest multiple of `unit` that divides n and is <= cap (>= unit)."""
    best = unit
    d = unit
    while d <= min(n, cap):
        if n % d == 0:
            best = d
        d += unit
    return best


# ----------------------------------------------------------------------------
# Parameters (deterministic synthetic init, shapes from the module __init__).
# ----------------------------------------------------------------------------
def init_params(key, C, IC):
    ks = jax.random.split(key, 12)

    def w(k, shape, scale=0.3):
        return (scale * jax.random.normal(k, shape)).astype(jnp.float32)

    return {
        "d1_w": w(ks[0], (3, 3, C)),        # depthwise 3x3 (groups=C)
        "d1_b": w(ks[1], (1, C), 0.1),
        "d2_w": w(ks[2], (3, 3, C, C)),     # dense 3x3, dilation 5
        "d2_b": w(ks[3], (1, C), 0.1),
        "theta_w": w(ks[4], (C, IC)),       # 1x1 convs as (Cin, Cout) matmuls
        "theta_b": w(ks[5], (1, IC), 0.1),
        "phi_w": w(ks[6], (C, IC)),
        "phi_b": w(ks[7], (1, IC), 0.1),
        "g_w": w(ks[8], (C, IC)),
        "g_b": w(ks[9], (1, IC), 0.1),
        "W_w": w(ks[10], (IC, C)),
        "W_b": w(ks[11], (1, C), 0.1),
    }


# ----------------------------------------------------------------------------
# Pallas forward.
# ----------------------------------------------------------------------------
def enblock2_forward(x_nchw, amap_nchw, fmap_nchw, params, inter_channels,
                     row_block=None, chan_block=None):
    del fmap_nchw  # only feeds dead code in the reference forward
    B, C, H, W = x_nchw.shape
    IC = inter_channels
    # three 2x2/stride-2 maxpools == one 8x8 non-overlapping window max
    assert H % 8 == 0 and W % 8 == 0
    H8, W8 = H // 8, W // 8
    N = H8 * W8
    M = 2 * IC + C  # fused attention weight width: [theta | phi | g@W]

    # ---- K1 row-block / K3 channel-block tiling (bounds per-step VMEM) ----
    TH = row_block if row_block is not None else _largest_divisor(H, 8, 64)
    assert H % TH == 0 and TH % 8 == 0
    THB = TH // 8          # 8-row blocks per row block (for halo index maps)
    TH8 = TH // 8          # pooled rows per row block
    nblk = H // TH
    CB = chan_block if chan_block is not None else _largest_divisor(C, 1, 8)
    assert C % CB == 0

    x = x_nchw.astype(jnp.float32)
    amap = amap_nchw.astype(jnp.float32)

    # --- small scalar tables for the VPU conv MACs (live in SMEM) ---
    d1w = params["d1_w"].reshape(-1).astype(jnp.float32)    # idx = (ky*3+kx)*C + c
    d1b = params["d1_b"][0].astype(jnp.float32)             # (C,)
    d2w = params["d2_w"].reshape(-1).astype(jnp.float32)    # idx = ((ky*3+kx)*C + ci)*C + co
    d2b = params["d2_b"][0].astype(jnp.float32)             # (C,)
    wb = params["W_b"][0].astype(jnp.float32)               # (C,)

    # --- fused attention weights, transposed for the (C, N) in-kernel layout ---
    gW = params["g_w"] @ params["W_w"]                       # (C, C): W folded into g
    bW = params["g_b"][0] @ params["W_w"]                    # (C,)
    wT = jnp.concatenate(
        [params["theta_w"], params["phi_w"], gW], axis=1).T.astype(jnp.float32)   # (M, C)
    bT = jnp.concatenate(
        [params["theta_b"][0], params["phi_b"][0], bW])[:, None].astype(jnp.float32)  # (M, 1)

    # --- kron-factored bilinear upsample operators ---
    Uh = jnp.asarray(_up_matrix(H, H8), jnp.float32)         # (H, H8)
    UwT = jnp.asarray(_up_matrix(W, W8).T, jnp.float32)      # (W8, W)

    VMEM_LIMIT = 48 * 1024 * 1024  # above default scoped limits, below v7x physical

    # ------------------------------------------------------------------
    # K1: contrast block + (contrast_map * x) + 8x8 window max pooling.
    # Grid (B, H/TH); halo rows come from clamped 8-row neighbour blocks.
    # ------------------------------------------------------------------
    def contrast_pool_kernel(xm_ref, xt_ref, xb_ref, amap_ref,
                             d1w_ref, d1b_ref, d2w_ref, d2b_ref,
                             out_ref, pad_ref):
        i = pl.program_id(1)
        last = pl.num_programs(1) - 1

        # Halo-padded row block.  Only the 5-wide W strips are zero-filled;
        # the top/bottom halo rows come from neighbour blocks (zeroed at edges).
        pad_ref[:, :, :PAD] = jnp.zeros((C, TH + 2 * PAD, PAD), jnp.float32)
        pad_ref[:, :, PAD + W:] = jnp.zeros((C, TH + 2 * PAD, PAD), jnp.float32)
        pad_ref[:, :PAD, PAD:PAD + W] = jnp.where(
            i > 0, xt_ref[0, :, 8 - PAD:, :], 0.0)
        pad_ref[:, PAD:PAD + TH, PAD:PAD + W] = xm_ref[0]
        pad_ref[:, PAD + TH:, PAD:PAD + W] = jnp.where(
            i < last, xb_ref[0, :, :PAD, :], 0.0)

        # Per OUTPUT channel: conv -> LeakyReLU -> |y1-y2| -> sigmoid -> +amap
        # -> *x -> 8x8 window max.  Only one (TH, W) accumulator pair is live
        # at a time (no Python-list accumulators / jnp.stack).
        # TODO(synk): im2col + single MXU matmul for the dilated conv at C >= 8.
        for co in range(C):
            y1 = jnp.zeros((TH, W), jnp.float32)
            y2 = jnp.zeros((TH, W), jnp.float32)
            for ky in range(3):
                for kx in range(3):
                    tap = ky * 3 + kx
                    # depthwise 3x3 (pad 1): inner window of the halo frame
                    y1 = y1 + (pad_ref[co, PAD - 1 + ky:PAD - 1 + ky + TH,
                                       PAD - 1 + kx:PAD - 1 + kx + W]
                               * d1w_ref[tap * C + co])
                    # dense 3x3, dilation 5 (pad 5)
                    for ci in range(C):
                        y2 = y2 + (pad_ref[ci, 5 * ky:5 * ky + TH,
                                           5 * kx:5 * kx + W]
                                   * d2w_ref[(tap * C + ci) * C + co])
            a1 = y1 + d1b_ref[co]
            a2 = y2 + d2b_ref[co]
            a1 = jnp.where(a1 >= 0, a1, 0.2 * a1)            # LeakyReLU(0.2)
            a2 = jnp.where(a2 >= 0, a2, 0.2 * a2)
            cmap = jax.nn.sigmoid(jnp.abs(a1 - a2)) + amap_ref[0, co]
            prod = cmap * xm_ref[0, co]                      # (TH, W)

            # triple 2x2/stride-2 maxpool == 8x8 window max
            rows = [jnp.max(prod[8 * r:8 * r + 8, :], axis=0, keepdims=True)
                    for r in range(TH8)]
            ph = jnp.concatenate(rows, axis=0)               # (TH8, W)
            cols = [jnp.max(ph[:, 8 * c:8 * c + 8], axis=1, keepdims=True)
                    for c in range(W8)]
            out_ref[0, co] = jnp.concatenate(cols, axis=1)   # (TH8, W8)

    pooled = pl.pallas_call(
        contrast_pool_kernel,
        out_shape=jax.ShapeDtypeStruct((B, C, H8, W8), jnp.float32),
        grid_spec=pltpu.PrefetchScalarGridSpec(
            num_scalar_prefetch=0,
            grid=(B, nblk),
            in_specs=[
                # row block of x
                pl.BlockSpec((1, C, TH, W), lambda b, i: (b, 0, i, 0)),
                # 8-row block just above (clamped; masked to zero when i == 0)
                pl.BlockSpec((1, C, 8, W),
                             lambda b, i: (b, 0, jnp.maximum(i * THB - 1, 0), 0)),
                # 8-row block just below (clamped; masked to zero when i == last)
                pl.BlockSpec((1, C, 8, W),
                             lambda b, i: (b, 0, jnp.minimum((i + 1) * THB,
                                                             H // 8 - 1), 0)),
                pl.BlockSpec((1, C, TH, W), lambda b, i: (b, 0, i, 0)),
                pl.BlockSpec(memory_space=pltpu.MemorySpace.SMEM),
                pl.BlockSpec(memory_space=pltpu.MemorySpace.SMEM),
                pl.BlockSpec(memory_space=pltpu.MemorySpace.SMEM),
                pl.BlockSpec(memory_space=pltpu.MemorySpace.SMEM),
            ],
            out_specs=pl.BlockSpec((1, C, TH8, W8), lambda b, i: (b, 0, i, 0)),
            scratch_shapes=[pltpu.VMEM((C, TH + 2 * PAD, W + 2 * PAD),
                                       jnp.float32)],
        ),
        compiler_params=pltpu.CompilerParams(
            dimension_semantics=("parallel", "parallel"),
            vmem_limit_bytes=VMEM_LIMIT),
    )(x, x, x, amap, d1w, d1b, d2w, d2b)

    # pure reshape (no transpose): (B, C, H8, W8) -> (B, C, N)
    s_cn = pooled.reshape(B, C, N)

    # ------------------------------------------------------------------
    # K2: non-local attention on the pooled map, done in (C, N) layout so N
    # (the big dim) stays lane-dense and no transposes are needed between
    # kernels.  theta|phi|(g@W) fused into one (M, C) x (C, N) projection.
    # ------------------------------------------------------------------
    def attn_kernel(s_ref, wT_ref, bT_ref, y_ref):
        s = s_ref[0]                                                       # (C, N)
        tpgT = jnp.dot(wT_ref[...], s,
                       preferred_element_type=jnp.float32) + bT_ref[...]  # (M, N)
        thetaT = tpgT[:IC, :]
        phiT = tpgT[IC:2 * IC, :]
        gwT = tpgT[2 * IC:, :]                                             # (C, N), W folded in
        # f[i, j] = theta_i . phi_j
        f = lax.dot_general(thetaT, phiT, (((0,), (0,)), ((), ())),
                            preferred_element_type=jnp.float32)            # (N, N)
        # torch F.softmax(f, dim=1): normalize over the row index (axis 0 here)
        f = f - jnp.max(f, axis=0, keepdims=True)
        e = jnp.exp(f)
        fdiv = e * pl.reciprocal(jnp.sum(e, axis=0, keepdims=True), approx=True)
        # y^T[c, i] = sum_j gw[j, c] * fdiv[i, j]
        y_ref[0] = lax.dot_general(gwT, fdiv, (((1,), (1,)), ((), ())),
                                   preferred_element_type=jnp.float32)     # (C, N)

    y_cn = pl.pallas_call(
        attn_kernel,
        out_shape=jax.ShapeDtypeStruct((B, C, N), jnp.float32),
        grid_spec=pltpu.PrefetchScalarGridSpec(
            num_scalar_prefetch=0,
            grid=(B,),
            in_specs=[
                pl.BlockSpec((1, C, N), lambda b: (b, 0, 0)),
                pl.BlockSpec((M, C), lambda b: (0, 0)),
                pl.BlockSpec((M, 1), lambda b: (0, 0)),
            ],
            out_specs=pl.BlockSpec((1, C, N), lambda b: (b, 0, 0)),
        ),
        compiler_params=pltpu.CompilerParams(
            dimension_semantics=("parallel",),
            vmem_limit_bytes=VMEM_LIMIT),
    )(s_cn, wT, bT)

    # pure reshape (no transpose): (B, C, N) -> (B, C, H8, W8)
    yr = y_cn.reshape(B, C, H8, W8)

    # ------------------------------------------------------------------
    # K3: factored bilinear 8x upsample + folded-W bias + residual add.
    # Grid (B, C/CB).  Stage 1: per-channel (H, H8)x(H8, W8) (tiny); stage 2:
    # ONE (CB*H, W8)x(W8, W) matmul for the whole channel block.
    # ------------------------------------------------------------------
    def up_kernel(yr_ref, x_ref, uh_ref, uwt_ref, wb_ref, z_ref):
        j = pl.program_id(1)
        uh = uh_ref[...]                                      # (H, H8)
        # stage 1: H-upsample per channel, stacked channel-major along sublanes
        t = jnp.concatenate(
            [jnp.dot(uh, yr_ref[0, c], preferred_element_type=jnp.float32)
             for c in range(CB)], axis=0)                     # (CB*H, W8)
        # stage 2: one wide W-upsample matmul for the whole channel block
        up = jnp.dot(t, uwt_ref[...],
                     preferred_element_type=jnp.float32)      # (CB*H, W)
        for c in range(CB):
            z_ref[0, c] = (up[c * H:(c + 1) * H, :]
                           + wb_ref[j * CB + c] + x_ref[0, c])  # lane-dense (H, W)

    z = pl.pallas_call(
        up_kernel,
        out_shape=jax.ShapeDtypeStruct((B, C, H, W), jnp.float32),
        grid_spec=pltpu.PrefetchScalarGridSpec(
            num_scalar_prefetch=0,
            grid=(B, C // CB),
            in_specs=[
                pl.BlockSpec((1, CB, H8, W8), lambda b, j: (b, j, 0, 0)),
                pl.BlockSpec((1, CB, H, W), lambda b, j: (b, j, 0, 0)),
                pl.BlockSpec((H, H8), lambda b, j: (0, 0)),
                pl.BlockSpec((W8, W), lambda b, j: (0, 0)),
                pl.BlockSpec(memory_space=pltpu.MemorySpace.SMEM),
            ],
            out_specs=pl.BlockSpec((1, CB, H, W), lambda b, j: (b, j, 0, 0)),
        ),
        compiler_params=pltpu.CompilerParams(
            dimension_semantics=("parallel", "parallel"),
            vmem_limit_bytes=VMEM_LIMIT),
    )(yr, x, Uh, UwT, wb)

    return z  # NCHW, same as the PyTorch module


# ----------------------------------------------------------------------------
# Pure-JAX reference (same math, no Pallas) for a correctness check.
# ----------------------------------------------------------------------------
def enblock2_reference(x, amap, fmap, params, IC):
    del fmap
    B, C, H, W = x.shape
    H8, W8 = H // 8, W // 8
    N = H8 * W8
    xpad = jnp.pad(x, ((0, 0), (0, 0), (PAD, PAD), (PAD, PAD)))
    y1 = jnp.zeros_like(x)
    y2 = jnp.zeros_like(x)
    for ky in range(3):
        for kx in range(3):
            y1 = y1 + (xpad[:, :, 4 + ky:4 + ky + H, 4 + kx:4 + kx + W]
                       * params["d1_w"][ky, kx][None, :, None, None])
            y2 = y2 + jnp.einsum("bchw,cd->bdhw",
                                 xpad[:, :, 5 * ky:5 * ky + H, 5 * kx:5 * kx + W],
                                 params["d2_w"][ky, kx])
    y1 = y1 + params["d1_b"][0][None, :, None, None]
    y2 = y2 + params["d2_b"][0][None, :, None, None]
    lrelu = lambda v: jnp.where(v >= 0, v, 0.2 * v)
    cmap = jax.nn.sigmoid(jnp.abs(lrelu(y1) - lrelu(y2))) + amap
    prod = cmap * x
    shrink = prod.reshape(B, C, H8, 8, W8, 8).max(axis=(3, 5))    # (B, C, H8, W8)
    s = shrink.reshape(B, C, N)
    theta = jnp.einsum("bcn,ck->bkn", s, params["theta_w"]) + params["theta_b"][0][None, :, None]
    phi = jnp.einsum("bcn,ck->bkn", s, params["phi_w"]) + params["phi_b"][0][None, :, None]
    g = jnp.einsum("bcn,ck->bkn", s, params["g_w"]) + params["g_b"][0][None, :, None]
    f = jnp.einsum("bki,bkj->bij", theta, phi)                    # (B, N, N)
    fdiv = jax.nn.softmax(f, axis=1)
    yatt = jnp.einsum("bij,bkj->bik", fdiv, g)                    # (B, N, IC)
    y_sp = jnp.transpose(yatt, (0, 2, 1)).reshape(B, IC, H8, W8)
    Uh = jnp.asarray(_up_matrix(H, H8), jnp.float32)
    Uw = jnp.asarray(_up_matrix(W, W8), jnp.float32)
    y_up = jnp.einsum("hm,bkmn,wn->bkhw", Uh, y_sp, Uw)
    wy = jnp.einsum("bkhw,kc->bchw", y_up, params["W_w"]) + params["W_b"][0][None, :, None, None]
    return wy + x


if __name__ == "__main__":
    def _check(B, C, H, W, IC, row_block=None):
        key = jax.random.PRNGKey(0)
        k_x, k_a, k_f, k_p = jax.random.split(key, 4)
        x = jax.random.normal(k_x, (B, C, H, W), jnp.float32)
        amap = jax.random.normal(k_a, (B, C, H, W), jnp.float32)
        fmap = jax.random.normal(k_f, (B, C, H, W), jnp.float32)
        params = init_params(k_p, C, IC)

        z = enblock2_forward(x, amap, fmap, params, IC, row_block=row_block)
        jax.block_until_ready(z)
        assert z.shape == (B, C, H, W) and z.dtype == jnp.float32

        z_ref = enblock2_reference(x, amap, fmap, params, IC)
        max_err = float(jnp.max(jnp.abs(z - z_ref)))
        assert jnp.allclose(z, z_ref, rtol=2e-2, atol=2e-2), (
            "mismatch vs pure-JAX reference, max abs err = %g" % max_err)

    # single row/channel block (the module's nominal small shapes)
    _check(2, 4, 16, 16, 2)
    # two row blocks: exercises the cross-block halo path of K1
    _check(1, 4, 32, 16, 2, row_block=16)

    print("KERNEL_OK")
</pallas_src>

<mosaic_0001>
module attributes {stable_mosaic.version = 11 : i64} {
  func.func @contrast_pool_kernel(%arg0: i32, %arg1: i32, %arg2: memref<1x4x16x16xf32, #tpu.memory_space<vmem>>, %arg3: memref<1x4x8x16xf32, #tpu.memory_space<vmem>>, %arg4: memref<1x4x8x16xf32, #tpu.memory_space<vmem>>, %arg5: memref<1x4x16x16xf32, #tpu.memory_space<vmem>>, %arg6: memref<36xf32, #tpu.memory_space<smem>>, %arg7: memref<4xf32, #tpu.memory_space<smem>>, %arg8: memref<144xf32, #tpu.memory_space<smem>>, %arg9: memref<4xf32, #tpu.memory_space<smem>>, %arg10: memref<1x4x2x2xf32, #tpu.memory_space<vmem>>, %arg11: memref<4x26x26xf32, #tpu.memory_space<vmem>>) attributes {dimension_semantics = [#tpu.dimension_semantics<parallel>, #tpu.dimension_semantics<parallel>], iteration_bounds = array<i64: 2, 1>, scalar_prefetch = 0 : i64, scratch_operands = 1 : i64, tpu.core_type = #tpu.core_type<tc>, window_params = [{transform_indices = @transform_0, window_bounds = array<i64: 1, 4, 16, 16>}, {transform_indices = @transform_1, window_bounds = array<i64: 1, 4, 8, 16>}, {transform_indices = @transform_2, window_bounds = array<i64: 1, 4, 8, 16>}, {transform_indices = @transform_3, window_bounds = array<i64: 1, 4, 16, 16>}, {transform_indices = @transform_4, window_bounds = array<i64: 36>}, {transform_indices = @transform_5, window_bounds = array<i64: 4>}, {transform_indices = @transform_6, window_bounds = array<i64: 144>}, {transform_indices = @transform_7, window_bounds = array<i64: 4>}, {transform_indices = @transform_8, window_bounds = array<i64: 1, 4, 2, 2>}]} {
    %cst = arith.constant 0.000000e+00 : f32
    %0 = vector.broadcast %cst : f32 to vector<4x26x5xf32>
    %c0 = arith.constant 0 : index
    %c0_0 = arith.constant 0 : index
    %c0_1 = arith.constant 0 : index
    %1 = vector.load %arg11[%c0, %c0_0, %c0_1] : memref<4x26x26xf32, #tpu.memory_space<vmem>>, vector<4x26x5xf32>
    tpu.vector_store %arg11[%c0, %c0_0, %c0_1], %0 {strides = array<i32>} : memref<4x26x26xf32, #tpu.memory_space<vmem>>, vector<4x26x5xf32>,
    %cst_2 = arith.constant 0.000000e+00 : f32
    %2 = vector.broadcast %cst_2 : f32 to vector<4x26x5xf32>
    %c0_3 = arith.constant 0 : index
    %c0_4 = arith.constant 0 : index
    %c21 = arith.constant 21 : index
    %3 = vector.load %arg11[%c0_3, %c0_4, %c21] : memref<4x26x26xf32, #tpu.memory_space<vmem>>, vector<4x26x5xf32>
    tpu.vector_store %arg11[%c0_3, %c0_4, %c21], %2 {strides = array<i32>} : memref<4x26x26xf32, #tpu.memory_space<vmem>>, vector<4x26x5xf32>,
    %c0_i32 = arith.constant 0 : i32
    %4 = arith.cmpi sgt, %arg1, %c0_i32 : i32
    %c0_5 = arith.constant 0 : index
    %c0_6 = arith.constant 0 : index
    %c3 = arith.constant 3 : index
    %c0_7 = arith.constant 0 : index
    %5 = vector.load %arg3[%c0_5, %c0_6, %c3, %c0_7] : memref<1x4x8x16xf32, #tpu.memory_space<vmem>>, vector<1x4x5x16xf32>
    %6 = vector.shape_cast %5 : vector<1x4x5x16xf32> to vector<4x5x16xf32>
    %cst_8 = arith.constant 0.000000e+00 : f32
    %7 = vector.broadcast %cst_8 : f32 to vector<4x5x16xf32>
    %8 = arith.select %4, %6, %7 : vector<4x5x16xf32>
    %c0_9 = arith.constant 0 : index
    %c0_10 = arith.constant 0 : index
    %c5 = arith.constant 5 : index
    %9 = vector.load %arg11[%c0_9, %c0_10, %c5] : memref<4x26x26xf32, #tpu.memory_space<vmem>>, vector<4x5x16xf32>
    tpu.vector_store %arg11[%c0_9, %c0_10, %c5], %8 {strides = array<i32>} : memref<4x26x26xf32, #tpu.memory_space<vmem>>, vector<4x5x16xf32>,
    %c0_11 = arith.constant 0 : index
    %c0_12 = arith.constant 0 : index
    %c0_13 = arith.constant 0 : index
    %c0_14 = arith.constant 0 : index
    %10 = vector.load %arg2[%c0_11, %c0_12, %c0_13, %c0_14] : memref<1x4x16x16xf32, #tpu.memory_space<vmem>>, vector<1x4x16x16xf32>
    %11 = vector.shape_cast %10 : vector<1x4x16x16xf32> to vector<4x16x16xf32>
    %c0_15 = arith.constant 0 : index
    %c5_16 = arith.constant 5 : index
    %c5_17 = arith.constant 5 : index
    %12 = vector.load %arg11[%c0_15, %c5_16, %c5_17] : memref<4x26x26xf32, #tpu.memory_space<vmem>>, vector<4x16x16xf32>
    tpu.vector_store %arg11[%c0_15, %c5_16, %c5_17], %11 {strides = array<i32>} : memref<4x26x26xf32, #tpu.memory_space<vmem>>, vector<4x16x16xf32>,
    %c0_i32_18 = arith.constant 0 : i32
    %13 = arith.cmpi slt, %arg1, %c0_i32_18 : i32
    %c0_19 = arith.constant 0 : index
    %c0_20 = arith.constant 0 : index
    %c0_21 = arith.constant 0 : index
    %c0_22 = arith.constant 0 : index
    %14 = vector.load %arg4[%c0_19, %c0_20, %c0_21, %c0_22] : memref<1x4x8x16xf32, #tpu.memory_space<vmem>>, vector<1x4x5x16xf32>
    %15 = vector.shape_cast %14 : vector<1x4x5x16xf32> to vector<4x5x16xf32>
    %cst_23 = arith.constant 0.000000e+00 : f32
    %16 = vector.broadcast %cst_23 : f32 to vector<4x5x16xf32>
    %17 = arith.select %13, %15, %16 : vector<4x5x16xf32>
    %c0_24 = arith.constant 0 : index
    %c21_25 = arith.constant 21 : index
    %c5_26 = arith.constant 5 : index
    %18 = vector.load %arg11[%c0_24, %c21_25, %c5_26] : memref<4x26x26xf32, #tpu.memory_space<vmem>>, vector<4x5x16xf32>
    tpu.vector_store %arg11[%c0_24, %c21_25, %c5_26], %17 {strides = array<i32>} : memref<4x26x26xf32, #tpu.memory_space<vmem>>, vector<4x5x16xf32>,
    %cst_27 = arith.constant 0.000000e+00 : f32
    %19 = vector.broadcast %cst_27 : f32 to vector<16x16xf32>
    %cst_28 = arith.constant 0.000000e+00 : f32
    %20 = vector.broadcast %cst_28 : f32 to vector<16x16xf32>
    %c0_29 = arith.constant 0 : index
    %c4 = arith.constant 4 : index
    %c4_30 = arith.constant 4 : index
    %21 = vector.load %arg11[%c0_29, %c4, %c4_30] : memref<4x26x26xf32, #tpu.memory_space<vmem>>, vector<1x16x16xf32>
    %22 = vector.shape_cast %21 : vector<1x16x16xf32> to vector<16x16xf32>
    %c0_31 = arith.constant 0 : index
    %23 = memref.load %arg6[%c0_31] : memref<36xf32, #tpu.memory_space<smem>>
    %24 = vector.broadcast %23 : f32 to vector<16x16xf32>
    %25 = arith.mulf %22, %24 : vector<16x16xf32>
    %26 = arith.addf %19, %25 : vector<16x16xf32>
    %c0_32 = arith.constant 0 : index
    %c0_33 = arith.constant 0 : index
    %c0_34 = arith.constant 0 : index
    %27 = vector.load %arg11[%c0_32, %c0_33, %c0_34] : memref<4x26x26xf32, #tpu.memory_space<vmem>>, vector<1x16x16xf32>
    %28 = vector.shape_cast %27 : vector<1x16x16xf32> to vector<16x16xf32>
    %c0_35 = arith.constant 0 : index
    %29 = memref.load %arg8[%c0_35] : memref<144xf32, #tpu.memory_space<smem>>
    %30 = vector.broadcast %29 : f32 to vector<16x16xf32>
    %31 = arith.mulf %28, %30 : vector<16x16xf32>
    %32 = arith.addf %20, %31 : vector<16x16xf32>
    %c1 = arith.constant 1 : index
    %c0_36 = arith.constant 0 : index
    %c0_37 = arith.constant 0 : index
    %33 = vector.load %arg11[%c1, %c0_36, %c0_37] : memref<4x26x26xf32, #tpu.memory_space<vmem>>, vector<1x16x16xf32>
    %34 = vector.shape_cast %33 : vector<1x16x16xf32> to vector<16x16xf32>
    %c4_38 = arith.constant 4 : index
    %35 = memref.load %arg8[%c4_38] : memref<144xf32, #tpu.memory_space<smem>>
    %36 = vector.broadcast %35 : f32 to vector<16x16xf32>
    %37 = arith.mulf %34, %36 : vector<16x16xf32>
    %38 = arith.addf %32, %37 : vector<16x16xf32>
    %c2 = arith.constant 2 : index
    %c0_39 = arith.constant 0 : index
    %c0_40 = arith.constant 0 : index
    %39 = vector.load %arg11[%c2, %c0_39, %c0_40] : memref<4x26x26xf32, #tpu.memory_space<vmem>>, vector<1x16x16xf32>
    %40 = vector.shape_cast %39 : vector<1x16x16xf32> to vector<16x16xf32>
    %c8 = arith.constant 8 : index
    %41 = memref.load %arg8[%c8] : memref<144xf32, #tpu.memory_space<smem>>
    %42 = vector.broadcast %41 : f32 to vector<16x16xf32>
    %43 = arith.mulf %40, %42 : vector<16x16xf32>
    %44 = arith.addf %38, %43 : vector<16x16xf32>
    %c3_41 = arith.constant 3 : index
    %c0_42 = arith.constant 0 : index
    %c0_43 = arith.constant 0 : index
    %45 = vector.load %arg11[%c3_41, %c0_42, %c0_43] : memref<4x26x26xf32, #tpu.memory_space<vmem>>, vector<1x16x16xf32>
    %46 = vector.shape_cast %45 : vector<1x16x16xf32> to vector<16x16xf32>
    %c12 = arith.constant 12 : index
    %47 = memref.load %arg8[%c12] : memref<144xf32, #tpu.memory_space<smem>>
    %48 = vector.broadcast %47 : f32 to vector<16x16xf32>
    %49 = arith.mulf %46, %48 : vector<16x16xf32>
    %50 = arith.addf %44, %49 : vector<16x16xf32>
    %c0_44 = arith.constant 0 : index
    %c4_45 = arith.constant 4 : index
    %c5_46 = arith.constant 5 : index
    %51 = vector.load %arg11[%c0_44, %c4_45, %c5_46] : memref<4x26x26xf32, #tpu.memory_space<vmem>>, vector<1x16x16xf32>
    %52 = vector.shape_cast %51 : vector<1x16x16xf32> to vector<16x16xf32>
    %c4_47 = arith.constant 4 : index
    %53 = memref.load %arg6[%c4_47] : memref<36xf32, #tpu.memory_space<smem>>
    %54 = vector.broadcast %53 : f32 to vector<16x16xf32>
    %55 = arith.mulf %52, %54 : vector<16x16xf32>
    %56 = arith.addf %26, %55 : vector<16x16xf32>
    %c0_48 = arith.constant 0 : index
    %c0_49 = arith.constant 0 : index
    %c5_50 = arith.constant 5 : index
    %57 = vector.load %arg11[%c0_48, %c0_49, %c5_50] : memref<4x26x26xf32, #tpu.memory_space<vmem>>, vector<1x16x16xf32>
    %58 = vector.shape_cast %57 : vector<1x16x16xf32> to vector<16x16xf32>
    %c16 = arith.constant 16 : index
    %59 = memref.load %arg8[%c16] : memref<144xf32, #tpu.memory_space<smem>>
    %60 = vector.broadcast %59 : f32 to vector<16x16xf32>
    %61 = arith.mulf %58, %60 : vector<16x16xf32>
    %62 = arith.addf %50, %61 : vector<16x16xf32>
    %c1_51 = arith.constant 1 : index
    %c0_52 = arith.constant 0 : index
    %c5_53 = arith.constant 5 : index
    %63 = vector.load %arg11[%c1_51, %c0_52, %c5_53] : memref<4x26x26xf32, #tpu.memory_space<vmem>>, vector<1x16x16xf32>
    %64 = vector.shape_cast %63 : vector<1x16x16xf32> to vector<16x16xf32>
    %c20 = arith.constant 20 : index
    %65 = memref.load %arg8[%c20] : memref<144xf32, #tpu.memory_space<smem>>
    %66 = vector.broadcast %65 : f32 to vector<16x16xf32>
    %67 = arith.mulf %64, %66 : vector<16x16xf32>
    %68 = arith.addf %62, %67 : vector<16x16xf32>
    %c2_54 = arith.constant 2 : index
    %c0_55 = arith.constant 0 : index
    %c5_56 = arith.constant 5 : index
    %69 = vector.load %arg11[%c2_54, %c0_55, %c5_56] : memref<4x26x26xf32, #tpu.memory_space<vmem>>, vector<1x16x16xf32>
    %70 = vector.shape_cast %69 : vector<1x16x16xf32> to vector<16x16xf32>
    %c24 = arith.constant 24 : index
    %71 = memref.load %arg8[%c24] : memref<144xf32, #tpu.memory_space<smem>>
    %72 = vector.broadcast %71 : f32 to vector<16x16xf32>
    %73 = arith.mulf %70, %72 : vector<16x16xf32>
    %74 = arith.addf %68, %73 : vector<16x16xf32>
    %c3_57 = arith.constant 3 : index
    %c0_58 = arith.constant 0 : index
    %c5_59 = arith.constant 5 : index
    %75 = vector.load %arg11[%c3_57, %c0_58, %c5_59] : memref<4x26x26xf32, #tpu.memory_space<vmem>>, vector<1x16x16xf32>
    %76 = vector.shape_cast %75 : vector<1x16x16xf32> to vector<16x16xf32>
    %c28 = arith.constant 28 : index
    %77 = memref.load %arg8[%c28] : memref<144xf32, #tpu.memory_space<smem>>
    %78 = vector.broadcast %77 : f32 to vector<16x16xf32>
    %79 = arith.mulf %76, %78 : vector<16x16xf32>
    %80 = arith.addf %74, %79 : vector<16x16xf32>
    %c0_60 = arith.constant 0 : index
    %c4_61 = arith.constant 4 : index
    %c6 = arith.constant 6 : index
    %81 = vector.load %arg11[%c0_60, %c4_61, %c6] : memref<4x26x26xf32, #tpu.memory_space<vmem>>, vector<1x16x16xf32>
    %82 = vector.shape_cast %81 : vector<1x16x16xf32> to vector<16x16xf32>
    %c8_62 = arith.constant 8 : index
    %83 = memref.load %arg6[%c8_62] : memref<36xf32, #tpu.memory_space<smem>>
    %84 = vector.broadcast %83 : f32 to vector<16x16xf32>
    %85 = arith.mulf %82, %84 : vector<16x16xf32>
    %86 = arith.addf %56, %85 : vector<16x16xf32>
    %c0_63 = arith.constant 0 : index
    %c0_64 = arith.constant 0 : index
    %c10 = arith.constant 10 : index
    %87 = vector.load %arg11[%c0_63, %c0_64, %c10] : memref<4x26x26xf32, #tpu.memory_space<vmem>>, vector<1x16x16xf32>
    %88 = vector.shape_cast %87 : vector<1x16x16xf32> to vector<16x16xf32>
    %c32 = arith.constant 32 : index
    %89 = memref.load %arg8[%c32] : memref<144xf32, #tpu.memory_space<smem>>
    %90 = vector.broadcast %89 : f32 to vector<16x16xf32>
    %91 = arith.mulf %88, %90 : vector<16x16xf32>
    %92 = arith.addf %80, %91 : vector<16x16xf32>
    %c1_65 = arith.constant 1 : index
    %c0_66 = arith.constant 0 : index
    %c10_67 = arith.constant 10 : index
    %93 = vector.load %arg11[%c1_65, %c0_66, %c10_67] : memref<4x26x26xf32, #tpu.memory_space<vmem>>, vector<1x16x16xf32>
    %94 = vector.shape_cast %93 : vector<1x16x16xf32> to vector<16x16xf32>
    %c36 = arith.constant 36 : index
    %95 = memref.load %arg8[%c36] : memref<144xf32, #tpu.memory_space<smem>>
    %96 = vector.broadcast %95 : f32 to vector<16x16xf32>
    %97 = arith.mulf %94, %96 : vector<16x16xf32>
    %98 = arith.addf %92, %97 : vector<16x16xf32>
    %c2_68 = arith.constant 2 : index
    %c0_69 = arith.constant 0 : index
    %c10_70 = arith.constant 10 : index
    %99 = vector.load %arg11[%c2_68, %c0_69, %c10_70] : memref<4x26x26xf32, #tpu.memory_space<vmem>>, vector<1x16x16xf32>
    %100 = vector.shape_cast %99 : vector<1x16x16xf32> to vector<16x16xf32>
    %c40 = arith.constant 40 : index
    %101 = memref.load %arg8[%c40] : memref<144xf32, #tpu.memory_space<smem>>
    %102 = vector.broadcast %101 : f32 to vector<16x16xf32>
    %103 = arith.mulf %100, %102 : vector<16x16xf32>
    %104 = arith.addf %98, %103 : vector<16x16xf32>
    %c3_71 = arith.constant 3 : index
    %c0_72 = arith.constant 0 : index
    %c10_73 = arith.constant 10 : index
    %105 = vector.load %arg11[%c3_71, %c0_72, %c10_73] : memref<4x26x26xf32, #tpu.memory_space<vmem>>, vector<1x16x16xf32>
    %106 = vector.shape_cast %105 : vector<1x16x16xf32> to vector<16x16xf32>
    %c44 = arith.constant 44 : index
    %107 = memref.load %arg8[%c44] : memref<144xf32, #tpu.memory_space<smem>>
    %108 = vector.broadcast %107 : f32 to vector<16x16xf32>
    %109 = arith.mulf %106, %108 : vector<16x16xf32>
    %110 = arith.addf %104, %109 : vector<16x16xf32>
    %c0_74 = arith.constant 0 : index
    %c5_75 = arith.constant 5 : index
    %c4_76 = arith.constant 4 : index
    %111 = vector.load %arg11[%c0_74, %c5_75, %c4_76] : memref<4x26x26xf32, #tpu.memory_space<vmem>>, vector<1x16x16xf32>
    %112 = vector.shape_cast %111 : vector<1x16x16xf32> to vector<16x16xf32>
    %c12_77 = arith.constant 12 : index
    %113 = memref.load %arg6[%c12_77] : memref<36xf32, #tpu.memory_space<smem>>
    %114 = vector.broadcast %113 : f32 to vector<16x16xf32>
    %115 = arith.mulf %112, %114 : vector<16x16xf32>
    %116 = arith.addf %86, %115 : vector<16x16xf32>
    %c0_78 = arith.constant 0 : index
    %c5_79 = arith.constant 5 : index
    %c0_80 = arith.constant 0 : index
    %117 = vector.load %arg11[%c0_78, %c5_79, %c0_80] : memref<4x26x26xf32, #tpu.memory_space<vmem>>, vector<1x16x16xf32>
    %118 = vector.shape_cast %117 : vector<1x16x16xf32> to vector<16x16xf32>
    %c48 = arith.constant 48 : index
    %119 = memref.load %arg8[%c48] : memref<144xf32, #tpu.memory_space<smem>>
    %120 = vector.broadcast %119 : f32 to vector<16x16xf32>
    %121 = arith.mulf %118, %120 : vector<16x16xf32>
    %122 = arith.addf %110, %121 : vector<16x16xf32>
    %c1_81 = arith.constant 1 : index
    %c5_82 = arith.constant 5 : index
    %c0_83 = arith.constant 0 : index
    %123 = vector.load %arg11[%c1_81, %c5_82, %c0_83] : memref<4x26x26xf32, #tpu.memory_space<vmem>>, vector<1x16x16xf32>
    %124 = vector.shape_cast %123 : vector<1x16x16xf32> to vector<16x16xf32>
    %c52 = arith.constant 52 : index
    %125 = memref.load %arg8[%c52] : memref<144xf32, #tpu.memory_space<smem>>
    %126 = vector.broadcast %125 : f32 to vector<16x16xf32>
    %127 = arith.mulf %124, %126 : vector<16x16xf32>
    %128 = arith.addf %122, %127 : vector<16x16xf32>
    %c2_84 = arith.constant 2 : index
    %c5_85 = arith.constant 5 : index
    %c0_86 = arith.constant 0 : index
    %129 = vector.load %arg11[%c2_84, %c5_85, %c0_86] : memref<4x26x26xf32, #tpu.memory_space<vmem>>, vector<1x16x16xf32>
    %130 = vector.shape_cast %129 : vector<1x16x16xf32> to vector<16x16xf32>
    %c56 = arith.constant 56 : index
    %131 = memref.load %arg8[%c56] : memref<144xf32, #tpu.memory_space<smem>>
    %132 = vector.broadcast %131 : f32 to vector<16x16xf32>
    %133 = arith.mulf %130, %132 : vector<16x16xf32>
    %134 = arith.addf %128, %133 : vector<16x16xf32>
    %c3_87 = arith.constant 3 : index
    %c5_88 = arith.constant 5 : index
    %c0_89 = arith.constant 0 : index
    %135 = vector.load %arg11[%c3_87, %c5_88, %c0_89] : memref<4x26x26xf32, #tpu.memory_space<vmem>>, vector<1x16x16xf32>
    %136 = vector.shape_cast %135 : vector<1x16x16xf32> to vector<16x16xf32>
    %c60 = arith.constant 60 : index
    %137 = memref.load %arg8[%c60] : memref<144xf32, #tpu.memory_space<smem>>
    %138 = vector.broadcast %137 : f32 to vector<16x16xf32>
    %139 = arith.mulf %136, %138 : vector<16x16xf32>
    %140 = arith.addf %134, %139 : vector<16x16xf32>
    %c0_90 = arith.constant 0 : index
    %c5_91 = arith.constant 5 : index
    %c5_92 = arith.constant 5 : index
    %141 = vector.load %arg11[%c0_90, %c5_91, %c5_92] : memref<4x26x26xf32, #tpu.memory_space<vmem>>, vector<1x16x16xf32>
    %142 = vector.shape_cast %141 : vector<1x16x16xf32> to vector<16x16xf32>
    %c16_93 = arith.constant 16 : index
    %143 = memref.load %arg6[%c16_93] : memref<36xf32, #tpu.memory_space<smem>>
    %144 = vector.broadcast %143 : f32 to vector<16x16xf32>
    %145 = arith.mulf %142, %144 : vector<16x16xf32>
    %146 = arith.addf %116, %145 : vector<16x16xf32>
    %c0_94 = arith.constant 0 : index
    %c5_95 = arith.constant 5 : index
    %c5_96 = arith.constant 5 : index
    %147 = vector.load %arg11[%c0_94, %c5_95, %c5_96] : memref<4x26x26xf32, #tpu.memory_space<vmem>>, vector<1x16x16xf32>
    %148 = vector.shape_cast %147 : vector<1x16x16xf32> to vector<16x16xf32>
    %c64 = arith.constant 64 : index
    %149 = memref.load %arg8[%c64] : memref<144xf32, #tpu.memory_space<smem>>
    %150 = vector.broadcast %149 : f32 to vector<16x16xf32>
    %151 = arith.mulf %148, %150 : vector<16x16xf32>
    %152 = arith.addf %140, %151 : vector<16x16xf32>
    %c1_97 = arith.constant 1 : index
    %c5_98 = arith.constant 5 : index
    %c5_99 = arith.constant 5 : index
    %153 = vector.load %arg11[%c1_97, %c5_98, %c5_99] : memref<4x26x26xf32, #tpu.memory_space<vmem>>, vector<1x16x16xf32>
    %154 = vector.shape_cast %153 : vector<1x16x16xf32> to vector<16x16xf32>
    %c68 = arith.constant 68 : index
    %155 = memref.load %arg8[%c68] : memref<144xf32, #tpu.memory_space<smem>>
    %156 = vector.broadcast %155 : f32 to vector<16x16xf32>
    %157 = arith.mulf %154, %156 : vector<16x16xf32>
    %158 = arith.addf %152, %157 : vector<16x16xf32>
    %c2_100 = arith.constant 2 : index
    %c5_101 = arith.constant 5 : index
    %c5_102 = arith.constant 5 : index
    %159 = vector.load %arg11[%c2_100, %c5_101, %c5_102] : memref<4x26x26xf32, #tpu.memory_space<vmem>>, vector<1x16x16xf32>
    %160 = vector.shape_cast %159 : vector<1x16x16xf32> to vector<16x16xf32>
    %c72 = arith.constant 72 : index
    %161 = memref.load %arg8[%c72] : memref<144xf32, #tpu.memory_space<smem>>
    %162 = vector.broadcast %161 : f32 to vector<16x16xf32>
    %163 = arith.mulf %160, %162 : vector<16x16xf32>
    %164 = arith.addf %158, %163 : vector<16x16xf32>
    %c3_103 = arith.constant 3 : index
    %c5_104 = arith.constant 5 : index
    %c5_105 = arith.constant 5 : index
    %165 = vector.load %arg11[%c3_103, %c5_104, %c5_105] : memref<4x26x26xf32, #tpu.memory_space<vmem>>, vector<1x16x16xf32>
    %166 = vector.shape_cast %165 : vector<1x16x16xf32> to vector<16x16xf32>
    %c76 = arith.constant 76 : index
    %167 = memref.load %arg8[%c76] : memref<144xf32, #tpu.memory_space<smem>>
    %168 = vector.broadcast %167 : f32 to vector<16x16xf32>
    %169 = arith.mulf %166, %168 : vector<16x16xf32>
    %170 = arith.addf %164, %169 : vector<16x16xf32>
    %c0_106 = arith.constant 0 : index
    %c5_107 = arith.constant 5 : index
    %c6_108 = arith.constant 6 : index
    %171 = vector.load %arg11[%c0_106, %c5_107, %c6_108] : memref<4x26x26xf32, #tpu.memory_space<vmem>>, vector<1x16x16xf32>
    %172 = vector.shape_cast %171 : vector<1x16x16xf32> to vector<16x16xf32>
    %c20_109 = arith.constant 20 : index
    %173 = memref.load %arg6[%c20_109] : memref<36xf32, #tpu.memory_space<smem>>
    %174 = vector.broadcast %173 : f32 to vector<16x16xf32>
    %175 = arith.mulf %172, %174 : vector<16x16xf32>
    %176 = arith.addf %146, %175 : vector<16x16xf32>
    %c0_110 = arith.constant 0 : index
    %c5_111 = arith.constant 5 : index
    %c10_112 = arith.constant 10 : index
    %177 = vector.load %arg11[%c0_110, %c5_111, %c10_112] : memref<4x26x26xf32, #tpu.memory_space<vmem>>, vector<1x16x16xf32>
    %178 = vector.shape_cast %177 : vector<1x16x16xf32> to vector<16x16xf32>
    %c80 = arith.constant 80 : index
    %179 = memref.load %arg8[%c80] : memref<144xf32, #tpu.memory_space<smem>>
    %180 = vector.broadcast %179 : f32 to vector<16x16xf32>
    %181 = arith.mulf %178, %180 : vector<16x16xf32>
    %182 = arith.addf %170, %181 : vector<16x16xf32>
    %c1_113 = arith.constant 1 : index
    %c5_114 = arith.constant 5 : index
    %c10_115 = arith.constant 10 : index
    %183 = vector.load %arg11[%c1_113, %c5_114, %c10_115] : memref<4x26x26xf32, #tpu.memory_space<vmem>>, vector<1x16x16xf32>
    %184 = vector.shape_cast %183 : vector<1x16x16xf32> to vector<16x16xf32>
    %c84 = arith.constant 84 : index
    %185 = memref.load %arg8[%c84] : memref<144xf32, #tpu.memory_space<smem>>
    %186 = vector.broadcast %185 : f32 to vector<16x16xf32>
    %187 = arith.mulf %184, %186 : vector<16x16xf32>
    %188 = arith.addf %182, %187 : vector<16x16xf32>
    %c2_116 = arith.constant 2 : index
    %c5_117 = arith.constant 5 : index
    %c10_118 = arith.constant 10 : index
    %189 = vector.load %arg11[%c2_116, %c5_117, %c10_118] : memref<4x26x26xf32, #tpu.memory_space<vmem>>, vector<1x16x16xf32>
    %190 = vector.shape_cast %189 : vector<1x16x16xf32> to vector<16x16xf32>
    %c88 = arith.constant 88 : index
    %191 = memref.load %arg8[%c88] : memref<144xf32, #tpu.memory_space<smem>>
    %192 = vector.broadcast %191 : f32 to vector<16x16xf32>
    %193 = arith.mulf %190, %192 : vector<16x16xf32>
    %194 = arith.addf %188, %193 : vector<16x16xf32>
    %c3_119 = arith.constant 3 : index
    %c5_120 = arith.constant 5 : index
    %c10_121 = arith.constant 10 : index
    %195 = vector.load %arg11[%c3_119, %c5_120, %c10_121] : memref<4x26x26xf32, #tpu.memory_space<vmem>>, vector<1x16x16xf32>
    %196 = vector.shape_cast %195 : vector<1x16x16xf32> to vector<16x16xf32>
    %c92 = arith.constant 92 : index
    %197 = memref.load %arg8[%c92] : memref<144xf32, #tpu.memory_space<smem>>
    %198 = vector.broadcast %197 : f32 to vector<16x16xf32>
    %199 = arith.mulf %196, %198 : vector<16x16xf32>
    %200 = arith.addf %194, %199 : vector<16x16xf32>
    %c0_122 = arith.constant 0 : index
    %c6_123 = arith.constant 6 : index
    %c4_124 = arith.constant 4 : index
    %201 = vector.load %arg11[%c0_122, %c6_123, %c4_124] : memref<4x26x26xf32, #tpu.memory_space<vmem>>, vector<1x16x16xf32>
    %202 = vector.shape_cast %201 : vector<1x16x16xf32> to vector<16x16xf32>
    %c24_125 = arith.constant 24 : index
    %203 = memref.load %arg6[%c24_125] : memref<36xf32, #tpu.memory_space<smem>>
    %204 = vector.broadcast %203 : f32 to vector<16x16xf32>
    %205 = arith.mulf %202, %204 : vector<16x16xf32>
    %206 = arith.addf %176, %205 : vector<16x16xf32>
    %c0_126 = arith.constant 0 : index
    %c10_127 = arith.constant 10 : index
    %c0_128 = arith.constant 0 : index
    %207 = vector.load %arg11[%c0_126, %c10_127, %c0_128] : memref<4x26x26xf32, #tpu.memory_space<vmem>>, vector<1x16x16xf32>
    %208 = vector.shape_cast %207 : vector<1x16x16xf32> to vector<16x16xf32>
    %c96 = arith.constant 96 : index
    %209 = memref.load %arg8[%c96] : memref<144xf32, #tpu.memory_space<smem>>
    %210 = vector.broadcast %209 : f32 to vector<16x16xf32>
    %211 = arith.mulf %208, %210 : vector<16x16xf32>
    %212 = arith.addf %200, %211 : vector<16x16xf32>
    %c1_129 = arith.constant 1 : index
    %c10_130 = arith.constant 10 : index
    %c0_131 = arith.constant 0 : index
    %213 = vector.load %arg11[%c1_129, %c10_130, %c0_131] : memref<4x26x26xf32, #tpu.memory_space<vmem>>, vector<1x16x16xf32>
    %214 = vector.shape_cast %213 : vector<1x16x16xf32> to vector<16x16xf32>
    %c100 = arith.constant 100 : index
    %215 = memref.load %arg8[%c100] : memref<144xf32, #tpu.memory_space<smem>>
    %216 = vector.broadcast %215 : f32 to vector<16x16xf32>
    %217 = arith.mulf %214, %216 : vector<16x16xf32>
    %218 = arith.addf %212, %217 : vector<16x16xf32>
    %c2_132 = arith.constant 2 : index
    %c10_133 = arith.constant 10 : index
    %c0_134 = arith.constant 0 : index
    %219 = vector.load %arg11[%c2_132, %c10_133, %c0_134] : memref<4x26x26xf32, #tpu.memory_space<vmem>>, vector<1x16x16xf32>
    %220 = vector.shape_cast %219 : vector<1x16x16xf32> to vector<16x16xf32>
    %c104 = arith.constant 104 : index
    %221 = memref.load %arg8[%c104] : memref<144xf32, #tpu.memory_space<smem>>
    %222 = vector.broadcast %221 : f32 to vector<16x16xf32>
    %223 = arith.mulf %220, %222 : vector<16x16xf32>
    %224 = arith.addf %218, %223 : vector<16x16xf32>
    %c3_135 = arith.constant 3 : index
    %c10_136 = arith.constant 10 : index
    %c0_137 = arith.constant 0 : index
    %225 = vector.load %arg11[%c3_135, %c10_136, %c0_137] : memref<4x26x26xf32, #tpu.memory_space<vmem>>, vector<1x16x16xf32>
    %226 = vector.shape_cast %225 : vector<1x16x16xf32> to vector<16x16xf32>
    %c108 = arith.constant 108 : index
    %227 = memref.load %arg8[%c108] : memref<144xf32, #tpu.memory_space<smem>>
    %228 = vector.broadcast %227 : f32 to vector<16x16xf32>
    %229 = arith.mulf %226, %228 : vector<16x16xf32>
    %230 = arith.addf %224, %229 : vector<16x16xf32>
    %c0_138 = arith.constant 0 : index
    %c6_139 = arith.constant 6 : index
    %c5_140 = arith.constant 5 : index
    %231 = vector.load %arg11[%c0_138, %c6_139, %c5_140] : memref<4x26x26xf32, #tpu.memory_space<vmem>>, vector<1x16x16xf32>
    %232 = vector.shape_cast %231 : vector<1x16x16xf32> to vector<16x16xf32>
    %c28_141 = arith.constant 28 : index
    %233 = memref.load %arg6[%c28_141] : memref<36xf32, #tpu.memory_space<smem>>
    %234 = vector.broadcast %233 : f32 to vector<16x16xf32>
    %235 = arith.mulf %232, %234 : vector<16x16xf32>
    %236 = arith.addf %206, %235 : vector<16x16xf32>
    %c0_142 = arith.constant 0 : index
    %c10_143 = arith.constant 10 : index
    %c5_144 = arith.constant 5 : index
    %237 = vector.load %arg11[%c0_142, %c10_143, %c5_144] : memref<4x26x26xf32, #tpu.memory_space<vmem>>, vector<1x16x16xf32>
    %238 = vector.shape_cast %237 : vector<1x16x16xf32> to vector<16x16xf32>
    %c112 = arith.constant 112 : index
    %239 = memref.load %arg8[%c112] : memref<144xf32, #tpu.memory_space<smem>>
    %240 = vector.broadcast %239 : f32 to vector<16x16xf32>
    %241 = arith.mulf %238, %240 : vector<16x16xf32>
    %242 = arith.addf %230, %241 : vector<16x16xf32>
    %c1_145 = arith.constant 1 : index
    %c10_146 = arith.constant 10 : index
    %c5_147 = arith.constant 5 : index
    %243 = vector.load %arg11[%c1_145, %c10_146, %c5_147] : memref<4x26x26xf32, #tpu.memory_space<vmem>>, vector<1x16x16xf32>
    %244 = vector.shape_cast %243 : vector<1x16x16xf32> to vector<16x16xf32>
    %c116 = arith.constant 116 : index
    %245 = memref.load %arg8[%c116] : memref<144xf32, #tpu.memory_space<smem>>
    %246 = vector.broadcast %245 : f32 to vector<16x16xf32>
    %247 = arith.mulf %244, %246 : vector<16x16xf32>
    %248 = arith.addf %242, %247 : vector<16x16xf32>
    %c2_148 = arith.constant 2 : index
    %c10_149 = arith.constant 10 : index
    %c5_150 = arith.constant 5 : index
    %249 = vector.load %arg11[%c2_148, %c10_149, %c5_150] : memref<4x26x26xf32, #tpu.memory_space<vmem>>, vector<1x16x16xf32>
    %250 = vector.shape_cast %249 : vector<1x16x16xf32> to vector<16x16xf32>
    %c120 = arith.constant 120 : index
    %251 = memref.load %arg8[%c120] : memref<144xf32, #tpu.memory_space<smem>>
    %252 = vector.broadcast %251 : f32 to vector<16x16xf32>
    %253 = arith.mulf %250, %252 : vector<16x16xf32>
    %254 = arith.addf %248, %253 : vector<16x16xf32>
    %c3_151 = arith.constant 3 : index
    %c10_152 = arith.constant 10 : index
    %c5_153 = arith.constant 5 : index
    %255 = vector.load %arg11[%c3_151, %c10_152, %c5_153] : memref<4x26x26xf32, #tpu.memory_space<vmem>>, vector<1x16x16xf32>
    %256 = vector.shape_cast %255 : vector<1x16x16xf32> to vector<16x16xf32>
    %c124 = arith.constant 124 : index
    %257 = memref.load %arg8[%c124] : memref<144xf32, #tpu.memory_space<smem>>
    %258 = vector.broadcast %257 : f32 to vector<16x16xf32>
    %259 = arith.mulf %256, %258 : vector<16x16xf32>
    %260 = arith.addf %254, %259 : vector<16x16xf32>
    %c0_154 = arith.constant 0 : index
    %c6_155 = arith.constant 6 : index
    %c6_156 = arith.constant 6 : index
    %261 = vector.load %arg11[%c0_154, %c6_155, %c6_156] : memref<4x26x26xf32, #tpu.memory_space<vmem>>, vector<1x16x16xf32>
    %262 = vector.shape_cast %261 : vector<1x16x16xf32> to vector<16x16xf32>
    %c32_157 = arith.constant 32 : index
    %263 = memref.load %arg6[%c32_157] : memref<36xf32, #tpu.memory_space<smem>>
    %264 = vector.broadcast %263 : f32 to vector<16x16xf32>
    %265 = arith.mulf %262, %264 : vector<16x16xf32>
    %266 = arith.addf %236, %265 : vector<16x16xf32>
    %c0_158 = arith.constant 0 : index
    %c10_159 = arith.constant 10 : index
    %c10_160 = arith.constant 10 : index
    %267 = vector.load %arg11[%c0_158, %c10_159, %c10_160] : memref<4x26x26xf32, #tpu.memory_space<vmem>>, vector<1x16x16xf32>
    %268 = vector.shape_cast %267 : vector<1x16x16xf32> to vector<16x16xf32>
    %c128 = arith.constant 128 : index
    %269 = memref.load %arg8[%c128] : memref<144xf32, #tpu.memory_space<smem>>
    %270 = vector.broadcast %269 : f32 to vector<16x16xf32>
    %271 = arith.mulf %268, %270 : vector<16x16xf32>
    %272 = arith.addf %260, %271 : vector<16x16xf32>
    %c1_161 = arith.constant 1 : index
    %c10_162 = arith.constant 10 : index
    %c10_163 = arith.constant 10 : index
    %273 = vector.load %arg11[%c1_161, %c10_162, %c10_163] : memref<4x26x26xf32, #tpu.memory_space<vmem>>, vector<1x16x16xf32>
    %274 = vector.shape_cast %273 : vector<1x16x16xf32> to vector<16x16xf32>
    %c132 = arith.constant 132 : index
    %275 = memref.load %arg8[%c132] : memref<144xf32, #tpu.memory_space<smem>>
    %276 = vector.broadcast %275 : f32 to vector<16x16xf32>
    %277 = arith.mulf %274, %276 : vector<16x16xf32>
    %278 = arith.addf %272, %277 : vector<16x16xf32>
    %c2_164 = arith.constant 2 : index
    %c10_165 = arith.constant 10 : index
    %c10_166 = arith.constant 10 : index
    %279 = vector.load %arg11[%c2_164, %c10_165, %c10_166] : memref<4x26x26xf32, #tpu.memory_space<vmem>>, vector<1x16x16xf32>
    %280 = vector.shape_cast %279 : vector<1x16x16xf32> to vector<16x16xf32>
    %c136 = arith.constant 136 : index
    %281 = memref.load %arg8[%c136] : memref<144xf32, #tpu.memory_space<smem>>
    %282 = vector.broadcast %281 : f32 to vector<16x16xf32>
    %283 = arith.mulf %280, %282 : vector<16x16xf32>
    %284 = arith.addf %278, %283 : vector<16x16xf32>
    %c3_167 = arith.constant 3 : index
    %c10_168 = arith.constant 10 : index
    %c10_169 = arith.constant 10 : index
    %285 = vector.load %arg11[%c3_167, %c10_168, %c10_169] : memref<4x26x26xf32, #tpu.memory_space<vmem>>, vector<1x16x16xf32>
    %286 = vector.shape_cast %285 : vector<1x16x16xf32> to vector<16x16xf32>
    %c140 = arith.constant 140 : index
    %287 = memref.load %arg8[%c140] : memref<144xf32, #tpu.memory_space<smem>>
    %288 = vector.broadcast %287 : f32 to vector<16x16xf32>
    %289 = arith.mulf %286, %288 : vector<16x16xf32>
    %290 = arith.addf %284, %289 : vector<16x16xf32>
    %c0_170 = arith.constant 0 : index
    %291 = memref.load %arg7[%c0_170] : memref<4xf32, #tpu.memory_space<smem>>
    %292 = vector.broadcast %291 : f32 to vector<16x16xf32>
    %293 = arith.addf %266, %292 : vector<16x16xf32>
    %c0_171 = arith.constant 0 : index
    %294 = memref.load %arg9[%c0_171] : memref<4xf32, #tpu.memory_space<smem>>
    %295 = vector.broadcast %294 : f32 to vector<16x16xf32>
    %296 = arith.addf %290, %295 : vector<16x16xf32>
    %cst_172 = arith.constant 0.000000e+00 : f32
    %297 = vector.broadcast %cst_172 : f32 to vector<16x16xf32>
    %298 = arith.cmpf oge, %293, %297 : vector<16x16xf32>
    %cst_173 = arith.constant 2.000000e-01 : f32
    %299 = vector.broadcast %cst_173 : f32 to vector<16x16xf32>
    %300 = arith.mulf %299, %293 : vector<16x16xf32>
    %301 = arith.select %298, %293, %300 : vector<16x16xi1>, vector<16x16xf32>
    %cst_174 = arith.constant 0.000000e+00 : f32
    %302 = vector.broadcast %cst_174 : f32 to vector<16x16xf32>
    %303 = arith.cmpf oge, %296, %302 : vector<16x16xf32>
    %cst_175 = arith.constant 2.000000e-01 : f32
    %304 = vector.broadcast %cst_175 : f32 to vector<16x16xf32>
    %305 = arith.mulf %304, %296 : vector<16x16xf32>
    %306 = arith.select %303, %296, %305 : vector<16x16xi1>, vector<16x16xf32>
    %307 = arith.subf %301, %306 : vector<16x16xf32>
    %308 = math.absf %307 : vector<16x16xf32>
    %309 = arith.negf %308 : vector<16x16xf32>
    %310 = math.exp %309 : vector<16x16xf32>
    %cst_176 = arith.constant 1.000000e+00 : f32
    %311 = vector.broadcast %cst_176 : f32 to vector<16x16xf32>
    %312 = arith.addf %311, %310 : vector<16x16xf32>
    %313 = arith.divf %311, %312 : vector<16x16xf32>
    %c0_177 = arith.constant 0 : index
    %c0_178 = arith.constant 0 : index
    %c0_179 = arith.constant 0 : index
    %c0_180 = arith.constant 0 : index
    %314 = vector.load %arg5[%c0_177, %c0_178, %c0_179, %c0_180] : memref<1x4x16x16xf32, #tpu.memory_space<vmem>>, vector<1x1x16x16xf32>
    %315 = vector.shape_cast %314 : vector<1x1x16x16xf32> to vector<16x16xf32>
    %316 = arith.addf %313, %315 : vector<16x16xf32>
    %c0_181 = arith.constant 0 : index
    %c0_182 = arith.constant 0 : index
    %c0_183 = arith.constant 0 : index
    %c0_184 = arith.constant 0 : index
    %317 = vector.load %arg2[%c0_181, %c0_182, %c0_183, %c0_184] : memref<1x4x16x16xf32, #tpu.memory_space<vmem>>, vector<1x1x16x16xf32>
    %318 = vector.shape_cast %317 : vector<1x1x16x16xf32> to vector<16x16xf32>
    %319 = arith.mulf %316, %318 : vector<16x16xf32>
    %320 = vector.extract_strided_slice %319 {offsets = [0, 0], sizes = [8, 16], strides = [1, 1]} : vector<16x16xf32> to vector<8x16xf32>
    %cst_185 = arith.constant dense<0xFF800000> : vector<16xf32>
    %321 = vector.multi_reduction <maximumf>, %320, %cst_185 [0] : vector<8x16xf32> to vector<16xf32>
    %322 = vector.shape_cast %321 : vector<16xf32> to vector<1x16xf32>
    %323 = vector.extract_strided_slice %319 {offsets = [8, 0], sizes = [8, 16], strides = [1, 1]} : vector<16x16xf32> to vector<8x16xf32>
    %cst_186 = arith.constant dense<0xFF800000> : vector<16xf32>
    %324 = vector.multi_reduction <maximumf>, %323, %cst_186 [0] : vector<8x16xf32> to vector<16xf32>
    %325 = vector.shape_cast %324 : vector<16xf32> to vector<1x16xf32>
    %326 = tpu.concatenate %322, %325 in 0 : vector<1x16xf32>, vector<1x16xf32> -> vector<2x16xf32>
    %327 = vector.extract_strided_slice %326 {offsets = [0, 0], sizes = [2, 8], strides = [1, 1]} : vector<2x16xf32> to vector<2x8xf32>
    %cst_187 = arith.constant dense<0xFF800000> : vector<2xf32>
    %328 = vector.multi_reduction <maximumf>, %327, %cst_187 [1] : vector<2x8xf32> to vector<2xf32>
    %329 = vector.shape_cast %328 : vector<2xf32> to vector<2x1xf32>
    %330 = vector.extract_strided_slice %326 {offsets = [0, 8], sizes = [2, 8], strides = [1, 1]} : vector<2x16xf32> to vector<2x8xf32>
    %cst_188 = arith.constant dense<0xFF800000> : vector<2xf32>
    %331 = vector.multi_reduction <maximumf>, %330, %cst_188 [1] : vector<2x8xf32> to vector<2xf32>
    %332 = vector.shape_cast %331 : vector<2xf32> to vector<2x1xf32>
    %333 = tpu.concatenate %329, %332 in 1 : vector<2x1xf32>, vector<2x1xf32> -> vector<2x2xf32>
    %c0_189 = arith.constant 0 : index
    %c0_190 = arith.constant 0 : index
    %c0_191 = arith.constant 0 : index
    %c0_192 = arith.constant 0 : index
    %334 = vector.load %arg10[%c0_189, %c0_190, %c0_191, %c0_192] : memref<1x4x2x2xf32, #tpu.memory_space<vmem>>, vector<1x1x2x2xf32>
    %335 = vector.shape_cast %334 : vector<1x1x2x2xf32> to vector<2x2xf32>
    %336 = vector.shape_cast %333 : vector<2x2xf32> to vector<1x1x2x2xf32>
    tpu.vector_store %arg10[%c0_189, %c0_190, %c0_191, %c0_192], %336 {strides = array<i32>} : memref<1x4x2x2xf32, #tpu.memory_space<vmem>>, vector<1x1x2x2xf32>,
    %cst_193 = arith.constant 0.000000e+00 : f32
    %337 = vector.broadcast %cst_193 : f32 to vector<16x16xf32>
    %cst_194 = arith.constant 0.000000e+00 : f32
    %338 = vector.broadcast %cst_194 : f32 to vector<16x16xf32>
    %c1_195 = arith.constant 1 : index
    %c4_196 = arith.constant 4 : index
    %c4_197 = arith.constant 4 : index
    %339 = vector.load %arg11[%c1_195, %c4_196, %c4_197] : memref<4x26x26xf32, #tpu.memory_space<vmem>>, vector<1x16x16xf32>
    %340 = vector.shape_cast %339 : vector<1x16x16xf32> to vector<16x16xf32>
    %c1_198 = arith.constant 1 : index
    %341 = memref.load %arg6[%c1_198] : memref<36xf32, #tpu.memory_space<smem>>
    %342 = vector.broadcast %341 : f32 to vector<16x16xf32>
    %343 = arith.mulf %340, %342 : vector<16x16xf32>
    %344 = arith.addf %337, %343 : vector<16x16xf32>
    %c0_199 = arith.constant 0 : index
    %c0_200 = arith.constant 0 : index
    %c0_201 = arith.constant 0 : index
    %345 = vector.load %arg11[%c0_199, %c0_200, %c0_201] : memref<4x26x26xf32, #tpu.memory_space<vmem>>, vector<1x16x16xf32>
    %346 = vector.shape_cast %345 : vector<1x16x16xf32> to vector<16x16xf32>
    %c1_202 = arith.constant 1 : index
    %347 = memref.load %arg8[%c1_202] : memref<144xf32, #tpu.memory_space<smem>>
    %348 = vector.broadcast %347 : f32 to vector<16x16xf32>
    %349 = arith.mulf %346, %348 : vector<16x16xf32>
    %350 = arith.addf %338, %349 : vector<16x16xf32>
    %c1_203 = arith.constant 1 : index
    %c0_204 = arith.constant 0 : index
    %c0_205 = arith.constant 0 : index
    %351 = vector.load %arg11[%c1_203, %c0_204, %c0_205] : memref<4x26x26xf32, #tpu.memory_space<vmem>>, vector<1x16x16xf32>
    %352 = vector.shape_cast %351 : vector<1x16x16xf32> to vector<16x16xf32>
    %c5_206 = arith.constant 5 : index
    %353 = memref.load %arg8[%c5_206] : memref<144xf32, #tpu.memory_space<smem>>
    %354 = vector.broadcast %353 : f32 to vector<16x16xf32>
    %355 = arith.mulf %352, %354 : vector<16x16xf32>
    %356 = arith.addf %350, %355 : vector<16x16xf32>
    %c2_207 = arith.constant 2 : index
    %c0_208 = arith.constant 0 : index
    %c0_209 = arith.constant 0 : index
    %357 = vector.load %arg11[%c2_207, %c0_208, %c0_209] : memref<4x26x26xf32, #tpu.memory_space<vmem>>, vector<1x16x16xf32>
    %358 = vector.shape_cast %357 : vector<1x16x16xf32> to vector<16x16xf32>
    %c9 = arith.constant 9 : index
    %359 = memref.load %arg8[%c9] : memref<144xf32, #tpu.memory_space<smem>>
    %360 = vector.broadcast %359 : f32 to vector<16x16xf32>
    %361 = arith.mulf %358, %360 : vector<16x16xf32>
    %362 = arith.addf %356, %361 : vector<16x16xf32>
    %c3_210 = arith.constant 3 : index
    %c0_211 = arith.constant 0 : index
    %c0_212 = arith.constant 0 : index
    %363 = vector.load %arg11[%c3_210, %c0_211, %c0_212] : memref<4x26x26xf32, #tpu.memory_space<vmem>>, vector<1x16x16xf32>
    %364 = vector.shape_cast %363 : vector<1x16x16xf32> to vector<16x16xf32>
    %c13 = arith.constant 13 : index
    %365 = memref.load %arg8[%c13] : memref<144xf32, #tpu.memory_space<smem>>
    %366 = vector.broadcast %365 : f32 to vector<16x16xf32>
    %367 = arith.mulf %364, %366 : vector<16x16xf32>
    %368 = arith.addf %362, %367 : vector<16x16xf32>
    %c1_213 = arith.constant 1 : index
    %c4_214 = arith.constant 4 : index
    %c5_215 = arith.constant 5 : index
    %369 = vector.load %arg11[%c1_213, %c4_214, %c5_215] : memref<4x26x26xf32, #tpu.memory_space<vmem>>, vector<1x16x16xf32>
    %370 = vector.shape_cast %369 : vector<1x16x16xf32> to vector<16x16xf32>
    %c5_216 = arith.constant 5 : index
    %371 = memref.load %arg6[%c5_216] : memref<36xf32, #tpu.memory_space<smem>>
    %372 = vector.broadcast %371 : f32 to vector<16x16xf32>
    %373 = arith.mulf %370, %372 : vector<16x16xf32>
    %374 = arith.addf %344, %373 : vector<16x16xf32>
    %c0_217 = arith.constant 0 : index
    %c0_218 = arith.constant 0 : index
    %c5_219 = arith.constant 5 : index
    %375 = vector.load %arg11[%c0_217, %c0_218, %c5_219] : memref<4x26x26xf32, #tpu.memory_space<vmem>>, vector<1x16x16xf32>
    %376 = vector.shape_cast %375 : vector<1x16x16xf32> to vector<16x16xf32>
    %c17 = arith.constant 17 : index
    %377 = memref.load %arg8[%c17] : memref<144xf32, #tpu.memory_space<smem>>
    %378 = vector.broadcast %377 : f32 to vector<16x16xf32>
    %379 = arith.mulf %376, %378 : vector<16x16xf32>
    %380 = arith.addf %368, %379 : vector<16x16xf32>
    %c1_220 = arith.constant 1 : index
    %c0_221 = arith.constant 0 : index
    %c5_222 = arith.constant 5 : index
    %381 = vector.load %arg11[%c1_220, %c0_221, %c5_222] : memref<4x26x26xf32, #tpu.memory_space<vmem>>, vector<1x16x16xf32>
    %382 = vector.shape_cast %381 : vector<1x16x16xf32> to vector<16x16xf32>
    %c21_223 = arith.constant 21 : index
    %383 = memref.load %arg8[%c21_223] : memref<144xf32, #tpu.memory_space<smem>>
    %384 = vector.broadcast %383 : f32 to vector<16x16xf32>
    %385 = arith.mulf %382, %384 : vector<16x16xf32>
    %386 = arith.addf %380, %385 : vector<16x16xf32>
    %c2_224 = arith.constant 2 : index
    %c0_225 = arith.constant 0 : index
    %c5_226 = arith.constant 5 : index
    %387 = vector.load %arg11[%c2_224, %c0_225, %c5_226] : memref<4x26x26xf32, #tpu.memory_space<vmem>>, vector<1x16x16xf32>
    %388 = vector.shape_cast %387 : vector<1x16x16xf32> to vector<16x16xf32>
    %c25 = arith.constant 25 : index
    %389 = memref.load %arg8[%c25] : memref<144xf32, #tpu.memory_space<smem>>
    %390 = vector.broadcast %389 : f32 to vector<16x16xf32>
    %391 = arith.mulf %388, %390 : vector<16x16xf32>
    %392 = arith.addf %386, %391 : vector<16x16xf32>
    %c3_227 = arith.constant 3 : index
    %c0_228 = arith.constant 0 : index
    %c5_229 = arith.constant 5 : index
    %393 = vector.load %arg11[%c3_227, %c0_228, %c5_229] : memref<4x26x26xf32, #tpu.memory_space<vmem>>, vector<1x16x16xf32>
    %394 = vector.shape_cast %393 : vector<1x16x16xf32> to vector<16x16xf32>
    %c29 = arith.constant 29 : index
    %395 = memref.load %arg8[%c29] : memref<144xf32, #tpu.memory_space<smem>>
    %396 = vector.broadcast %395 : f32 to vector<16x16xf32>
    %397 = arith.mulf %394, %396 : vector<16x16xf32>
    %398 = arith.addf %392, %397 : vector<16x16xf32>
    %c1_230 = arith.constant 1 : index
    %c4_231 = arith.constant 4 : index
    %c6_232 = arith.constant 6 : index
    %399 = vector.load %arg11[%c1_230, %c4_231, %c6_232] : memref<4x26x26xf32, #tpu.memory_space<vmem>>, vector<1x16x16xf32>
    %400 = vector.shape_cast %399 : vector<1x16x16xf32> to vector<16x16xf32>
    %c9_233 = arith.constant 9 : index
    %401 = memref.load %arg6[%c9_233] : memref<36xf32, #tpu.memory_space<smem>>
    %402 = vector.broadcast %401 : f32 to vector<16x16xf32>
    %403 = arith.mulf %400, %402 : vector<16x16xf32>
    %404 = arith.addf %374, %403 : vector<16x16xf32>
    %c0_234 = arith.constant 0 : index
    %c0_235 = arith.constant 0 : index
    %c10_236 = arith.constant 10 : index
    %405 = vector.load %arg11[%c0_234, %c0_235, %c10_236] : memref<4x26x26xf32, #tpu.memory_space<vmem>>, vector<1x16x16xf32>
    %406 = vector.shape_cast %405 : vector<1x16x16xf32> to vector<16x16xf32>
    %c33 = arith.constant 33 : index
    %407 = memref.load %arg8[%c33] : memref<144xf32, #tpu.memory_space<smem>>
    %408 = vector.broadcast %407 : f32 to vector<16x16xf32>
    %409 = arith.mulf %406, %408 : vector<16x16xf32>
    %410 = arith.addf %398, %409 : vector<16x16xf32>
    %c1_237 = arith.constant 1 : index
    %c0_238 = arith.constant 0 : index
    %c10_239 = arith.constant 10 : index
    %411 = vector.load %arg11[%c1_237, %c0_238, %c10_239] : memref<4x26x26xf32, #tpu.memory_space<vmem>>, vector<1x16x16xf32>
    %412 = vector.shape_cast %411 : vector<1x16x16xf32> to vector<16x16xf32>
    %c37 = arith.constant 37 : index
    %413 = memref.load %arg8[%c37] : memref<144xf32, #tpu.memory_space<smem>>
    %414 = vector.broadcast %413 : f32 to vector<16x16xf32>
    %415 = arith.mulf %412, %414 : vector<16x16xf32>
    %416 = arith.addf %410, %415 : vector<16x16xf32>
    %c2_240 = arith.constant 2 : index
    %c0_241 = arith.constant 0 : index
    %c10_242 = arith.constant 10 : index
    %417 = vector.load %arg11[%c2_240, %c0_241, %c10_242] : memref<4x26x26xf32, #tpu.memory_space<vmem>>, vector<1x16x16xf32>
    %418 = vector.shape_cast %417 : vector<1x16x16xf32> to vector<16x16xf32>
    %c41 = arith.constant 41 : index
    %419 = memref.load %arg8[%c41] : memref<144xf32, #tpu.memory_space<smem>>
    %420 = vector.broadcast %419 : f32 to vector<16x16xf32>
    %421 = arith.mulf %418, %420 : vector<16x16xf32>
    %422 = arith.addf %416, %421 : vector<16x16xf32>
    %c3_243 = arith.constant 3 : index
    %c0_244 = arith.constant 0 : index
    %c10_245 = arith.constant 10 : index
    %423 = vector.load %arg11[%c3_243, %c0_244, %c10_245] : memref<4x26x26xf32, #tpu.memory_space<vmem>>, vector<1x16x16xf32>
    %424 = vector.shape_cast %423 : vector<1x16x16xf32> to vector<16x16xf32>
    %c45 = arith.constant 45 : index
    %425 = memref.load %arg8[%c45] : memref<144xf32, #tpu.memory_space<smem>>
    %426 = vector.broadcast %425 : f32 to vector<16x16xf32>
    %427 = arith.mulf %424, %426 : vector<16x16xf32>
    %428 = arith.addf %422, %427 : vector<16x16xf32>
    %c1_246 = arith.constant 1 : index
    %c5_247 = arith.constant 5 : index
    %c4_248 = arith.constant 4 : index
    %429 = vector.load %arg11[%c1_246, %c5_247, %c4_248] : memref<4x26x26xf32, #tpu.memory_space<vmem>>, vector<1x16x16xf32>
    %430 = vector.shape_cast %429 : vector<1x16x16xf32> to vector<16x16xf32>
    %c13_249 = arith.constant 13 : index
    %431 = memref.load %arg6[%c13_249] : memref<36xf32, #tpu.memory_space<smem>>
    %432 = vector.broadcast %431 : f32 to vector<16x16xf32>
    %433 = arith.mulf %430, %432 : vector<16x16xf32>
    %434 = arith.addf %404, %433 : vector<16x16xf32>
    %c0_250 = arith.constant 0 : index
    %c5_251 = arith.constant 5 : index
    %c0_252 = arith.constant 0 : index
    %435 = vector.load %arg11[%c0_250, %c5_251, %c0_252] : memref<4x26x26xf32, #tpu.memory_space<vmem>>, vector<1x16x16xf32>
    %436 = vector.shape_cast %435 : vector<1x16x16xf32> to vector<16x16xf32>
    %c49 = arith.constant 49 : index
    %437 = memref.load %arg8[%c49] : memref<144xf32, #tpu.memory_space<smem>>
    %438 = vector.broadcast %437 : f32 to vector<16x16xf32>
    %439 = arith.mulf %436, %438 : vector<16x16xf32>
    %440 = arith.addf %428, %439 : vector<16x16xf32>
    %c1_253 = arith.constant 1 : index
    %c5_254 = arith.constant 5 : index
    %c0_255 = arith.constant 0 : index
    %441 = vector.load %arg11[%c1_253, %c5_254, %c0_255] : memref<4x26x26xf32, #tpu.memory_space<vmem>>, vector<1x16x16xf32>
    %442 = vector.shape_cast %441 : vector<1x16x16xf32> to vector<16x16xf32>
    %c53 = arith.constant 53 : index
    %443 = memref.load %arg8[%c53] : memref<144xf32, #tpu.memory_space<smem>>
    %444 = vector.broadcast %443 : f32 to vector<16x16xf32>
    %445 = arith.mulf %442, %444 : vector<16x16xf32>
    %446 = arith.addf %440, %445 : vector<16x16xf32>
    %c2_256 = arith.constant 2 : index
    %c5_257 = arith.constant 5 : index
    %c0_258 = arith.constant 0 : index
    %447 = vector.load %arg11[%c2_256, %c5_257, %c0_258] : memref<4x26x26xf32, #tpu.memory_space<vmem>>, vector<1x16x16xf32>
    %448 = vector.shape_cast %447 : vector<1x16x16xf32> to vector<16x16xf32>
    %c57 = arith.constant 57 : index
    %449 = memref.load %arg8[%c57] : memref<144xf32, #tpu.memory_space<smem>>
    %450 = vector.broadcast %449 : f32 to vector<16x16xf32>
    %451 = arith.mulf %448, %450 : vector<16x16xf32>
    %452 = arith.addf %446, %451 : vector<16x16xf32>
    %c3_259 = arith.constant 3 : index
    %c5_260 = arith.constant 5 : index
    %c0_261 = arith.constant 0 : index
    %453 = vector.load %arg11[%c3_259, %c5_260, %c0_261] : memref<4x26x26xf32, #tpu.memory_space<vmem>>, vector<1x16x16xf32>
    %454 = vector.shape_cast %453 : vector<1x16x16xf32> to vector<16x16xf32>
    %c61 = arith.constant 61 : index
    %455 = memref.load %arg8[%c61] : memref<144xf32, #tpu.memory_space<smem>>
    %456 = vector.broadcast %455 : f32 to vector<16x16xf32>
    %457 = arith.mulf %454, %456 : vector<16x16xf32>
    %458 = arith.addf %452, %457 : vector<16x16xf32>
    %c1_262 = arith.constant 1 : index
    %c5_263 = arith.constant 5 : index
    %c5_264 = arith.constant 5 : index
    %459 = vector.load %arg11[%c1_262, %c5_263, %c5_264] : memref<4x26x26xf32, #tpu.memory_space<vmem>>, vector<1x16x16xf32>
    %460 = vector.shape_cast %459 : vector<1x16x16xf32> to vector<16x16xf32>
    %c17_265 = arith.constant 17 : index
    %461 = memref.load %arg6[%c17_265] : memref<36xf32, #tpu.memory_space<smem>>
    %462 = vector.broadcast %461 : f32 to vector<16x16xf32>
    %463 = arith.mulf %460, %462 : vector<16x16xf32>
    %464 = arith.addf %434, %463 : vector<16x16xf32>
    %c0_266 = arith.constant 0 : index
    %c5_267 = arith.constant 5 : index
    %c5_268 = arith.constant 5 : index
    %465 = vector.load %arg11[%c0_266, %c5_267, %c5_268] : memref<4x26x26xf32, #tpu.memory_space<vmem>>, vector<1x16x16xf32>
    %466 = vector.shape_cast %465 : vector<1x16x16xf32> to vector<16x16xf32>
    %c65 = arith.constant 65 : index
    %467 = memref.load %arg8[%c65] : memref<144xf32, #tpu.memory_space<smem>>
    %468 = vector.broadcast %467 : f32 to vector<16x16xf32>
    %469 = arith.mulf %466, %468 : vector<16x16xf32>
    %470 = arith.addf %458, %469 : vector<16x16xf32>
    %c1_269 = arith.constant 1 : index
    %c5_270 = arith.constant 5 : index
    %c5_271 = arith.constant 5 : index
    %471 = vector.load %arg11[%c1_269, %c5_270, %c5_271] : memref<4x26x26xf32, #tpu.memory_space<vmem>>, vector<1x16x16xf32>
    %472 = vector.shape_cast %471 : vector<1x16x16xf32> to vector<16x16xf32>
    %c69 = arith.constant 69 : index
    %473 = memref.load %arg8[%c69] : memref<144xf32, #tpu.memory_space<smem>>
    %474 = vector.broadcast %473 : f32 to vector<16x16xf32>
    %475 = arith.mulf %472, %474 : vector<16x16xf32>
    %476 = arith.addf %470, %475 : vector<16x16xf32>
    %c2_272 = arith.constant 2 : index
    %c5_273 = arith.constant 5 : index
    %c5_274 = arith.constant 5 : index
    %477 = vector.load %arg11[%c2_272, %c5_273, %c5_274] : memref<4x26x26xf32, #tpu.memory_space<vmem>>, vector<1x16x16xf32>
    %478 = vector.shape_cast %477 : vector<1x16x16xf32> to vector<16x16xf32>
    %c73 = arith.constant 73 : index
    %479 = memref.load %arg8[%c73] : memref<144xf32, #tpu.memory_space<smem>>
    %480 = vector.broadcast %479 : f32 to vector<16x16xf32>
    %481 = arith.mulf %478, %480 : vector<16x16xf32>
    %482 = arith.addf %476, %481 : vector<16x16xf32>
    %c3_275 = arith.constant 3 : index
    %c5_276 = arith.constant 5 : index
    %c5_277 = arith.constant 5 : index
    %483 = vector.load %arg11[%c3_275, %c5_276, %c5_277] : memref<4x26x26xf32, #tpu.memory_space<vmem>>, vector<1x16x16xf32>
    %484 = vector.shape_cast %483 : vector<1x16x16xf32> to vector<16x16xf32>
    %c77 = arith.constant 77 : index
    %485 = memref.load %arg8[%c77] : memref<144xf32, #tpu.memory_space<smem>>
    %486 = vector.broadcast %485 : f32 to vector<16x16xf32>
    %487 = arith.mulf %484, %486 : vector<16x16xf32>
    %488 = arith.addf %482, %487 : vector<16x16xf32>
    %c1_278 = arith.constant 1 : index
    %c5_279 = arith.constant 5 : index
    %c6_280 = arith.constant 6 : index
    %489 = vector.load %arg11[%c1_278, %c5_279, %c6_280] : memref<4x26x26xf32, #tpu.memory_space<vmem>>, vector<1x16x16xf32>
    %490 = vector.shape_cast %489 : vector<1x16x16xf32> to vector<16x16xf32>
    %c21_281 = arith.constant 21 : index
    %491 = memref.load %arg6[%c21_281] : memref<36xf32, #tpu.memory_space<smem>>
    %492 = vector.broadcast %491 : f32 to vector<16x16xf32>
    %493 = arith.mulf %490, %492 : vector<16x16xf32>
    %494 = arith.addf %464, %493 : vector<16x16xf32>
    %c0_282 = arith.constant 0 : index
    %c5_283 = arith.constant 5 : index
    %c10_284 = arith.constant 10 : index
    %495 = vector.load %arg11[%c0_282, %c5_283, %c10_284] : memref<4x26x26xf32, #tpu.memory_space<vmem>>, vector<1x16x16xf32>
    %496 = vector.shape_cast %495 : vector<1x16x16xf32> to vector<16x16xf32>
    %c81 = arith.constant 81 : index
    %497 = memref.load %arg8[%c81] : memref<144xf32, #tpu.memory_space<smem>>
    %498 = vector.broadcast %497 : f32 to vector<16x16xf32>
    %499 = arith.mulf %496, %498 : vector<16x16xf32>
    %500 = arith.addf %488, %499 : vector<16x16xf32>
    %c1_285 = arith.constant 1 : index
    %c5_286 = arith.constant 5 : index
    %c10_287 = arith.constant 10 : index
    %501 = vector.load %arg11[%c1_285, %c5_286, %c10_287] : memref<4x26x26xf32, #tpu.memory_space<vmem>>, vector<1x16x16xf32>
    %502 = vector.shape_cast %501 : vector<1x16x16xf32> to vector<16x16xf32>
    %c85 = arith.constant 85 : index
    %503 = memref.load %arg8[%c85] : memref<144xf32, #tpu.memory_space<smem>>
    %504 = vector.broadcast %503 : f32 to vector<16x16xf32>
    %505 = arith.mulf %502, %504 : vector<16x16xf32>
    %506 = arith.addf %500, %505 : vector<16x16xf32>
    %c2_288 = arith.constant 2 : index
    %c5_289 = arith.constant 5 : index
    %c10_290 = arith.constant 10 : index
    %507 = vector.load %arg11[%c2_288, %c5_289, %c10_290] : memref<4x26x26xf32, #tpu.memory_space<vmem>>, vector<1x16x16xf32>
    %508 = vector.shape_cast %507 : vector<1x16x16xf32> to vector<16x16xf32>
    %c89 = arith.constant 89 : index
    %509 = memref.load %arg8[%c89] : memref<144xf32, #tpu.memory_space<smem>>
    %510 = vector.broadcast %509 : f32 to vector<16x16xf32>
    %511 = arith.mulf %508, %510 : vector<16x16xf32>
    %512 = arith.addf %506, %511 : vector<16x16xf32>
    %c3_291 = arith.constant 3 : index
    %c5_292 = arith.constant 5 : index
    %c10_293 = arith.constant 10 : index
    %513 = vector.load %arg11[%c3_291, %c5_292, %c10_293] : memref<4x26x26xf32, #tpu.memory_space<vmem>>, vector<1x16x16xf32>
    %514 = vector.shape_cast %513 : vector<1x16x16xf32> to vector<16x16xf32>
    %c93 = arith.constant 93 : index
    %515 = memref.load %arg8[%c93] : memref<144xf32, #tpu.memory_space<smem>>
    %516 = vector.broadcast %515 : f32 to vector<16x16xf32>
    %517 = arith.mulf %514, %516 : vector<16x16xf32>
    %518 = arith.addf %512, %517 : vector<16x16xf32>
    %c1_294 = arith.constant 1 : index
    %c6_295 = arith.constant 6 : index
    %c4_296 = arith.constant 4 : index
    %519 = vector.load %arg11[%c1_294, %c6_295, %c4_296] : memref<4x26x26xf32, #tpu.memory_space<vmem>>, vector<1x16x16xf32>
    %520 = vector.shape_cast %519 : vector<1x16x16xf32> to vector<16x16xf32>
    %c25_297 = arith.constant 25 : index
    %521 = memref.load %arg6[%c25_297] : memref<36xf32, #tpu.memory_space<smem>>
    %522 = vector.broadcast %521 : f32 to vector<16x16xf32>
    %523 = arith.mulf %520, %522 : vector<16x16xf32>
    %524 = arith.addf %494, %523 : vector<16x16xf32>
    %c0_298 = arith.constant 0 : index
    %c10_299 = arith.constant 10 : index
    %c0_300 = arith.constant 0 : index
    %525 = vector.load %arg11[%c0_298, %c10_299, %c0_300] : memref<4x26x26xf32, #tpu.memory_space<vmem>>, vector<1x16x16xf32>
    %526 = vector.shape_cast %525 : vector<1x16x16xf32> to vector<16x16xf32>
    %c97 = arith.constant 97 : index
    %527 = memref.load %arg8[%c97] : memref<144xf32, #tpu.memory_space<smem>>
    %528 = vector.broadcast %527 : f32 to vector<16x16xf32>
    %529 = arith.mulf %526, %528 : vector<16x16xf32>
    %530 = arith.addf %518, %529 : vector<16x16xf32>
    %c1_301 = arith.constant 1 : index
    %c10_302 = arith.constant 10 : index
    %c0_303 = arith.constant 0 : index
    %531 = vector.load %arg11[%c1_301, %c10_302, %c0_303] : memref<4x26x26xf32, #tpu.memory_space<vmem>>, vector<1x16x16xf32>
    %532 = vector.shape_cast %531 : vector<1x16x16xf32> to vector<16x16xf32>
    %c101 = arith.constant 101 : index
    %533 = memref.load %arg8[%c101] : memref<144xf32, #tpu.memory_space<smem>>
    %534 = vector.broadcast %533 : f32 to vector<16x16xf32>
    %535 = arith.mulf %532, %534 : vector<16x16xf32>
    %536 = arith.addf %530, %535 : vector<16x16xf32>
    %c2_304 = arith.constant 2 : index
    %c10_305 = arith.constant 10 : index
    %c0_306 = arith.constant 0 : index
    %537 = vector.load %arg11[%c2_304, %c10_305, %c0_306] : memref<4x26x26xf32, #tpu.memory_space<vmem>>, vector<1x16x16xf32>
    %538 = vector.shape_cast %537 : vector<1x16x16xf32> to vector<16x16xf32>
    %c105 = arith.constant 105 : index
    %539 = memref.load %arg8[%c105] : memref<144xf32, #tpu.memory_space<smem>>
    %540 = vector.broadcast %539 : f32 to vector<16x16xf32>
    %541 = arith.mulf %538, %540 : vector<16x16xf32>
    %542 = arith.addf %536, %541 : vector<16x16xf32>
    %c3_307 = arith.constant 3 : index
    %c10_308 = arith.constant 10 : index
    %c0_309 = arith.constant 0 : index
    %543 = vector.load %arg11[%c3_307, %c10_308, %c0_309] : memref<4x26x26xf32, #tpu.memory_space<vmem>>, vector<1x16x16xf32>
    %544 = vector.shape_cast %543 : vector<1x16x16xf32> to vector<16x16xf32>
    %c109 = arith.constant 109 : index
    %545 = memref.load %arg8[%c109] : memref<144xf32, #tpu.memory_space<smem>>
    %546 = vector.broadcast %545 : f32 to vector<16x16xf32>
    %547 = arith.mulf %544, %546 : vector<16x16xf32>
    %548 = arith.addf %542, %547 : vector<16x16xf32>
    %c1_310 = arith.constant 1 : index
    %c6_311 = arith.constant 6 : index
    %c5_312 = arith.constant 5 : index
    %549 = vector.load %arg11[%c1_310, %c6_311, %c5_312] : memref<4x26x26xf32, #tpu.memory_space<vmem>>, vector<1x16x16xf32>
    %550 = vector.shape_cast %549 : vector<1x16x16xf32> to vector<16x16xf32>
    %c29_313 = arith.constant 29 : index
    %551 = memref.load %arg6[%c29_313] : memref<36xf32, #tpu.memory_space<smem>>
    %552 = vector.broadcast %551 : f32 to vector<16x16xf32>
    %553 = arith.mulf %550, %552 : vector<16x16xf32>
    %554 = arith.addf %524, %553 : vector<16x16xf32>
    %c0_314 = arith.constant 0 : index
    %c10_315 = arith.constant 10 : index
    %c5_316 = arith.constant 5 : index
    %555 = vector.load %arg11[%c0_314, %c10_315, %c5_316] : memref<4x26x26xf32, #tpu.memory_space<vmem>>, vector<1x16x16xf32>
    %556 = vector.shape_cast %555 : vector<1x16x16xf32> to vector<16x16xf32>
    %c113 = arith.constant 113 : index
    %557 = memref.load %arg8[%c113] : memref<144xf32, #tpu.memory_space<smem>>
    %558 = vector.broadcast %557 : f32 to vector<16x16xf32>
    %559 = arith.mulf %556, %558 : vector<16x16xf32>
    %560 = arith.addf %548, %559 : vector<16x16xf32>
    %c1_317 = arith.constant 1 : index
    %c10_318 = arith.constant 10 : index
    %c5_319 = arith.constant 5 : index
    %561 = vector.load %arg11[%c1_317, %c10_318, %c5_319] : memref<4x26x26xf32, #tpu.memory_space<vmem>>, vector<1x16x16xf32>
    %562 = vector.shape_cast %561 : vector<1x16x16xf32> to vector<16x16xf32>
    %c117 = arith.constant 117 : index
    %563 = memref.load %arg8[%c117] : memref<144xf32, #tpu.memory_space<smem>>
    %564 = vector.broadcast %563 : f32 to vector<16x16xf32>
    %565 = arith.mulf %562, %564 : vector<16x16xf32>
    %566 = arith.addf %560, %565 : vector<16x16xf32>
    %c2_320 = arith.constant 2 : index
    %c10_321 = arith.constant 10 : index
    %c5_322 = arith.constant 5 : index
    %567 = vector.load %arg11[%c2_320, %c10_321, %c5_322] : memref<4x26x26xf32, #tpu.memory_space<vmem>>, vector<1x16x16xf32>
    %568 = vector.shape_cast %567 : vector<1x16x16xf32> to vector<16x16xf32>
    %c121 = arith.constant 121 : index
    %569 = memref.load %arg8[%c121] : memref<144xf32, #tpu.memory_space<smem>>
    %570 = vector.broadcast %569 : f32 to vector<16x16xf32>
    %571 = arith.mulf %568, %570 : vector<16x16xf32>
    %572 = arith.addf %566, %571 : vector<16x16xf32>
    %c3_323 = arith.constant 3 : index
    %c10_324 = arith.constant 10 : index
    %c5_325 = arith.constant 5 : index
    %573 = vector.load %arg11[%c3_323, %c10_324, %c5_325] : memref<4x26x26xf32, #tpu.memory_space<vmem>>, vector<1x16x16xf32>
    %574 = vector.shape_cast %573 : vector<1x16x16xf32> to vector<16x16xf32>
    %c125 = arith.constant 125 : index
    %575 = memref.load %arg8[%c125] : memref<144xf32, #tpu.memory_space<smem>>
    %576 = vector.broadcast %575 : f32 to vector<16x16xf32>
    %577 = arith.mulf %574, %576 : vector<16x16xf32>
    %578 = arith.addf %572, %577 : vector<16x16xf32>
    %c1_326 = arith.constant 1 : index
    %c6_327 = arith.constant 6 : index
    %c6_328 = arith.constant 6 : index
    %579 = vector.load %arg11[%c1_326, %c6_327, %c6_328] : memref<4x26x26xf32, #tpu.memory_space<vmem>>, vector<1x16x16xf32>
    %580 = vector.shape_cast %579 : vector<1x16x16xf32> to vector<16x16xf32>
    %c33_329 = arith.constant 33 : index
    %581 = memref.load %arg6[%c33_329] : memref<36xf32, #tpu.memory_space<smem>>
    %582 = vector.broadcast %581 : f32 to vector<16x16xf32>
    %583 = arith.mulf %580, %582 : vector<16x16xf32>
    %584 = arith.addf %554, %583 : vector<16x16xf32>
    %c0_330 = arith.constant 0 : index
    %c10_331 = arith.constant 10 : index
    %c10_332 = arith.constant 10 : index
    %585 = vector.load %arg11[%c0_330, %c10_331, %c10_332] : memref<4x26x26xf32, #tpu.memory_space<vmem>>, vector<1x16x16xf32>
    %586 = vector.shape_cast %585 : vector<1x16x16xf32> to vector<16x16xf32>
    %c129 = arith.constant 129 : index
    %587 = memref.load %arg8[%c129] : memref<144xf32, #tpu.memory_space<smem>>
    %588 = vector.broadcast %587 : f32 to vector<16x16xf32>
    %589 = arith.mulf %586, %588 : vector<16x16xf32>
    %590 = arith.addf %578, %589 : vector<16x16xf32>
    %c1_333 = arith.constant 1 : index
    %c10_334 = arith.constant 10 : index
    %c10_335 = arith.constant 10 : index
    %591 = vector.load %arg11[%c1_333, %c10_334, %c10_335] : memref<4x26x26xf32, #tpu.memory_space<vmem>>, vector<1x16x16xf32>
    %592 = vector.shape_cast %591 : vector<1x16x16xf32> to vector<16x16xf32>
    %c133 = arith.constant 133 : index
    %593 = memref.load %arg8[%c133] : memref<144xf32, #tpu.memory_space<smem>>
    %594 = vector.broadcast %593 : f32 to vector<16x16xf32>
    %595 = arith.mulf %592, %594 : vector<16x16xf32>
    %596 = arith.addf %590, %595 : vector<16x16xf32>
    %c2_336 = arith.constant 2 : index
    %c10_337 = arith.constant 10 : index
    %c10_338 = arith.constant 10 : index
    %597 = vector.load %arg11[%c2_336, %c10_337, %c10_338] : memref<4x26x26xf32, #tpu.memory_space<vmem>>, vector<1x16x16xf32>
    %598 = vector.shape_cast %597 : vector<1x16x16xf32> to vector<16x16xf32>
    %c137 = arith.constant 137 : index
    %599 = memref.load %arg8[%c137] : memref<144xf32, #tpu.memory_space<smem>>
    %600 = vector.broadcast %599 : f32 to vector<16x16xf32>
    %601 = arith.mulf %598, %600 : vector<16x16xf32>
    %602 = arith.addf %596, %601 : vector<16x16xf32>
    %c3_339 = arith.constant 3 : index
    %c10_340 = arith.constant 10 : index
    %c10_341 = arith.constant 10 : index
    %603 = vector.load %arg11[%c3_339, %c10_340, %c10_341] : memref<4x26x26xf32, #tpu.memory_space<vmem>>, vector<1x16x16xf32>
    %604 = vector.shape_cast %603 : vector<1x16x16xf32> to vector<16x16xf32>
    %c141 = arith.constant 141 : index
    %605 = memref.load %arg8[%c141] : memref<144xf32, #tpu.memory_space<smem>>
    %606 = vector.broadcast %605 : f32 to vector<16x16xf32>
    %607 = arith.mulf %604, %606 : vector<16x16xf32>
    %608 = arith.addf %602, %607 : vector<16x16xf32>
    %c1_342 = arith.constant 1 : index
    %609 = memref.load %arg7[%c1_342] : memref<4xf32, #tpu.memory_space<smem>>
    %610 = vector.broadcast %609 : f32 to vector<16x16xf32>
    %611 = arith.addf %584, %610 : vector<16x16xf32>
    %c1_343 = arith.constant 1 : index
    %612 = memref.load %arg9[%c1_343] : memref<4xf32, #tpu.memory_space<smem>>
    %613 = vector.broadcast %612 : f32 to vector<16x16xf32>
    %614 = arith.addf %608, %613 : vector<16x16xf32>
    %cst_344 = arith.constant 0.000000e+00 : f32
    %615 = vector.broadcast %cst_344 : f32 to vector<16x16xf32>
    %616 = arith.cmpf oge, %611, %615 : vector<16x16xf32>
    %cst_345 = arith.constant 2.000000e-01 : f32
    %617 = vector.broadcast %cst_345 : f32 to vector<16x16xf32>
    %618 = arith.mulf %617, %611 : vector<16x16xf32>
    %619 = arith.select %616, %611, %618 : vector<16x16xi1>, vector<16x16xf32>
    %cst_346 = arith.constant 0.000000e+00 : f32
    %620 = vector.broadcast %cst_346 : f32 to vector<16x16xf32>
    %621 = arith.cmpf oge, %614, %620 : vector<16x16xf32>
    %cst_347 = arith.constant 2.000000e-01 : f32
    %622 = vector.broadcast %cst_347 : f32 to vector<16x16xf32>
    %623 = arith.mulf %622, %614 : vector<16x16xf32>
    %624 = arith.select %621, %614, %623 : vector<16x16xi1>, vector<16x16xf32>
    %625 = arith.subf %619, %624 : vector<16x16xf32>
    %626 = math.absf %625 : vector<16x16xf32>
    %627 = arith.negf %626 : vector<16x16xf32>
    %628 = math.exp %627 : vector<16x16xf32>
    %cst_348 = arith.constant 1.000000e+00 : f32
    %629 = vector.broadcast %cst_348 : f32 to vector<16x16xf32>
    %630 = arith.addf %629, %628 : vector<16x16xf32>
    %631 = arith.divf %629, %630 : vector<16x16xf32>
    %c0_349 = arith.constant 0 : index
    %c1_350 = arith.constant 1 : index
    %c0_351 = arith.constant 0 : index
    %c0_352 = arith.constant 0 : index
    %632 = vector.load %arg5[%c0_349, %c1_350, %c0_351, %c0_352] : memref<1x4x16x16xf32, #tpu.memory_space<vmem>>, vector<1x1x16x16xf32>
    %633 = vector.shape_cast %632 : vector<1x1x16x16xf32> to vector<16x16xf32>
    %634 = arith.addf %631, %633 : vector<16x16xf32>
    %c0_353 = arith.constant 0 : index
    %c1_354 = arith.constant 1 : index
    %c0_355 = arith.constant 0 : index
    %c0_356 = arith.constant 0 : index
    %635 = vector.load %arg2[%c0_353, %c1_354, %c0_355, %c0_356] : memref<1x4x16x16xf32, #tpu.memory_space<vmem>>, vector<1x1x16x16xf32>
    %636 = vector.shape_cast %635 : vector<1x1x16x16xf32> to vector<16x16xf32>
    %637 = arith.mulf %634, %636 : vector<16x16xf32>
    %638 = vector.extract_strided_slice %637 {offsets = [0, 0], sizes = [8, 16], strides = [1, 1]} : vector<16x16xf32> to vector<8x16xf32>
    %cst_357 = arith.constant dense<0xFF800000> : vector<16xf32>
    %639 = vector.multi_reduction <maximumf>, %638, %cst_357 [0] : vector<8x16xf32> to vector<16xf32>
    %640 = vector.shape_cast %639 : vector<16xf32> to vector<1x16xf32>
    %641 = vector.extract_strided_slice %637 {offsets = [8, 0], sizes = [8, 16], strides = [1, 1]} : vector<16x16xf32> to vector<8x16xf32>
    %cst_358 = arith.constant dense<0xFF800000> : vector<16xf32>
    %642 = vector.multi_reduction <maximumf>, %641, %cst_358 [0] : vector<8x16xf32> to vector<16xf32>
    %643 = vector.shape_cast %642 : vector<16xf32> to vector<1x16xf32>
    %644 = tpu.concatenate %640, %643 in 0 : vector<1x16xf32>, vector<1x16xf32> -> vector<2x16xf32>
    %645 = vector.extract_strided_slice %644 {offsets = [0, 0], sizes = [2, 8], strides = [1, 1]} : vector<2x16xf32> to vector<2x8xf32>
    %cst_359 = arith.constant dense<0xFF800000> : vector<2xf32>
    %646 = vector.multi_reduction <maximumf>, %645, %cst_359 [1] : vector<2x8xf32> to vector<2xf32>
    %647 = vector.shape_cast %646 : vector<2xf32> to vector<2x1xf32>
    %648 = vector.extract_strided_slice %644 {offsets = [0, 8], sizes = [2, 8], strides = [1, 1]} : vector<2x16xf32> to vector<2x8xf32>
    %cst_360 = arith.constant dense<0xFF800000> : vector<2xf32>
    %649 = vector.multi_reduction <maximumf>, %648, %cst_360 [1] : vector<2x8xf32> to vector<2xf32>
    %650 = vector.shape_cast %649 : vector<2xf32> to vector<2x1xf32>
    %651 = tpu.concatenate %647, %650 in 1 : vector<2x1xf32>, vector<2x1xf32> -> vector<2x2xf32>
    %c0_361 = arith.constant 0 : index
    %c1_362 = arith.constant 1 : index
    %c0_363 = arith.constant 0 : index
    %c0_364 = arith.constant 0 : index
    %652 = vector.load %arg10[%c0_361, %c1_362, %c0_363, %c0_364] : memref<1x4x2x2xf32, #tpu.memory_space<vmem>>, vector<1x1x2x2xf32>
    %653 = vector.shape_cast %652 : vector<1x1x2x2xf32> to vector<2x2xf32>
    %654 = vector.shape_cast %651 : vector<2x2xf32> to vector<1x1x2x2xf32>
    tpu.vector_store %arg10[%c0_361, %c1_362, %c0_363, %c0_364], %654 {strides = array<i32>} : memref<1x4x2x2xf32, #tpu.memory_space<vmem>>, vector<1x1x2x2xf32>,
    %cst_365 = arith.constant 0.000000e+00 : f32
    %655 = vector.broadcast %cst_365 : f32 to vector<16x16xf32>
    %cst_366 = arith.constant 0.000000e+00 : f32
    %656 = vector.broadcast %cst_366 : f32 to vector<16x16xf32>
    %c2_367 = arith.constant 2 : index
    %c4_368 = arith.constant 4 : index
    %c4_369 = arith.constant 4 : index
    %657 = vector.load %arg11[%c2_367, %c4_368, %c4_369] : memref<4x26x26xf32, #tpu.memory_space<vmem>>, vector<1x16x16xf32>
    %658 = vector.shape_cast %657 : vector<1x16x16xf32> to vector<16x16xf32>
    %c2_370 = arith.constant 2 : index
    %659 = memref.load %arg6[%c2_370] : memref<36xf32, #tpu.memory_space<smem>>
    %660 = vector.broadcast %659 : f32 to vector<16x16xf32>
    %661 = arith.mulf %658, %660 : vector<16x16xf32>
    %662 = arith.addf %655, %661 : vector<16x16xf32>
    %c0_371 = arith.constant 0 : index
    %c0_372 = arith.constant 0 : index
    %c0_373 = arith.constant 0 : index
    %663 = vector.load %arg11[%c0_371, %c0_372, %c0_373] : memref<4x26x26xf32, #tpu.memory_space<vmem>>, vector<1x16x16xf32>
    %664 = vector.shape_cast %663 : vector<1x16x16xf32> to vector<16x16xf32>
    %c2_374 = arith.constant 2 : index
    %665 = memref.load %arg8[%c2_374] : memref<144xf32, #tpu.memory_space<smem>>
    %666 = vector.broadcast %665 : f32 to vector<16x16xf32>
    %667 = arith.mulf %664, %666 : vector<16x16xf32>
    %668 = arith.addf %656, %667 : vector<16x16xf32>
    %c1_375 = arith.constant 1 : index
    %c0_376 = arith.constant 0 : index
    %c0_377 = arith.constant 0 : index
    %669 = vector.load %arg11[%c1_375, %c0_376, %c0_377] : memref<4x26x26xf32, #tpu.memory_space<vmem>>, vector<1x16x16xf32>
    %670 = vector.shape_cast %669 : vector<1x16x16xf32> to vector<16x16xf32>
    %c6_378 = arith.constant 6 : index
    %671 = memref.load %arg8[%c6_378] : memref<144xf32, #tpu.memory_space<smem>>
    %672 = vector.broadcast %671 : f32 to vector<16x16xf32>
    %673 = arith.mulf %670, %672 : vector<16x16xf32>
    %674 = arith.addf %668, %673 : vector<16x16xf32>
    %c2_379 = arith.constant 2 : index
    %c0_380 = arith.constant 0 : index
    %c0_381 = arith.constant 0 : index
    %675 = vector.load %arg11[%c2_379, %c0_380, %c0_381] : memref<4x26x26xf32, #tpu.memory_space<vmem>>, vector<1x16x16xf32>
    %676 = vector.shape_cast %675 : vector<1x16x16xf32> to vector<16x16xf32>
    %c10_382 = arith.constant 10 : index
    %677 = memref.load %arg8[%c10_382] : memref<144xf32, #tpu.memory_space<smem>>
    %678 = vector.broadcast %677 : f32 to vector<16x16xf32>
    %679 = arith.mulf %676, %678 : vector<16x16xf32>
    %680 = arith.addf %674, %679 : vector<16x16xf32>
    %c3_383 = arith.constant 3 : index
    %c0_384 = arith.constant 0 : index
    %c0_385 = arith.constant 0 : index
    %681 = vector.load %arg11[%c3_383, %c0_384, %c0_385] : memref<4x26x26xf32, #tpu.memory_space<vmem>>, vector<1x16x16xf32>
    %682 = vector.shape_cast %681 : vector<1x16x16xf32> to vector<16x16xf32>
    %c14 = arith.constant 14 : index
    %683 = memref.load %arg8[%c14] : memref<144xf32, #tpu.memory_space<smem>>
    %684 = vector.broadcast %683 : f32 to vector<16x16xf32>
    %685 = arith.mulf %682, %684 : vector<16x16xf32>
    %686 = arith.addf %680, %685 : vector<16x16xf32>
    %c2_386 = arith.constant 2 : index
    %c4_387 = arith.constant 4 : index
    %c5_388 = arith.constant 5 : index
    %687 = vector.load %arg11[%c2_386, %c4_387, %c5_388] : memref<4x26x26xf32, #tpu.memory_space<vmem>>, vector<1x16x16xf32>
    %688 = vector.shape_cast %687 : vector<1x16x16xf32> to vector<16x16xf32>
    %c6_389 = arith.constant 6 : index
    %689 = memref.load %arg6[%c6_389] : memref<36xf32, #tpu.memory_space<smem>>
    %690 = vector.broadcast %689 : f32 to vector<16x16xf32>
    %691 = arith.mulf %688, %690 : vector<16x16xf32>
    %692 = arith.addf %662, %691 : vector<16x16xf32>
    %c0_390 = arith.constant 0 : index
    %c0_391 = arith.constant 0 : index
    %c5_392 = arith.constant 5 : index
    %693 = vector.load %arg11[%c0_390, %c0_391, %c5_392] : memref<4x26x26xf32, #tpu.memory_space<vmem>>, vector<1x16x16xf32>
    %694 = vector.shape_cast %693 : vector<1x16x16xf32> to vector<16x16xf32>
    %c18 = arith.constant 18 : index
    %695 = memref.load %arg8[%c18] : memref<144xf32, #tpu.memory_space<smem>>
    %696 = vector.broadcast %695 : f32 to vector<16x16xf32>
    %697 = arith.mulf %694, %696 : vector<16x16xf32>
    %698 = arith.addf %686, %697 : vector<16x16xf32>
    %c1_393 = arith.constant 1 : index
    %c0_394 = arith.constant 0 : index
    %c5_395 = arith.constant 5 : index
    %699 = vector.load %arg11[%c1_393, %c0_394, %c5_395] : memref<4x26x26xf32, #tpu.memory_space<vmem>>, vector<1x16x16xf32>
    %700 = vector.shape_cast %699 : vector<1x16x16xf32> to vector<16x16xf32>
    %c22 = arith.constant 22 : index
    %701 = memref.load %arg8[%c22] : memref<144xf32, #tpu.memory_space<smem>>
    %702 = vector.broadcast %701 : f32 to vector<16x16xf32>
    %703 = arith.mulf %700, %702 : vector<16x16xf32>
    %704 = arith.addf %698, %703 : vector<16x16xf32>
    %c2_396 = arith.constant 2 : index
    %c0_397 = arith.constant 0 : index
    %c5_398 = arith.constant 5 : index
    %705 = vector.load %arg11[%c2_396, %c0_397, %c5_398] : memref<4x26x26xf32, #tpu.memory_space<vmem>>, vector<1x16x16xf32>
    %706 = vector.shape_cast %705 : vector<1x16x16xf32> to vector<16x16xf32>
    %c26 = arith.constant 26 : index
    %707 = memref.load %arg8[%c26] : memref<144xf32, #tpu.memory_space<smem>>
    %708 = vector.broadcast %707 : f32 to vector<16x16xf32>
    %709 = arith.mulf %706, %708 : vector<16x16xf32>
    %710 = arith.addf %704, %709 : vector<16x16xf32>
    %c3_399 = arith.constant 3 : index
    %c0_400 = arith.constant 0 : index
    %c5_401 = arith.constant 5 : index
    %711 = vector.load %arg11[%c3_399, %c0_400, %c5_401] : memref<4x26x26xf32, #tpu.memory_space<vmem>>, vector<1x16x16xf32>
    %712 = vector.shape_cast %711 : vector<1x16x16xf32> to vector<16x16xf32>
    %c30 = arith.constant 30 : index
    %713 = memref.load %arg8[%c30] : memref<144xf32, #tpu.memory_space<smem>>
    %714 = vector.broadcast %713 : f32 to vector<16x16xf32>
    %715 = arith.mulf %712, %714 : vector<16x16xf32>
    %716 = arith.addf %710, %715 : vector<16x16xf32>
    %c2_402 = arith.constant 2 : index
    %c4_403 = arith.constant 4 : index
    %c6_404 = arith.constant 6 : index
    %717 = vector.load %arg11[%c2_402, %c4_403, %c6_404] : memref<4x26x26xf32, #tpu.memory_space<vmem>>, vector<1x16x16xf32>
    %718 = vector.shape_cast %717 : vector<1x16x16xf32> to vector<16x16xf32>
    %c10_405 = arith.constant 10 : index
    %719 = memref.load %arg6[%c10_405] : memref<36xf32, #tpu.memory_space<smem>>
    %720 = vector.broadcast %719 : f32 to vector<16x16xf32>
    %721 = arith.mulf %718, %720 : vector<16x16xf32>
    %722 = arith.addf %692, %721 : vector<16x16xf32>
    %c0_406 = arith.constant 0 : index
    %c0_407 = arith.constant 0 : index
    %c10_408 = arith.constant 10 : index
    %723 = vector.load %arg11[%c0_406, %c0_407, %c10_408] : memref<4x26x26xf32, #tpu.memory_space<vmem>>, vector<1x16x16xf32>
    %724 = vector.shape_cast %723 : vector<1x16x16xf32> to vector<16x16xf32>
    %c34 = arith.constant 34 : index
    %725 = memref.load %arg8[%c34] : memref<144xf32, #tpu.memory_space<smem>>
    %726 = vector.broadcast %725 : f32 to vector<16x16xf32>
    %727 = arith.mulf %724, %726 : vector<16x16xf32>
    %728 = arith.addf %716, %727 : vector<16x16xf32>
    %c1_409 = arith.constant 1 : index
    %c0_410 = arith.constant 0 : index
    %c10_411 = arith.constant 10 : index
    %729 = vector.load %arg11[%c1_409, %c0_410, %c10_411] : memref<4x26x26xf32, #tpu.memory_space<vmem>>, vector<1x16x16xf32>
    %730 = vector.shape_cast %729 : vector<1x16x16xf32> to vector<16x16xf32>
    %c38 = arith.constant 38 : index
    %731 = memref.load %arg8[%c38] : memref<144xf32, #tpu.memory_space<smem>>
    %732 = vector.broadcast %731 : f32 to vector<16x16xf32>
    %733 = arith.mulf %730, %732 : vector<16x16xf32>
    %734 = arith.addf %728, %733 : vector<16x16xf32>
    %c2_412 = arith.constant 2 : index
    %c0_413 = arith.constant 0 : index
    %c10_414 = arith.constant 10 : index
    %735 = vector.load %arg11[%c2_412, %c0_413, %c10_414] : memref<4x26x26xf32, #tpu.memory_space<vmem>>, vector<1x16x16xf32>
    %736 = vector.shape_cast %735 : vector<1x16x16xf32> to vector<16x16xf32>
    %c42 = arith.constant 42 : index
    %737 = memref.load %arg8[%c42] : memref<144xf32, #tpu.memory_space<smem>>
    %738 = vector.broadcast %737 : f32 to vector<16x16xf32>
    %739 = arith.mulf %736, %738 : vector<16x16xf32>
    %740 = arith.addf %734, %739 : vector<16x16xf32>
    %c3_415 = arith.constant 3 : index
    %c0_416 = arith.constant 0 : index
    %c10_417 = arith.constant 10 : index
    %741 = vector.load %arg11[%c3_415, %c0_416, %c10_417] : memref<4x26x26xf32, #tpu.memory_space<vmem>>, vector<1x16x16xf32>
    %742 = vector.shape_cast %741 : vector<1x16x16xf32> to vector<16x16xf32>
    %c46 = arith.constant 46 : index
    %743 = memref.load %arg8[%c46] : memref<144xf32, #tpu.memory_space<smem>>
    %744 = vector.broadcast %743 : f32 to vector<16x16xf32>
    %745 = arith.mulf %742, %744 : vector<16x16xf32>
    %746 = arith.addf %740, %745 : vector<16x16xf32>
    %c2_418 = arith.constant 2 : index
    %c5_419 = arith.constant 5 : index
    %c4_420 = arith.constant 4 : index
    %747 = vector.load %arg11[%c2_418, %c5_419, %c4_420] : memref<4x26x26xf32, #tpu.memory_space<vmem>>, vector<1x16x16xf32>
    %748 = vector.shape_cast %747 : vector<1x16x16xf32> to vector<16x16xf32>
    %c14_421 = arith.constant 14 : index
    %749 = memref.load %arg6[%c14_421] : memref<36xf32, #tpu.memory_space<smem>>
    %750 = vector.broadcast %749 : f32 to vector<16x16xf32>
    %751 = arith.mulf %748, %750 : vector<16x16xf32>
    %752 = arith.addf %722, %751 : vector<16x16xf32>
    %c0_422 = arith.constant 0 : index
    %c5_423 = arith.constant 5 : index
    %c0_424 = arith.constant 0 : index
    %753 = vector.load %arg11[%c0_422, %c5_423, %c0_424] : memref<4x26x26xf32, #tpu.memory_space<vmem>>, vector<1x16x16xf32>
    %754 = vector.shape_cast %753 : vector<1x16x16xf32> to vector<16x16xf32>
    %c50 = arith.constant 50 : index
    %755 = memref.load %arg8[%c50] : memref<144xf32, #tpu.memory_space<smem>>
    %756 = vector.broadcast %755 : f32 to vector<16x16xf32>
    %757 = arith.mulf %754, %756 : vector<16x16xf32>
    %758 = arith.addf %746, %757 : vector<16x16xf32>
    %c1_425 = arith.constant 1 : index
    %c5_426 = arith.constant 5 : index
    %c0_427 = arith.constant 0 : index
    %759 = vector.load %arg11[%c1_425, %c5_426, %c0_427] : memref<4x26x26xf32, #tpu.memory_space<vmem>>, vector<1x16x16xf32>
    %760 = vector.shape_cast %759 : vector<1x16x16xf32> to vector<16x16xf32>
    %c54 = arith.constant 54 : index
    %761 = memref.load %arg8[%c54] : memref<144xf32, #tpu.memory_space<smem>>
    %762 = vector.broadcast %761 : f32 to vector<16x16xf32>
    %763 = arith.mulf %760, %762 : vector<16x16xf32>
    %764 = arith.addf %758, %763 : vector<16x16xf32>
    %c2_428 = arith.constant 2 : index
    %c5_429 = arith.constant 5 : index
    %c0_430 = arith.constant 0 : index
    %765 = vector.load %arg11[%c2_428, %c5_429, %c0_430] : memref<4x26x26xf32, #tpu.memory_space<vmem>>, vector<1x16x16xf32>
    %766 = vector.shape_cast %765 : vector<1x16x16xf32> to vector<16x16xf32>
    %c58 = arith.constant 58 : index
    %767 = memref.load %arg8[%c58] : memref<144xf32, #tpu.memory_space<smem>>
    %768 = vector.broadcast %767 : f32 to vector<16x16xf32>
    %769 = arith.mulf %766, %768 : vector<16x16xf32>
    %770 = arith.addf %764, %769 : vector<16x16xf32>
    %c3_431 = arith.constant 3 : index
    %c5_432 = arith.constant 5 : index
    %c0_433 = arith.constant 0 : index
    %771 = vector.load %arg11[%c3_431, %c5_432, %c0_433] : memref<4x26x26xf32, #tpu.memory_space<vmem>>, vector<1x16x16xf32>
    %772 = vector.shape_cast %771 : vector<1x16x16xf32> to vector<16x16xf32>
    %c62 = arith.constant 62 : index
    %773 = memref.load %arg8[%c62] : memref<144xf32, #tpu.memory_space<smem>>
    %774 = vector.broadcast %773 : f32 to vector<16x16xf32>
    %775 = arith.mulf %772, %774 : vector<16x16xf32>
    %776 = arith.addf %770, %775 : vector<16x16xf32>
    %c2_434 = arith.constant 2 : index
    %c5_435 = arith.constant 5 : index
    %c5_436 = arith.constant 5 : index
    %777 = vector.load %arg11[%c2_434, %c5_435, %c5_436] : memref<4x26x26xf32, #tpu.memory_space<vmem>>, vector<1x16x16xf32>
    %778 = vector.shape_cast %777 : vector<1x16x16xf32> to vector<16x16xf32>
    %c18_437 = arith.constant 18 : index
    %779 = memref.load %arg6[%c18_437] : memref<36xf32, #tpu.memory_space<smem>>
    %780 = vector.broadcast %779 : f32 to vector<16x16xf32>
    %781 = arith.mulf %778, %780 : vector<16x16xf32>
    %782 = arith.addf %752, %781 : vector<16x16xf32>
    %c0_438 = arith.constant 0 : index
    %c5_439 = arith.constant 5 : index
    %c5_440 = arith.constant 5 : index
    %783 = vector.load %arg11[%c0_438, %c5_439, %c5_440] : memref<4x26x26xf32, #tpu.memory_space<vmem>>, vector<1x16x16xf32>
    %784 = vector.shape_cast %783 : vector<1x16x16xf32> to vector<16x16xf32>
    %c66 = arith.constant 66 : index
    %785 = memref.load %arg8[%c66] : memref<144xf32, #tpu.memory_space<smem>>
    %786 = vector.broadcast %785 : f32 to vector<16x16xf32>
    %787 = arith.mulf %784, %786 : vector<16x16xf32>
    %788 = arith.addf %776, %787 : vector<16x16xf32>
    %c1_441 = arith.constant 1 : index
    %c5_442 = arith.constant 5 : index
    %c5_443 = arith.constant 5 : index
    %789 = vector.load %arg11[%c1_441, %c5_442, %c5_443] : memref<4x26x26xf32, #tpu.memory_space<vmem>>, vector<1x16x16xf32>
    %790 = vector.shape_cast %789 : vector<1x16x16xf32> to vector<16x16xf32>
    %c70 = arith.constant 70 : index
    %791 = memref.load %arg8[%c70] : memref<144xf32, #tpu.memory_space<smem>>
    %792 = vector.broadcast %791 : f32 to vector<16x16xf32>
    %793 = arith.mulf %790, %792 : vector<16x16xf32>
    %794 = arith.addf %788, %793 : vector<16x16xf32>
    %c2_444 = arith.constant 2 : index
    %c5_445 = arith.constant 5 : index
    %c5_446 = arith.constant 5 : index
    %795 = vector.load %arg11[%c2_444, %c5_445, %c5_446] : memref<4x26x26xf32, #tpu.memory_space<vmem>>, vector<1x16x16xf32>
    %796 = vector.shape_cast %795 : vector<1x16x16xf32> to vector<16x16xf32>
    %c74 = arith.constant 74 : index
    %797 = memref.load %arg8[%c74] : memref<144xf32, #tpu.memory_space<smem>>
    %798 = vector.broadcast %797 : f32 to vector<16x16xf32>
    %799 = arith.mulf %796, %798 : vector<16x16xf32>
    %800 = arith.addf %794, %799 : vector<16x16xf32>
    %c3_447 = arith.constant 3 : index
    %c5_448 = arith.constant 5 : index
    %c5_449 = arith.constant 5 : index
    %801 = vector.load %arg11[%c3_447, %c5_448, %c5_449] : memref<4x26x26xf32, #tpu.memory_space<vmem>>, vector<1x16x16xf32>
    %802 = vector.shape_cast %801 : vector<1x16x16xf32> to vector<16x16xf32>
    %c78 = arith.constant 78 : index
    %803 = memref.load %arg8[%c78] : memref<144xf32, #tpu.memory_space<smem>>
    %804 = vector.broadcast %803 : f32 to vector<16x16xf32>
    %805 = arith.mulf %802, %804 : vector<16x16xf32>
    %806 = arith.addf %800, %805 : vector<16x16xf32>
    %c2_450 = arith.constant 2 : index
    %c5_451 = arith.constant 5 : index
    %c6_452 = arith.constant 6 : index
    %807 = vector.load %arg11[%c2_450, %c5_451, %c6_452] : memref<4x26x26xf32, #tpu.memory_space<vmem>>, vector<1x16x16xf32>
    %808 = vector.shape_cast %807 : vector<1x16x16xf32> to vector<16x16xf32>
    %c22_453 = arith.constant 22 : index
    %809 = memref.load %arg6[%c22_453] : memref<36xf32, #tpu.memory_space<smem>>
    %810 = vector.broadcast %809 : f32 to vector<16x16xf32>
    %811 = arith.mulf %808, %810 : vector<16x16xf32>
    %812 = arith.addf %782, %811 : vector<16x16xf32>
    %c0_454 = arith.constant 0 : index
    %c5_455 = arith.constant 5 : index
    %c10_456 = arith.constant 10 : index
    %813 = vector.load %arg11[%c0_454, %c5_455, %c10_456] : memref<4x26x26xf32, #tpu.memory_space<vmem>>, vector<1x16x16xf32>
    %814 = vector.shape_cast %813 : vector<1x16x16xf32> to vector<16x16xf32>
    %c82 = arith.constant 82 : index
    %815 = memref.load %arg8[%c82] : memref<144xf32, #tpu.memory_space<smem>>
    %816 = vector.broadcast %815 : f32 to vector<16x16xf32>
    %817 = arith.mulf %814, %816 : vector<16x16xf32>
    %818 = arith.addf %806, %817 : vector<16x16xf32>
    %c1_457 = arith.constant 1 : index
    %c5_458 = arith.constant 5 : index
    %c10_459 = arith.constant 10 : index
    %819 = vector.load %arg11[%c1_457, %c5_458, %c10_459] : memref<4x26x26xf32, #tpu.memory_space<vmem>>, vector<1x16x16xf32>
    %820 = vector.shape_cast %819 : vector<1x16x16xf32> to vector<16x16xf32>
    %c86 = arith.constant 86 : index
    %821 = memref.load %arg8[%c86] : memref<144xf32, #tpu.memory_space<smem>>
    %822 = vector.broadcast %821 : f32 to vector<16x16xf32>
    %823 = arith.mulf %820, %822 : vector<16x16xf32>
    %824 = arith.addf %818, %823 : vector<16x16xf32>
    %c2_460 = arith.constant 2 : index
    %c5_461 = arith.constant 5 : index
    %c10_462 = arith.constant 10 : index
    %825 = vector.load %arg11[%c2_460, %c5_461, %c10_462] : memref<4x26x26xf32, #tpu.memory_space<vmem>>, vector<1x16x16xf32>
    %826 = vector.shape_cast %825 : vector<1x16x16xf32> to vector<16x16xf32>
    %c90 = arith.constant 90 : index
    %827 = memref.load %arg8[%c90] : memref<144xf32, #tpu.memory_space<smem>>
    %828 = vector.broadcast %827 : f32 to vector<16x16xf32>
    %829 = arith.mulf %826, %828 : vector<16x16xf32>
    %830 = arith.addf %824, %829 : vector<16x16xf32>
    %c3_463 = arith.constant 3 : index
    %c5_464 = arith.constant 5 : index
    %c10_465 = arith.constant 10 : index
    %831 = vector.load %arg11[%c3_463, %c5_464, %c10_465] : memref<4x26x26xf32, #tpu.memory_space<vmem>>, vector<1x16x16xf32>
    %832 = vector.shape_cast %831 : vector<1x16x16xf32> to vector<16x16xf32>
    %c94 = arith.constant 94 : index
    %833 = memref.load %arg8[%c94] : memref<144xf32, #tpu.memory_space<smem>>
    %834 = vector.broadcast %833 : f32 to vector<16x16xf32>
    %835 = arith.mulf %832, %834 : vector<16x16xf32>
    %836 = arith.addf %830, %835 : vector<16x16xf32>
    %c2_466 = arith.constant 2 : index
    %c6_467 = arith.constant 6 : index
    %c4_468 = arith.constant 4 : index
    %837 = vector.load %arg11[%c2_466, %c6_467, %c4_468] : memref<4x26x26xf32, #tpu.memory_space<vmem>>, vector<1x16x16xf32>
    %838 = vector.shape_cast %837 : vector<1x16x16xf32> to vector<16x16xf32>
    %c26_469 = arith.constant 26 : index
    %839 = memref.load %arg6[%c26_469] : memref<36xf32, #tpu.memory_space<smem>>
    %840 = vector.broadcast %839 : f32 to vector<16x16xf32>
    %841 = arith.mulf %838, %840 : vector<16x16xf32>
    %842 = arith.addf %812, %841 : vector<16x16xf32>
    %c0_470 = arith.constant 0 : index
    %c10_471 = arith.constant 10 : index
    %c0_472 = arith.constant 0 : index
    %843 = vector.load %arg11[%c0_470, %c10_471, %c0_472] : memref<4x26x26xf32, #tpu.memory_space<vmem>>, vector<1x16x16xf32>
    %844 = vector.shape_cast %843 : vector<1x16x16xf32> to vector<16x16xf32>
    %c98 = arith.constant 98 : index
    %845 = memref.load %arg8[%c98] : memref<144xf32, #tpu.memory_space<smem>>
    %846 = vector.broadcast %845 : f32 to vector<16x16xf32>
    %847 = arith.mulf %844, %846 : vector<16x16xf32>
    %848 = arith.addf %836, %847 : vector<16x16xf32>
    %c1_473 = arith.constant 1 : index
    %c10_474 = arith.constant 10 : index
    %c0_475 = arith.constant 0 : index
    %849 = vector.load %arg11[%c1_473, %c10_474, %c0_475] : memref<4x26x26xf32, #tpu.memory_space<vmem>>, vector<1x16x16xf32>
    %850 = vector.shape_cast %849 : vector<1x16x16xf32> to vector<16x16xf32>
    %c102 = arith.constant 102 : index
    %851 = memref.load %arg8[%c102] : memref<144xf32, #tpu.memory_space<smem>>
    %852 = vector.broadcast %851 : f32 to vector<16x16xf32>
    %853 = arith.mulf %850, %852 : vector<16x16xf32>
    %854 = arith.addf %848, %853 : vector<16x16xf32>
    %c2_476 = arith.constant 2 : index
    %c10_477 = arith.constant 10 : index
    %c0_478 = arith.constant 0 : index
    %855 = vector.load %arg11[%c2_476, %c10_477, %c0_478] : memref<4x26x26xf32, #tpu.memory_space<vmem>>, vector<1x16x16xf32>
    %856 = vector.shape_cast %855 : vector<1x16x16xf32> to vector<16x16xf32>
    %c106 = arith.constant 106 : index
    %857 = memref.load %arg8[%c106] : memref<144xf32, #tpu.memory_space<smem>>
    %858 = vector.broadcast %857 : f32 to vector<16x16xf32>
    %859 = arith.mulf %856, %858 : vector<16x16xf32>
    %860 = arith.addf %854, %859 : vector<16x16xf32>
    %c3_479 = arith.constant 3 : index
    %c10_480 = arith.constant 10 : index
    %c0_481 = arith.constant 0 : index
    %861 = vector.load %arg11[%c3_479, %c10_480, %c0_481] : memref<4x26x26xf32, #tpu.memory_space<vmem>>, vector<1x16x16xf32>
    %862 = vector.shape_cast %861 : vector<1x16x16xf32> to vector<16x16xf32>
    %c110 = arith.constant 110 : index
    %863 = memref.load %arg8[%c110] : memref<144xf32, #tpu.memory_space<smem>>
    %864 = vector.broadcast %863 : f32 to vector<16x16xf32>
    %865 = arith.mulf %862, %864 : vector<16x16xf32>
    %866 = arith.addf %860, %865 : vector<16x16xf32>
    %c2_482 = arith.constant 2 : index
    %c6_483 = arith.constant 6 : index
    %c5_484 = arith.constant 5 : index
    %867 = vector.load %arg11[%c2_482, %c6_483, %c5_484] : memref<4x26x26xf32, #tpu.memory_space<vmem>>, vector<1x16x16xf32>
    %868 = vector.shape_cast %867 : vector<1x16x16xf32> to vector<16x16xf32>
    %c30_485 = arith.constant 30 : index
    %869 = memref.load %arg6[%c30_485] : memref<36xf32, #tpu.memory_space<smem>>
    %870 = vector.broadcast %869 : f32 to vector<16x16xf32>
    %871 = arith.mulf %868, %870 : vector<16x16xf32>
    %872 = arith.addf %842, %871 : vector<16x16xf32>
    %c0_486 = arith.constant 0 : index
    %c10_487 = arith.constant 10 : index
    %c5_488 = arith.constant 5 : index
    %873 = vector.load %arg11[%c0_486, %c10_487, %c5_488] : memref<4x26x26xf32, #tpu.memory_space<vmem>>, vector<1x16x16xf32>
    %874 = vector.shape_cast %873 : vector<1x16x16xf32> to vector<16x16xf32>
    %c114 = arith.constant 114 : index
    %875 = memref.load %arg8[%c114] : memref<144xf32, #tpu.memory_space<smem>>
    %876 = vector.broadcast %875 : f32 to vector<16x16xf32>
    %877 = arith.mulf %874, %876 : vector<16x16xf32>
    %878 = arith.addf %866, %877 : vector<16x16xf32>
    %c1_489 = arith.constant 1 : index
    %c10_490 = arith.constant 10 : index
    %c5_491 = arith.constant 5 : index
    %879 = vector.load %arg11[%c1_489, %c10_490, %c5_491] : memref<4x26x26xf32, #tpu.memory_space<vmem>>, vector<1x16x16xf32>
    %880 = vector.shape_cast %879 : vector<1x16x16xf32> to vector<16x16xf32>
    %c118 = arith.constant 118 : index
    %881 = memref.load %arg8[%c118] : memref<144xf32, #tpu.memory_space<smem>>
    %882 = vector.broadcast %881 : f32 to vector<16x16xf32>
    %883 = arith.mulf %880, %882 : vector<16x16xf32>
    %884 = arith.addf %878, %883 : vector<16x16xf32>
    %c2_492 = arith.constant 2 : index
    %c10_493 = arith.constant 10 : index
    %c5_494 = arith.constant 5 : index
    %885 = vector.load %arg11[%c2_492, %c10_493, %c5_494] : memref<4x26x26xf32, #tpu.memory_space<vmem>>, vector<1x16x16xf32>
    %886 = vector.shape_cast %885 : vector<1x16x16xf32> to vector<16x16xf32>
    %c122 = arith.constant 122 : index
    %887 = memref.load %arg8[%c122] : memref<144xf32, #tpu.memory_space<smem>>
    %888 = vector.broadcast %887 : f32 to vector<16x16xf32>
    %889 = arith.mulf %886, %888 : vector<16x16xf32>
    %890 = arith.addf %884, %889 : vector<16x16xf32>
    %c3_495 = arith.constant 3 : index
    %c10_496 = arith.constant 10 : index
    %c5_497 = arith.constant 5 : index
    %891 = vector.load %arg11[%c3_495, %c10_496, %c5_497] : memref<4x26x26xf32, #tpu.memory_space<vmem>>, vector<1x16x16xf32>
    %892 = vector.shape_cast %891 : vector<1x16x16xf32> to vector<16x16xf32>
    %c126 = arith.constant 126 : index
    %893 = memref.load %arg8[%c126] : memref<144xf32, #tpu.memory_space<smem>>
    %894 = vector.broadcast %893 : f32 to vector<16x16xf32>
    %895 = arith.mulf %892, %894 : vector<16x16xf32>
    %896 = arith.addf %890, %895 : vector<16x16xf32>
    %c2_498 = arith.constant 2 : index
    %c6_499 = arith.constant 6 : index
    %c6_500 = arith.constant 6 : index
    %897 = vector.load %arg11[%c2_498, %c6_499, %c6_500] : memref<4x26x26xf32, #tpu.memory_space<vmem>>, vector<1x16x16xf32>
    %898 = vector.shape_cast %897 : vector<1x16x16xf32> to vector<16x16xf32>
    %c34_501 = arith.constant 34 : index
    %899 = memref.load %arg6[%c34_501] : memref<36xf32, #tpu.memory_space<smem>>
    %900 = vector.broadcast %899 : f32 to vector<16x16xf32>
    %901 = arith.mulf %898, %900 : vector<16x16xf32>
    %902 = arith.addf %872, %901 : vector<16x16xf32>
    %c0_502 = arith.constant 0 : index
    %c10_503 = arith.constant 10 : index
    %c10_504 = arith.constant 10 : index
    %903 = vector.load %arg11[%c0_502, %c10_503, %c10_504] : memref<4x26x26xf32, #tpu.memory_space<vmem>>, vector<1x16x16xf32>
    %904 = vector.shape_cast %903 : vector<1x16x16xf32> to vector<16x16xf32>
    %c130 = arith.constant 130 : index
    %905 = memref.load %arg8[%c130] : memref<144xf32, #tpu.memory_space<smem>>
    %906 = vector.broadcast %905 : f32 to vector<16x16xf32>
    %907 = arith.mulf %904, %906 : vector<16x16xf32>
    %908 = arith.addf %896, %907 : vector<16x16xf32>
    %c1_505 = arith.constant 1 : index
    %c10_506 = arith.constant 10 : index
    %c10_507 = arith.constant 10 : index
    %909 = vector.load %arg11[%c1_505, %c10_506, %c10_507] : memref<4x26x26xf32, #tpu.memory_space<vmem>>, vector<1x16x16xf32>
    %910 = vector.shape_cast %909 : vector<1x16x16xf32> to vector<16x16xf32>
    %c134 = arith.constant 134 : index
    %911 = memref.load %arg8[%c134] : memref<144xf32, #tpu.memory_space<smem>>
    %912 = vector.broadcast %911 : f32 to vector<16x16xf32>
    %913 = arith.mulf %910, %912 : vector<16x16xf32>
    %914 = arith.addf %908, %913 : vector<16x16xf32>
    %c2_508 = arith.constant 2 : index
    %c10_509 = arith.constant 10 : index
    %c10_510 = arith.constant 10 : index
    %915 = vector.load %arg11[%c2_508, %c10_509, %c10_510] : memref<4x26x26xf32, #tpu.memory_space<vmem>>, vector<1x16x16xf32>
    %916 = vector.shape_cast %915 : vector<1x16x16xf32> to vector<16x16xf32>
    %c138 = arith.constant 138 : index
    %917 = memref.load %arg8[%c138] : memref<144xf32, #tpu.memory_space<smem>>
    %918 = vector.broadcast %917 : f32 to vector<16x16xf32>
    %919 = arith.mulf %916, %918 : vector<16x16xf32>
    %920 = arith.addf %914, %919 : vector<16x16xf32>
    %c3_511 = arith.constant 3 : index
    %c10_512 = arith.constant 10 : index
    %c10_513 = arith.constant 10 : index
    %921 = vector.load %arg11[%c3_511, %c10_512, %c10_513] : memref<4x26x26xf32, #tpu.memory_space<vmem>>, vector<1x16x16xf32>
    %922 = vector.shape_cast %921 : vector<1x16x16xf32> to vector<16x16xf32>
    %c142 = arith.constant 142 : index
    %923 = memref.load %arg8[%c142] : memref<144xf32, #tpu.memory_space<smem>>
    %924 = vector.broadcast %923 : f32 to vector<16x16xf32>
    %925 = arith.mulf %922, %924 : vector<16x16xf32>
    %926 = arith.addf %920, %925 : vector<16x16xf32>
    %c2_514 = arith.constant 2 : index
    %927 = memref.load %arg7[%c2_514] : memref<4xf32, #tpu.memory_space<smem>>
    %928 = vector.broadcast %927 : f32 to vector<16x16xf32>
    %929 = arith.addf %902, %928 : vector<16x16xf32>
    %c2_515 = arith.constant 2 : index
    %930 = memref.load %arg9[%c2_515] : memref<4xf32, #tpu.memory_space<smem>>
    %931 = vector.broadcast %930 : f32 to vector<16x16xf32>
    %932 = arith.addf %926, %931 : vector<16x16xf32>
    %cst_516 = arith.constant 0.000000e+00 : f32
    %933 = vector.broadcast %cst_516 : f32 to vector<16x16xf32>
    %934 = arith.cmpf oge, %929, %933 : vector<16x16xf32>
    %cst_517 = arith.constant 2.000000e-01 : f32
    %935 = vector.broadcast %cst_517 : f32 to vector<16x16xf32>
    %936 = arith.mulf %935, %929 : vector<16x16xf32>
    %937 = arith.select %934, %929, %936 : vector<16x16xi1>, vector<16x16xf32>
    %cst_518 = arith.constant 0.000000e+00 : f32
    %938 = vector.broadcast %cst_518 : f32 to vector<16x16xf32>
    %939 = arith.cmpf oge, %932, %938 : vector<16x16xf32>
    %cst_519 = arith.constant 2.000000e-01 : f32
    %940 = vector.broadcast %cst_519 : f32 to vector<16x16xf32>
    %941 = arith.mulf %940, %932 : vector<16x16xf32>
    %942 = arith.select %939, %932, %941 : vector<16x16xi1>, vector<16x16xf32>
    %943 = arith.subf %937, %942 : vector<16x16xf32>
    %944 = math.absf %943 : vector<16x16xf32>
    %945 = arith.negf %944 : vector<16x16xf32>
    %946 = math.exp %945 : vector<16x16xf32>
    %cst_520 = arith.constant 1.000000e+00 : f32
    %947 = vector.broadcast %cst_520 : f32 to vector<16x16xf32>
    %948 = arith.addf %947, %946 : vector<16x16xf32>
    %949 = arith.divf %947, %948 : vector<16x16xf32>
    %c0_521 = arith.constant 0 : index
    %c2_522 = arith.constant 2 : index
    %c0_523 = arith.constant 0 : index
    %c0_524 = arith.constant 0 : index
    %950 = vector.load %arg5[%c0_521, %c2_522, %c0_523, %c0_524] : memref<1x4x16x16xf32, #tpu.memory_space<vmem>>, vector<1x1x16x16xf32>
    %951 = vector.shape_cast %950 : vector<1x1x16x16xf32> to vector<16x16xf32>
    %952 = arith.addf %949, %951 : vector<16x16xf32>
    %c0_525 = arith.constant 0 : index
    %c2_526 = arith.constant 2 : index
    %c0_527 = arith.constant 0 : index
    %c0_528 = arith.constant 0 : index
    %953 = vector.load %arg2[%c0_525, %c2_526, %c0_527, %c0_528] : memref<1x4x16x16xf32, #tpu.memory_space<vmem>>, vector<1x1x16x16xf32>
    %954 = vector.shape_cast %953 : vector<1x1x16x16xf32> to vector<16x16xf32>
    %955 = arith.mulf %952, %954 : vector<16x16xf32>
    %956 = vector.extract_strided_slice %955 {offsets = [0, 0], sizes = [8, 16], strides = [1, 1]} : vector<16x16xf32> to vector<8x16xf32>
    %cst_529 = arith.constant dense<0xFF800000> : vector<16xf32>
    %957 = vector.multi_reduction <maximumf>, %956, %cst_529 [0] : vector<8x16xf32> to vector<16xf32>
    %958 = vector.shape_cast %957 : vector<16xf32> to vector<1x16xf32>
    %959 = vector.extract_strided_slice %955 {offsets = [8, 0], sizes = [8, 16], strides = [1, 1]} : vector<16x16xf32> to vector<8x16xf32>
    %cst_530 = arith.constant dense<0xFF800000> : vector<16xf32>
    %960 = vector.multi_reduction <maximumf>, %959, %cst_530 [0] : vector<8x16xf32> to vector<16xf32>
    %961 = vector.shape_cast %960 : vector<16xf32> to vector<1x16xf32>
    %962 = tpu.concatenate %958, %961 in 0 : vector<1x16xf32>, vector<1x16xf32> -> vector<2x16xf32>
    %963 = vector.extract_strided_slice %962 {offsets = [0, 0], sizes = [2, 8], strides = [1, 1]} : vector<2x16xf32> to vector<2x8xf32>
    %cst_531 = arith.constant dense<0xFF800000> : vector<2xf32>
    %964 = vector.multi_reduction <maximumf>, %963, %cst_531 [1] : vector<2x8xf32> to vector<2xf32>
    %965 = vector.shape_cast %964 : vector<2xf32> to vector<2x1xf32>
    %966 = vector.extract_strided_slice %962 {offsets = [0, 8], sizes = [2, 8], strides = [1, 1]} : vector<2x16xf32> to vector<2x8xf32>
    %cst_532 = arith.constant dense<0xFF800000> : vector<2xf32>
    %967 = vector.multi_reduction <maximumf>, %966, %cst_532 [1] : vector<2x8xf32> to vector<2xf32>
    %968 = vector.shape_cast %967 : vector<2xf32> to vector<2x1xf32>
    %969 = tpu.concatenate %965, %968 in 1 : vector<2x1xf32>, vector<2x1xf32> -> vector<2x2xf32>
    %c0_533 = arith.constant 0 : index
    %c2_534 = arith.constant 2 : index
    %c0_535 = arith.constant 0 : index
    %c0_536 = arith.constant 0 : index
    %970 = vector.load %arg10[%c0_533, %c2_534, %c0_535, %c0_536] : memref<1x4x2x2xf32, #tpu.memory_space<vmem>>, vector<1x1x2x2xf32>
    %971 = vector.shape_cast %970 : vector<1x1x2x2xf32> to vector<2x2xf32>
    %972 = vector.shape_cast %969 : vector<2x2xf32> to vector<1x1x2x2xf32>
    tpu.vector_store %arg10[%c0_533, %c2_534, %c0_535, %c0_536], %972 {strides = array<i32>} : memref<1x4x2x2xf32, #tpu.memory_space<vmem>>, vector<1x1x2x2xf32>,
    %cst_537 = arith.constant 0.000000e+00 : f32
    %973 = vector.broadcast %cst_537 : f32 to vector<16x16xf32>
    %cst_538 = arith.constant 0.000000e+00 : f32
    %974 = vector.broadcast %cst_538 : f32 to vector<16x16xf32>
    %c3_539 = arith.constant 3 : index
    %c4_540 = arith.constant 4 : index
    %c4_541 = arith.constant 4 : index
    %975 = vector.load %arg11[%c3_539, %c4_540, %c4_541] : memref<4x26x26xf32, #tpu.memory_space<vmem>>, vector<1x16x16xf32>
    %976 = vector.shape_cast %975 : vector<1x16x16xf32> to vector<16x16xf32>
    %c3_542 = arith.constant 3 : index
    %977 = memref.load %arg6[%c3_542] : memref<36xf32, #tpu.memory_space<smem>>
    %978 = vector.broadcast %977 : f32 to vector<16x16xf32>
    %979 = arith.mulf %976, %978 : vector<16x16xf32>
    %980 = arith.addf %973, %979 : vector<16x16xf32>
    %c0_543 = arith.constant 0 : index
    %c0_544 = arith.constant 0 : index
    %c0_545 = arith.constant 0 : index
    %981 = vector.load %arg11[%c0_543, %c0_544, %c0_545] : memref<4x26x26xf32, #tpu.memory_space<vmem>>, vector<1x16x16xf32>
    %982 = vector.shape_cast %981 : vector<1x16x16xf32> to vector<16x16xf32>
    %c3_546 = arith.constant 3 : index
    %983 = memref.load %arg8[%c3_546] : memref<144xf32, #tpu.memory_space<smem>>
    %984 = vector.broadcast %983 : f32 to vector<16x16xf32>
    %985 = arith.mulf %982, %984 : vector<16x16xf32>
    %986 = arith.addf %974, %985 : vector<16x16xf32>
    %c1_547 = arith.constant 1 : index
    %c0_548 = arith.constant 0 : index
    %c0_549 = arith.constant 0 : index
    %987 = vector.load %arg11[%c1_547, %c0_548, %c0_549] : memref<4x26x26xf32, #tpu.memory_space<vmem>>, vector<1x16x16xf32>
    %988 = vector.shape_cast %987 : vector<1x16x16xf32> to vector<16x16xf32>
    %c7 = arith.constant 7 : index
    %989 = memref.load %arg8[%c7] : memref<144xf32, #tpu.memory_space<smem>>
    %990 = vector.broadcast %989 : f32 to vector<16x16xf32>
    %991 = arith.mulf %988, %990 : vector<16x16xf32>
    %992 = arith.addf %986, %991 : vector<16x16xf32>
    %c2_550 = arith.constant 2 : index
    %c0_551 = arith.constant 0 : index
    %c0_552 = arith.constant 0 : index
    %993 = vector.load %arg11[%c2_550, %c0_551, %c0_552] : memref<4x26x26xf32, #tpu.memory_space<vmem>>, vector<1x16x16xf32>
    %994 = vector.shape_cast %993 : vector<1x16x16xf32> to vector<16x16xf32>
    %c11 = arith.constant 11 : index
    %995 = memref.load %arg8[%c11] : memref<144xf32, #tpu.memory_space<smem>>
    %996 = vector.broadcast %995 : f32 to vector<16x16xf32>
    %997 = arith.mulf %994, %996 : vector<16x16xf32>
    %998 = arith.addf %992, %997 : vector<16x16xf32>
    %c3_553 = arith.constant 3 : index
    %c0_554 = arith.constant 0 : index
    %c0_555 = arith.constant 0 : index
    %999 = vector.load %arg11[%c3_553, %c0_554, %c0_555] : memref<4x26x26xf32, #tpu.memory_space<vmem>>, vector<1x16x16xf32>
    %1000 = vector.shape_cast %999 : vector<1x16x16xf32> to vector<16x16xf32>
    %c15 = arith.constant 15 : index
    %1001 = memref.load %arg8[%c15] : memref<144xf32, #tpu.memory_space<smem>>
    %1002 = vector.broadcast %1001 : f32 to vector<16x16xf32>
    %1003 = arith.mulf %1000, %1002 : vector<16x16xf32>
    %1004 = arith.addf %998, %1003 : vector<16x16xf32>
    %c3_556 = arith.constant 3 : index
    %c4_557 = arith.constant 4 : index
    %c5_558 = arith.constant 5 : index
    %1005 = vector.load %arg11[%c3_556, %c4_557, %c5_558] : memref<4x26x26xf32, #tpu.memory_space<vmem>>, vector<1x16x16xf32>
    %1006 = vector.shape_cast %1005 : vector<1x16x16xf32> to vector<16x16xf32>
    %c7_559 = arith.constant 7 : index
    %1007 = memref.load %arg6[%c7_559] : memref<36xf32, #tpu.memory_space<smem>>
    %1008 = vector.broadcast %1007 : f32 to vector<16x16xf32>
    %1009 = arith.mulf %1006, %1008 : vector<16x16xf32>
    %1010 = arith.addf %980, %1009 : vector<16x16xf32>
    %c0_560 = arith.constant 0 : index
    %c0_561 = arith.constant 0 : index
    %c5_562 = arith.constant 5 : index
    %1011 = vector.load %arg11[%c0_560, %c0_561, %c5_562] : memref<4x26x26xf32, #tpu.memory_space<vmem>>, vector<1x16x16xf32>
    %1012 = vector.shape_cast %1011 : vector<1x16x16xf32> to vector<16x16xf32>
    %c19 = arith.constant 19 : index
    %1013 = memref.load %arg8[%c19] : memref<144xf32, #tpu.memory_space<smem>>
    %1014 = vector.broadcast %1013 : f32 to vector<16x16xf32>
    %1015 = arith.mulf %1012, %1014 : vector<16x16xf32>
    %1016 = arith.addf %1004, %1015 : vector<16x16xf32>
    %c1_563 = arith.constant 1 : index
    %c0_564 = arith.constant 0 : index
    %c5_565 = arith.constant 5 : index
    %1017 = vector.load %arg11[%c1_563, %c0_564, %c5_565] : memref<4x26x26xf32, #tpu.memory_space<vmem>>, vector<1x16x16xf32>
    %1018 = vector.shape_cast %1017 : vector<1x16x16xf32> to vector<16x16xf32>
    %c23 = arith.constant 23 : index
    %1019 = memref.load %arg8[%c23] : memref<144xf32, #tpu.memory_space<smem>>
    %1020 = vector.broadcast %1019 : f32 to vector<16x16xf32>
    %1021 = arith.mulf %1018, %1020 : vector<16x16xf32>
    %1022 = arith.addf %1016, %1021 : vector<16x16xf32>
    %c2_566 = arith.constant 2 : index
    %c0_567 = arith.constant 0 : index
    %c5_568 = arith.constant 5 : index
    %1023 = vector.load %arg11[%c2_566, %c0_567, %c5_568] : memref<4x26x26xf32, #tpu.memory_space<vmem>>, vector<1x16x16xf32>
    %1024 = vector.shape_cast %1023 : vector<1x16x16xf32> to vector<16x16xf32>
    %c27 = arith.constant 27 : index
    %1025 = memref.load %arg8[%c27] : memref<144xf32, #tpu.memory_space<smem>>
    %1026 = vector.broadcast %1025 : f32 to vector<16x16xf32>
    %1027 = arith.mulf %1024, %1026 : vector<16x16xf32>
    %1028 = arith.addf %1022, %1027 : vector<16x16xf32>
    %c3_569 = arith.constant 3 : index
    %c0_570 = arith.constant 0 : index
    %c5_571 = arith.constant 5 : index
    %1029 = vector.load %arg11[%c3_569, %c0_570, %c5_571] : memref<4x26x26xf32, #tpu.memory_space<vmem>>, vector<1x16x16xf32>
    %1030 = vector.shape_cast %1029 : vector<1x16x16xf32> to vector<16x16xf32>
    %c31 = arith.constant 31 : index
    %1031 = memref.load %arg8[%c31] : memref<144xf32, #tpu.memory_space<smem>>
    %1032 = vector.broadcast %1031 : f32 to vector<16x16xf32>
    %1033 = arith.mulf %1030, %1032 : vector<16x16xf32>
    %1034 = arith.addf %1028, %1033 : vector<16x16xf32>
    %c3_572 = arith.constant 3 : index
    %c4_573 = arith.constant 4 : index
    %c6_574 = arith.constant 6 : index
    %1035 = vector.load %arg11[%c3_572, %c4_573, %c6_574] : memref<4x26x26xf32, #tpu.memory_space<vmem>>, vector<1x16x16xf32>
    %1036 = vector.shape_cast %1035 : vector<1x16x16xf32> to vector<16x16xf32>
    %c11_575 = arith.constant 11 : index
    %1037 = memref.load %arg6[%c11_575] : memref<36xf32, #tpu.memory_space<smem>>
    %1038 = vector.broadcast %1037 : f32 to vector<16x16xf32>
    %1039 = arith.mulf %1036, %1038 : vector<16x16xf32>
    %1040 = arith.addf %1010, %1039 : vector<16x16xf32>
    %c0_576 = arith.constant 0 : index
    %c0_577 = arith.constant 0 : index
    %c10_578 = arith.constant 10 : index
    %1041 = vector.load %arg11[%c0_576, %c0_577, %c10_578] : memref<4x26x26xf32, #tpu.memory_space<vmem>>, vector<1x16x16xf32>
    %1042 = vector.shape_cast %1041 : vector<1x16x16xf32> to vector<16x16xf32>
    %c35 = arith.constant 35 : index
    %1043 = memref.load %arg8[%c35] : memref<144xf32, #tpu.memory_space<smem>>
    %1044 = vector.broadcast %1043 : f32 to vector<16x16xf32>
    %1045 = arith.mulf %1042, %1044 : vector<16x16xf32>
    %1046 = arith.addf %1034, %1045 : vector<16x16xf32>
    %c1_579 = arith.constant 1 : index
    %c0_580 = arith.constant 0 : index
    %c10_581 = arith.constant 10 : index
    %1047 = vector.load %arg11[%c1_579, %c0_580, %c10_581] : memref<4x26x26xf32, #tpu.memory_space<vmem>>, vector<1x16x16xf32>
    %1048 = vector.shape_cast %1047 : vector<1x16x16xf32> to vector<16x16xf32>
    %c39 = arith.constant 39 : index
    %1049 = memref.load %arg8[%c39] : memref<144xf32, #tpu.memory_space<smem>>
    %1050 = vector.broadcast %1049 : f32 to vector<16x16xf32>
    %1051 = arith.mulf %1048, %1050 : vector<16x16xf32>
    %1052 = arith.addf %1046, %1051 : vector<16x16xf32>
    %c2_582 = arith.constant 2 : index
    %c0_583 = arith.constant 0 : index
    %c10_584 = arith.constant 10 : index
    %1053 = vector.load %arg11[%c2_582, %c0_583, %c10_584] : memref<4x26x26xf32, #tpu.memory_space<vmem>>, vector<1x16x16xf32>
    %1054 = vector.shape_cast %1053 : vector<1x16x16xf32> to vector<16x16xf32>
    %c43 = arith.constant 43 : index
    %1055 = memref.load %arg8[%c43] : memref<144xf32, #tpu.memory_space<smem>>
    %1056 = vector.broadcast %1055 : f32 to vector<16x16xf32>
    %1057 = arith.mulf %1054, %1056 : vector<16x16xf32>
    %1058 = arith.addf %1052, %1057 : vector<16x16xf32>
    %c3_585 = arith.constant 3 : index
    %c0_586 = arith.constant 0 : index
    %c10_587 = arith.constant 10 : index
    %1059 = vector.load %arg11[%c3_585, %c0_586, %c10_587] : memref<4x26x26xf32, #tpu.memory_space<vmem>>, vector<1x16x16xf32>
    %1060 = vector.shape_cast %1059 : vector<1x16x16xf32> to vector<16x16xf32>
    %c47 = arith.constant 47 : index
    %1061 = memref.load %arg8[%c47] : memref<144xf32, #tpu.memory_space<smem>>
    %1062 = vector.broadcast %1061 : f32 to vector<16x16xf32>
    %1063 = arith.mulf %1060, %1062 : vector<16x16xf32>
    %1064 = arith.addf %1058, %1063 : vector<16x16xf32>
    %c3_588 = arith.constant 3 : index
    %c5_589 = arith.constant 5 : index
    %c4_590 = arith.constant 4 : index
    %1065 = vector.load %arg11[%c3_588, %c5_589, %c4_590] : memref<4x26x26xf32, #tpu.memory_space<vmem>>, vector<1x16x16xf32>
    %1066 = vector.shape_cast %1065 : vector<1x16x16xf32> to vector<16x16xf32>
    %c15_591 = arith.constant 15 : index
    %1067 = memref.load %arg6[%c15_591] : memref<36xf32, #tpu.memory_space<smem>>
    %1068 = vector.broadcast %1067 : f32 to vector<16x16xf32>
    %1069 = arith.mulf %1066, %1068 : vector<16x16xf32>
    %1070 = arith.addf %1040, %1069 : vector<16x16xf32>
    %c0_592 = arith.constant 0 : index
    %c5_593 = arith.constant 5 : index
    %c0_594 = arith.constant 0 : index
    %1071 = vector.load %arg11[%c0_592, %c5_593, %c0_594] : memref<4x26x26xf32, #tpu.memory_space<vmem>>, vector<1x16x16xf32>
    %1072 = vector.shape_cast %1071 : vector<1x16x16xf32> to vector<16x16xf32>
    %c51 = arith.constant 51 : index
    %1073 = memref.load %arg8[%c51] : memref<144xf32, #tpu.memory_space<smem>>
    %1074 = vector.broadcast %1073 : f32 to vector<16x16xf32>
    %1075 = arith.mulf %1072, %1074 : vector<16x16xf32>
    %1076 = arith.addf %1064, %1075 : vector<16x16xf32>
    %c1_595 = arith.constant 1 : index
    %c5_596 = arith.constant 5 : index
    %c0_597 = arith.constant 0 : index
    %1077 = vector.load %arg11[%c1_595, %c5_596, %c0_597] : memref<4x26x26xf32, #tpu.memory_space<vmem>>, vector<1x16x16xf32>
    %1078 = vector.shape_cast %1077 : vector<1x16x16xf32> to vector<16x16xf32>
    %c55 = arith.constant 55 : index
    %1079 = memref.load %arg8[%c55] : memref<144xf32, #tpu.memory_space<smem>>
    %1080 = vector.broadcast %1079 : f32 to vector<16x16xf32>
    %1081 = arith.mulf %1078, %1080 : vector<16x16xf32>
    %1082 = arith.addf %1076, %1081 : vector<16x16xf32>
    %c2_598 = arith.constant 2 : index
    %c5_599 = arith.constant 5 : index
    %c0_600 = arith.constant 0 : index
    %1083 = vector.load %arg11[%c2_598, %c5_599, %c0_600] : memref<4x26x26xf32, #tpu.memory_space<vmem>>, vector<1x16x16xf32>
    %1084 = vector.shape_cast %1083 : vector<1x16x16xf32> to vector<16x16xf32>
    %c59 = arith.constant 59 : index
    %1085 = memref.load %arg8[%c59] : memref<144xf32, #tpu.memory_space<smem>>
    %1086 = vector.broadcast %1085 : f32 to vector<16x16xf32>
    %1087 = arith.mulf %1084, %1086 : vector<16x16xf32>
    %1088 = arith.addf %1082, %1087 : vector<16x16xf32>
    %c3_601 = arith.constant 3 : index
    %c5_602 = arith.constant 5 : index
    %c0_603 = arith.constant 0 : index
    %1089 = vector.load %arg11[%c3_601, %c5_602, %c0_603] : memref<4x26x26xf32, #tpu.memory_space<vmem>>, vector<1x16x16xf32>
    %1090 = vector.shape_cast %1089 : vector<1x16x16xf32> to vector<16x16xf32>
    %c63 = arith.constant 63 : index
    %1091 = memref.load %arg8[%c63] : memref<144xf32, #tpu.memory_space<smem>>
    %1092 = vector.broadcast %1091 : f32 to vector<16x16xf32>
    %1093 = arith.mulf %1090, %1092 : vector<16x16xf32>
    %1094 = arith.addf %1088, %1093 : vector<16x16xf32>
    %c3_604 = arith.constant 3 : index
    %c5_605 = arith.constant 5 : index
    %c5_606 = arith.constant 5 : index
    %1095 = vector.load %arg11[%c3_604, %c5_605, %c5_606] : memref<4x26x26xf32, #tpu.memory_space<vmem>>, vector<1x16x16xf32>
    %1096 = vector.shape_cast %1095 : vector<1x16x16xf32> to vector<16x16xf32>
    %c19_607 = arith.constant 19 : index
    %1097 = memref.load %arg6[%c19_607] : memref<36xf32, #tpu.memory_space<smem>>
    %1098 = vector.broadcast %1097 : f32 to vector<16x16xf32>
    %1099 = arith.mulf %1096, %1098 : vector<16x16xf32>
    %1100 = arith.addf %1070, %1099 : vector<16x16xf32>
    %c0_608 = arith.constant 0 : index
    %c5_609 = arith.constant 5 : index
    %c5_610 = arith.constant 5 : index
    %1101 = vector.load %arg11[%c0_608, %c5_609, %c5_610] : memref<4x26x26xf32, #tpu.memory_space<vmem>>, vector<1x16x16xf32>
    %1102 = vector.shape_cast %1101 : vector<1x16x16xf32> to vector<16x16xf32>
    %c67 = arith.constant 67 : index
    %1103 = memref.load %arg8[%c67] : memref<144xf32, #tpu.memory_space<smem>>
    %1104 = vector.broadcast %1103 : f32 to vector<16x16xf32>
    %1105 = arith.mulf %1102, %1104 : vector<16x16xf32>
    %1106 = arith.addf %1094, %1105 : vector<16x16xf32>
    %c1_611 = arith.constant 1 : index
    %c5_612 = arith.constant 5 : index
    %c5_613 = arith.constant 5 : index
    %1107 = vector.load %arg11[%c1_611, %c5_612, %c5_613] : memref<4x26x26xf32, #tpu.memory_space<vmem>>, vector<1x16x16xf32>
    %1108 = vector.shape_cast %1107 : vector<1x16x16xf32> to vector<16x16xf32>
    %c71 = arith.constant 71 : index
    %1109 = memref.load %arg8[%c71] : memref<144xf32, #tpu.memory_space<smem>>
    %1110 = vector.broadcast %1109 : f32 to vector<16x16xf32>
    %1111 = arith.mulf %1108, %1110 : vector<16x16xf32>
    %1112 = arith.addf %1106, %1111 : vector<16x16xf32>
    %c2_614 = arith.constant 2 : index
    %c5_615 = arith.constant 5 : index
    %c5_616 = arith.constant 5 : index
    %1113 = vector.load %arg11[%c2_614, %c5_615, %c5_616] : memref<4x26x26xf32, #tpu.memory_space<vmem>>, vector<1x16x16xf32>
    %1114 = vector.shape_cast %1113 : vector<1x16x16xf32> to vector<16x16xf32>
    %c75 = arith.constant 75 : index
    %1115 = memref.load %arg8[%c75] : memref<144xf32, #tpu.memory_space<smem>>
    %1116 = vector.broadcast %1115 : f32 to vector<16x16xf32>
    %1117 = arith.mulf %1114, %1116 : vector<16x16xf32>
    %1118 = arith.addf %1112, %1117 : vector<16x16xf32>
    %c3_617 = arith.constant 3 : index
    %c5_618 = arith.constant 5 : index
    %c5_619 = arith.constant 5 : index
    %1119 = vector.load %arg11[%c3_617, %c5_618, %c5_619] : memref<4x26x26xf32, #tpu.memory_space<vmem>>, vector<1x16x16xf32>
    %1120 = vector.shape_cast %1119 : vector<1x16x16xf32> to vector<16x16xf32>
    %c79 = arith.constant 79 : index
    %1121 = memref.load %arg8[%c79] : memref<144xf32, #tpu.memory_space<smem>>
    %1122 = vector.broadcast %1121 : f32 to vector<16x16xf32>
    %1123 = arith.mulf %1120, %1122 : vector<16x16xf32>
    %1124 = arith.addf %1118, %1123 : vector<16x16xf32>
    %c3_620 = arith.constant 3 : index
    %c5_621 = arith.constant 5 : index
    %c6_622 = arith.constant 6 : index
    %1125 = vector.load %arg11[%c3_620, %c5_621, %c6_622] : memref<4x26x26xf32, #tpu.memory_space<vmem>>, vector<1x16x16xf32>
    %1126 = vector.shape_cast %1125 : vector<1x16x16xf32> to vector<16x16xf32>
    %c23_623 = arith.constant 23 : index
    %1127 = memref.load %arg6[%c23_623] : memref<36xf32, #tpu.memory_space<smem>>
    %1128 = vector.broadcast %1127 : f32 to vector<16x16xf32>
    %1129 = arith.mulf %1126, %1128 : vector<16x16xf32>
    %1130 = arith.addf %1100, %1129 : vector<16x16xf32>
    %c0_624 = arith.constant 0 : index
    %c5_625 = arith.constant 5 : index
    %c10_626 = arith.constant 10 : index
    %1131 = vector.load %arg11[%c0_624, %c5_625, %c10_626] : memref<4x26x26xf32, #tpu.memory_space<vmem>>, vector<1x16x16xf32>
    %1132 = vector.shape_cast %1131 : vector<1x16x16xf32> to vector<16x16xf32>
    %c83 = arith.constant 83 : index
    %1133 = memref.load %arg8[%c83] : memref<144xf32, #tpu.memory_space<smem>>
    %1134 = vector.broadcast %1133 : f32 to vector<16x16xf32>
    %1135 = arith.mulf %1132, %1134 : vector<16x16xf32>
    %1136 = arith.addf %1124, %1135 : vector<16x16xf32>
    %c1_627 = arith.constant 1 : index
    %c5_628 = arith.constant 5 : index
    %c10_629 = arith.constant 10 : index
    %1137 = vector.load %arg11[%c1_627, %c5_628, %c10_629] : memref<4x26x26xf32, #tpu.memory_space<vmem>>, vector<1x16x16xf32>
    %1138 = vector.shape_cast %1137 : vector<1x16x16xf32> to vector<16x16xf32>
    %c87 = arith.constant 87 : index
    %1139 = memref.load %arg8[%c87] : memref<144xf32, #tpu.memory_space<smem>>
    %1140 = vector.broadcast %1139 : f32 to vector<16x16xf32>
    %1141 = arith.mulf %1138, %1140 : vector<16x16xf32>
    %1142 = arith.addf %1136, %1141 : vector<16x16xf32>
    %c2_630 = arith.constant 2 : index
    %c5_631 = arith.constant 5 : index
    %c10_632 = arith.constant 10 : index
    %1143 = vector.load %arg11[%c2_630, %c5_631, %c10_632] : memref<4x26x26xf32, #tpu.memory_space<vmem>>, vector<1x16x16xf32>
    %1144 = vector.shape_cast %1143 : vector<1x16x16xf32> to vector<16x16xf32>
    %c91 = arith.constant 91 : index
    %1145 = memref.load %arg8[%c91] : memref<144xf32, #tpu.memory_space<smem>>
    %1146 = vector.broadcast %1145 : f32 to vector<16x16xf32>
    %1147 = arith.mulf %1144, %1146 : vector<16x16xf32>
    %1148 = arith.addf %1142, %1147 : vector<16x16xf32>
    %c3_633 = arith.constant 3 : index
    %c5_634 = arith.constant 5 : index
    %c10_635 = arith.constant 10 : index
    %1149 = vector.load %arg11[%c3_633, %c5_634, %c10_635] : memref<4x26x26xf32, #tpu.memory_space<vmem>>, vector<1x16x16xf32>
    %1150 = vector.shape_cast %1149 : vector<1x16x16xf32> to vector<16x16xf32>
    %c95 = arith.constant 95 : index
    %1151 = memref.load %arg8[%c95] : memref<144xf32, #tpu.memory_space<smem>>
    %1152 = vector.broadcast %1151 : f32 to vector<16x16xf32>
    %1153 = arith.mulf %1150, %1152 : vector<16x16xf32>
    %1154 = arith.addf %1148, %1153 : vector<16x16xf32>
    %c3_636 = arith.constant 3 : index
    %c6_637 = arith.constant 6 : index
    %c4_638 = arith.constant 4 : index
    %1155 = vector.load %arg11[%c3_636, %c6_637, %c4_638] : memref<4x26x26xf32, #tpu.memory_space<vmem>>, vector<1x16x16xf32>
    %1156 = vector.shape_cast %1155 : vector<1x16x16xf32> to vector<16x16xf32>
    %c27_639 = arith.constant 27 : index
    %1157 = memref.load %arg6[%c27_639] : memref<36xf32, #tpu.memory_space<smem>>
    %1158 = vector.broadcast %1157 : f32 to vector<16x16xf32>
    %1159 = arith.mulf %1156, %1158 : vector<16x16xf32>
    %1160 = arith.addf %1130, %1159 : vector<16x16xf32>
    %c0_640 = arith.constant 0 : index
    %c10_641 = arith.constant 10 : index
    %c0_642 = arith.constant 0 : index
    %1161 = vector.load %arg11[%c0_640, %c10_641, %c0_642] : memref<4x26x26xf32, #tpu.memory_space<vmem>>, vector<1x16x16xf32>
    %1162 = vector.shape_cast %1161 : vector<1x16x16xf32> to vector<16x16xf32>
    %c99 = arith.constant 99 : index
    %1163 = memref.load %arg8[%c99] : memref<144xf32, #tpu.memory_space<smem>>
    %1164 = vector.broadcast %1163 : f32 to vector<16x16xf32>
    %1165 = arith.mulf %1162, %1164 : vector<16x16xf32>
    %1166 = arith.addf %1154, %1165 : vector<16x16xf32>
    %c1_643 = arith.constant 1 : index
    %c10_644 = arith.constant 10 : index
    %c0_645 = arith.constant 0 : index
    %1167 = vector.load %arg11[%c1_643, %c10_644, %c0_645] : memref<4x26x26xf32, #tpu.memory_space<vmem>>, vector<1x16x16xf32>
    %1168 = vector.shape_cast %1167 : vector<1x16x16xf32> to vector<16x16xf32>
    %c103 = arith.constant 103 : index
    %1169 = memref.load %arg8[%c103] : memref<144xf32, #tpu.memory_space<smem>>
    %1170 = vector.broadcast %1169 : f32 to vector<16x16xf32>
    %1171 = arith.mulf %1168, %1170 : vector<16x16xf32>
    %1172 = arith.addf %1166, %1171 : vector<16x16xf32>
    %c2_646 = arith.constant 2 : index
    %c10_647 = arith.constant 10 : index
    %c0_648 = arith.constant 0 : index
    %1173 = vector.load %arg11[%c2_646, %c10_647, %c0_648] : memref<4x26x26xf32, #tpu.memory_space<vmem>>, vector<1x16x16xf32>
    %1174 = vector.shape_cast %1173 : vector<1x16x16xf32> to vector<16x16xf32>
    %c107 = arith.constant 107 : index
    %1175 = memref.load %arg8[%c107] : memref<144xf32, #tpu.memory_space<smem>>
    %1176 = vector.broadcast %1175 : f32 to vector<16x16xf32>
    %1177 = arith.mulf %1174, %1176 : vector<16x16xf32>
    %1178 = arith.addf %1172, %1177 : vector<16x16xf32>
    %c3_649 = arith.constant 3 : index
    %c10_650 = arith.constant 10 : index
    %c0_651 = arith.constant 0 : index
    %1179 = vector.load %arg11[%c3_649, %c10_650, %c0_651] : memref<4x26x26xf32, #tpu.memory_space<vmem>>, vector<1x16x16xf32>
    %1180 = vector.shape_cast %1179 : vector<1x16x16xf32> to vector<16x16xf32>
    %c111 = arith.constant 111 : index
    %1181 = memref.load %arg8[%c111] : memref<144xf32, #tpu.memory_space<smem>>
    %1182 = vector.broadcast %1181 : f32 to vector<16x16xf32>
    %1183 = arith.mulf %1180, %1182 : vector<16x16xf32>
    %1184 = arith.addf %1178, %1183 : vector<16x16xf32>
    %c3_652 = arith.constant 3 : index
    %c6_653 = arith.constant 6 : index
    %c5_654 = arith.constant 5 : index
    %1185 = vector.load %arg11[%c3_652, %c6_653, %c5_654] : memref<4x26x26xf32, #tpu.memory_space<vmem>>, vector<1x16x16xf32>
    %1186 = vector.shape_cast %1185 : vector<1x16x16xf32> to vector<16x16xf32>
    %c31_655 = arith.constant 31 : index
    %1187 = memref.load %arg6[%c31_655] : memref<36xf32, #tpu.memory_space<smem>>
    %1188 = vector.broadcast %1187 : f32 to vector<16x16xf32>
    %1189 = arith.mulf %1186, %1188 : vector<16x16xf32>
    %1190 = arith.addf %1160, %1189 : vector<16x16xf32>
    %c0_656 = arith.constant 0 : index
    %c10_657 = arith.constant 10 : index
    %c5_658 = arith.constant 5 : index
    %1191 = vector.load %arg11[%c0_656, %c10_657, %c5_658] : memref<4x26x26xf32, #tpu.memory_space<vmem>>, vector<1x16x16xf32>
    %1192 = vector.shape_cast %1191 : vector<1x16x16xf32> to vector<16x16xf32>
    %c115 = arith.constant 115 : index
    %1193 = memref.load %arg8[%c115] : memref<144xf32, #tpu.memory_space<smem>>
    %1194 = vector.broadcast %1193 : f32 to vector<16x16xf32>
    %1195 = arith.mulf %1192, %1194 : vector<16x16xf32>
    %1196 = arith.addf %1184, %1195 : vector<16x16xf32>
    %c1_659 = arith.constant 1 : index
    %c10_660 = arith.constant 10 : index
    %c5_661 = arith.constant 5 : index
    %1197 = vector.load %arg11[%c1_659, %c10_660, %c5_661] : memref<4x26x26xf32, #tpu.memory_space<vmem>>, vector<1x16x16xf32>
    %1198 = vector.shape_cast %1197 : vector<1x16x16xf32> to vector<16x16xf32>
    %c119 = arith.constant 119 : index
    %1199 = memref.load %arg8[%c119] : memref<144xf32, #tpu.memory_space<smem>>
    %1200 = vector.broadcast %1199 : f32 to vector<16x16xf32>
    %1201 = arith.mulf %1198, %1200 : vector<16x16xf32>
    %1202 = arith.addf %1196, %1201 : vector<16x16xf32>
    %c2_662 = arith.constant 2 : index
    %c10_663 = arith.constant 10 : index
    %c5_664 = arith.constant 5 : index
    %1203 = vector.load %arg11[%c2_662, %c10_663, %c5_664] : memref<4x26x26xf32, #tpu.memory_space<vmem>>, vector<1x16x16xf32>
    %1204 = vector.shape_cast %1203 : vector<1x16x16xf32> to vector<16x16xf32>
    %c123 = arith.constant 123 : index
    %1205 = memref.load %arg8[%c123] : memref<144xf32, #tpu.memory_space<smem>>
    %1206 = vector.broadcast %1205 : f32 to vector<16x16xf32>
    %1207 = arith.mulf %1204, %1206 : vector<16x16xf32>
    %1208 = arith.addf %1202, %1207 : vector<16x16xf32>
    %c3_665 = arith.constant 3 : index
    %c10_666 = arith.constant 10 : index
    %c5_667 = arith.constant 5 : index
    %1209 = vector.load %arg11[%c3_665, %c10_666, %c5_667] : memref<4x26x26xf32, #tpu.memory_space<vmem>>, vector<1x16x16xf32>
    %1210 = vector.shape_cast %1209 : vector<1x16x16xf32> to vector<16x16xf32>
    %c127 = arith.constant 127 : index
    %1211 = memref.load %arg8[%c127] : memref<144xf32, #tpu.memory_space<smem>>
    %1212 = vector.broadcast %1211 : f32 to vector<16x16xf32>
    %1213 = arith.mulf %1210, %1212 : vector<16x16xf32>
    %1214 = arith.addf %1208, %1213 : vector<16x16xf32>
    %c3_668 = arith.constant 3 : index
    %c6_669 = arith.constant 6 : index
    %c6_670 = arith.constant 6 : index
    %1215 = vector.load %arg11[%c3_668, %c6_669, %c6_670] : memref<4x26x26xf32, #tpu.memory_space<vmem>>, vector<1x16x16xf32>
    %1216 = vector.shape_cast %1215 : vector<1x16x16xf32> to vector<16x16xf32>
    %c35_671 = arith.constant 35 : index
    %1217 = memref.load %arg6[%c35_671] : memref<36xf32, #tpu.memory_space<smem>>
    %1218 = vector.broadcast %1217 : f32 to vector<16x16xf32>
    %1219 = arith.mulf %1216, %1218 : vector<16x16xf32>
    %1220 = arith.addf %1190, %1219 : vector<16x16xf32>
    %c0_672 = arith.constant 0 : index
    %c10_673 = arith.constant 10 : index
    %c10_674 = arith.constant 10 : index
    %1221 = vector.load %arg11[%c0_672, %c10_673, %c10_674] : memref<4x26x26xf32, #tpu.memory_space<vmem>>, vector<1x16x16xf32>
    %1222 = vector.shape_cast %1221 : vector<1x16x16xf32> to vector<16x16xf32>
    %c131 = arith.constant 131 : index
    %1223 = memref.load %arg8[%c131] : memref<144xf32, #tpu.memory_space<smem>>
    %1224 = vector.broadcast %1223 : f32 to vector<16x16xf32>
    %1225 = arith.mulf %1222, %1224 : vector<16x16xf32>
    %1226 = arith.addf %1214, %1225 : vector<16x16xf32>
    %c1_675 = arith.constant 1 : index
    %c10_676 = arith.constant 10 : index
    %c10_677 = arith.constant 10 : index
    %1227 = vector.load %arg11[%c1_675, %c10_676, %c10_677] : memref<4x26x26xf32, #tpu.memory_space<vmem>>, vector<1x16x16xf32>
    %1228 = vector.shape_cast %1227 : vector<1x16x16xf32> to vector<16x16xf32>
    %c135 = arith.constant 135 : index
    %1229 = memref.load %arg8[%c135] : memref<144xf32, #tpu.memory_space<smem>>
    %1230 = vector.broadcast %1229 : f32 to vector<16x16xf32>
    %1231 = arith.mulf %1228, %1230 : vector<16x16xf32>
    %1232 = arith.addf %1226, %1231 : vector<16x16xf32>
    %c2_678 = arith.constant 2 : index
    %c10_679 = arith.constant 10 : index
    %c10_680 = arith.constant 10 : index
    %1233 = vector.load %arg11[%c2_678, %c10_679, %c10_680] : memref<4x26x26xf32, #tpu.memory_space<vmem>>, vector<1x16x16xf32>
    %1234 = vector.shape_cast %1233 : vector<1x16x16xf32> to vector<16x16xf32>
    %c139 = arith.constant 139 : index
    %1235 = memref.load %arg8[%c139] : memref<144xf32, #tpu.memory_space<smem>>
    %1236 = vector.broadcast %1235 : f32 to vector<16x16xf32>
    %1237 = arith.mulf %1234, %1236 : vector<16x16xf32>
    %1238 = arith.addf %1232, %1237 : vector<16x16xf32>
    %c3_681 = arith.constant 3 : index
    %c10_682 = arith.constant 10 : index
    %c10_683 = arith.constant 10 : index
    %1239 = vector.load %arg11[%c3_681, %c10_682, %c10_683] : memref<4x26x26xf32, #tpu.memory_space<vmem>>, vector<1x16x16xf32>
    %1240 = vector.shape_cast %1239 : vector<1x16x16xf32> to vector<16x16xf32>
    %c143 = arith.constant 143 : index
    %1241 = memref.load %arg8[%c143] : memref<144xf32, #tpu.memory_space<smem>>
    %1242 = vector.broadcast %1241 : f32 to vector<16x16xf32>
    %1243 = arith.mulf %1240, %1242 : vector<16x16xf32>
    %1244 = arith.addf %1238, %1243 : vector<16x16xf32>
    %c3_684 = arith.constant 3 : index
    %1245 = memref.load %arg7[%c3_684] : memref<4xf32, #tpu.memory_space<smem>>
    %1246 = vector.broadcast %1245 : f32 to vector<16x16xf32>
    %1247 = arith.addf %1220, %1246 : vector<16x16xf32>
    %c3_685 = arith.constant 3 : index
    %1248 = memref.load %arg9[%c3_685] : memref<4xf32, #tpu.memory_space<smem>>
    %1249 = vector.broadcast %1248 : f32 to vector<16x16xf32>
    %1250 = arith.addf %1244, %1249 : vector<16x16xf32>
    %cst_686 = arith.constant 0.000000e+00 : f32
    %1251 = vector.broadcast %cst_686 : f32 to vector<16x16xf32>
    %1252 = arith.cmpf oge, %1247, %1251 : vector<16x16xf32>
    %cst_687 = arith.constant 2.000000e-01 : f32
    %1253 = vector.broadcast %cst_687 : f32 to vector<16x16xf32>
    %1254 = arith.mulf %1253, %1247 : vector<16x16xf32>
    %1255 = arith.select %1252, %1247, %1254 : vector<16x16xi1>, vector<16x16xf32>
    %cst_688 = arith.constant 0.000000e+00 : f32
    %1256 = vector.broadcast %cst_688 : f32 to vector<16x16xf32>
    %1257 = arith.cmpf oge, %1250, %1256 : vector<16x16xf32>
    %cst_689 = arith.constant 2.000000e-01 : f32
    %1258 = vector.broadcast %cst_689 : f32 to vector<16x16xf32>
    %1259 = arith.mulf %1258, %1250 : vector<16x16xf32>
    %1260 = arith.select %1257, %1250, %1259 : vector<16x16xi1>, vector<16x16xf32>
    %1261 = arith.subf %1255, %1260 : vector<16x16xf32>
    %1262 = math.absf %1261 : vector<16x16xf32>
    %1263 = arith.negf %1262 : vector<16x16xf32>
    %1264 = math.exp %1263 : vector<16x16xf32>
    %cst_690 = arith.constant 1.000000e+00 : f32
    %1265 = vector.broadcast %cst_690 : f32 to vector<16x16xf32>
    %1266 = arith.addf %1265, %1264 : vector<16x16xf32>
    %1267 = arith.divf %1265, %1266 : vector<16x16xf32>
    %c0_691 = arith.constant 0 : index
    %c3_692 = arith.constant 3 : index
    %c0_693 = arith.constant 0 : index
    %c0_694 = arith.constant 0 : index
    %1268 = vector.load %arg5[%c0_691, %c3_692, %c0_693, %c0_694] : memref<1x4x16x16xf32, #tpu.memory_space<vmem>>, vector<1x1x16x16xf32>
    %1269 = vector.shape_cast %1268 : vector<1x1x16x16xf32> to vector<16x16xf32>
    %1270 = arith.addf %1267, %1269 : vector<16x16xf32>
    %c0_695 = arith.constant 0 : index
    %c3_696 = arith.constant 3 : index
    %c0_697 = arith.constant 0 : index
    %c0_698 = arith.constant 0 : index
    %1271 = vector.load %arg2[%c0_695, %c3_696, %c0_697, %c0_698] : memref<1x4x16x16xf32, #tpu.memory_space<vmem>>, vector<1x1x16x16xf32>
    %1272 = vector.shape_cast %1271 : vector<1x1x16x16xf32> to vector<16x16xf32>
    %1273 = arith.mulf %1270, %1272 : vector<16x16xf32>
    %1274 = vector.extract_strided_slice %1273 {offsets = [0, 0], sizes = [8, 16], strides = [1, 1]} : vector<16x16xf32> to vector<8x16xf32>
    %cst_699 = arith.constant dense<0xFF800000> : vector<16xf32>
    %1275 = vector.multi_reduction <maximumf>, %1274, %cst_699 [0] : vector<8x16xf32> to vector<16xf32>
    %1276 = vector.shape_cast %1275 : vector<16xf32> to vector<1x16xf32>
    %1277 = vector.extract_strided_slice %1273 {offsets = [8, 0], sizes = [8, 16], strides = [1, 1]} : vector<16x16xf32> to vector<8x16xf32>
    %cst_700 = arith.constant dense<0xFF800000> : vector<16xf32>
    %1278 = vector.multi_reduction <maximumf>, %1277, %cst_700 [0] : vector<8x16xf32> to vector<16xf32>
    %1279 = vector.shape_cast %1278 : vector<16xf32> to vector<1x16xf32>
    %1280 = tpu.concatenate %1276, %1279 in 0 : vector<1x16xf32>, vector<1x16xf32> -> vector<2x16xf32>
    %1281 = vector.extract_strided_slice %1280 {offsets = [0, 0], sizes = [2, 8], strides = [1, 1]} : vector<2x16xf32> to vector<2x8xf32>
    %cst_701 = arith.constant dense<0xFF800000> : vector<2xf32>
    %1282 = vector.multi_reduction <maximumf>, %1281, %cst_701 [1] : vector<2x8xf32> to vector<2xf32>
    %1283 = vector.shape_cast %1282 : vector<2xf32> to vector<2x1xf32>
    %1284 = vector.extract_strided_slice %1280 {offsets = [0, 8], sizes = [2, 8], strides = [1, 1]} : vector<2x16xf32> to vector<2x8xf32>
    %cst_702 = arith.constant dense<0xFF800000> : vector<2xf32>
    %1285 = vector.multi_reduction <maximumf>, %1284, %cst_702 [1] : vector<2x8xf32> to vector<2xf32>
    %1286 = vector.shape_cast %1285 : vector<2xf32> to vector<2x1xf32>
    %1287 = tpu.concatenate %1283, %1286 in 1 : vector<2x1xf32>, vector<2x1xf32> -> vector<2x2xf32>
    %c0_703 = arith.constant 0 : index
    %c3_704 = arith.constant 3 : index
    %c0_705 = arith.constant 0 : index
    %c0_706 = arith.constant 0 : index
    %1288 = vector.load %arg10[%c0_703, %c3_704, %c0_705, %c0_706] : memref<1x4x2x2xf32, #tpu.memory_space<vmem>>, vector<1x1x2x2xf32>
    %1289 = vector.shape_cast %1288 : vector<1x1x2x2xf32> to vector<2x2xf32>
    %1290 = vector.shape_cast %1287 : vector<2x2xf32> to vector<1x1x2x2xf32>
    tpu.vector_store %arg10[%c0_703, %c3_704, %c0_705, %c0_706], %1290 {strides = array<i32>} : memref<1x4x2x2xf32, #tpu.memory_space<vmem>>, vector<1x1x2x2xf32>,
    return
  }
  func.func @transform_0(%arg0: i32, %arg1: i32) -> (i32, i32, i32, i32) {
    %c0_i32 = arith.constant 0 : i32
    %c0_i32_0 = arith.constant 0 : i32
    %c0_i32_1 = arith.constant 0 : i32
    return %arg0, %c0_i32, %arg1, %c0_i32_0 : i32, i32, i32, i32
  }
  func.func @transform_1(%arg0: i32, %arg1: i32) -> (i32, i32, i32, i32) {
    %c2_i32 = arith.constant 2 : i32
    %0 = arith.muli %arg1, %c2_i32 : i32
    %c1_i32 = arith.constant 1 : i32
    %1 = arith.subi %0, %c1_i32 : i32
    %c0_i32 = arith.constant 0 : i32
    %2 = arith.maxsi %1, %c0_i32 : i32
    %c0_i32_0 = arith.constant 0 : i32
    %c0_i32_1 = arith.constant 0 : i32
    %c0_i32_2 = arith.constant 0 : i32
    return %arg0, %c0_i32_0, %2, %c0_i32_1 : i32, i32, i32, i32
  }
  func.func @transform_2(%arg0: i32, %arg1: i32) -> (i32, i32, i32, i32) {
    %c1_i32 = arith.constant 1 : i32
    %0 = arith.addi %arg1, %c1_i32 : i32
    %c2_i32 = arith.constant 2 : i32
    %1 = arith.muli %0, %c2_i32 : i32
    %c1_i32_0 = arith.constant 1 : i32
    %2 = arith.minsi %1, %c1_i32_0 : i32
    %c0_i32 = arith.constant 0 : i32
    %c0_i32_1 = arith.constant 0 : i32
    %c0_i32_2 = arith.constant 0 : i32
    return %arg0, %c0_i32, %2, %c0_i32_1 : i32, i32, i32, i32
  }
  func.func @transform_3(%arg0: i32, %arg1: i32) -> (i32, i32, i32, i32) {
    %c0_i32 = arith.constant 0 : i32
    %c0_i32_0 = arith.constant 0 : i32
    %c0_i32_1 = arith.constant 0 : i32
    return %arg0, %c0_i32, %arg1, %c0_i32_0 : i32, i32, i32, i32
  }
  func.func @transform_4(%arg0: i32, %arg1: i32) -> i32 {
    %c0_i32 = arith.constant 0 : i32
    %c0_i32_0 = arith.constant 0 : i32
    return %c0_i32 : i32
  }
  func.func @transform_5(%arg0: i32, %arg1: i32) -> i32 {
    %c0_i32 = arith.constant 0 : i32
    %c0_i32_0 = arith.constant 0 : i32
    return %c0_i32 : i32
  }
  func.func @transform_6(%arg0: i32, %arg1: i32) -> i32 {
    %c0_i32 = arith.constant 0 : i32
    %c0_i32_0 = arith.constant 0 : i32
    return %c0_i32 : i32
  }
  func.func @transform_7(%arg0: i32, %arg1: i32) -> i32 {
    %c0_i32 = arith.constant 0 : i32
    %c0_i32_0 = arith.constant 0 : i32
    return %c0_i32 : i32
  }
  func.func @transform_8(%arg0: i32, %arg1: i32) -> (i32, i32, i32, i32) {
    %c0_i32 = arith.constant 0 : i32
    %c0_i32_0 = arith.constant 0 : i32
    %c0_i32_1 = arith.constant 0 : i32
    return %arg0, %c0_i32, %arg1, %c0_i32_0 : i32, i32, i32, i32
  }
}

</mosaic_0001>

<bundles_post_ra>
// kernel: tpu_custom_call.1
= control target key start
LH: loop header
LB: loop body
LE: loop exit
PB: predicated region body
PF: predicated region fallthrough
CT: control target
= control target key end

     0   :  { %s5892_s0 = inlined_call_operand.hbm [shape: f32[2,4,16,16], index: 0, kind: input, shape index: {}]   ;;  %s5893_s1 = inlined_call_operand.hbm [shape: f32[2,4,16,16], index: 1, kind: input, shape index: {}]   ;;  %s5894_s2 = inlined_call_operand.hbm [shape: f32[2,4,16,16], index: 2, kind: input, shape index: {}]   ;;  %s5895_s3 = inlined_call_operand.hbm [shape: f32[2,4,16,16], index: 3, kind: input, shape index: {}]   ;;  %s5896_s4 = inlined_call_operand.vmem [shape: f32[36], index: 4, kind: input, shape index: {}]   ;;  %s5897_s5 = inlined_call_operand.vmem [shape: f32[4], index: 5, kind: input, shape index: {}]   ;;  %s5898_s6 = inlined_call_operand.vmem [shape: f32[144], index: 6, kind: input, shape index: {}]   ;;  %s5899_s7 = inlined_call_operand.vmem [shape: f32[4], index: 7, kind: input, shape index: {}]   ;;  %s5900_s8 = inlined_call_operand.vmem [shape: f32[2,4,2,2], index: 8, kind: output, shape index: {}]  }
   0x1   :  { %5923 = sst [smem:[#allocation27_spill]] %s5893_s1 }
   0x2   :  { %5924 = sst [smem:[#allocation28_spill]] %s5896_s4 }
   0x3   :  { %5925 = sst [smem:[#allocation29_spill]] %s5897_s5 }
   0x4   :  { %13 = vsyncpa [#allocation4], 0 }
   0x5   :  { %15 = vsyncpa [#allocation4 + $0x1], 0 }
   0x6   :  { %16 = vsyncpa [#allocation7], 0 }
   0x7   :  { %18 = vsyncpa [#allocation7 + $0x1], 0 }
   0x8   :  { %19 = vsyncpa [#allocation10], 0 }
   0x9   :  { %21 = vsyncpa [#allocation10 + $0x1], 0 }
   0xa   :  { %22 = vsyncpa [#allocation5], 0 }
   0xb   :  { %23 = vsyncpa [#allocation13], 0 }
   0xc   :  { %24 = vsyncpa [#allocation16], 0  ;;  %s4216_s27 = smov 0   ;;  %s4218_s28 = smov 0  }
   0xd   :  { %s4220_s29 = smov 0   ;;  %s4222_s30 = smov 0  }
   0xe   :  { %s4224_s9 = smov 0   ;;  %s4226_s10 = smov 0  }
   0xf LB: > { %5926 = sst [smem:[#allocation23_spill]] %s4139_s29  ;;  %s5902_s11 = sadd.s32 4294967295, %s4151_s10   ;;  %s4151_s10 = sphi %s4226_s10, %s30_s10   ;;  %s4147_s9 = sphi %s4224_s9, %s5961_s9   ;;  %s4143_s30 = sphi %s4222_s30, %s5957_s30   ;;  %s4139_s29 = sphi %s4220_s29, %s5956_s29   ;;  %s4135_s28 = sphi %s4218_s28, %s5960_s28   ;;  %s4131_s27 = sphi %s4216_s27, %s5959_s27  }
  0x10   : > { %5927 = sst [smem:[#allocation24_spill]] %s4147_s9  ;;  %p58_p0 = scmp.ne.s32.totalorder %s4139_s29, %s4135_s28 }
  0x11   : > { %p59_p1 = scmp.eq.s32.totalorder %s4151_s10, 0  ;;  %p64_p2 = scmp.ne.s32.totalorder %s4135_s28, %s4131_s27 }
  0x12   : > { %p4251_p3 = scmp.eq.s32.totalorder %s5902_s11, 0  ;;  %p3455_p4 = scmp.ge.s32.totalorder %s4151_s10, 1 }
  0x13   : > { %p4256_p5 = por %p59_p1, %p58_p0  ;;  %p287_p6 = scmp.lt.s32.totalorder %s4151_s10, 3 }
  0x14   : > { %s5928_s12 = scalar_select %p4251_p3, 1, 0 }
  0x15   : > { %p4263_p7 = por %p4251_p3, %p64_p2  ;;  %p4267_p8 = pnand %p3455_p4, %p287_p6 }
  0x16   : > { %s5932_s5 = sld [smem:[#allocation29_spill]]  ;;  %s51_s19 = sadd.s32 1, %s4139_s29 }
  0x17   : > { %s5930_s14 = scalar_select %p4263_p7, 1, 0 }
  0x18   : > { %s5931_s15 = scalar_select %p4267_p8, 1, 0 }
  0x19   : > { %p3724_p9 = pneg %p4267_p8  ;;  %s42_s21 = sadd.s32 1, %s4147_s9 }
  0x1a   : > { %p3754_p11 = scmp.lt.s32.totalorder %s4151_s10, 2  ;;  %p44_p12 = scmp.ge.s32.totalorder %s42_s21, 2 }
  0x1b   : > { %p4279_p10 = pnand %p3724_p9, %p4251_p3 }
  0x1c   : > { %s311_s18 = sshll.u32 %s5932_s5, 4  ;;  %s312_s18 = int_to_ptr.vmem [resolvable:$true] %s311_s18 }
  0x1d   : > { %s5933_s20 = scalar_select %p4279_p10, 1, 0 }
  0x1e   : > { %s3901_s22 = scalar_lea.vmem %s312_s18, 16  ;;  %p5906_p0 = pneg %p4279_p10 }
  0x1f   : > { %p3902_p13 = scmp.ne.s32.totalorder %s312_s18, %s3901_s22  ;;  %p3909_p4 = scmp.lt.s32.totalorder %s312_s18, %s312_s18 }
  0x20   : > { %p3910_p6 = scmp.lt.s32.totalorder %s3901_s22, %s3901_s22 }
  0x21   : > { %p3904_p1 = pnand %p5906_p0, %p3902_p13 }
  0x22   : > { %p3911_p7 = por %p3910_p6, %p3909_p4 }
  0x23   : > { %p3905_p2 = pneg %p3904_p1 }
  0x25   : > { %p3912_p9 = pnand %p3911_p7, %p3905_p2 }
  0x27   : > { %3915 = shalt.err (!%p3912_p9)
}
  0x28   : > { %s4153_s23 = smov [#allocation12]   ;;  %s5963_s21 = smov (%p44_p12, %s42_s21), 0 }
  0x29   : > { %3730 = dma.vmem_to_smem (!%p4279_p10), %s312_s18, 16, %s4153_s23, [#allocation13]  }
  0x2a   : > { %5934 = sst [smem:[#allocation25_spill]] %s5963_s21  ;;  %s4295_s24 = sand.u32 1, %s4139_s29  }
  0x2b   : > { %s4298_s25 = sshll.u32 %s4147_s9, 10  ;;  %s46_s26 = ssub.s32 %s4147_s9, %s5963_s21 }
  0x2c   : > { %p4306_p7 = pnand %p3754_p11, %p4256_p5  ;;  %p49_p13 = scmp.eq.s32.totalorder %s46_s26, 0 }
  0x2d   : > { %s367_s17 = sand.u32 1, %s4151_s10   ;;  %s5904_s18 = sshll.u32 %s4295_s24, 5 }
  0x2e   : > { %s5935_s27 = scalar_select %p4306_p7, 1, 0 }
  0x2f   : > { %s4311_s16 = scalar_select %p49_p13, %s4139_s29, %s51_s19  }
  0x30   : > { %s5937_s1 = sld [smem:[#allocation27_spill]]  ;;  %s371_s13 = scalar_lea.vmem [#allocation6], %s5904_s18 }
  0x31   : > { %5936 = sst [smem:[#allocation26_spill]] %s4311_s16  ;;  %s383_s5 = sshll.u32 %s371_s13, 4  ;;  %s4323_s5 = int_to_ptr.vmem [resolvable:$true] %s383_s5 }
  0x32   : > { %s4325_s21 = scalar_lea.sflag [#allocation7], %s367_s17  ;;  %p4331_p11 = pneg %p4306_p7 }
  0x34   : > { %s5938_s26 = scalar_select %p4331_p11, 1, 0 }
  0x36   : > { %s4319_s11 = scalar_lea.hbm %s5937_s1, %s4298_s25  ;;  %s3921_s18 = scalar_lea.hbm %s5937_s1, 2048 }
  0x37   : > { %s3916_s19 = scalar_lea.hbm %s4319_s11, 512  ;;  %p3922_p2 = scmp.lt.u32.totalorder %s4319_s11, %s5937_s1 }
  0x38   : > { %p3917_p5 = scmp.ne.s32.totalorder %s4319_s11, %s3916_s19  ;;  %p3923_p4 = scmp.lt.u32.totalorder %s3921_s18, %s3916_s19 }
  0x39   : > { %p3925_p9 = scmp.lt.u32.totalorder %s3916_s19, %s4319_s11 }
  0x3a   : > { %p3919_p12 = pnand %p4331_p11, %p3917_p5  ;;  %p3924_p6 = por %p3923_p4, %p3922_p2 }
  0x3c   : > { %p3920_p1 = pneg %p3919_p12  ;;  %p3926_p13 = por %p3925_p9, %p3924_p6 }
  0x3e   : > { %p3927_p0 = pnand %p3926_p13, %p3920_p1 }
  0x40   : > { %3930 = shalt.err (!%p3927_p0)
}
  0x41   : > { %s3931_s17 = scalar_lea.vmem %s4323_s5, 512  ;;  %s4154_s22 = smov [#allocation6]  }
  0x42   : > { %p3932_p5 = scmp.ne.s32.totalorder %s4323_s5, %s3931_s17  ;;  %s3936_s23 = sshll.u32 %s4154_s22, 4  ;;  %s3937_s23 = int_to_ptr.vmem [resolvable:$false] %s3936_s23 }
  0x43   : > { %s3938_s9 = scalar_lea.vmem %s3937_s23, 1024  ;;  %p3939_p8 = scmp.lt.s32.totalorder %s4323_s5, %s3937_s23 }
  0x44   : > { %p3934_p12 = pnand %p3932_p5, %p4331_p11  ;;  %p3940_p10 = scmp.lt.s32.totalorder %s3938_s9, %s3931_s17 }
  0x46   : > { %p3935_p3 = pneg %p3934_p12  ;;  %p3941_p2 = por %p3940_p10, %p3939_p8 }
  0x48   : > { %p3942_p4 = pnand %p3941_p2, %p3935_p3 }
  0x4a   : > { %3945 = shalt.err (!%p3942_p4)
}
  0x4b   : > { %s5913_s18 = smov 256   ;;  %s5914_s19 = smov 128  }
  0x4c   : > { %s5920_s13 = smov 8   ;;  %s5939_s22 = sshll.u32 %s4295_s24, 5 }
  0x4d   : > { %3743 = dma.hbm_to_vmem [thread:$0]  (!%p4306_p7), %s4319_s11, 512, %s4323_s5, %s4325_s21, %s5913_s18, %s5914_s19, %s5920_s13  }
  0x4e   : > { %s397_s23 = scalar_lea.vmem [#allocation8], %s5939_s22  ;;  %s5940_s4 = sld [smem:[#allocation28_spill]] }
  0x4f   : > { %s409_s17 = sshll.u32 %s397_s23, 4  ;;  %p5941_p8 = scmp.ne.s32.totalorder %s5933_s20, 0  ;;  %s4360_s17 = int_to_ptr.vmem [resolvable:$true] %s409_s17 }
  0x51   : > { %p5942_p10 = pneg %p5941_p8 }
  0x54   : > { %s300_s16 = sshll.u32 %s5940_s4, 4  ;;  %s301_s16 = int_to_ptr.vmem [resolvable:$true] %s300_s16 }
  0x55   : > { %s3946_s29 = scalar_lea.vmem %s301_s16, 16  ;;  %p3954_p6 = scmp.lt.s32.totalorder %s301_s16, %s301_s16 }
  0x56   : > { %p3947_p3 = scmp.ne.s32.totalorder %s301_s16, %s3946_s29  ;;  %p3955_p9 = scmp.lt.s32.totalorder %s3946_s29, %s3946_s29 }
  0x58   : > { %p3949_p0 = pnand %p3947_p3, %p5942_p10  ;;  %p3956_p13 = por %p3955_p9, %p3954_p6 }
  0x5a   : > { %p3950_p1 = pneg %p3949_p0 }
  0x5c   : > { %p3957_p5 = pnand %p3956_p13, %p3950_p1 }
  0x5e   : > { %3960 = shalt.err (!%p3957_p5)
}
  0x5f   : > { %s4158_s5 = smov [#allocation11]   ;;  %s322_s22 = sshll.u32 %s5898_s6, 4  ;;  %s323_s22 = int_to_ptr.vmem [resolvable:$true] %s322_s22 }
  0x60   : > { %3727 = dma.vmem_to_smem (!%p5941_p8), %s301_s16, 16, %s4158_s5, [#allocation5]  }
  0x61   : > { %s333_s18 = sshll.u32 %s5899_s7, 4  ;;  %s3961_s19 = scalar_lea.vmem %s323_s22, 32  ;;  %s334_s18 = int_to_ptr.vmem [resolvable:$true] %s333_s18 }
  0x62   : > { %p3962_p12 = scmp.ne.s32.totalorder %s323_s22, %s3961_s19  ;;  %p5943_p2 = pmov %p5942_p10 }
  0x63   : > { %p3969_p10 = scmp.lt.s32.totalorder %s323_s22, %s323_s22  ;;  %p3970_p0 = scmp.lt.s32.totalorder %s3961_s19, %s3961_s19 }
  0x64   : > { %p3964_p4 = pnand %p3962_p12, %p5943_p2 }
  0x65   : > { %p3971_p1 = por %p3970_p0, %p3969_p10 }
  0x66   : > { %p3965_p3 = pneg %p3964_p4 }
  0x68   : > { %p3972_p6 = pnand %p3971_p1, %p3965_p3 }
  0x6a   : > { %3975 = shalt.err (!%p3972_p6)
}
  0x6b   : > { %s4159_s29 = smov [#allocation14]   ;;  %s3976_s16 = scalar_lea.vmem %s334_s18, 16 }
  0x6c   : > { %3733 = dma.vmem_to_smem (!%p5941_p8), %s323_s22, 32, %s4159_s29, [#allocation13]  }
  0x6d   : > { %p3977_p9 = scmp.ne.s32.totalorder %s334_s18, %s3976_s16  ;;  %p5944_p13 = pmov %p5943_p2 }
  0x6e   : > { %p3984_p11 = scmp.lt.s32.totalorder %s334_s18, %s334_s18  ;;  %p3985_p12 = scmp.lt.s32.totalorder %s3976_s16, %s3976_s16 }
  0x6f   : > { %p3979_p5 = pnand %p3977_p9, %p5944_p13 }
  0x70   : > { %p3986_p2 = por %p3985_p12, %p3984_p11 }
  0x71   : > { %p3980_p7 = pneg %p3979_p5 }
  0x73   : > { %p3987_p4 = pnand %p3986_p2, %p3980_p7 }
  0x75   : > { %3990 = shalt.err (!%p3987_p4)
}
  0x76   : > { %s4160_s19 = smov [#allocation15]   ;;  %s5922_s5 = sshll.u32 %s4295_s24, 6 }
  0x77   : > { %3736 = dma.vmem_to_smem (!%p5941_p8), %s334_s18, 16, %s4160_s19, [#allocation16]  }
  0x78   : > { %s4391_s22 = scalar_lea.hbm %s5892_s0, %s4298_s25  ;;  %s348_s23 = scalar_lea.vmem [#allocation3], %s5922_s5 }
  0x79   : > { %s357_s20 = sshll.u32 %s348_s23, 4  ;;  %s3696_s9 = sadd.s32 128, %s4298_s25  ;;  %s4396_s20 = int_to_ptr.vmem [resolvable:$true] %s357_s20 }
  0x7a   : > { %s4401_s18 = scalar_lea.hbm %s5894_s2, %s3696_s9  ;;  %s345_s19 = scalar_lea.sflag [#allocation4], %s4295_s24 }
  0x7b   : > { %s3991_s13 = scalar_lea.hbm %s4391_s22, 1024  ;;  %p5945_p11 = scmp.ne.s32.totalorder %s5938_s26, 0 }
  0x7c   : > { %p3992_p7 = scmp.ne.s32.totalorder %s4391_s22, %s3991_s13  ;;  %s3996_s4 = scalar_lea.hbm %s5892_s0, 2048 }
  0x7d   : > { %p3997_p10 = scmp.lt.u32.totalorder %s4391_s22, %s5892_s0  ;;  %p3998_p0 = scmp.lt.u32.totalorder %s3996_s4, %s3991_s13 }
  0x7e   : > { %p3994_p8 = pnand %p3992_p7, %p5945_p11  ;;  %p4000_p6 = scmp.lt.u32.totalorder %s3991_s13, %s4391_s22 }
  0x7f   : > { %p3999_p1 = por %p3998_p0, %p3997_p10 }
  0x80   : > { %p3995_p3 = pneg %p3994_p8 }
  0x81   : > { %p4001_p9 = por %p4000_p6, %p3999_p1 }
  0x83   : > { %p4002_p13 = pnand %p4001_p9, %p3995_p3 }
  0x85   : > { %4005 = shalt.err (!%p4002_p13)
}
  0x86   : > { %s4006_s9 = scalar_lea.vmem %s4396_s20, 1024  ;;  %s4161_s29 = smov [#allocation3]  }
  0x87   : > { %p4007_p5 = scmp.ne.s32.totalorder %s4396_s20, %s4006_s9  ;;  %s4011_s16 = sshll.u32 %s4161_s29, 4  ;;  %s4012_s16 = int_to_ptr.vmem [resolvable:$false] %s4011_s16 }
  0x88   : > { %s4013_s5 = scalar_lea.vmem %s4012_s16, 2048  ;;  %p4014_p4 = scmp.lt.s32.totalorder %s4396_s20, %s4012_s16 }
  0x89   : > { %p4009_p12 = pnand %p4007_p5, %p5945_p11  ;;  %p4015_p7 = scmp.lt.s32.totalorder %s4013_s5, %s4006_s9 }
  0x8b   : > { %p4010_p2 = pneg %p4009_p12  ;;  %p4016_p8 = por %p4015_p7, %p4014_p4 }
  0x8d   : > { %p4017_p10 = pnand %p4016_p8, %p4010_p2 }
  0x8f   : > { %4020 = shalt.err (!%p4017_p10)
}
  0x90   : > { %p5946_p3 = scmp.ne.s32.totalorder %s5935_s27, 0  ;;  %s5947_s4 = smov 8  }
  0x91   : > { %s5948_s13 = smov 128   ;;  %s4021_s11 = scalar_lea.hbm %s4401_s18, 512 }
  0x92   : > { %3740 = dma.hbm_to_vmem [thread:$0]  (!%p5946_p3), %s4391_s22, 1024, %s4396_s20, %s345_s19, %s5948_s13, %s5948_s13, %s5947_s4  }
  0x93   : > { %p4022_p0 = scmp.ne.s32.totalorder %s4401_s18, %s4021_s11  ;;  %s4026_s9 = scalar_lea.hbm %s5894_s2, 2048 }
  0x94   : > { %p4027_p9 = scmp.lt.u32.totalorder %s4401_s18, %s5894_s2  ;;  %p4028_p13 = scmp.lt.u32.totalorder %s4026_s9, %s4021_s11 }
  0x95   : > { %p4024_p1 = pnand %p4022_p0, %p5945_p11  ;;  %p4030_p12 = scmp.lt.u32.totalorder %s4021_s11, %s4401_s18 }
  0x96   : > { %p4029_p5 = por %p4028_p13, %p4027_p9 }
  0x97   : > { %p4025_p6 = pneg %p4024_p1 }
  0x98   : > { %p4031_p2 = por %p4030_p12, %p4029_p5 }
  0x9a   : > { %p4032_p4 = pnand %p4031_p2, %p4025_p6 }
  0x9c   : > { %4035 = shalt.err (!%p4032_p4)
}
  0x9d   : > { %s4036_s22 = scalar_lea.vmem %s4360_s17, 512  ;;  %s4162_s20 = smov [#allocation8]  }
  0x9e   : > { %p4037_p7 = scmp.ne.s32.totalorder %s4360_s17, %s4036_s22  ;;  %s4041_s19 = sshll.u32 %s4162_s20, 4  ;;  %s4042_s19 = int_to_ptr.vmem [resolvable:$false] %s4041_s19 }
  0x9f   : > { %s4043_s5 = scalar_lea.vmem %s4042_s19, 1024  ;;  %p4044_p0 = scmp.lt.s32.totalorder %s4360_s17, %s4042_s19 }
  0xa0   : > { %p4039_p8 = pnand %p4037_p7, %p5945_p11  ;;  %p4045_p1 = scmp.lt.s32.totalorder %s4043_s5, %s4036_s22 }
  0xa2   : > { %p4040_p10 = pneg %p4039_p8  ;;  %p4046_p9 = por %p4045_p1, %p4044_p0 }
  0xa4   : > { %p4047_p13 = pnand %p4046_p9, %p4040_p10 }
  0xa6   : > { %4050 = shalt.err (!%p4047_p13)
}
  0xa7   : > { %s5949_s11 = smov 256   ;;  %s4459_s9 = scalar_lea.hbm %s5895_s3, %s4298_s25 }
  0xa8   : > { %3746 = dma.hbm_to_vmem [thread:$0]  (!%p5946_p3), %s4401_s18, 512, %s4360_s17, %s4325_s21, %s5949_s11, %s5948_s13, %s5947_s4  }
  0xa9   : > { %s5950_s29 = sshll.u32 %s4295_s24, 6  ;;  %s420_s20 = scalar_lea.sflag [#allocation10], %s4295_s24 }
  0xaa   : > { %s423_s16 = scalar_lea.vmem [#allocation9], %s5950_s29  ;;  %s4051_s19 = scalar_lea.hbm %s4459_s9, 1024 }
  0xab   : > { %s432_s22 = sshll.u32 %s423_s16, 4  ;;  %p4052_p6 = scmp.ne.s32.totalorder %s4459_s9, %s4051_s19  ;;  %s4463_s22 = int_to_ptr.vmem [resolvable:$true] %s432_s22 }
  0xac   : > { %s4056_s25 = scalar_lea.hbm %s5895_s3, 2048  ;;  %p4057_p2 = scmp.lt.u32.totalorder %s4459_s9, %s5895_s3 }
  0xad   : > { %p4054_p5 = pnand %p4052_p6, %p5945_p11  ;;  %p4058_p4 = scmp.lt.u32.totalorder %s4056_s25, %s4051_s19 }
  0xae   : > { %p4060_p8 = scmp.lt.u32.totalorder %s4051_s19, %s4459_s9 }
  0xaf   : > { %p4055_p12 = pneg %p4054_p5  ;;  %p4059_p7 = por %p4058_p4, %p4057_p2 }
  0xb1   : > { %p4061_p10 = por %p4060_p8, %p4059_p7 }
  0xb3   : > { %p4062_p0 = pnand %p4061_p10, %p4055_p12 }
  0xb5   : > { %4065 = shalt.err (!%p4062_p0)
}
  0xb6   : > { %s4066_s11 = scalar_lea.vmem %s4463_s22, 1024  ;;  %s4163_s1 = smov [#allocation9]  }
  0xb7   : > { %p4067_p1 = scmp.ne.s32.totalorder %s4463_s22, %s4066_s11  ;;  %s4071_s23 = sshll.u32 %s4163_s1, 4  ;;  %s4072_s23 = int_to_ptr.vmem [resolvable:$false] %s4071_s23 }
  0xb8   : > { %s4073_s29 = scalar_lea.vmem %s4072_s23, 2048  ;;  %p4074_p6 = scmp.lt.s32.totalorder %s4463_s22, %s4072_s23 }
  0xb9   : > { %p4069_p9 = pnand %p4067_p1, %p5945_p11  ;;  %p4075_p5 = scmp.lt.s32.totalorder %s4073_s29, %s4066_s11 }
  0xbb   : > { %p4070_p13 = pneg %p4069_p9  ;;  %p4076_p2 = por %p4075_p5, %p4074_p6 }
  0xbd   : > { %p4077_p4 = pnand %p4076_p2, %p4070_p13 }
  0xbf   : > { %4080 = shalt.err (!%p4077_p4)
}
  0xc0   : > { %3749 = dma.hbm_to_vmem [thread:$0]  (!%p5946_p3), %s4459_s9, 1024, %s4463_s22, %s420_s20, %s5948_s13, %s5948_s13, %s5947_s4  }
  0xc1   : > { %p5951_p11 = scmp.ne.s32.totalorder %s5931_s15, 0 }
  0xc2   : > { %s446_s26 = sand.u32 (!%p5951_p11), 1, %s4135_s28   ;;  %p5952_p12 = scmp.ne.s32.totalorder (!%p5951_p11), %s5930_s14, 0 }
  0xc3   : > { %444 = sbr.rel (%p5951_p11) target bundleno = 1444 (0x5a4), region = 52  ;;  %s3474_s16 = sshll.u32 (!%p5951_p11), %s446_s26, 6 }
  0xc4   : > { %s447_s19 = scalar_lea.sflag (!%p5951_p11), [#allocation4], %s446_s26  ;;  %s4495_s21 = scalar_lea.vmem (!%p5951_p11), [#allocation3], %s3474_s16 }
  0xca   : > { %4106 = dma.done.wait (%p5952_p12), %s447_s19, 1024  }
  0xcb   : > { %4108 = vsyncadd (%p5952_p12), %s447_s19, 4294966272  ;;  %s5953_s24 = sadd.s32 4294967295, %s4151_s10  }
  0xcc   : > { %s455_s27 = sand.u32 1, %s5953_s24  }
  0xcd   : > { %s456_s4 = scalar_lea.sflag [#allocation7], %s455_s27 }
  0xce   : > { %4110 = dma.done.wait (%p5952_p12), %s456_s4, 1024  }
  0xcf   : > { %4112 = vsyncadd (%p5952_p12), %s456_s4, 4294966272  ;;  %s474_s15 = scalar_lea.sflag [#allocation10], %s446_s26  ;;  %s4507_s13 = scalar_lea.vmem [#allocation9], %s3474_s16 }
  0xd0   : > { %4114 = dma.done.wait (%p5952_p12), %s474_s15, 1024  }
  0xd1   : > { %4116 = vsyncadd (%p5952_p12), %s474_s15, 4294966272  ;;  %p5954_p3 = scmp.ne.s32.totalorder %s5928_s12, 0 }
  0xd3   : > { %4118 = dma.done.wait (%p5954_p3), [#allocation5], 16  }
  0xd4   : > { %4120 = vsyncadd (%p5954_p3), [#allocation5], 4294967280 }
  0xd5   : > { %4122 = dma.done.wait (%p5954_p3), [#allocation13], 48  }
  0xd6   : > { %4124 = vsyncadd (%p5954_p3), [#allocation13], 4294967248 }
  0xd7   : > { %4126 = dma.done.wait (%p5954_p3), [#allocation16], 16  }
  0xd8   : > { %4128 = vsyncadd (%p5954_p3), [#allocation16], 4294967280 }
  0xd9   : > { %498 = sfence }
  0xda   : > { %v4526_v0 = vld [vmem:[%s4495_s21] sm:$0xff]  ;;  %s4164_s14 = smov 5   ;;  %v4531_v1 = vld [vmem:[%s4495_s21 + $0x8] sm:$0xff]  ;;  %vm563_vm0 = vcmask 39936   ;;  %vm581_vm1 = vcmask 212136   ;;  %v4165_v2 = vmov 0.0  }
  0xdb   : > { %648 = vrot.lane.b32.xlu1 %v4526_v0, %s4164_s14  ;;  %3822 = vrot.lane.b32.xlu0 %v4165_v2, %s4164_s14  ;;  %564 = vst.msk [vmem:[#allocation2] sm:$0xff] %vm563_vm0, %v4165_v2  ;;  %565 = vst.msk [vmem:[#allocation2 + $0x8] sm:$0xff] %vm563_vm0, %v4165_v2  ;;  %v635_v3 = vld [vmem:[%s4495_s21 + $0x18] sm:$0xff]  ;;  %vm567_vm2 = vcmask 33792   ;;  %vm585_vm3 = vcmask 205992   ;;  %v634_v4 = vld [vmem:[%s4495_s21 + $0x10] sm:$0xff] }
  0xdc   : > { %566 = vst.msk [vmem:[#allocation2 + $0x10] sm:$0xff] %vm563_vm0, %v4165_v2  ;;  %569 = vst.msk [vmem:[#allocation2 + $0x20] sm:$0xff] %vm563_vm0, %v4165_v2  ;;  %v637_v5 = vld [vmem:[%s4495_s21 + $0x28] sm:$0xff]  ;;  %v636_v6 = vld [vmem:[%s4495_s21 + $0x20] sm:$0xff]  ;;  %vm672_vm4 = vcmask 171048   ;;  %vm627_vm5 = vcmask 167976  }
  0xdd   : > { %570 = vst.msk [vmem:[#allocation2 + $0x28] sm:$0xff] %vm563_vm0, %v4165_v2  ;;  %571 = vst.msk [vmem:[#allocation2 + $0x30] sm:$0xff] %vm563_vm0, %v4165_v2  ;;  %v639_v7 = vld [vmem:[%s4495_s21 + $0x38] sm:$0xff]  ;;  %v638_v8 = vld [vmem:[%s4495_s21 + $0x30] sm:$0xff]  ;;  %s3487_s12 = sld [smem:[#allocation11 + $0x4]]  ;;  %s4567_s9 = sld [smem:[#allocation14 + $0x10]] }
  0xde   : > { %573 = vst.msk [vmem:[#allocation2 + $0x40] sm:$0xff] %vm563_vm0, %v4165_v2  ;;  %574 = vst.msk [vmem:[#allocation2 + $0x48] sm:$0xff] %vm563_vm0, %v4165_v2  ;;  %s4569_s22 = sld [smem:[#allocation14 + $0x4]]  ;;  %s4574_s20 = sld [smem:[#allocation14]]  ;;  %vm1322_vm12 = vcmask 162848   ;;  %vm1337_vm13 = vcmask 1040384  }
  0xdf   : > { %575 = vst.msk [vmem:[#allocation2 + $0x50] sm:$0xff] %vm563_vm0, %v4165_v2  ;;  %577 = vst.msk [vmem:[#allocation2 + $0x60] sm:$0xff] %vm563_vm0, %v4165_v2  ;;  %650 = vrot.lane.b32.xlu1 %v4531_v1, %s4164_s14  ;;  %3827 = vrot.lane.b32.xlu0 %v4165_v2, %s4164_s14  ;;  %s4576_s17 = sld [smem:[#allocation14 + $0x14]]  ;;  %s4591_s25 = sld [smem:[#allocation14 + $0x18]] }
  0xe0   : > { %578 = vst.msk [vmem:[#allocation2 + $0x68] sm:$0xff] %vm563_vm0, %v4165_v2  ;;  %579 = vst.msk [vmem:[#allocation2 + $0x70] sm:$0xff] %vm563_vm0, %v4165_v2  ;;  %s4166_s18 = smov 127   ;;  %s4596_s5 = sld [smem:[#allocation14 + $0x8]]  ;;  %vm1339_vm0 = vcmask 91168  }
  0xe1   : > { %582 = vst.msk [vmem:[#allocation2] sm:$0xff] %vm581_vm1, %v4165_v2  ;;  %583 = vst.msk [vmem:[#allocation2 + $0x8] sm:$0xff] %vm581_vm1, %v4165_v2  ;;  %s4603_s11 = sld [smem:[#allocation14 + $0x1c]]  ;;  %s4167_s23 = smov 123  }
  0xe2   : > { %584 = vst.msk [vmem:[#allocation2 + $0x10] sm:$0xff] %vm581_vm1, %v4165_v2  ;;  %587 = vst.msk [vmem:[#allocation2 + $0x20] sm:$0xff] %vm581_vm1, %v4165_v2  ;;  %s4610_s1 = sld [smem:[#allocation14 + $0xc]]  ;;  %s4625_s29 = sld [smem:[#allocation11 + $0x8]] }
  0xe3   : > { %588 = vst.msk [vmem:[#allocation2 + $0x28] sm:$0xff] %vm581_vm1, %v4165_v2  ;;  %589 = vst.msk [vmem:[#allocation2 + $0x30] sm:$0xff] %vm581_vm1, %v4165_v2  ;;  %654 = vrot.lane.b32.xlu1 %v635_v3, %s4164_s14  ;;  %652 = vrot.lane.b32.xlu0 %v634_v4, %s4164_s14  ;;  %v757_v19 = vstv %s3487_s12  ;;  %v771_v27 = vstv %s4567_s9  ;;  %s3493_s26 = sld [smem:[#allocation14 + $0x20]]  ;;  %s3494_s16 = sld [smem:[#allocation14 + $0x24]] }
  0xe4   : > { %591 = vst.msk [vmem:[#allocation2 + $0x40] sm:$0xff] %vm581_vm1, %v4165_v2  ;;  %592 = vst.msk [vmem:[#allocation2 + $0x48] sm:$0xff] %vm581_vm1, %v4165_v2  ;;  %v733_v30 = vstv %s4569_s22  ;;  %v724_v31 = vstv %s4574_s20  ;;  %s3495_s19 = sld [smem:[#allocation14 + $0x28]]  ;;  %s4168_s24 = smov 126  }
  0xe5   : > { %593 = vst.msk [vmem:[#allocation2 + $0x50] sm:$0xff] %vm581_vm1, %v4165_v2  ;;  %595 = vst.msk [vmem:[#allocation2 + $0x60] sm:$0xff] %vm581_vm1, %v4165_v2  ;;  %v785_v36 = vstv %s4576_s17  ;;  %v799_v48 = vstv %s4591_s25  ;;  %s3496_s27 = sld [smem:[#allocation14 + $0x2c]]  ;;  %s4169_s4 = smov 118  }
  0xe6   : > { %596 = vst.msk [vmem:[#allocation2 + $0x68] sm:$0xff] %vm581_vm1, %v4165_v2  ;;  %597 = vst.msk [vmem:[#allocation2 + $0x70] sm:$0xff] %vm581_vm1, %v4165_v2  ;;  %v742_v54 = vstv %s4596_s5  ;;  %s3531_s15 = sld [smem:[#allocation14 + $0x5]]  ;;  %s3502_s12 = sld [smem:[#allocation11 + $0x10]]  ;;  %vm1343_vm1 = vcmask 156768  }
  0xe7   : > { %576 = vst.msk [vmem:[#allocation2 + $0x58] sm:$0x3] %vm567_vm2, %v4165_v2  ;;  %580 = vst.msk [vmem:[#allocation2 + $0x78] sm:$0x3] %vm567_vm2, %v4165_v2  ;;  %658 = vrot.lane.b32.xlu1 %v637_v5, %s4164_s14  ;;  %656 = vrot.lane.b32.xlu0 %v636_v6, %s4164_s14  ;;  %v813_v57 = vstv %s4603_s11  ;;  %s4670_s9 = sld [smem:[#allocation14 + $0x9]]  ;;  %s4672_s22 = sld [smem:[#allocation14 + $0xd]] }
  0xe8   : > { %568 = vst.msk [vmem:[#allocation2 + $0x18] sm:$0x3] %vm567_vm2, %v4165_v2  ;;  %572 = vst.msk [vmem:[#allocation2 + $0x38] sm:$0x3] %vm567_vm2, %v4165_v2  ;;  %v751_v61 = vstv %s4610_s1  ;;  %s4676_s20 = sld [smem:[#allocation14 + $0x40]]  ;;  %s4686_s17 = sld [smem:[#allocation14 + $0x44]] }
  0xe9   : > { %594 = vst.msk [vmem:[#allocation2 + $0x58] sm:$0x3] %vm585_vm3, %v4165_v2  ;;  %598 = vst.msk [vmem:[#allocation2 + $0x78] sm:$0x3] %vm585_vm3, %v4165_v2  ;;  %s4699_s25 = sld [smem:[#allocation14 + $0x48]]  ;;  %s4714_s5 = sld [smem:[#allocation14 + $0x4c]] }
  0xea   : > { %586 = vst.msk [vmem:[#allocation2 + $0x18] sm:$0x3] %vm585_vm3, %v4165_v2  ;;  %590 = vst.msk [vmem:[#allocation2 + $0x38] sm:$0x3] %vm585_vm3, %v4165_v2  ;;  %s4724_s11 = sld [smem:[#allocation11 + $0x14]]  ;;  %s4726_s1 = sld [smem:[#allocation14 + $0x50]] }
  0xeb   : > { %662 = vrot.lane.b32.xlu1 %v639_v7, %s4164_s14  ;;  %660 = vrot.lane.b32.xlu0 %v638_v8, %s4164_s14  ;;  %v827_v7 = vstv %s4625_s29  ;;  %s4733_s29 = sld [smem:[#allocation14 + $0x2]]  ;;  %p555_p7 = scmp.lt.s32.totalorder %s4143_s30, 1  ;;  %vm1347_vm2 = vcmask 7168   ;;  %vm1349_vm3 = vcmask 9216  }
  0xed   : > { %s5965_s30 = smov (!%p555_p7, %s4143_s30), 1 }
  0xef   : > { %3837 = vrot.lane.b32.xlu1 %v4165_v2, %s4164_s14  ;;  %3832 = vrot.lane.b32.xlu0 %v4165_v2, %s4164_s14  ;;  %s3530_s14 = sld [smem:[#allocation14 + $0x1]] }
 0x14d   : > { %v649_v9 = vpop.permute.xlu1 %648  ;;  %v3823_v10 = vpop.permute.xlu0 %3822 }
 0x14e   : > { %673 = vst.msk [vmem:[#allocation2 + $0x5] sm:$0xff] %vm672_vm4, %v649_v9  ;;  %v3825_v11 = vunpack.i.h.bf16 %v3823_v10  ;;  %v3824_v12 = vunpack.i.l.bf16 %v3823_v10 }
 0x150   : > { %628 = vst.msk [vmem:[#allocation2] sm:$0x1f] %vm627_vm5, %v3824_v12  ;;  %629 = vst.msk [vmem:[#allocation2 + $0x20] sm:$0x1f] %vm627_vm5, %v3825_v11 }
 0x151   : > { %v651_v13 = vpop.permute.xlu1 %650  ;;  %v3828_v14 = vpop.permute.xlu0 %3827 }
 0x152   : > { %674 = vst.msk [vmem:[#allocation2 + $0xd] sm:$0xff] %vm672_vm4, %v651_v13  ;;  %v3830_v15 = vunpack.i.h.bf16 %v3828_v14  ;;  %v3829_v16 = vunpack.i.l.bf16 %v3828_v14  ;;  %v841_v13 = vstv %s3493_s26  ;;  %s4735_s26 = sld [smem:[#allocation14 + $0x3]] }
 0x154   : > { %630 = vst.msk [vmem:[#allocation2 + $0x40] sm:$0x1f] %vm627_vm5, %v3829_v16  ;;  %631 = vst.msk [vmem:[#allocation2 + $0x60] sm:$0x1f] %vm627_vm5, %v3830_v15  ;;  %v855_v16 = vstv %s3494_s16  ;;  %s4739_s16 = sld [smem:[#allocation14 + $0x6]] }
 0x155   : > { %v655_v17 = vpop.permute.xlu1 %654  ;;  %v653_v18 = vpop.permute.xlu0 %652 }
 0x156   : > { %676 = vst.msk [vmem:[#allocation2 + $0x2d] sm:$0xff] %vm672_vm4, %v655_v17  ;;  %675 = vst.msk [vmem:[#allocation2 + $0x25] sm:$0xff] %vm672_vm4, %v653_v18 }
 0x157   : > { %v4581_v22 = vld [vmem:[#allocation2 + $0x4] sm:$0xff] }
 0x158   : > { %v758_v24 = vmul.f32 %v757_v19, %v4581_v22  ;;  %v4589_v28 = vld [vmem:[#allocation2] sm:$0xff]  ;;  %v828_v12 = vmul.f32 %v827_v7, %v4581_v22 }
 0x159   : > { %v659_v20 = vpop.permute.xlu1 %658  ;;  %v4579_v21 = vld [vmem:[#allocation2 + $0xc] sm:$0xff]  ;;  %v657_v25 = vpop.permute.xlu0 %656  ;;  %v772_v33 = vmul.f32 %v771_v27, %v4589_v28  ;;  %v725_v55 = vmul.f32 %v724_v31, %v4589_v28  ;;  %v842_v15 = vmul.f32 %v841_v13, %v4589_v28 }
 0x15a   : > { %678 = vst.msk [vmem:[#allocation2 + $0x4d] sm:$0xff] %vm672_vm4, %v659_v20  ;;  %v759_v23 = vmul.f32 %v757_v19, %v4579_v21  ;;  %v4586_v26 = vld [vmem:[#allocation2 + $0x8] sm:$0xff]  ;;  %677 = vst.msk [vmem:[#allocation2 + $0x45] sm:$0xff] %vm672_vm4, %v657_v25  ;;  %762 = vrot.lane.b32.xlu0 %v758_v24, %s4166_s18  ;;  %v829_v11 = vmul.f32 %v827_v7, %v4579_v21  ;;  %v869_v19 = vstv %s3495_s19  ;;  %v883_v24 = vstv %s3496_s27  ;;  %s4741_s19 = sld [smem:[#allocation14 + $0x7]]  ;;  %s4743_s27 = sld [smem:[#allocation14 + $0xa]] }
 0x15b   : > { %v773_v32 = vmul.f32 %v771_v27, %v4586_v26  ;;  %v726_v40 = vmul.f32 %v724_v31, %v4586_v26  ;;  %v843_v14 = vmul.f32 %v841_v13, %v4586_v26  ;;  %v1370_v25 = vstv %s3531_s15  ;;  %v4682_v31 = vld [vmem:[#allocation2 + $0xd] sm:$0xff]  ;;  %s4745_s15 = sld [smem:[#allocation14 + $0xe]] }
 0x15c   : > { %764 = vrot.lane.b32.xlu1 %v759_v23, %s4166_s18 }
 0x15d   : > { %v663_v29 = vpop.permute.xlu1 %662  ;;  %v661_v34 = vpop.permute.xlu0 %660  ;;  %v4605_v35 = vld [vmem:[#allocation2 + $0x28] sm:$0xff]  ;;  %v4608_v37 = vld [vmem:[#allocation2 + $0x20] sm:$0xff] }
 0x15e   : > { %680 = vst.msk [vmem:[#allocation2 + $0x6d] sm:$0xff] %vm672_vm4, %v663_v29  ;;  %679 = vst.msk [vmem:[#allocation2 + $0x65] sm:$0xff] %vm672_vm4, %v661_v34  ;;  %776 = vrot.lane.b32.xlu0 %v772_v33, %s4167_s23  ;;  %v735_v38 = vmul.f32 %v733_v30, %v4605_v35  ;;  %v787_v39 = vmul.f32 %v785_v36, %v4605_v35  ;;  %v786_v44 = vmul.f32 %v785_v36, %v4608_v37  ;;  %v4684_v33 = vld [vmem:[#allocation2 + $0x5] sm:$0xff] }
 0x15f   : > { %v734_v46 = vmul.f32 %v733_v30, %v4608_v37  ;;  %v857_v17 = vmul.f32 %v855_v16, %v4605_v35  ;;  %v856_v18 = vmul.f32 %v855_v16, %v4608_v37  ;;  %v1362_v30 = vstv %s3530_s14  ;;  %s4749_s14 = sld [smem:[#allocation14 + $0xb]] }
 0x160   : > { %778 = vrot.lane.b32.xlu1 %v773_v32, %s4167_s23  ;;  %v737_v50 = vadd.f32 %v735_v38, %v726_v40  ;;  %v935_v32 = vstv %s3502_s12  ;;  %v1372_v34 = vmul.f32 %v1370_v25, %v4605_v35  ;;  %v1371_v36 = vmul.f32 %v1370_v25, %v4608_v37  ;;  %s4751_s12 = sld [smem:[#allocation14 + $0xf]] }
 0x161   : > { %v3838_v41 = vpop.permute.xlu1 %3837  ;;  %v3833_v45 = vpop.permute.xlu0 %3832  ;;  %v4620_v47 = vld [vmem:[#allocation2 + $0x48] sm:$0xff]  ;;  %v4623_v49 = vld [vmem:[#allocation2 + $0x40] sm:$0xff]  ;;  %v736_v62 = vadd.f32 %v734_v46, %v725_v55  ;;  %v1364_v38 = vmul.f32 %v1362_v30, %v4586_v26  ;;  %v1386_v40 = vstv %s4672_s22  ;;  %v1005_v16 = vstv %s4724_s11  ;;  %s4780_s22 = sld [smem:[#allocation14 + $0x58]] }
 0x162   : > { %v3840_v42 = vunpack.i.h.bf16 %v3838_v41  ;;  %v3839_v43 = vunpack.i.l.bf16 %v3838_v41  ;;  %v3835_v51 = vunpack.i.h.bf16 %v3833_v45  ;;  %v3834_v52 = vunpack.i.l.bf16 %v3833_v45  ;;  %790 = vrot.lane.b32.xlu0 %v786_v44, %s4167_s23  ;;  %s3520_s11 = sld [smem:[#allocation14 + $0x78]] }
 0x163   : > { %v801_v53 = vmul.f32 %v799_v48, %v4620_v47  ;;  %v800_v56 = vmul.f32 %v799_v48, %v4623_v49  ;;  %v744_v60 = vmul.f32 %v742_v54, %v4620_v47  ;;  %v743_v63 = vmul.f32 %v742_v54, %v4623_v49 }
 0x164   : > { %711 = vst.msk [vmem:[#allocation2 + $0x55] sm:$0x1f] %vm627_vm5, %v3839_v43  ;;  %712 = vst.msk [vmem:[#allocation2 + $0x75] sm:$0x1f] %vm627_vm5, %v3840_v42  ;;  %792 = vrot.lane.b32.xlu1 %v787_v39, %s4167_s23  ;;  %v871_v20 = vmul.f32 %v869_v19, %v4620_v47  ;;  %v870_v23 = vmul.f32 %v869_v19, %v4623_v49  ;;  %v1378_v39 = vstv %s4670_s9  ;;  %v949_v44 = vstv %s4676_s20  ;;  %s4760_s9 = sld [smem:[#allocation14 + $0x54]] }
 0x165   : > { %709 = vst.msk [vmem:[#allocation2 + $0x15] sm:$0x1f] %vm627_vm5, %v3834_v52  ;;  %710 = vst.msk [vmem:[#allocation2 + $0x35] sm:$0x1f] %vm627_vm5, %v3835_v51  ;;  %v4638_v58 = vld [vmem:[#allocation2 + $0x68] sm:$0xff]  ;;  %v4640_v59 = vld [vmem:[#allocation2 + $0x60] sm:$0xff]  ;;  %v746_v4 = vadd.f32 %v744_v60, %v737_v50  ;;  %v745_v6 = vadd.f32 %v743_v63, %v736_v62  ;;  %v937_v41 = vmul.f32 %v935_v32, %v4682_v31  ;;  %v1994_v19 = vstv %s4733_s29 }
 0x166   : > { %804 = vrot.lane.b32.xlu0 %v800_v56, %s4167_s23  ;;  %v815_v2 = vmul.f32 %v813_v57, %v4638_v58  ;;  %v814_v3 = vmul.f32 %v813_v57, %v4640_v59  ;;  %v753_v5 = vmul.f32 %v751_v61, %v4638_v58  ;;  %v752_v8 = vmul.f32 %v751_v61, %v4640_v59  ;;  %v4709_v56 = vld [vmem:[#allocation2 + $0x2d] sm:$0xff]  ;;  %v4712_v60 = vld [vmem:[#allocation2 + $0x25] sm:$0xff]  ;;  %s4785_s20 = sld [smem:[#allocation14 + $0x5c]]  ;;  %s3522_s29 = sld [smem:[#allocation11 + $0x20]] }
 0x167   : > { %v885_v27 = vmul.f32 %v883_v24, %v4638_v58  ;;  %v884_v29 = vmul.f32 %v883_v24, %v4640_v59  ;;  %v936_v42 = vmul.f32 %v935_v32, %v4684_v33  ;;  %v1363_v43 = vmul.f32 %v1362_v30, %v4589_v28  ;;  %v4756_v13 = vld [vmem:[#allocation2 + $0x65] sm:$0xff] }
 0x168   : > { %806 = vrot.lane.b32.xlu1 %v801_v53, %s4167_s23  ;;  %v4654_v9 = vadd.f32 %v753_v5, %v746_v4  ;;  %v4656_v10 = vadd.f32 %v752_v8, %v745_v6  ;;  %v1374_v45 = vadd.f32 %v1372_v34, %v1364_v38  ;;  %v1380_v46 = vmul.f32 %v1378_v39, %v4620_v47  ;;  %v4728_v4 = vld [vmem:[#allocation2 + $0x4d] sm:$0xff]  ;;  %v4731_v6 = vld [vmem:[#allocation2 + $0x45] sm:$0xff] }
 0x169   : > { %v1388_v48 = vmul.f32 %v1386_v40, %v4638_v58  ;;  %v1373_v50 = vadd.f32 %v1371_v36, %v1363_v43  ;;  %v1379_v51 = vmul.f32 %v1378_v39, %v4623_v49  ;;  %v1387_v52 = vmul.f32 %v1386_v40, %v4640_v59  ;;  %v2007_v24 = vld [vmem:[#allocation2 + $0x40] sm:$0xff]  ;;  %v2000_v43 = vld [vmem:[#allocation2 + $0x28] sm:$0xff] }
 0x16a   : > { %818 = vrot.lane.b32.xlu0 %v814_v3, %s4167_s23  ;;  %v951_v53 = vmul.f32 %v949_v44, %v4682_v31  ;;  %v950_v54 = vmul.f32 %v949_v44, %v4684_v33  ;;  %v1382_v55 = vadd.f32 %v1380_v46, %v1374_v45  ;;  %v963_v57 = vstv %s4686_s17  ;;  %v2015_v25 = vld [vmem:[#allocation2 + $0x60] sm:$0xff]  ;;  %v2008_v44 = vld [vmem:[#allocation2 + $0x48] sm:$0xff]  ;;  %s3517_s17 = sld [smem:[#allocation11 + $0x1c]] }
 0x16b   : > { %v1381_v61 = vadd.f32 %v1379_v51, %v1373_v50  ;;  %v964_v3 = vmul.f32 %v963_v57, %v4712_v60  ;;  %v977_v5 = vstv %s4699_s25  ;;  %v2626_v30 = vstv %s4735_s26  ;;  %s3518_s25 = sld [smem:[#allocation14 + $0x70]] }
 0x16c   : > { %820 = vrot.lane.b32.xlu1 %v815_v2, %s4167_s23  ;;  %v4718_v62 = vadd.f32 %v1388_v48, %v1382_v55  ;;  %v965_v2 = vmul.f32 %v963_v57, %v4709_v56  ;;  %v979_v7 = vmul.f32 %v977_v5, %v4728_v4  ;;  %v978_v8 = vmul.f32 %v977_v5, %v4731_v6  ;;  %s3523_s26 = sld [smem:[#allocation14 + $0x80]] }
 0x16d   : > { %v4720_v63 = vadd.f32 %v1387_v52, %v1381_v61  ;;  %v2634_v32 = vstv %s4741_s19  ;;  %v1007_v34 = vmul.f32 %v1005_v16, %v4682_v31  ;;  %v1006_v36 = vmul.f32 %v1005_v16, %v4684_v33  ;;  %v2016_v52 = vld [vmem:[#allocation2 + $0x68] sm:$0xff]  ;;  %s3525_s19 = sld [smem:[#allocation14 + $0x88]] }
 0x16e   : > { %832 = vrot.lane.b32.xlu0 %v828_v12, %s4168_s24  ;;  %v991_v12 = vstv %s4714_s5  ;;  %v2642_v38 = vstv %s4749_s14  ;;  %v2650_v39 = vstv %s4751_s12  ;;  %s3519_s5 = sld [smem:[#allocation14 + $0x74]]  ;;  %s3535_s14 = sld [smem:[#allocation14 + $0x11]] }
 0x16f   : > { %v1033_v46 = vstv %s4760_s9  ;;  %v2643_v55 = vmul.f32 %v2642_v38, %v2007_v24  ;;  %v2651_v57 = vmul.f32 %v2650_v39, %v2015_v25  ;;  %s715_s12 = sld [smem:[#allocation11]]  ;;  %s4170_s9 = smov 4  }
 0x170   : > { %834 = vrot.lane.b32.xlu1 %v829_v11, %s4168_s24  ;;  %v4753_v11 = vld [vmem:[#allocation2 + $0x6d] sm:$0xff] }
 0x172   : > { %846 = vrot.lane.b32.xlu0 %v842_v15, %s4169_s4  ;;  %v992_v15 = vmul.f32 %v991_v12, %v4756_v13 }
 0x174   : > { %848 = vrot.lane.b32.xlu1 %v843_v14, %s4169_s4  ;;  %v993_v14 = vmul.f32 %v991_v12, %v4753_v11  ;;  %v2636_v12 = vmul.f32 %v2634_v32, %v2000_v43 }
 0x176   : > { %860 = vrot.lane.b32.xlu0 %v856_v18, %s4169_s4  ;;  %v1999_v18 = vld [vmem:[#allocation2 + $0x20] sm:$0xff] }
 0x178   : > { %862 = vrot.lane.b32.xlu1 %v857_v17, %s4169_s4  ;;  %v1019_v17 = vstv %s4726_s1  ;;  %s3521_s1 = sld [smem:[#allocation14 + $0x7c]] }
 0x179   : > { %v1021_v40 = vmul.f32 %v1019_v17, %v4682_v31 }
 0x17a   : > { %874 = vrot.lane.b32.xlu0 %v870_v23, %s4169_s4  ;;  %v1991_v23 = vld [vmem:[#allocation2] sm:$0xff] }
 0x17b   : > { %v1995_v51 = vmul.f32 %v1994_v19, %v1991_v23 }
 0x17c   : > { %876 = vrot.lane.b32.xlu1 %v871_v20, %s4169_s4  ;;  %v2002_v20 = vstv %s4739_s16  ;;  %s3524_s16 = sld [smem:[#allocation14 + $0x84]] }
 0x17d   : > { %v2003_v45 = vmul.f32 %v2002_v20, %v1999_v18 }
 0x17e   : > { %888 = vrot.lane.b32.xlu0 %v884_v29, %s4169_s4  ;;  %v2018_v29 = vstv %s4745_s15  ;;  %s3534_s15 = sld [smem:[#allocation11 + $0x5]] }
 0x17f   : > { %v2019_v50 = vmul.f32 %v2018_v29, %v2015_v25  ;;  %v2005_v61 = vadd.f32 %v2003_v45, %v1995_v51  ;;  %v4811_v45 = vld [vmem:[#allocation2 + $0x6] sm:$0xff]  ;;  %v1129_v51 = vstv %s3518_s25  ;;  %s4895_s25 = sld [smem:[#allocation14 + $0x1d]] }
 0x180   : > { %890 = vrot.lane.b32.xlu1 %v885_v27, %s4169_s4  ;;  %v2010_v27 = vstv %s4743_s27  ;;  %s3526_s27 = sld [smem:[#allocation14 + $0x8c]] }
 0x181   : > { %v2011_v48 = vmul.f32 %v2010_v27, %v2007_v24  ;;  %v2012_v5 = vmul.f32 %v2010_v27, %v2008_v44  ;;  %v1034_v24 = vmul.f32 %v1033_v46, %v4712_v60 }
 0x182   : > { %940 = vrot.lane.b32.xlu0 %v936_v42, %s4166_s18  ;;  %v1992_v42 = vld [vmem:[#allocation2 + $0x8] sm:$0xff] }
 0x184   : > { %942 = vrot.lane.b32.xlu1 %v937_v41, %s4166_s18  ;;  %v1020_v41 = vmul.f32 %v1019_v17, %v4684_v33  ;;  %v2020_v17 = vmul.f32 %v2018_v29, %v2016_v52 }
 0x186   : > { %954 = vrot.lane.b32.xlu0 %v950_v54, %s4167_s23  ;;  %v2635_v54 = vmul.f32 %v2634_v32, %v1999_v18 }
 0x188   : > { %956 = vrot.lane.b32.xlu1 %v951_v53, %s4167_s23  ;;  %v2627_v53 = vmul.f32 %v2626_v30, %v1991_v23 }
 0x18a   : > { %968 = vrot.lane.b32.xlu0 %v964_v3, %s4167_s23  ;;  %v2004_v3 = vmul.f32 %v2002_v20, %v2000_v43  ;;  %v1035_v20 = vmul.f32 %v1033_v46, %v4709_v56  ;;  %v4809_v43 = vld [vmem:[#allocation2 + $0xe] sm:$0xff] }
 0x18c   : > { %970 = vrot.lane.b32.xlu1 %v965_v2, %s4167_s23  ;;  %v1996_v2 = vmul.f32 %v1994_v19, %v1992_v42  ;;  %v2652_v19 = vmul.f32 %v2650_v39, %v2016_v52  ;;  %v4819_v52 = vld [vmem:[#allocation2 + $0xa] sm:$0xff] }
 0x18e   : > { %982 = vrot.lane.b32.xlu0 %v978_v8, %s4167_s23  ;;  %v2628_v8 = vmul.f32 %v2626_v30, %v1992_v42  ;;  %v2006_v16 = vadd.f32 %v2004_v3, %v1996_v2  ;;  %v1047_v30 = vstv %s4780_s22  ;;  %s3536_s22 = sld [smem:[#allocation14 + $0x15]] }
 0x18f   : > { %v1048_v39 = vmul.f32 %v1047_v30, %v4731_v6 }
 0x190   : > { %984 = vrot.lane.b32.xlu1 %v979_v7, %s4167_s23  ;;  %v2637_v7 = vadd.f32 %v2635_v54, %v2627_v53  ;;  %v2638_v23 = vadd.f32 %v2636_v12, %v2628_v8  ;;  %v2014_v27 = vadd.f32 %v2012_v5, %v2006_v16  ;;  %v1130_v54 = vmul.f32 %v1129_v51, %v4819_v52  ;;  %v4833_v5 = vld [vmem:[#allocation2 + $0x52] sm:$0xff]  ;;  %v4835_v8 = vld [vmem:[#allocation2 + $0x4a] sm:$0xff] }
 0x191   : > { %v1171_v16 = vstv %s3521_s1  ;;  %s4922_s1 = sld [smem:[#allocation14 + $0x30]] }
 0x192   : > { %996 = vrot.lane.b32.xlu0 %v992_v15, %s4167_s23  ;;  %v2013_v15 = vadd.f32 %v2011_v48, %v2005_v61  ;;  %v2645_v18 = vadd.f32 %v2643_v55, %v2637_v7  ;;  %v4798_v29 = vadd.f32 %v2020_v17, %v2014_v27  ;;  %v4825_v55 = vld [vmem:[#allocation2 + $0x32] sm:$0xff]  ;;  %v4827_v61 = vld [vmem:[#allocation2 + $0x2a] sm:$0xff]  ;;  %v1157_v7 = vstv %s3520_s11  ;;  %s4918_s11 = sld [smem:[#allocation14 + $0x21]] }
 0x193   : > { %v1159_v12 = vmul.f32 %v1157_v7, %v4833_v5  ;;  %v4843_v17 = vld [vmem:[#allocation2 + $0x6a] sm:$0xff]  ;;  %v1199_v27 = vstv %s3523_s26  ;;  %s4928_s26 = sld [smem:[#allocation14 + $0x25]] }
 0x194   : > { %998 = vrot.lane.b32.xlu1 %v993_v14, %s4167_s23  ;;  %v2644_v14 = vmul.f32 %v2642_v38, %v2008_v44  ;;  %v4791_v25 = vadd.f32 %v2019_v50, %v2013_v15  ;;  %v4794_v32 = vadd.f32 %v2651_v57, %v2645_v18  ;;  %v1049_v38 = vmul.f32 %v1047_v30, %v4728_v4  ;;  %v4817_v50 = vld [vmem:[#allocation2 + $0x12] sm:$0xff] }
 0x195   : > { %v1115_v44 = vstv %s3517_s17  ;;  %v1131_v53 = vmul.f32 %v1129_v51, %v4817_v50  ;;  %v1143_v57 = vstv %s3519_s5  ;;  %v4841_v15 = vld [vmem:[#allocation2 + $0x72] sm:$0xff]  ;;  %v1201_v30 = vmul.f32 %v1199_v27, %v4817_v50  ;;  %s4887_s17 = sld [smem:[#allocation14 + $0x19]] }
 0x196   : > { %1010 = vrot.lane.b32.xlu0 %v1006_v36, %s4168_s24  ;;  %v1117_v46 = vmul.f32 %v1115_v44, %v4809_v43  ;;  %v1116_v48 = vmul.f32 %v1115_v44, %v4811_v45  ;;  %v1145_v2 = vmul.f32 %v1143_v57, %v4825_v55  ;;  %v1144_v3 = vmul.f32 %v1143_v57, %v4827_v61  ;;  %v1299_v57 = vld [vmem:[%s4507_s13 + $0x8] sm:$0xff]  ;;  %s4903_s5 = sld [smem:[#allocation11 + $0x9]] }
 0x197   : > { %v1173_v18 = vmul.f32 %v1171_v16, %v4841_v15 }
 0x198   : > { %1012 = vrot.lane.b32.xlu1 %v1007_v34, %s4168_s24  ;;  %v2646_v34 = vadd.f32 %v2644_v14, %v2638_v23  ;;  %v1158_v14 = vmul.f32 %v1157_v7, %v4835_v8  ;;  %v1172_v23 = vmul.f32 %v1171_v16, %v4843_v17  ;;  %v4875_v16 = vld [vmem:[#allocation2 + $0x2c] sm:$0xff] }
 0x19a   : > { %1024 = vrot.lane.b32.xlu0 %v1020_v41, %s4169_s4  ;;  %v4800_v36 = vadd.f32 %v2652_v19, %v2646_v34  ;;  %v1185_v19 = vstv %s3522_s29  ;;  %v1200_v34 = vmul.f32 %v1199_v27, %v4819_v52  ;;  %s4926_s29 = sld [smem:[#allocation14 + $0x34]] }
 0x19c   : > { %1026 = vrot.lane.b32.xlu1 %v1021_v40, %s4169_s4  ;;  %v1061_v40 = vstv %s4785_s20  ;;  %s4883_s20 = sld [smem:[#allocation11 + $0xc]] }
 0x19d   : > { %v1063_v41 = vmul.f32 %v1061_v40, %v4753_v11  ;;  %v1062_v42 = vmul.f32 %v1061_v40, %v4756_v13 }
 0x19e   : > { %1038 = vrot.lane.b32.xlu0 %v1034_v24, %s4169_s4  ;;  %v1186_v24 = vmul.f32 %v1185_v19, %v4811_v45 }
 0x1a0   : > { %1040 = vrot.lane.b32.xlu1 %v1035_v20, %s4169_s4  ;;  %v1187_v20 = vmul.f32 %v1185_v19, %v4809_v43 }
 0x1a2   : > { %1052 = vrot.lane.b32.xlu0 %v1048_v39, %s4169_s4 }
 0x1a4   : > { %1054 = vrot.lane.b32.xlu1 %v1049_v38, %s4169_s4  ;;  %v1213_v38 = vstv %s3524_s16  ;;  %s4933_s16 = sld [smem:[#allocation14 + $0x38]] }
 0x1a5   : > { %v1215_v39 = vmul.f32 %v1213_v38, %v4825_v55  ;;  %v1214_v40 = vmul.f32 %v1213_v38, %v4827_v61 }
 0x1a6   : > { %1066 = vrot.lane.b32.xlu0 %v1062_v42, %s4169_s4 }
 0x1a8   : > { %1068 = vrot.lane.b32.xlu1 %v1063_v41, %s4169_s4  ;;  %v1227_v41 = vstv %s3525_s19  ;;  %s4937_s19 = sld [smem:[#allocation14 + $0x3c]] }
 0x1a9   : > { %v1229_v42 = vmul.f32 %v1227_v41, %v4833_v5  ;;  %v1228_v44 = vmul.f32 %v1227_v41, %v4835_v8 }
 0x1aa   : > { %1120 = vrot.lane.b32.xlu0 %v1116_v48, %s4166_s18 }
 0x1ac   : > { %1122 = vrot.lane.b32.xlu1 %v1117_v46, %s4166_s18  ;;  %v1241_v46 = vstv %s3526_s27  ;;  %s4939_s27 = sld [smem:[#allocation14 + $0x29]] }
 0x1ae   : > { %1134 = vrot.lane.b32.xlu0 %v1130_v54, %s4167_s23  ;;  %v1242_v54 = vmul.f32 %v1241_v46, %v4843_v17 }
 0x1b0   : > { %1136 = vrot.lane.b32.xlu1 %v1131_v53, %s4167_s23  ;;  %v1243_v53 = vmul.f32 %v1241_v46, %v4841_v15 }
 0x1b2   : > { %1148 = vrot.lane.b32.xlu0 %v1144_v3, %s4167_s23 }
 0x1b4   : > { %1150 = vrot.lane.b32.xlu1 %v1145_v2, %s4167_s23  ;;  %v1298_v2 = vld [vmem:[%s4507_s13] sm:$0xff] }
 0x1b6   : > { %1162 = vrot.lane.b32.xlu0 %v1158_v14, %s4167_s23 }
 0x1b8   : > { %1164 = vrot.lane.b32.xlu1 %v1159_v12, %s4167_s23 }
 0x1ba   : > { %1176 = vrot.lane.b32.xlu0 %v1172_v23, %s4167_s23  ;;  %v4877_v23 = vld [vmem:[#allocation2 + $0x24] sm:$0xff] }
 0x1bc   : > { %1178 = vrot.lane.b32.xlu1 %v1173_v18, %s4167_s23  ;;  %v1392_v18 = vstv %s3534_s15  ;;  %s4951_s15 = sld [smem:[#allocation14 + $0x2d]] }
 0x1bd   : > { %v1393_v27 = vmul.f32 %v1392_v18, %v4877_v23 }
 0x1be   : > { %1190 = vrot.lane.b32.xlu0 %v1186_v24, %s4168_s24  ;;  %v1394_v24 = vmul.f32 %v1392_v18, %v4875_v16 }
 0x1c0   : > { %1192 = vrot.lane.b32.xlu1 %v1187_v20, %s4168_s24 }
 0x1c2   : > { %1204 = vrot.lane.b32.xlu0 %v1200_v34, %s4169_s4  ;;  %v716_v34 = vstv %s715_s12  ;;  %s3550_s12 = sld [smem:[#allocation14 + $0x41]] }
 0x1c3   : > { %v717_v41 = vmul.f32 %v716_v34, %v4581_v22 }
 0x1c4   : > { %1206 = vrot.lane.b32.xlu1 %v1201_v30, %s4169_s4  ;;  %v1406_v30 = vstv %s3535_s14  ;;  %s3549_s14 = sld [smem:[#allocation11 + $0x11]] }
 0x1c6   : > { %1218 = vrot.lane.b32.xlu0 %v1214_v40, %s4169_s4  ;;  %v718_v40 = vmul.f32 %v716_v34, %v4579_v21 }
 0x1c8   : > { %1220 = vrot.lane.b32.xlu1 %v1215_v39, %s4169_s4  ;;  %v1407_v39 = vmul.f32 %v1406_v30, %v4589_v28 }
 0x1ca   : > { %1232 = vrot.lane.b32.xlu0 %v1228_v44, %s4169_s4  ;;  %v899_v44 = vstv %s4883_s20  ;;  %s3512_s20 = sld [smem:[#allocation11 + $0x18]] }
 0x1cb   : > { %v901_v22 = vmul.f32 %v899_v44, %v4682_v31 }
 0x1cc   : > { %1234 = vrot.lane.b32.xlu1 %v1229_v42, %s4169_s4  ;;  %v763_v51 = vpop.permute.xlu0 %762  ;;  %v1420_v42 = vstv %s3536_s22  ;;  %s3551_s22 = sld [smem:[#allocation14 + $0x45]] }
 0x1cd   : > { %v1421_v18 = vmul.f32 %v1420_v42, %v4608_v37 }
 0x1ce   : > { %v765_v48 = vpop.permute.xlu1 %764  ;;  %1246 = vrot.lane.b32.xlu0 %v1242_v54, %s4169_s4 }
 0x1cf   : > { %v769_v46 = vadd.f32 %v765_v48, %v718_v40 }
 0x1d0   : > { %1248 = vrot.lane.b32.xlu1 %v1243_v53, %s4169_s4  ;;  %v777_v7 = vpop.permute.xlu0 %776  ;;  %v768_v53 = vadd.f32 %v763_v51, %v717_v41 }
 0x1d1   : > { %v782_v51 = vadd.f32 %v777_v7, %v4656_v10 }
 0x1d2   : > { %v779_v3 = vpop.permute.xlu1 %778  ;;  %1302 = vrot.lane.b32.xlu0 %v1298_v2, %s4170_s9  ;;  %v1422_v2 = vmul.f32 %v1420_v42, %v4605_v35 }
 0x1d3   : > { %v783_v48 = vadd.f32 %v779_v3, %v4654_v9 }
 0x1d4   : > { %1304 = vrot.lane.b32.xlu1 %v1299_v57, %s4170_s9  ;;  %v791_v14 = vpop.permute.xlu0 %790 }
 0x1d6   : > { %v793_v12 = vpop.permute.xlu1 %792  ;;  %1314 = vrot.lane.b32.xlu0 %v4526_v0, %s4170_s9  ;;  %v1408_v0 = vmul.f32 %v1406_v30, %v4586_v26  ;;  %v900_v30 = vmul.f32 %v899_v44, %v4684_v33  ;;  %v796_v44 = vadd.f32 %v791_v14, %v782_v51 }
 0x1d8   : > { %1316 = vrot.lane.b32.xlu1 %v4531_v1, %s4170_s9  ;;  %v805_v20 = vpop.permute.xlu0 %804 }
 0x1d9   : > { %v810_v10 = vadd.f32 %v805_v20, %v796_v44  ;;  %v1490_v44 = vstv %s4928_s26  ;;  %s5017_s26 = sld [smem:[#allocation14 + $0x55]] }
 0x1da   : > { %v807_v19 = vpop.permute.xlu1 %806  ;;  %1397 = vrot.lane.b32.xlu0 %v1393_v27, %s4166_s18 }
 0x1dc   : > { %1399 = vrot.lane.b32.xlu1 %v1394_v24, %s4166_s18  ;;  %v819_v38 = vpop.permute.xlu0 %818  ;;  %v1434_v24 = vstv %s4887_s17  ;;  %s4977_s17 = sld [smem:[#allocation14 + $0x49]] }
 0x1dd   : > { %v1436_v41 = vmul.f32 %v1434_v24, %v4620_v47  ;;  %v1435_v42 = vmul.f32 %v1434_v24, %v4623_v49  ;;  %v824_v14 = vadd.f32 %v819_v38, %v810_v10 }
 0x1de   : > { %v821_v1 = vpop.permute.xlu1 %820  ;;  %1411 = vrot.lane.b32.xlu0 %v1407_v39, %s4167_s23 }
 0x1e0   : > { %1413 = vrot.lane.b32.xlu1 %v1408_v0, %s4167_s23  ;;  %v833_v57 = vpop.permute.xlu0 %832 }
 0x1e1   : > { %v838_v27 = vadd.f32 %v833_v57, %v768_v53  ;;  %v1448_v53 = vstv %s4895_s25  ;;  %s4985_s25 = sld [smem:[#allocation14 + $0x4d]] }
 0x1e2   : > { %v835_v54 = vpop.permute.xlu1 %834  ;;  %1425 = vrot.lane.b32.xlu0 %v1421_v18, %s4167_s23  ;;  %v1449_v57 = vmul.f32 %v1448_v53, %v4640_v59 }
 0x1e3   : > { %v839_v21 = vadd.f32 %v835_v54, %v769_v46  ;;  %v4913_v0 = vadd.f32 %v900_v30, %v838_v27  ;;  %v797_v46 = vadd.f32 %v793_v12, %v783_v48  ;;  %v1450_v54 = vmul.f32 %v1448_v53, %v4638_v58 }
 0x1e4   : > { %1427 = vrot.lane.b32.xlu1 %v1422_v2, %s4167_s23  ;;  %v847_v40 = vpop.permute.xlu0 %846  ;;  %v1462_v2 = vstv %s4903_s5  ;;  %v905_v30 = vstv %s4922_s1  ;;  %s4996_s5 = sld [smem:[#allocation11 + $0x15]]  ;;  %s5011_s1 = sld [smem:[#allocation14 + $0x60]] }
 0x1e5   : > { %v4911_v34 = vadd.f32 %v901_v22, %v839_v21  ;;  %v811_v9 = vadd.f32 %v807_v19, %v797_v46  ;;  %v852_v20 = vadd.f32 %v847_v40, %v824_v14  ;;  %v1464_v21 = vmul.f32 %v1462_v2, %v4875_v16 }
 0x1e6   : > { %v849_v39 = vpop.permute.xlu1 %848  ;;  %1439 = vrot.lane.b32.xlu0 %v1435_v42, %s4167_s23  ;;  %v1463_v27 = vmul.f32 %v1462_v2, %v4877_v23  ;;  %v1476_v22 = vstv %s4918_s11  ;;  %v907_v53 = vmul.f32 %v905_v30, %v4682_v31  ;;  %v906_v10 = vmul.f32 %v905_v30, %v4684_v33  ;;  %s5007_s11 = sld [smem:[#allocation14 + $0x51]] }
 0x1e7   : > { %v825_v12 = vadd.f32 %v821_v1, %v811_v9  ;;  %v1478_v42 = vmul.f32 %v1476_v22, %v4586_v26  ;;  %v1477_v46 = vmul.f32 %v1476_v22, %v4589_v28  ;;  %v1492_v2 = vmul.f32 %v1490_v44, %v4605_v35 }
 0x1e8   : > { %1441 = vrot.lane.b32.xlu1 %v1436_v41, %s4167_s23  ;;  %v861_v7 = vpop.permute.xlu0 %860 }
 0x1e9   : > { %v853_v19 = vadd.f32 %v849_v39, %v825_v12  ;;  %v866_v38 = vadd.f32 %v861_v7, %v852_v20  ;;  %v913_v39 = vstv %s4926_s29  ;;  %v921_v7 = vstv %s4933_s16  ;;  %s5015_s29 = sld [smem:[#allocation14 + $0x64]]  ;;  %s5022_s16 = sld [smem:[#allocation14 + $0x68]] }
 0x1ea   : > { %v863_v3 = vpop.permute.xlu1 %862  ;;  %1453 = vrot.lane.b32.xlu0 %v1449_v57, %s4167_s23  ;;  %v915_v26 = vmul.f32 %v913_v39, %v4709_v56  ;;  %v914_v28 = vmul.f32 %v913_v39, %v4712_v60  ;;  %v929_v20 = vstv %s4937_s19  ;;  %s5026_s19 = sld [smem:[#allocation14 + $0x6c]] }
 0x1eb   : > { %v867_v1 = vadd.f32 %v863_v3, %v853_v19  ;;  %v1491_v19 = vmul.f32 %v1490_v44, %v4608_v37  ;;  %v931_v22 = vmul.f32 %v929_v20, %v4753_v11  ;;  %v930_v37 = vmul.f32 %v929_v20, %v4756_v13 }
 0x1ec   : > { %1455 = vrot.lane.b32.xlu1 %v1450_v54, %s4167_s23  ;;  %v875_v24 = vpop.permute.xlu0 %874 }
 0x1ed   : > { %v880_v51 = vadd.f32 %v875_v24, %v866_v38 }
 0x1ee   : > { %v877_v18 = vpop.permute.xlu1 %876  ;;  %1467 = vrot.lane.b32.xlu0 %v1463_v27, %s4168_s24  ;;  %v923_v27 = vmul.f32 %v921_v7, %v4728_v4 }
 0x1ef   : > { %v881_v48 = vadd.f32 %v877_v18, %v867_v1  ;;  %v1504_v18 = vstv %s4939_s27  ;;  %v922_v1 = vmul.f32 %v921_v7, %v4731_v6  ;;  %s5028_s27 = sld [smem:[#allocation14 + $0x59]] }
 0x1f0   : > { %1469 = vrot.lane.b32.xlu1 %v1464_v21, %s4168_s24  ;;  %v889_v41 = vpop.permute.xlu0 %888  ;;  %v1505_v39 = vmul.f32 %v1504_v18, %v4623_v49 }
 0x1f1   : > { %v894_v3 = vadd.f32 %v889_v41, %v880_v51  ;;  %v1506_v51 = vmul.f32 %v1504_v18, %v4620_v47  ;;  %v1612_v18 = vstv %s4977_s17  ;;  %s3568_s17 = sld [smem:[#allocation14 + $0x7d]] }
 0x1f2   : > { %v891_v40 = vpop.permute.xlu1 %890  ;;  %1481 = vrot.lane.b32.xlu0 %v1477_v46, %s4169_s4 }
 0x1f3   : > { %v895_v9 = vadd.f32 %v891_v40, %v881_v48  ;;  %v908_v57 = vadd.f32 %v906_v10, %v894_v3  ;;  %v1570_v10 = vstv %s3549_s14  ;;  %s3564_s14 = sld [smem:[#allocation11 + $0x1d]] }
 0x1f4   : > { %1483 = vrot.lane.b32.xlu1 %v1478_v42, %s4169_s4  ;;  %v941_v14 = vpop.permute.xlu0 %940  ;;  %v1518_v42 = vstv %s4951_s15  ;;  %v1572_v3 = vmul.f32 %v1570_v10, %v4709_v56  ;;  %v1571_v7 = vmul.f32 %v1570_v10, %v4712_v60  ;;  %s5040_s15 = sld [smem:[#allocation14 + $0x5d]] }
 0x1f5   : > { %v909_v54 = vadd.f32 %v907_v53, %v895_v9  ;;  %v916_v21 = vadd.f32 %v914_v28, %v908_v57  ;;  %v1520_v53 = vmul.f32 %v1518_v42, %v4638_v58  ;;  %v1519_v9 = vmul.f32 %v1518_v42, %v4640_v59 }
 0x1f6   : > { %v943_v12 = vpop.permute.xlu1 %942  ;;  %1495 = vrot.lane.b32.xlu0 %v1491_v19, %s4169_s4  ;;  %v1598_v57 = vstv %s3551_s22  ;;  %v946_v20 = vadd.f32 %v941_v14, %v4913_v0  ;;  %s3566_s22 = sld [smem:[#allocation14 + $0x75]] }
 0x1f7   : > { %v917_v24 = vadd.f32 %v915_v26, %v909_v54  ;;  %v924_v35 = vadd.f32 %v922_v1, %v916_v21  ;;  %v1584_v26 = vstv %s3550_s12  ;;  %v947_v19 = vadd.f32 %v943_v12, %v4911_v34  ;;  %s3565_s12 = sld [smem:[#allocation14 + $0x71]] }
 0x1f8   : > { %1497 = vrot.lane.b32.xlu1 %v1492_v2, %s4169_s4  ;;  %v955_v48 = vpop.permute.xlu0 %954  ;;  %v1586_v54 = vmul.f32 %v1584_v26, %v4682_v31  ;;  %v1585_v28 = vmul.f32 %v1584_v26, %v4684_v33  ;;  %v1077_v2 = vstv %s3512_s20  ;;  %v1599_v1 = vmul.f32 %v1598_v57, %v4712_v60  ;;  %s3567_s20 = sld [smem:[#allocation14 + $0x79]] }
 0x1f9   : > { %v925_v38 = vadd.f32 %v923_v27, %v917_v24  ;;  %v932_v41 = vadd.f32 %v930_v37, %v924_v35  ;;  %v1600_v27 = vmul.f32 %v1598_v57, %v4709_v56 }
 0x1fa   : > { %v957_v30 = vpop.permute.xlu1 %956  ;;  %1509 = vrot.lane.b32.xlu0 %v1505_v39, %s4169_s4 }
 0x1fb   : > { %v933_v40 = vadd.f32 %v931_v22, %v925_v38  ;;  %v1079_v38 = vmul.f32 %v1077_v2, %v4809_v43  ;;  %v1078_v22 = vmul.f32 %v1077_v2, %v4811_v45  ;;  %v960_v37 = vadd.f32 %v955_v48, %v932_v41 }
 0x1fc   : > { %1511 = vrot.lane.b32.xlu1 %v1506_v51, %s4169_s4  ;;  %v969_v44 = vpop.permute.xlu0 %968  ;;  %v1614_v43 = vmul.f32 %v1612_v18, %v4728_v4  ;;  %v1613_v45 = vmul.f32 %v1612_v18, %v4731_v6  ;;  %v1654_v2 = vstv %s5007_s11  ;;  %s3571_s11 = sld [smem:[#allocation14 + $0x85]] }
 0x1fd   : > { %v961_v35 = vadd.f32 %v957_v30, %v933_v40  ;;  %v974_v48 = vadd.f32 %v969_v44, %v960_v37  ;;  %v1626_v40 = vstv %s4985_s25  ;;  %s3569_s25 = sld [smem:[#allocation11 + $0x21]] }
 0x1fe   : > { %v971_v46 = vpop.permute.xlu1 %970  ;;  %1523 = vrot.lane.b32.xlu0 %v1519_v9, %s4169_s4  ;;  %v1628_v10 = vmul.f32 %v1626_v40, %v4753_v11 }
 0x1ff   : > { %v975_v30 = vadd.f32 %v971_v46, %v961_v35 }
 0x200   : > { %1525 = vrot.lane.b32.xlu1 %v1520_v53, %s4169_s4  ;;  %v983_v49 = vpop.permute.xlu0 %982 }
 0x201   : > { %v988_v42 = vadd.f32 %v983_v49, %v974_v48 }
 0x202   : > { %v985_v47 = vpop.permute.xlu1 %984  ;;  %1575 = vrot.lane.b32.xlu0 %v1571_v7, %s4166_s18  ;;  %v1640_v7 = vstv %s4996_s5  ;;  %s3570_s5 = sld [smem:[#allocation14 + $0x81]] }
 0x203   : > { %v989_v41 = vadd.f32 %v985_v47, %v975_v30  ;;  %v1641_v57 = vmul.f32 %v1640_v7, %v4712_v60 }
 0x204   : > { %1577 = vrot.lane.b32.xlu1 %v1572_v3, %s4166_s18  ;;  %v997_v59 = vpop.permute.xlu0 %996  ;;  %v1627_v3 = vmul.f32 %v1626_v40, %v4756_v13 }
 0x205   : > { %v1002_v44 = vadd.f32 %v997_v59, %v988_v42  ;;  %v1682_v42 = vstv %s5028_s27  ;;  %s3545_s27 = sld [smem:[#allocation14 + $0x31]] }
 0x206   : > { %v999_v58 = vpop.permute.xlu1 %998  ;;  %1589 = vrot.lane.b32.xlu0 %v1585_v28, %s4167_s23  ;;  %v1642_v28 = vmul.f32 %v1640_v7, %v4709_v56 }
 0x207   : > { %v1003_v46 = vadd.f32 %v999_v58, %v989_v41  ;;  %v1109_v41 = vstv %s5026_s19  ;;  %s3544_s19 = sld [smem:[#allocation11 + $0xd]] }
 0x208   : > { %1591 = vrot.lane.b32.xlu1 %v1586_v54, %s4167_s23  ;;  %v1011_v21 = vpop.permute.xlu0 %1010 }
 0x209   : > { %v1016_v39 = vadd.f32 %v1011_v21, %v946_v20 }
 0x20a   : > { %v1013_v24 = vpop.permute.xlu1 %1012  ;;  %1603 = vrot.lane.b32.xlu0 %v1599_v1, %s4167_s23  ;;  %v1656_v1 = vmul.f32 %v1654_v2, %v4682_v31 }
 0x20b   : > { %v1017_v51 = vadd.f32 %v1013_v24, %v947_v19  ;;  %v5002_v0 = vadd.f32 %v1078_v22, %v1016_v39  ;;  %v1085_v19 = vstv %s5011_s1  ;;  %v1093_v24 = vstv %s5015_s29  ;;  %s3572_s1 = sld [smem:[#allocation14 + $0x89]]  ;;  %s5116_s29 = sld [smem:[#allocation14 + $0x8d]] }
 0x20c   : > { %1605 = vrot.lane.b32.xlu1 %v1600_v27, %s4167_s23  ;;  %v1025_v14 = vpop.permute.xlu0 %1024  ;;  %v1668_v22 = vstv %s5017_s26  ;;  %v1087_v35 = vmul.f32 %v1085_v19, %v4817_v50  ;;  %v1095_v31 = vmul.f32 %v1093_v24, %v4825_v55  ;;  %s1258_s26 = sld [smem:[#allocation15]] }
 0x20d   : > { %v5000_v34 = vadd.f32 %v1079_v38, %v1017_v51  ;;  %v1030_v49 = vadd.f32 %v1025_v14, %v1002_v44  ;;  %v1655_v38 = vmul.f32 %v1654_v2, %v4684_v33  ;;  %v1086_v51 = vmul.f32 %v1085_v19, %v4819_v52 }
 0x20e   : > { %v1027_v12 = vpop.permute.xlu1 %1026  ;;  %1617 = vrot.lane.b32.xlu0 %v1613_v45, %s4167_s23  ;;  %v1094_v33 = vmul.f32 %v1093_v24, %v4827_v61  ;;  %v1670_v48 = vmul.f32 %v1668_v22, %v4709_v56  ;;  %v1669_v40 = vmul.f32 %v1668_v22, %v4712_v60  ;;  %v1111_v44 = vmul.f32 %v1109_v41, %v4841_v15 }
 0x20f   : > { %v1031_v47 = vadd.f32 %v1027_v12, %v1003_v46  ;;  %v1101_v12 = vstv %s5022_s16  ;;  %v1110_v60 = vmul.f32 %v1109_v41, %v4843_v17  ;;  %s3529_s16 = sld [smem:[#allocation11 + $0x1]] }
 0x210   : > { %1619 = vrot.lane.b32.xlu1 %v1614_v43, %s4167_s23  ;;  %v1039_v9 = vpop.permute.xlu0 %1038 }
 0x211   : > { %v1044_v59 = vadd.f32 %v1039_v9, %v1030_v49  ;;  %v1684_v49 = vmul.f32 %v1682_v42, %v4728_v4  ;;  %v1750_v4 = vstv %s3564_s14  ;;  %s5159_s14 = sld [smem:[#allocation14 + $0x39]] }
 0x212   : > { %v1041_v53 = vpop.permute.xlu1 %1040  ;;  %1631 = vrot.lane.b32.xlu0 %v1627_v3, %s4167_s23  ;;  %v1102_v3 = vmul.f32 %v1101_v12, %v4835_v8 }
 0x213   : > { %v1045_v58 = vadd.f32 %v1041_v53, %v1031_v47 }
 0x214   : > { %1633 = vrot.lane.b32.xlu1 %v1628_v10, %s4167_s23  ;;  %v1053_v54 = vpop.permute.xlu0 %1052  ;;  %v1103_v10 = vmul.f32 %v1101_v12, %v4833_v5 }
 0x215   : > { %v1058_v18 = vadd.f32 %v1053_v54, %v1044_v59 }
 0x216   : > { %v1055_v26 = vpop.permute.xlu1 %1054  ;;  %1645 = vrot.lane.b32.xlu0 %v1641_v57, %s4168_s24  ;;  %v1696_v57 = vstv %s5040_s15  ;;  %s3546_s15 = sld [smem:[#allocation14 + $0x35]] }
 0x217   : > { %v1059_v20 = vadd.f32 %v1055_v26, %v1045_v58  ;;  %v1683_v26 = vmul.f32 %v1682_v42, %v4731_v6  ;;  %v1698_v2 = vmul.f32 %v1696_v57, %v4753_v11  ;;  %v1697_v19 = vmul.f32 %v1696_v57, %v4756_v13  ;;  %v5078_v6 = vld [vmem:[#allocation2 + $0x26] sm:$0xff] }
 0x218   : > { %1647 = vrot.lane.b32.xlu1 %v1642_v28, %s4168_s24  ;;  %v1067_v27 = vpop.permute.xlu0 %1066 }
 0x219   : > { %v1072_v39 = vadd.f32 %v1067_v27, %v1058_v18  ;;  %v1751_v27 = vmul.f32 %v1750_v4, %v5078_v6 }
 0x21a   : > { %v1069_v21 = vpop.permute.xlu1 %1068  ;;  %1659 = vrot.lane.b32.xlu0 %v1655_v38, %s4169_s4 }
 0x21b   : > { %v1073_v37 = vadd.f32 %v1069_v21, %v1059_v20  ;;  %v1088_v43 = vadd.f32 %v1086_v51, %v1072_v39  ;;  %v5076_v20 = vld [vmem:[#allocation2 + $0x2e] sm:$0xff] }
 0x21c   : > { %1661 = vrot.lane.b32.xlu1 %v1656_v1, %s4169_s4  ;;  %v5049_v30 = vpop.permute.xlu0 %1120  ;;  %v1752_v21 = vmul.f32 %v1750_v4, %v5076_v20  ;;  %v1764_v1 = vstv %s3565_s12  ;;  %s5161_s12 = sld [smem:[#allocation14 + $0x3d]] }
 0x21d   : > { %v1089_v14 = vadd.f32 %v1087_v35, %v1073_v37  ;;  %v1096_v9 = vadd.f32 %v1094_v33, %v1088_v43  ;;  %v1766_v38 = vmul.f32 %v1764_v1, %v4817_v50  ;;  %v1765_v22 = vmul.f32 %v1764_v1, %v4819_v52 }
 0x21e   : > { %v5047_v45 = vpop.permute.xlu1 %1122  ;;  %1673 = vrot.lane.b32.xlu0 %v1669_v40, %s4169_s4  ;;  %v1778_v35 = vstv %s3566_s22  ;;  %v1806_v40 = vstv %s3568_s17  ;;  %v1848_v1 = vstv %s3571_s11  ;;  %s3559_s22 = sld [smem:[#allocation11 + $0x19]]  ;;  %s3561_s17 = sld [smem:[#allocation14 + $0x65]] }
 0x21f   : > { %v1097_v53 = vadd.f32 %v1095_v31, %v1089_v14  ;;  %v1104_v56 = vadd.f32 %v1102_v3, %v1096_v9  ;;  %v1780_v39 = vmul.f32 %v1778_v35, %v4825_v55  ;;  %v1779_v12 = vmul.f32 %v1778_v35, %v4827_v61  ;;  %s3575_s11 = sld [smem:[#allocation15 + $0x1]] }
 0x220   : > { %1675 = vrot.lane.b32.xlu1 %v1670_v48, %s4169_s4  ;;  %v5063_v47 = vpop.permute.xlu0 %1134  ;;  %v1792_v31 = vstv %s3567_s20  ;;  %v1807_v9 = vmul.f32 %v1806_v40, %v4843_v17  ;;  %s3560_s20 = sld [smem:[#allocation14 + $0x61]] }
 0x221   : > { %v1105_v46 = vadd.f32 %v1103_v10, %v1097_v53  ;;  %v1112_v28 = vadd.f32 %v1110_v60, %v1104_v56  ;;  %v1794_v43 = vmul.f32 %v1792_v31, %v4833_v5  ;;  %v1793_v48 = vmul.f32 %v1792_v31, %v4835_v8 }
 0x222   : > { %v5061_v7 = vpop.permute.xlu1 %1136  ;;  %1687 = vrot.lane.b32.xlu0 %v1683_v26, %s4169_s4  ;;  %v1808_v53 = vmul.f32 %v1806_v40, %v4841_v15  ;;  %v1820_v10 = vstv %s3569_s25  ;;  %v1834_v26 = vstv %s3570_s5  ;;  %v1259_v40 = vstv %s1258_s26  ;;  %s5173_s25 = sld [smem:[#allocation14 + $0x69]]  ;;  %s5175_s5 = sld [smem:[#allocation14 + $0x6d]] }
 0x223   : > { %v1113_v54 = vadd.f32 %v1111_v44, %v1105_v46  ;;  %v1822_v44 = vmul.f32 %v1820_v10, %v5076_v20  ;;  %v1821_v56 = vmul.f32 %v1820_v10, %v5078_v6  ;;  %v1835_v4 = vmul.f32 %v1834_v26, %v4819_v52  ;;  %s5193_s26 = sld [smem:[#allocation11 + $0x6]] }
 0x224   : > { %1689 = vrot.lane.b32.xlu1 %v1684_v49, %s4169_s4  ;;  %v5072_v59 = vpop.permute.xlu0 %1148  ;;  %v1140_v49 = vadd.f32 %v5063_v47, %v1112_v28  ;;  %v1849_v52 = vmul.f32 %v1848_v1, %v4827_v61 }
 0x225   : > { %v1141_v60 = vadd.f32 %v5061_v7, %v1113_v54 }
 0x226   : > { %v5070_v58 = vpop.permute.xlu1 %1150  ;;  %1701 = vrot.lane.b32.xlu0 %v1697_v19, %s4169_s4  ;;  %v1836_v19 = vmul.f32 %v1834_v26, %v4817_v50  ;;  %v1850_v50 = vmul.f32 %v1848_v1, %v4825_v55 }
 0x228   : > { %1703 = vrot.lane.b32.xlu1 %v1698_v2, %s4169_s4  ;;  %v1163_v24 = vpop.permute.xlu0 %1162 }
 0x22a   : > { %v1165_v18 = vpop.permute.xlu1 %1164  ;;  %1755 = vrot.lane.b32.xlu0 %v1751_v27, %s4166_s18  ;;  %v1154_v27 = vadd.f32 %v5072_v59, %v1140_v49 }
 0x22c   : > { %1757 = vrot.lane.b32.xlu1 %v1752_v21, %s4166_s18  ;;  %v1177_v13 = vpop.permute.xlu0 %1176  ;;  %v1155_v21 = vadd.f32 %v5070_v58, %v1141_v60  ;;  %v1168_v47 = vadd.f32 %v1163_v24, %v1154_v27 }
 0x22e   : > { %v1179_v11 = vpop.permute.xlu1 %1178  ;;  %1769 = vrot.lane.b32.xlu0 %v1765_v22, %s4167_s23  ;;  %v1169_v7 = vadd.f32 %v1165_v18, %v1155_v21  ;;  %v1182_v59 = vadd.f32 %v1177_v13, %v1168_v47 }
 0x230   : > { %1771 = vrot.lane.b32.xlu1 %v1766_v38, %s4167_s23  ;;  %v5092_v51 = vpop.permute.xlu0 %1190  ;;  %v1183_v58 = vadd.f32 %v1179_v11, %v1169_v7  ;;  %v1862_v38 = vstv %s3572_s1  ;;  %v1876_v11 = vstv %s5116_s29  ;;  %v1534_v7 = vstv %s3544_s19  ;;  %s1254_s1 = sld [smem:[#allocation12]]  ;;  %s5191_s29 = sld [smem:[#allocation14 + $0x12]] }
 0x231   : > { %v1863_v55 = vmul.f32 %v1862_v38, %v4835_v8  ;;  %s5205_s19 = sld [smem:[#allocation14 + $0x16]] }
 0x232   : > { %v5090_v37 = vpop.permute.xlu1 %1192  ;;  %1783 = vrot.lane.b32.xlu0 %v1779_v12, %s4167_s23 }
 0x234   : > { %1785 = vrot.lane.b32.xlu1 %v1780_v39, %s4167_s23  ;;  %v1205_v33 = vpop.permute.xlu0 %1204  ;;  %v1864_v39 = vmul.f32 %v1862_v38, %v4833_v5  ;;  %v1877_v5 = vmul.f32 %v1876_v11, %v4843_v17  ;;  %v3580_v17 = vld [vmem:[%s4495_s21 + $0x10] sm:$0xff] }
 0x235   : > { %v1210_v18 = vadd.f32 %v1205_v33, %v1182_v59 }
 0x236   : > { %v1207_v14 = vpop.permute.xlu1 %1206  ;;  %1797 = vrot.lane.b32.xlu0 %v1793_v48, %s4167_s23 }
 0x237   : > { %v1211_v22 = vadd.f32 %v1207_v14, %v1183_v58 }
 0x238   : > { %1799 = vrot.lane.b32.xlu1 %v1794_v43, %s4167_s23  ;;  %v1219_v42 = vpop.permute.xlu0 %1218  ;;  %v1878_v43 = vmul.f32 %v1876_v11, %v4841_v15  ;;  %v3581_v15 = vld [vmem:[%s4495_s21 + $0x18] sm:$0xff] }
 0x239   : > { %v1224_v61 = vadd.f32 %v1219_v42, %v1210_v18  ;;  %v3578_v42 = vld [vmem:[%s4507_s13 + $0x10] sm:$0xff] }
 0x23a   : > { %v1221_v41 = vpop.permute.xlu1 %1220  ;;  %1811 = vrot.lane.b32.xlu0 %v1807_v9, %s4167_s23 }
 0x23b   : > { %v1225_v12 = vadd.f32 %v1221_v41, %v1211_v22  ;;  %v3579_v41 = vld [vmem:[%s4507_s13 + $0x18] sm:$0xff]  ;;  %v3873_v22 = vld [vmem:[#allocation2 + $0x2d] sm:$0xff] }
 0x23c   : > { %1813 = vrot.lane.b32.xlu1 %v1808_v53, %s4167_s23  ;;  %v1233_v46 = vpop.permute.xlu0 %1232  ;;  %v1536_v18 = vmul.f32 %v3873_v22, %v1534_v7 }
 0x23d   : > { %v1238_v31 = vadd.f32 %v1233_v46, %v1224_v61 }
 0x23e   : > { %v1235_v3 = vpop.permute.xlu1 %1234  ;;  %1825 = vrot.lane.b32.xlu0 %v1821_v56, %s4168_s24 }
 0x23f   : > { %v1239_v13 = vadd.f32 %v1235_v3, %v1225_v12 }
 0x240   : > { %1827 = vrot.lane.b32.xlu1 %v1822_v44, %s4168_s24  ;;  %v1247_v2 = vpop.permute.xlu0 %1246 }
 0x241   : > { %v1252_v48 = vadd.f32 %v1247_v2, %v1238_v31 }
 0x242   : > { %v1249_v57 = vpop.permute.xlu1 %1248  ;;  %1839 = vrot.lane.b32.xlu0 %v1835_v4, %s4169_s4 }
 0x243   : > { %v1253_v8 = vadd.f32 %v1249_v57, %v1239_v13  ;;  %v1260_v3 = vadd.f32 %v1259_v40, %v1252_v48 }
 0x244   : > { %1841 = vrot.lane.b32.xlu1 %v1836_v19, %s4169_s4  ;;  %v5122_v28 = vpop.permute.xlu0 %1302  ;;  %v1354_v19 = vstv %s3529_s16  ;;  %s5197_s16 = sld [smem:[#allocation14 + $0x13]] }
 0x245   : > { %v1261_v10 = vadd.f32 %v1259_v40, %v1253_v8  ;;  %v1270_v60 = vmul.f32 0.2, %v1260_v3  ;;  %vm1268_vm7 = vcmp.ge.f32.partialorder %v1260_v3, 0.0  ;;  %v1356_v27 = vmul.f32 %v1354_v19, %v4875_v16 }
 0x246   : > { %v5120_v54 = vpop.permute.xlu1 %1304  ;;  %1853 = vrot.lane.b32.xlu0 %v1849_v52, %s4169_s4  ;;  %v1355_v1 = vmul.f32 %v1354_v19, %v4877_v23  ;;  %v1556_v19 = vstv %s5159_s14  ;;  %s5237_s14 = sld [smem:[#allocation14 + $0x1b]] }
 0x247   : > { %v1271_v56 = vmul.f32 0.2, %v1261_v10  ;;  %vm1269_vm6 = vcmp.ge.f32.partialorder %v1261_v10, 0.0  ;;  %v1272_v2 = vsel %vm1268_vm7, %v1260_v3, %v1270_v60 }
 0x248   : > { %1855 = vrot.lane.b32.xlu1 %v1850_v50, %s4169_s4  ;;  %v5130_v35 = vpop.permute.xlu0 %1314 }
 0x249   : > { %v1273_v57 = vsel %vm1269_vm6, %v1261_v10, %v1271_v56  ;;  %v1542_v10 = vstv %s3545_s27  ;;  %v3875_v56 = vld [vmem:[#allocation2 + $0xd] sm:$0xff]  ;;  %s5219_s27 = sld [smem:[#allocation14 + $0x17]] }
 0x24a   : > { %v5128_v24 = vpop.permute.xlu1 %1316  ;;  %1867 = vrot.lane.b32.xlu0 %v1863_v55, %s4169_s4  ;;  %v1544_v60 = vmul.f32 %v3875_v56, %v1542_v10 }
 0x24c   : > { %1869 = vrot.lane.b32.xlu1 %v1864_v39, %s4169_s4  ;;  %v1398_v33 = vpop.permute.xlu0 %1397  ;;  %v3874_v39 = vld [vmem:[#allocation2 + $0x25] sm:$0xff] }
 0x24d   : > { %v1403_v50 = vadd.f32 %v1398_v33, %v1355_v1  ;;  %v1535_v55 = vmul.f32 %v3874_v39, %v1534_v7 }
 0x24e   : > { %v1400_v14 = vpop.permute.xlu1 %1399  ;;  %1881 = vrot.lane.b32.xlu0 %v1877_v5, %s4169_s4 }
 0x24f   : > { %v1404_v47 = vadd.f32 %v1400_v14, %v1356_v27 }
 0x250   : > { %1883 = vrot.lane.b32.xlu1 %v1878_v43, %s4169_s4  ;;  %v1412_v9 = vpop.permute.xlu0 %1411 }
 0x251   : > { %v1417_v61 = vadd.f32 %v1412_v9, %v4720_v63 }
 0x252   : > { %v1414_v53 = vpop.permute.xlu1 %1413  ;;  %1938 = vrot.lane.b32.xlu0 %v3578_v42, %s4170_s9 }
 0x253   : > { %v1418_v12 = vadd.f32 %v1414_v53, %v4718_v62 }
 0x254   : > { %1940 = vrot.lane.b32.xlu1 %v3579_v41, %s4170_s9  ;;  %v1426_v44 = vpop.permute.xlu0 %1425 }
 0x255   : > { %v1431_v14 = vadd.f32 %v1426_v44, %v1417_v61  ;;  %v3879_v61 = vld [vmem:[#allocation2 + $0x6d] sm:$0xff] }
 0x256   : > { %v1428_v46 = vpop.permute.xlu1 %1427  ;;  %1951 = vrot.lane.b32.xlu0 %v3580_v17, %s4170_s9  ;;  %v1548_v17 = vstv %s3546_s15  ;;  %s5228_s15 = sld [smem:[#allocation14 + $0x1a]] }
 0x257   : > { %v1432_v31 = vadd.f32 %v1428_v46, %v1418_v12  ;;  %v1549_v27 = vmul.f32 %v3874_v39, %v1548_v17 }
 0x258   : > { %1953 = vrot.lane.b32.xlu1 %v3581_v15, %s4170_s9  ;;  %v1440_v26 = vpop.permute.xlu0 %1439 }
 0x259   : > { %v1445_v43 = vadd.f32 %v1440_v26, %v1431_v14  ;;  %v3876_v26 = vld [vmem:[#allocation2 + $0x5] sm:$0xff] }
 0x25a   : > { %v1442_v49 = vpop.permute.xlu1 %1441  ;;  %1276 = vrot.lane.b32.xlu0 %v1272_v2, %s4170_s9 }
 0x25b   : > { %v1446_v33 = vadd.f32 %v1442_v49, %v1432_v31  ;;  %v3880_v31 = vld [vmem:[#allocation2 + $0x65] sm:$0xff] }
 0x25c   : > { %1278 = vrot.lane.b32.xlu1 %v1273_v57, %s4170_s9  ;;  %v1454_v21 = vpop.permute.xlu0 %1453  ;;  %v1543_v57 = vmul.f32 %v3876_v26, %v1542_v10 }
 0x25d   : > { %v1459_v40 = vadd.f32 %v1454_v21, %v1445_v43 }
 0x25e   : > { %v1456_v4 = vpop.permute.xlu1 %1455 }
 0x25f   : > { %v1460_v48 = vadd.f32 %v1456_v4, %v1446_v33  ;;  %v1550_v4 = vmul.f32 %v3873_v22, %v1548_v17 }
 0x260   : > { %v1468_v58 = vpop.permute.xlu0 %1467 }
 0x261   : > { %v1473_v38 = vadd.f32 %v1468_v58, %v1403_v50  ;;  %v1564_v50 = vstv %s5161_s12  ;;  %s5246_s12 = sld [smem:[#allocation14 + $0x1e]] }
 0x262   : > { %v1470_v52 = vpop.permute.xlu1 %1469  ;;  %v1565_v14 = vmul.f32 %v3880_v31, %v1564_v50  ;;  %v3882_v31 = vld [vmem:[#allocation2 + $0xa] sm:$0xff] }
 0x263   : > { %v1474_v59 = vadd.f32 %v1470_v52, %v1404_v47  ;;  %v5157_v16 = vadd.f32 %v1535_v55, %v1473_v38 }
 0x264   : > { %v1482_v13 = vpop.permute.xlu0 %1481 }
 0x265   : > { %v5155_v11 = vadd.f32 %v1536_v18, %v1474_v59  ;;  %v1487_v63 = vadd.f32 %v1482_v13, %v1459_v40  ;;  %v3877_v59 = vld [vmem:[#allocation2 + $0x4d] sm:$0xff]  ;;  %v3878_v18 = vld [vmem:[#allocation2 + $0x45] sm:$0xff] }
 0x266   : > { %v1484_v23 = vpop.permute.xlu1 %1483  ;;  %v1558_v38 = vmul.f32 %v3877_v59, %v1556_v19  ;;  %v1557_v55 = vmul.f32 %v3878_v18, %v1556_v19  ;;  %v1728_v18 = vstv %s3561_s17  ;;  %s5273_s17 = sld [smem:[#allocation14 + $0x23]] }
 0x267   : > { %v1488_v62 = vadd.f32 %v1484_v23, %v1460_v48  ;;  %v1566_v23 = vmul.f32 %v3879_v61, %v1564_v50  ;;  %v3881_v61 = vld [vmem:[#allocation2 + $0x12] sm:$0xff] }
 0x268   : > { %v1496_v8 = vpop.permute.xlu0 %1495 }
 0x269   : > { %v1501_v9 = vadd.f32 %v1496_v8, %v1487_v63 }
 0x26a   : > { %v1498_v5 = vpop.permute.xlu1 %1497 }
 0x26b   : > { %v1502_v53 = vadd.f32 %v1498_v5, %v1488_v62 }
 0x26c   : > { %v1510_v42 = vpop.permute.xlu0 %1509 }
 0x26d   : > { %v1515_v15 = vadd.f32 %v1510_v42, %v1501_v9 }
 0x26e   : > { %v1512_v41 = vpop.permute.xlu1 %1511 }
 0x26f   : > { %v1516_v3 = vadd.f32 %v1512_v41, %v1502_v53  ;;  %v1712_v41 = vstv %s3559_s22  ;;  %s5255_s22 = sld [smem:[#allocation14 + $0x1f]] }
 0x270   : > { %v1524_v44 = vpop.permute.xlu0 %1523 }
 0x271   : > { %v1529_v2 = vadd.f32 %v1524_v44, %v1515_v15  ;;  %v1713_v15 = vmul.f32 %v1712_v41, %v5078_v6 }
 0x272   : > { %v1526_v46 = vpop.permute.xlu1 %1525 }
 0x273   : > { %v1530_v49 = vadd.f32 %v1526_v46, %v1516_v3  ;;  %v1545_v1 = vadd.f32 %v1543_v57, %v1529_v2  ;;  %v1714_v3 = vmul.f32 %v1712_v41, %v5076_v20  ;;  %v1744_v41 = vstv %s5175_s5  ;;  %s5289_s5 = sld [smem:[#allocation14 + $0x27]] }
 0x274   : > { %v1576_v47 = vpop.permute.xlu0 %1575 }
 0x275   : > { %v1546_v21 = vadd.f32 %v1544_v60, %v1530_v49  ;;  %v1551_v58 = vadd.f32 %v1549_v27, %v1545_v1  ;;  %v1581_v53 = vadd.f32 %v1576_v47, %v5157_v16 }
 0x276   : > { %v1578_v7 = vpop.permute.xlu1 %1577 }
 0x277   : > { %v1552_v52 = vadd.f32 %v1550_v4, %v1546_v21  ;;  %v1559_v13 = vadd.f32 %v1557_v55, %v1551_v58  ;;  %v1582_v42 = vadd.f32 %v1578_v7, %v5155_v11  ;;  %v1720_v58 = vstv %s3560_s20  ;;  %s5264_s20 = sld [smem:[#allocation14 + $0x22]] }
 0x278   : > { %v1590_v22 = vpop.permute.xlu0 %1589 }
 0x279   : > { %v1560_v12 = vadd.f32 %v1558_v38, %v1552_v52  ;;  %v1567_v39 = vadd.f32 %v1565_v14, %v1559_v13  ;;  %v1721_v14 = vmul.f32 %v3882_v31, %v1720_v58 }
 0x27a   : > { %v1592_v33 = vpop.permute.xlu1 %1591 }
 0x27b   : > { %v1568_v43 = vadd.f32 %v1566_v23, %v1560_v12  ;;  %v1595_v46 = vadd.f32 %v1590_v22, %v1567_v39  ;;  %v1722_v23 = vmul.f32 %v3881_v61, %v1720_v58  ;;  %v1736_v22 = vstv %s5173_s25  ;;  %s5282_s25 = sld [smem:[#allocation14 + $0x26]] }
 0x27c   : > { %v1604_v8 = vpop.permute.xlu0 %1603 }
 0x27d   : > { %v1596_v17 = vadd.f32 %v1592_v33, %v1568_v43  ;;  %v1609_v11 = vadd.f32 %v1604_v8, %v1595_v46  ;;  %v3883_v43 = vld [vmem:[#allocation2 + $0x32] sm:$0xff]  ;;  %v3884_v8 = vld [vmem:[#allocation2 + $0x2a] sm:$0xff] }
 0x27e   : > { %v1606_v5 = vpop.permute.xlu1 %1605  ;;  %v1730_v39 = vmul.f32 %v3883_v43, %v1728_v18  ;;  %v3887_v46 = vld [vmem:[#allocation2 + $0x72] sm:$0xff] }
 0x27f   : > { %v1610_v2 = vadd.f32 %v1606_v5, %v1596_v17 }
 0x280   : > { %v1618_v40 = vpop.permute.xlu0 %1617 }
 0x281   : > { %v1623_v19 = vadd.f32 %v1618_v40, %v1609_v11 }
 0x282   : > { %v1620_v48 = vpop.permute.xlu1 %1619 }
 0x283   : > { %v1624_v16 = vadd.f32 %v1620_v48, %v1610_v2  ;;  %v1729_v48 = vmul.f32 %v3884_v8, %v1728_v18  ;;  %v1127_v8 = vadd.f32 %v5047_v45, %v5000_v34 }
 0x284   : > { %v1632_v63 = vpop.permute.xlu0 %1631 }
 0x285   : > { %v1637_v6 = vadd.f32 %v1632_v63, %v1623_v19 }
 0x286   : > { %v1634_v62 = vpop.permute.xlu1 %1633 }
 0x287   : > { %v1638_v20 = vadd.f32 %v1634_v62, %v1624_v16 }
 0x288   : > { %v1646_v10 = vpop.permute.xlu0 %1645 }
 0x289   : > { %v1651_v56 = vadd.f32 %v1646_v10, %v1581_v53 }
 0x28a   : > { %v1648_v9 = vpop.permute.xlu1 %1647 }
 0x28b   : > { %v1652_v44 = vadd.f32 %v1648_v9, %v1582_v42  ;;  %v5171_v49 = vadd.f32 %v1713_v15, %v1651_v56  ;;  %v3885_v9 = vld [vmem:[#allocation2 + $0x52] sm:$0xff] }
 0x28c   : > { %v1660_v57 = vpop.permute.xlu0 %1659  ;;  %v1738_v10 = vmul.f32 %v3885_v9, %v1736_v22  ;;  %v1894_v9 = vstv %s3575_s11  ;;  %s5300_s11 = sld [smem:[#allocation14 + $0x2a]] }
 0x28d   : > { %v5169_v60 = vadd.f32 %v1714_v3, %v1652_v44  ;;  %v1665_v1 = vadd.f32 %v1660_v57, %v1637_v6  ;;  %v3886_v3 = vld [vmem:[#allocation2 + $0x4a] sm:$0xff]  ;;  %v1746_v44 = vmul.f32 %v3887_v46, %v1744_v41 }
 0x28e   : > { %v1662_v26 = vpop.permute.xlu1 %1661  ;;  %v1737_v15 = vmul.f32 %v3886_v3, %v1736_v22 }
 0x28f   : > { %v1666_v27 = vadd.f32 %v1662_v26, %v1638_v20  ;;  %v3888_v26 = vld [vmem:[#allocation2 + $0x6a] sm:$0xff] }
 0x290   : > { %v1674_v21 = vpop.permute.xlu0 %1673  ;;  %v1745_v57 = vmul.f32 %v3888_v26, %v1744_v41 }
 0x291   : > { %v1679_v52 = vadd.f32 %v1674_v21, %v1665_v1 }
 0x292   : > { %v1676_v4 = vpop.permute.xlu1 %1675 }
 0x293   : > { %v1680_v50 = vadd.f32 %v1676_v4, %v1666_v27 }
 0x294   : > { %v1688_v47 = vpop.permute.xlu0 %1687 }
 0x295   : > { %v1693_v38 = vadd.f32 %v1688_v47, %v1679_v52 }
 0x296   : > { %v1690_v7 = vpop.permute.xlu1 %1689 }
 0x297   : > { %v1694_v59 = vadd.f32 %v1690_v7, %v1680_v50 }
 0x298   : > { %v1702_v12 = vpop.permute.xlu0 %1701 }
 0x299   : > { %v1707_v33 = vadd.f32 %v1702_v12, %v1693_v38 }
 0x29a   : > { %v1704_v55 = vpop.permute.xlu1 %1703 }
 0x29b   : > { %v1708_v13 = vadd.f32 %v1704_v55, %v1694_v59  ;;  %v1723_v40 = vadd.f32 %v1721_v14, %v1707_v33 }
 0x29c   : > { %v5180_v63 = vpop.permute.xlu0 %1755 }
 0x29d   : > { %v1724_v5 = vadd.f32 %v1722_v23, %v1708_v13  ;;  %v1731_v53 = vadd.f32 %v1729_v48, %v1723_v40  ;;  %v1126_v48 = vadd.f32 %v5049_v30, %v5002_v0 }
 0x29e   : > { %v5178_v62 = vpop.permute.xlu1 %1757 }
 0x29f   : > { %v1732_v42 = vadd.f32 %v1730_v39, %v1724_v5  ;;  %v1739_v56 = vadd.f32 %v1737_v15, %v1731_v53  ;;  %v1196_v53 = vadd.f32 %v5092_v51, %v1126_v48  ;;  %v1255_v15 = vstv %s1254_s1  ;;  %s5309_s1 = sld [smem:[#allocation14 + $0x2b]] }
 0x2a0   : > { %v1770_v11 = vpop.permute.xlu0 %1769 }
 0x2a1   : > { %v1740_v17 = vadd.f32 %v1738_v10, %v1732_v42  ;;  %v1747_v19 = vadd.f32 %v1745_v57, %v1739_v56  ;;  %v1197_v42 = vadd.f32 %v5090_v37, %v1127_v8  ;;  %v1256_v46 = vadd.f32 %v1255_v15, %v1196_v53  ;;  %v5250_v53 = vld [vmem:[#allocation2 + $0x40] sm:$0xff] }
 0x2a2   : > { %v1772_v2 = vpop.permute.xlu1 %1771  ;;  %v2684_v8 = vstv %s5219_s27  ;;  %s3658_s27 = sld [smem:[#allocation14 + $0x43]] }
 0x2a3   : > { %v1748_v16 = vadd.f32 %v1746_v44, %v1740_v17  ;;  %v1775_v52 = vadd.f32 %v1770_v11, %v1747_v19  ;;  %v1257_v30 = vadd.f32 %v1255_v15, %v1197_v42  ;;  %v1983_v11 = vld [vmem:[#allocation2 + $0x44] sm:$0xff]  ;;  %vm1262_vm11 = vcmp.ge.f32.partialorder %v1256_v46, 0.0 }
 0x2a4   : > { %v1784_v21 = vpop.permute.xlu0 %1783  ;;  %v2066_v42 = vstv %s5228_s15  ;;  %s3605_s15 = sld [smem:[#allocation14 + $0x46]] }
 0x2a5   : > { %v1776_v50 = vadd.f32 %v1772_v2, %v1748_v16  ;;  %v1789_v18 = vadd.f32 %v1784_v21, %v1775_v52  ;;  %v2038_v2 = vstv %s5191_s29  ;;  %v2024_v16 = vstv %s5193_s26  ;;  %s3597_s29 = sld [smem:[#allocation14 + $0x2e]]  ;;  %s3657_s26 = sld [smem:[#allocation11 + $0x13]] }
 0x2a6   : > { %v1786_v4 = vpop.permute.xlu1 %1785  ;;  %v1265_v21 = vmul.f32 0.2, %v1257_v30  ;;  %vm1263_vm10 = vcmp.ge.f32.partialorder %v1257_v30, 0.0 }
 0x2a7   : > { %v1790_v38 = vadd.f32 %v1786_v4, %v1776_v50  ;;  %v2670_v50 = vstv %s5197_s16  ;;  %s3651_s16 = sld [smem:[#allocation14 + $0x2f]] }
 0x2a8   : > { %v1798_v6 = vpop.permute.xlu0 %1797 }
 0x2a9   : > { %v1803_v12 = vadd.f32 %v1798_v6, %v1789_v18  ;;  %v5213_v6 = vld [vmem:[#allocation2] sm:$0xff] }
 0x2aa   : > { %v1800_v20 = vpop.permute.xlu1 %1799 }
 0x2ab   : > { %v1804_v55 = vadd.f32 %v1800_v20, %v1790_v38  ;;  %v1264_v20 = vmul.f32 0.2, %v1256_v46 }
 0x2ac   : > { %v1812_v1 = vpop.permute.xlu0 %1811 }
 0x2ad   : > { %v1817_v31 = vadd.f32 %v1812_v1, %v1803_v12  ;;  %v2025_v1 = vmul.f32 %v2024_v16, %v1983_v11  ;;  %v1266_v38 = vsel %vm1262_vm11, %v1256_v46, %v1264_v20  ;;  %v2671_v12 = vmul.f32 %v5213_v6, %v2670_v50 }
 0x2ae   : > { %v1814_v27 = vpop.permute.xlu1 %1813 }
 0x2af   : > { %v1818_v13 = vadd.f32 %v1814_v27, %v1804_v55  ;;  %v2039_v27 = vmul.f32 %v5213_v6, %v2038_v2 }
 0x2b0   : > { %v5185_v47 = vpop.permute.xlu0 %1825 }
 0x2b2   : > { %v5183_v7 = vpop.permute.xlu1 %1827 }
 0x2b4   : > { %v1840_v59 = vpop.permute.xlu0 %1839 }
 0x2b5   : > { %v1845_v33 = vadd.f32 %v1840_v59, %v1817_v31 }
 0x2b6   : > { %v1842_v58 = vpop.permute.xlu1 %1841 }
 0x2b7   : > { %v1846_v14 = vadd.f32 %v1842_v58, %v1818_v13  ;;  %v1267_v58 = vsel %vm1263_vm10, %v1257_v30, %v1265_v21  ;;  %v5278_v21 = vld [vmem:[#allocation2 + $0x68] sm:$0xff] }
 0x2b8   : > { %v1854_v23 = vpop.permute.xlu0 %1853 }
 0x2b9   : > { %v1859_v5 = vadd.f32 %v1854_v23, %v1845_v33 }
 0x2ba   : > { %v1856_v61 = vpop.permute.xlu1 %1855 }
 0x2bb   : > { %v1860_v39 = vadd.f32 %v1856_v61, %v1846_v14  ;;  %v5224_v61 = vld [vmem:[#allocation2 + $0x8] sm:$0xff]  ;;  %v2052_v14 = vstv %s5205_s19  ;;  %s3604_s19 = sld [smem:[#allocation14 + $0x42]] }
 0x2bc   : > { %v1868_v43 = vpop.permute.xlu0 %1867  ;;  %v2040_v23 = vmul.f32 %v5224_v61, %v2038_v2  ;;  %v2712_v2 = vstv %s5255_s22  ;;  %s3660_s22 = sld [smem:[#allocation14 + $0x4b]] }
 0x2bd   : > { %v1873_v41 = vadd.f32 %v1868_v43, %v1859_v5  ;;  %v5232_v43 = vld [vmem:[#allocation2 + $0x20] sm:$0xff]  ;;  %v2672_v5 = vmul.f32 %v5224_v61, %v2670_v50 }
 0x2be   : > { %v1870_v22 = vpop.permute.xlu1 %1869  ;;  %v2685_v48 = vmul.f32 %v5232_v43, %v2684_v8 }
 0x2bf   : > { %v1874_v40 = vadd.f32 %v1870_v22, %v1860_v39  ;;  %v2053_v39 = vmul.f32 %v5232_v43, %v2052_v14 }
 0x2c0   : > { %v1882_v3 = vpop.permute.xlu0 %1881 }
 0x2c1   : > { %v1887_v34 = vadd.f32 %v1882_v3, %v1873_v41  ;;  %v2698_v3 = vstv %s5237_s14  ;;  %s3659_s14 = sld [smem:[#allocation14 + $0x47]] }
 0x2c2   : > { %v1884_v10 = vpop.permute.xlu1 %1883 }
 0x2c3   : > { %v1888_v17 = vadd.f32 %v1884_v10, %v1874_v40  ;;  %v1895_v0 = vadd.f32 %v1894_v9, %v1887_v34  ;;  %v5242_v40 = vld [vmem:[#allocation2 + $0x28] sm:$0xff] }
 0x2c4   : > { %v5201_v56 = vpop.permute.xlu0 %1938  ;;  %v2054_v41 = vmul.f32 %v5242_v40, %v2052_v14  ;;  %v2686_v10 = vmul.f32 %v5242_v40, %v2684_v8 }
 0x2c5   : > { %v1896_v45 = vadd.f32 %v1894_v9, %v1888_v17  ;;  %vm1903_vm9 = vcmp.ge.f32.partialorder %v1895_v0, 0.0  ;;  %v1905_v51 = vmul.f32 0.2, %v1895_v0  ;;  %v2067_v9 = vmul.f32 %v5250_v53, %v2066_v42 }
 0x2c6   : > { %v5199_v44 = vpop.permute.xlu1 %1940 }
 0x2c7   : > { %vm1904_vm8 = vcmp.ge.f32.partialorder %v1896_v45, 0.0  ;;  %v1906_v37 = vmul.f32 0.2, %v1896_v45  ;;  %v1907_v57 = vsel %vm1903_vm9, %v1895_v0, %v1905_v51  ;;  %v5260_v0 = vld [vmem:[#allocation2 + $0x48] sm:$0xff]  ;;  %v5268_v51 = vld [vmem:[#allocation2 + $0x60] sm:$0xff] }
 0x2c8   : > { %1911 = vrot.lane.b32.xlu0 %v1907_v57, %s4170_s9  ;;  %v5211_v4 = vpop.permute.xlu0 %1951  ;;  %v2068_v30 = vmul.f32 %v5260_v0, %v2066_v42  ;;  %v2700_v57 = vmul.f32 %v5260_v0, %v2698_v3  ;;  %v2713_v11 = vmul.f32 %v5268_v51, %v2712_v2 }
 0x2c9   : > { %v1908_v26 = vsel %vm1904_vm8, %v1896_v45, %v1906_v37  ;;  %v2699_v45 = vmul.f32 %v5250_v53, %v2698_v3  ;;  %v2080_v37 = vstv %s5246_s12  ;;  %s3606_s12 = sld [smem:[#allocation14 + $0x4a]] }
 0x2ca   : > { %1913 = vrot.lane.b32.xlu1 %v1908_v26, %s4170_s9  ;;  %v5208_v19 = vpop.permute.xlu1 %1953  ;;  %v2081_v26 = vmul.f32 %v5268_v51, %v2080_v37  ;;  %v2082_v20 = vmul.f32 %v5278_v21, %v2080_v37 }
 0x2cc   : > { %2029 = vrot.lane.b32.xlu0 %v2025_v1, %s4166_s18  ;;  %v1277_v59 = vpop.permute.xlu0 %1276 }
 0x2cd   : > { %v1282_v55 = vsub.f32 %v1266_v38, %v1277_v59  ;;  %v2740_v59 = vstv %s5273_s17  ;;  %s3574_s17 = sld [smem:[#allocation12 + $0x1]] }
 0x2ce   : > { %v1279_v52 = vpop.permute.xlu1 %1278  ;;  %2043 = vrot.lane.b32.xlu1 %v2039_v27, %s4167_s23  ;;  %v2108_v27 = vstv %s5264_s20  ;;  %s5362_s20 = sld [smem:[#allocation14 + $0x4e]] }
 0x2cf   : > { %v1283_v18 = vsub.f32 %v1267_v58, %v1279_v52  ;;  %v1284_v31 = vand.u32 2147483647, %v1282_v55  ;;  %v2109_v50 = vmul.f32 %v5213_v6, %v2108_v27  ;;  %v2714_v52 = vmul.f32 %v5278_v21, %v2712_v2 }
 0x2d0   : > { %2045 = vrot.lane.b32.xlu0 %v2040_v23, %s4167_s23  ;;  %v2110_v23 = vmul.f32 %v5224_v61, %v2108_v27  ;;  %v2782_v2 = vstv %s3651_s16  ;;  %v2216_v27 = vstv %s3604_s19  ;;  %s5429_s16 = sld [smem:[#allocation14 + $0x3a]]  ;;  %s5431_s19 = sld [smem:[#allocation14 + $0x3b]] }
 0x2d1   : > { %v1285_v13 = vand.u32 2147483647, %v1283_v18  ;;  %v3527_v22 = vmul.f32 -1.442695, %v1284_v31  ;;  %v2122_v31 = vstv %s5282_s25  ;;  %s5414_s25 = sld [smem:[#allocation14 + $0x32]] }
 0x2d2   : > { %2675 = vrot.lane.b32.xlu1 %v2671_v12, %s4167_s23  ;;  %v2741_v12 = vmul.f32 %v5213_v6, %v2740_v59  ;;  %v2123_v6 = vmul.f32 %v5232_v43, %v2122_v31 }
 0x2d3   : > { %v3528_v33 = vmul.f32 -1.442695, %v1285_v13 }
 0x2d4   : > { %2677 = vrot.lane.b32.xlu0 %v2672_v5, %s4167_s23 }
 0x2d5   : > { %3841 = vpow2.f32 %v3528_v33  ;;  %v2742_v33 = vmul.f32 %v5224_v61, %v2740_v59  ;;  %v5348_v59 = vld [vmem:[#allocation2 + $0x25] sm:$0xff] }
 0x2d6   : > { %3843 = vpow2.f32 %v3527_v22  ;;  %2057 = vrot.lane.b32.xlu1 %v2053_v39, %s4167_s23 }
 0x2d8   : > { %2059 = vrot.lane.b32.xlu0 %v2054_v41, %s4167_s23  ;;  %v2124_v41 = vmul.f32 %v5242_v40, %v2122_v31  ;;  %v5360_v31 = vld [vmem:[#allocation2 + $0x45] sm:$0xff] }
 0x2da   : > { %2689 = vrot.lane.b32.xlu1 %v2685_v48, %s4167_s23 }
 0x2dc   : > { %2691 = vrot.lane.b32.xlu0 %v2686_v10, %s4167_s23 }
 0x2de   : > { %2071 = vrot.lane.b32.xlu1 %v2067_v9, %s4167_s23  ;;  %v2136_v9 = vstv %s5300_s11  ;;  %s5421_s11 = sld [smem:[#allocation14 + $0x33]] }
 0x2df   : > { %v3842_v15 = vpop.eup %3841  ;;  %v2138_v37 = vmul.f32 %v5260_v0, %v2136_v9 }
 0x2e0   : > { %v3844_v17 = vpop.eup %3843  ;;  %v1293_v34 = vadd.f32 1.0, %v3842_v15  ;;  %2073 = vrot.lane.b32.xlu0 %v2068_v30, %s4167_s23  ;;  %v2137_v15 = vmul.f32 %v5250_v53, %v2136_v9 }
 0x2e1   : > { %v1292_v46 = vadd.f32 1.0, %v3844_v17 }
 0x2e2   : > { %3845 = vrcp.f32 %v1293_v34  ;;  %2703 = vrot.lane.b32.xlu1 %v2699_v45, %s4167_s23  ;;  %v2768_v45 = vstv %s5309_s1  ;;  %s5425_s1 = sld [smem:[#allocation14 + $0x52]] }
 0x2e3   : > { %3847 = vrcp.f32 %v1292_v46  ;;  %v2769_v46 = vmul.f32 %v5250_v53, %v2768_v45  ;;  %v2783_v53 = vmul.f32 %v5268_v51, %v2782_v2 }
 0x2e4   : > { %2705 = vrot.lane.b32.xlu0 %v2700_v57, %s4167_s23  ;;  %v2770_v57 = vmul.f32 %v5260_v0, %v2768_v45 }
 0x2e6   : > { %2085 = vrot.lane.b32.xlu1 %v2081_v26, %s4167_s23  ;;  %v2150_v26 = vstv %s3597_s29  ;;  %s5427_s29 = sld [smem:[#allocation14 + $0x37]] }
 0x2e8   : > { %2087 = vrot.lane.b32.xlu0 %v2082_v20, %s4167_s23  ;;  %v5336_v20 = vld [vmem:[#allocation2 + $0x5] sm:$0xff] }
 0x2e9   : > { %v2217_v0 = vmul.f32 %v2216_v27, %v5336_v20 }
 0x2ea   : > { %2717 = vrot.lane.b32.xlu1 %v2713_v11, %s4167_s23  ;;  %v2152_v11 = vmul.f32 %v5278_v21, %v2150_v26 }
 0x2ec   : > { %v3846_v1 = vpop.eup %3845  ;;  %2719 = vrot.lane.b32.xlu0 %v2714_v52, %s4167_s23  ;;  %v5342_v52 = vld [vmem:[#allocation2 + $0xd] sm:$0xff] }
 0x2ed   : > { %v3848_v58 = vpop.eup %3847  ;;  %v1309_v38 = vadd.f32 %v3846_v1, %v5120_v54  ;;  %v2784_v1 = vmul.f32 %v5278_v21, %v2782_v2 }
 0x2ee   : > { %2113 = vrot.lane.b32.xlu1 %v2109_v50, %s4169_s4  ;;  %v1308_v18 = vadd.f32 %v3848_v58, %v5122_v28  ;;  %v2848_v50 = vstv %s3658_s27  ;;  %v2218_v58 = vmul.f32 %v2216_v27, %v5342_v52  ;;  %s5433_s27 = sld [smem:[#allocation14 + $0x4f]] }
 0x2ef   : > { %v1321_v55 = vmul.f32 %v5128_v24, %v1309_v38  ;;  %v2230_v38 = vstv %s3605_s15  ;;  %s5435_s15 = sld [smem:[#allocation14 + $0x3e]] }
 0x2f0   : > { %v1320_v13 = vmul.f32 %v5130_v35, %v1308_v18  ;;  %2115 = vrot.lane.b32.xlu0 %v2110_v23, %s4169_s4  ;;  %v2754_v35 = vstv %s5289_s5  ;;  %v2231_v21 = vmul.f32 %v2230_v38, %v5348_v59  ;;  %v2850_v18 = vmul.f32 %v2848_v50, %v5342_v52  ;;  %s5419_s5 = sld [smem:[#allocation14 + $0x36]] }
 0x2f1   : > { %v1330_v54 = vsel %vm1322_vm12, %v1321_v55, -inf  ;;  %v2755_v48 = vmul.f32 %v5232_v43, %v2754_v35  ;;  %v2756_v17 = vmul.f32 %v5242_v40, %v2754_v35  ;;  %v2151_v40 = vmul.f32 %v5268_v51, %v2150_v26  ;;  %v5374_v35 = vld [vmem:[#allocation2 + $0x65] sm:$0xff] }
 0x2f2   : > { %2745 = vrot.lane.b32.xlu1 %v2741_v12, %s4169_s4  ;;  %v1323_v28 = vsel %vm1322_vm12, %v1320_v13, -inf  ;;  %v1331_v14 = vrot.slane %v1330_v54, 4  ;;  %v2849_v51 = vmul.f32 %v2848_v50, %v5336_v20  ;;  %v2862_v55 = vstv %s3659_s14  ;;  %v5354_v12 = vld [vmem:[#allocation2 + $0x2d] sm:$0xff]  ;;  %s5440_s14 = sld [smem:[#allocation14 + $0x3f]] }
 0x2f3   : > { %v1324_v24 = vrot.slane %v1323_v28, 4  ;;  %v2863_v23 = vmul.f32 %v2862_v55, %v5348_v59  ;;  %v2232_v13 = vmul.f32 %v2230_v38, %v5354_v12 }
 0x2f4   : > { %v1332_v22 = vmax.f32 %v1330_v54, %v1331_v14  ;;  %2747 = vrot.lane.b32.xlu0 %v2742_v33, %s4169_s4  ;;  %v2244_v54 = vstv %s3606_s12  ;;  %v2864_v14 = vmul.f32 %v2862_v55, %v5354_v12  ;;  %s5450_s12 = sld [smem:[#allocation14 + $0x53]] }
 0x2f5   : > { %v1325_v39 = vmax.f32 %v1323_v28, %v1324_v24  ;;  %v2245_v28 = vmul.f32 %v2244_v54, %v5360_v31  ;;  %v2876_v24 = vstv %s3660_s22  ;;  %s5468_s22 = sld [smem:[#allocation14 + $0x56]] }
 0x2f6   : > { %2127 = vrot.lane.b32.xlu1 %v2123_v6, %s4169_s4  ;;  %v1333_v5 = vrot.slane %v1332_v22, 2  ;;  %v5368_v6 = vld [vmem:[#allocation2 + $0x4d] sm:$0xff]  ;;  %v2877_v33 = vmul.f32 %v2876_v24, %v5360_v31 }
 0x2f7   : > { %v1326_v8 = vrot.slane %v1325_v39, 2 }
 0x2f8   : > { %v1334_v42 = vmax.f32 %v1332_v22, %v1333_v5  ;;  %2129 = vrot.lane.b32.xlu0 %v2124_v41, %s4169_s4  ;;  %v2246_v22 = vmul.f32 %v2244_v54, %v5368_v6  ;;  %v1761_v41 = vadd.f32 %v5180_v63, %v5171_v49 }
 0x2f9   : > { %v1327_v61 = vmax.f32 %v1325_v39, %v1326_v8  ;;  %v2258_v39 = vstv %s5362_s20  ;;  %v2878_v8 = vmul.f32 %v2876_v24, %v5368_v6  ;;  %s5497_s20 = sld [smem:[#allocation14 + $0x5a]] }
 0x2fa   : > { %2759 = vrot.lane.b32.xlu1 %v2755_v48, %s4169_s4  ;;  %v1335_v10 = vrot.slane %v1334_v42, 1  ;;  %v2259_v5 = vmul.f32 %v2258_v39, %v5374_v35  ;;  %v1762_v48 = vadd.f32 %v5178_v62, %v5169_v60  ;;  %v1831_v9 = vadd.f32 %v5185_v47, %v1761_v41 }
 0x2fb   : > { %v1328_v3 = vrot.slane %v1327_v61, 1 }
 0x2fc   : > { %v1336_v34 = vmax.f32 %v1334_v42, %v1335_v10  ;;  %2761 = vrot.lane.b32.xlu0 %v2756_v17, %s4169_s4  ;;  %v1832_v42 = vadd.f32 %v5183_v7, %v1762_v48 }
 0x2fd   : > { %v1329_v43 = vmax.f32 %v1327_v61, %v1328_v3  ;;  %v1890_v61 = vstv %s3574_s17  ;;  %s5484_s17 = sld [smem:[#allocation14 + $0x57]] }
 0x2fe   : > { %2141 = vrot.lane.b32.xlu1 %v2137_v15, %s4169_s4  ;;  %v1892_v10 = vadd.f32 %v1890_v61, %v1832_v42  ;;  %v1891_v3 = vadd.f32 %v1890_v61, %v1831_v9 }
 0x2ff   : > { %v5324_v30 = vsel %vm1337_vm13, %v1329_v43, %v1336_v34 }
 0x300   : > { %2143 = vrot.lane.b32.xlu0 %v2138_v37, %s4169_s4  ;;  %v1900_v15 = vmul.f32 0.2, %v1892_v10  ;;  %v1899_v17 = vmul.f32 0.2, %v1891_v3  ;;  %vm1898_vm14 = vcmp.ge.f32.partialorder %v1892_v10, 0.0  ;;  %vm1897_vm15 = vcmp.ge.f32.partialorder %v1891_v3, 0.0 }
 0x301   : > { %v1340_v2 = vsel %vm1339_vm0, %v5324_v30, -inf  ;;  %v1344_v27 = vsel %vm1343_vm1, %v5324_v30, -inf }
 0x302   : > { %2773 = vrot.lane.b32.xlu1 %v2769_v46, %s4169_s4  ;;  %v1902_v34 = vsel %vm1898_vm14, %v1892_v10, %v1900_v15  ;;  %v1901_v43 = vsel %vm1897_vm15, %v1891_v3, %v1899_v17 }
 0x304   : > { %2775 = vrot.lane.b32.xlu0 %v2770_v57, %s4169_s4 }
 0x306   : > { %2155 = vrot.lane.b32.xlu1 %v2151_v40, %s4169_s4 }
 0x308   : > { %2157 = vrot.lane.b32.xlu0 %v2152_v11, %s4169_s4 }
 0x30a   : > { %2787 = vrot.lane.b32.xlu1 %v2783_v53, %s4169_s4 }
 0x30c   : > { %2789 = vrot.lane.b32.xlu0 %v2784_v1, %s4169_s4 }
 0x30e   : > { %2221 = vrot.lane.b32.xlu1 %v2217_v0, %s4167_s23 }
 0x310   : > { %2223 = vrot.lane.b32.xlu0 %v2218_v58, %s4167_s23 }
 0x312   : > { %2853 = vrot.lane.b32.xlu1 %v2849_v51, %s4167_s23 }
 0x314   : > { %2855 = vrot.lane.b32.xlu0 %v2850_v18, %s4167_s23 }
 0x316   : > { %2235 = vrot.lane.b32.xlu1 %v2231_v21, %s4167_s23 }
 0x318   : > { %2237 = vrot.lane.b32.xlu0 %v2232_v13, %s4167_s23 }
 0x31a   : > { %2867 = vrot.lane.b32.xlu1 %v2863_v23, %s4167_s23 }
 0x31c   : > { %2869 = vrot.lane.b32.xlu0 %v2864_v14, %s4167_s23 }
 0x31e   : > { %2249 = vrot.lane.b32.xlu1 %v2245_v28, %s4167_s23 }
 0x320   : > { %2251 = vrot.lane.b32.xlu0 %v2246_v22, %s4167_s23 }
 0x322   : > { %2881 = vrot.lane.b32.xlu1 %v2877_v33, %s4167_s23 }
 0x324   : > { %2883 = vrot.lane.b32.xlu0 %v2878_v8, %s4167_s23 }
 0x326   : > { %2263 = vrot.lane.b32.xlu1 %v2259_v5, %s4167_s23 }
 0x33a   : > { %v1912_v46 = vpop.permute.xlu0 %1911 }
 0x33b   : > { %v1917_v60 = vsub.f32 %v1901_v43, %v1912_v46 }
 0x33c   : > { %v1914_v45 = vpop.permute.xlu1 %1913 }
 0x33d   : > { %v1918_v37 = vsub.f32 %v1902_v34, %v1914_v45  ;;  %v1919_v26 = vand.u32 2147483647, %v1917_v60 }
 0x33e   : > { %v5391_v63 = vpop.permute.xlu0 %2029 }
 0x33f   : > { %v1920_v62 = vand.u32 2147483647, %v1918_v37  ;;  %v3576_v47 = vmul.f32 -1.442695, %v1919_v26 }
 0x340   : > { %v2044_v49 = vpop.permute.xlu1 %2043 }
 0x341   : > { %v3577_v7 = vmul.f32 -1.442695, %v1920_v62  ;;  %v2049_v62 = vadd.f32 %v2044_v49, %v4791_v25 }
 0x342   : > { %v2046_v57 = vpop.permute.xlu0 %2045 }
 0x343   : > { %3849 = vpow2.f32 %v3577_v7  ;;  %1341 = vmax.xlane.f32.xlu0 %v1340_v2  ;;  %v2050_v25 = vadd.f32 %v2046_v57, %v4798_v29 }
 0x344   : > { %3851 = vpow2.f32 %v3576_v47  ;;  %v2676_v40 = vpop.permute.xlu1 %2675 }
 0x346   : > { %v5395_v11 = vpop.permute.xlu0 %2677 }
 0x348   : > { %v2058_v53 = vpop.permute.xlu1 %2057 }
 0x349   : > { %v2063_v2 = vadd.f32 %v2058_v53, %v2049_v62 }
 0x34a   : > { %1345 = vmax.xlane.f32.xlu1 %v1344_v27  ;;  %v2060_v1 = vpop.permute.xlu0 %2059 }
 0x34c   : > { %v2690_v0 = vpop.permute.xlu1 %2689 }
 0x34d   : > { %v3850_v50 = vpop.eup %3849 }
 0x34e   : > { %v3852_v51 = vpop.eup %3851  ;;  %v1928_v58 = vadd.f32 1.0, %v3850_v50  ;;  %v5399_v18 = vpop.permute.xlu0 %2691 }
 0x34f   : > { %v1927_v38 = vadd.f32 1.0, %v3852_v51 }
 0x350   : > { %3853 = vrcp.f32 %v1928_v58  ;;  %v2072_v21 = vpop.permute.xlu1 %2071  ;;  %v2681_v58 = vadd.f32 %v2676_v40, %v4794_v32  ;;  %v2682_v32 = vadd.f32 %v5395_v11, %v4800_v36 }
 0x351   : > { %3855 = vrcp.f32 %v1927_v38  ;;  %v2077_v49 = vadd.f32 %v2072_v21, %v2063_v2 }
 0x352   : > { %v2074_v23 = vpop.permute.xlu0 %2073 }
 0x354   : > { %v2704_v55 = vpop.permute.xlu1 %2703 }
 0x356   : > { %v5401_v54 = vpop.permute.xlu0 %2705 }
 0x358   : > { %v2086_v13 = vpop.permute.xlu1 %2085 }
 0x35a   : > { %v3854_v28 = vpop.eup %3853  ;;  %v2088_v33 = vpop.permute.xlu0 %2087 }
 0x35b   : > { %v3856_v14 = vpop.eup %3855  ;;  %v1945_v30 = vadd.f32 %v3854_v28, %v5199_v44  ;;  %v2695_v28 = vadd.f32 %v2690_v0, %v2681_v58  ;;  %v2174_v0 = vstv %s5414_s25  ;;  %s5506_s25 = sld [smem:[#allocation14 + $0x5b]] }
 0x35c   : > { %v2718_v24 = vpop.permute.xlu1 %2717  ;;  %v1944_v22 = vadd.f32 %v3856_v14, %v5201_v56  ;;  %v2064_v14 = vadd.f32 %v2060_v1, %v2050_v25  ;;  %v2696_v1 = vadd.f32 %v5399_v18, %v2682_v32  ;;  %v2286_v18 = vstv %s5425_s1  ;;  %v5466_v32 = vld [vmem:[#allocation2 + $0x6d] sm:$0xff]  ;;  %s5533_s1 = sld [smem:[#allocation14 + $0x72]] }
 0x35d   : > { %v1958_v5 = vmul.f32 %v5208_v19, %v1945_v30  ;;  %v2091_v30 = vadd.f32 %v2086_v13, %v2077_v49  ;;  %v2709_v29 = vadd.f32 %v2704_v55, %v2695_v28 }
 0x35e   : > { %v1957_v8 = vmul.f32 %v5211_v4, %v1944_v22  ;;  %v5408_v42 = vpop.permute.xlu0 %2719  ;;  %v2078_v40 = vadd.f32 %v2074_v23, %v2064_v14  ;;  %v2710_v36 = vadd.f32 %v5401_v54, %v2696_v1 }
 0x35f   : > { %v1966_v48 = vsel %vm1322_vm12, %v1958_v5, -inf  ;;  %v2723_v13 = vadd.f32 %v2718_v24, %v2709_v29 }
 0x360   : > { %v2114_v41 = vpop.permute.xlu1 %2113  ;;  %v1959_v9 = vsel %vm1322_vm12, %v1957_v8, -inf  ;;  %v1967_v61 = vrot.slane %v1966_v48, 4  ;;  %v2092_v5 = vadd.f32 %v2088_v33, %v2078_v40  ;;  %v2724_v24 = vadd.f32 %v5408_v42, %v2710_v36 }
 0x361   : > { %v1960_v10 = vrot.slane %v1959_v9, 4  ;;  %v2119_v57 = vadd.f32 %v2114_v41, %v2091_v30  ;;  %v2175_v41 = vmul.f32 %v2174_v0, %v5336_v20 }
 0x362   : > { %v1968_v3 = vmax.f32 %v1966_v48, %v1967_v61  ;;  %v2116_v17 = vpop.permute.xlu0 %2115  ;;  %v2182_v48 = vstv %s5419_s5  ;;  %s5515_s5 = sld [smem:[#allocation14 + $0x5e]] }
 0x363   : > { %v1961_v15 = vmax.f32 %v1959_v9, %v1960_v10  ;;  %v2806_v9 = vstv %s5421_s11  ;;  %v2120_v55 = vadd.f32 %v2116_v17, %v2092_v5  ;;  %v2890_v17 = vstv %s5433_s27  ;;  %s5522_s11 = sld [smem:[#allocation14 + $0x5f]]  ;;  %s5569_s27 = sld [smem:[#allocation14 + $0x7a]] }
 0x364   : > { %v2746_v44 = vpop.permute.xlu1 %2745  ;;  %v1969_v34 = vrot.slane %v1968_v3, 2  ;;  %v2891_v25 = vmul.f32 %v2890_v17, %v5374_v35  ;;  %v2808_v29 = vmul.f32 %v2806_v9, %v5342_v52 }
 0x365   : > { %v1962_v45 = vrot.slane %v1961_v15, 2  ;;  %v2751_v11 = vadd.f32 %v2746_v44, %v2723_v13  ;;  %v2183_v44 = vmul.f32 %v2182_v48, %v5348_v59 }
 0x366   : > { %v1970_v56 = vmax.f32 %v1968_v3, %v1969_v34  ;;  %v5411_v46 = vpop.permute.xlu0 %2747  ;;  %v2814_v3 = vstv %s5427_s29  ;;  %s5544_s29 = sld [smem:[#allocation14 + $0x73]] }
 0x367   : > { %v1963_v43 = vmax.f32 %v1961_v15, %v1962_v45  ;;  %v2188_v15 = vstv %s5429_s16  ;;  %v2196_v45 = vstv %s5435_s15  ;;  %v2815_v58 = vmul.f32 %v2814_v3, %v5348_v59  ;;  %s5553_s16 = sld [smem:[#allocation14 + $0x76]]  ;;  %s5578_s15 = sld [smem:[#allocation14 + $0x7b]] }
 0x368   : > { %v2128_v19 = vpop.permute.xlu1 %2127  ;;  %v1971_v4 = vrot.slane %v1970_v56, 1  ;;  %v2197_v49 = vmul.f32 %v2196_v45, %v5374_v35 }
 0x369   : > { %v1964_v37 = vrot.slane %v1963_v43, 1  ;;  %v2133_v8 = vadd.f32 %v2128_v19, %v2119_v57 }
 0x36a   : > { %v1972_v60 = vmax.f32 %v1970_v56, %v1971_v4  ;;  %v2130_v47 = vpop.permute.xlu0 %2129  ;;  %v2822_v56 = vstv %s5431_s19  ;;  %s5560_s19 = sld [smem:[#allocation14 + $0x77]] }
 0x36b   : > { %v1965_v26 = vmax.f32 %v1963_v43, %v1964_v37  ;;  %v2134_v54 = vadd.f32 %v2130_v47, %v2120_v55  ;;  %v2752_v43 = vadd.f32 %v5411_v46, %v2724_v24  ;;  %v2828_v47 = vstv %s5440_s14  ;;  %s5587_s14 = sld [smem:[#allocation14 + $0x7e]] }
 0x36c   : > { %v2760_v7 = vpop.permute.xlu1 %2759  ;;  %v2184_v46 = vmul.f32 %v2182_v48, %v5354_v12  ;;  %v2823_v57 = vmul.f32 %v2822_v56, %v5360_v31  ;;  %v2287_v48 = vmul.f32 %v2286_v18, %v5336_v20  ;;  %v2829_v36 = vmul.f32 %v2828_v47, %v5374_v35 }
 0x36d   : > { %v1973_v27 = vsel %vm1337_vm13, %v1965_v26, %v1972_v60  ;;  %v2765_v33 = vadd.f32 %v2760_v7, %v2751_v11  ;;  %v2807_v60 = vmul.f32 %v2806_v9, %v5336_v20  ;;  %v2176_v26 = vmul.f32 %v2174_v0, %v5342_v52 }
 0x36e   : > { %v1977_v50 = vsel %vm1343_vm1, %v1973_v27, -inf  ;;  %v1974_v51 = vsel %vm1339_vm0, %v1973_v27, -inf  ;;  %v2762_v38 = vpop.permute.xlu0 %2761  ;;  %v2189_v7 = vmul.f32 %v2188_v15, %v5360_v31  ;;  %v2198_v9 = vmul.f32 %v2196_v45, %v5466_v32 }
 0x36f   : > { %1978 = vmax.xlane.f32.xlu1 %v1977_v50  ;;  %1975 = vmax.xlane.f32.xlu0 %v1974_v51  ;;  %v2766_v2 = vadd.f32 %v2762_v38, %v2752_v43  ;;  %v2300_v45 = vstv %s5468_s22  ;;  %s3624_s22 = sld [smem:[#allocation14 + $0x82]] }
 0x370   : > { %v2142_v53 = vpop.permute.xlu1 %2141 }
 0x371   : > { %v2147_v23 = vadd.f32 %v2142_v53, %v2133_v8  ;;  %v2816_v8 = vmul.f32 %v2814_v3, %v5354_v12 }
 0x372   : > { %v2144_v22 = vpop.permute.xlu0 %2143 }
 0x373   : > { %v2148_v4 = vadd.f32 %v2144_v22, %v2134_v54  ;;  %v2918_v22 = vstv %s5450_s12  ;;  %s5596_s12 = sld [smem:[#allocation14 + $0x7f]] }
 0x374   : > { %v2774_v21 = vpop.permute.xlu1 %2773  ;;  %v2919_v54 = vmul.f32 %v2918_v22, %v5336_v20  ;;  %v2288_v20 = vmul.f32 %v2286_v18, %v5342_v52 }
 0x375   : > { %v2779_v19 = vadd.f32 %v2774_v21, %v2765_v33  ;;  %v2190_v21 = vmul.f32 %v2188_v15, %v5368_v6  ;;  %v2824_v33 = vmul.f32 %v2822_v56, %v5368_v6  ;;  %v2301_v56 = vmul.f32 %v2300_v45, %v5348_v59 }
 0x376   : > { %v2776_v10 = vpop.permute.xlu0 %2775 }
 0x377   : > { %v2780_v53 = vadd.f32 %v2776_v10, %v2766_v2 }
 0x378   : > { %v2156_v61 = vpop.permute.xlu1 %2155 }
 0x379   : > { %v2161_v34 = vadd.f32 %v2156_v61, %v2147_v23 }
 0x37a   : > { %v2158_v42 = vpop.permute.xlu0 %2157 }
 0x37b   : > { %v2177_v37 = vadd.f32 %v2175_v41, %v2161_v34  ;;  %v2162_v51 = vadd.f32 %v2158_v42, %v2148_v4  ;;  %v2260_v41 = vmul.f32 %v2258_v39, %v5466_v32  ;;  %v2830_v34 = vmul.f32 %v2828_v47, %v5466_v32 }
 0x37c   : > { %v2788_v62 = vpop.permute.xlu1 %2787  ;;  %v2314_v47 = vstv %s5497_s20  ;;  %s5618_s20 = sld [smem:[#allocation14 + $0x86]] }
 0x37d   : > { %v2185_v27 = vadd.f32 %v2183_v44, %v2177_v37  ;;  %v2793_v50 = vadd.f32 %v2788_v62, %v2779_v19  ;;  %v2178_v14 = vadd.f32 %v2176_v26, %v2162_v51  ;;  %v2892_v44 = vmul.f32 %v2890_v17, %v5466_v32 }
 0x37e   : > { %v2790_v40 = vpop.permute.xlu0 %2789  ;;  %v2932_v37 = vstv %s5484_s17  ;;  %v2315_v51 = vmul.f32 %v2314_v47, %v5360_v31  ;;  %s5612_s17 = sld [smem:[#allocation14 + $0x83]] }
 0x37f   : > { %v2809_v28 = vadd.f32 %v2807_v60, %v2793_v50  ;;  %v2191_v30 = vadd.f32 %v2189_v7, %v2185_v27  ;;  %v2186_v1 = vadd.f32 %v2184_v46, %v2178_v14  ;;  %v2794_v5 = vadd.f32 %v2790_v40, %v2780_v53 }
 0x380   : > { %2895 = vrot.lane.b32.xlu1 %v2891_v25, %s4167_s23  ;;  %v2222_v38 = vpop.permute.xlu1 %2221  ;;  %v2933_v26 = vmul.f32 %v2932_v37, %v5348_v59  ;;  %v2920_v7 = vmul.f32 %v2918_v22, %v5342_v52  ;;  %v2302_v59 = vmul.f32 %v2300_v45, %v5354_v12  ;;  %v2946_v46 = vstv %s5506_s25  ;;  %v5590_v45 = vld [vmem:[#allocation2 + $0x32] sm:$0xff]  ;;  %s5627_s25 = sld [smem:[#allocation14 + $0x87]] }
 0x381   : > { %v2817_v0 = vadd.f32 %v2815_v58, %v2809_v28  ;;  %v2199_v13 = vadd.f32 %v2197_v49, %v2191_v30  ;;  %v2810_v11 = vadd.f32 %v2808_v29, %v2794_v5  ;;  %v2192_v23 = vadd.f32 %v2190_v21, %v2186_v1  ;;  %v5550_v5 = vld [vmem:[#allocation2 + $0xa] sm:$0xff] }
 0x382   : > { %v5487_v10 = vpop.permute.xlu0 %2223  ;;  %v2947_v28 = vmul.f32 %v2946_v46, %v5360_v31  ;;  %v2934_v30 = vmul.f32 %v2932_v37, %v5354_v12  ;;  %v2960_v1 = vstv %s5522_s11  ;;  %v5602_v37 = vld [vmem:[#allocation2 + $0x6a] sm:$0xff]  ;;  %s5641_s11 = sld [smem:[#allocation14 + $0x8b]] }
 0x383   : > { %v2825_v55 = vadd.f32 %v2823_v57, %v2817_v0  ;;  %v2818_v3 = vadd.f32 %v2816_v8, %v2810_v11  ;;  %v5489_v24 = vadd.f32 %v2198_v9, %v2192_v23  ;;  %v2227_v62 = vadd.f32 %v2222_v38, %v2199_v13  ;;  %v5566_v23 = vld [vmem:[#allocation2 + $0x2a] sm:$0xff] }
 0x384   : > { %2291 = vrot.lane.b32.xlu1 %v2287_v48, %s4169_s4  ;;  %v2854_v61 = vpop.permute.xlu1 %2853  ;;  %v2328_v38 = vstv %s5515_s5  ;;  %v2316_v0 = vmul.f32 %v2314_v47, %v5368_v6  ;;  %v2961_v12 = vmul.f32 %v2960_v1, %v5374_v35  ;;  %v2948_v13 = vmul.f32 %v2946_v46, %v5368_v6  ;;  %s5634_s5 = sld [smem:[#allocation14 + $0x8a]] }
 0x385   : > { %v2831_v15 = vadd.f32 %v2829_v36, %v2825_v55  ;;  %2265 = vrot.lane.b32.xlu0 %v2260_v41, %s4167_s23  ;;  %v2826_v39 = vadd.f32 %v2824_v33, %v2818_v3  ;;  %v2329_v22 = vmul.f32 %v2328_v38, %v5374_v35  ;;  %v2396_v8 = vstv %s5533_s1  ;;  %s5647_s1 = sld [smem:[#allocation14 + $0x8e]] }
 0x386   : > { %v2856_v19 = vpop.permute.xlu0 %2855  ;;  %v2397_v48 = vmul.f32 %v2396_v8, %v5550_v5  ;;  %v2330_v36 = vmul.f32 %v2328_v38, %v5466_v32  ;;  %v3028_v9 = vstv %s5544_s29  ;;  %v2962_v55 = vmul.f32 %v2960_v1, %v5466_v32  ;;  %s5657_s29 = sld [smem:[#allocation14 + $0x8f]] }
 0x387   : > { %v2832_v4 = vadd.f32 %v2830_v34, %v2826_v39  ;;  %v2859_v27 = vadd.f32 %v2854_v61, %v2831_v15  ;;  %v3029_v11 = vmul.f32 %v3028_v9, %v5550_v5  ;;  %v2410_v41 = vstv %s5553_s16  ;;  %v5572_v61 = vld [vmem:[#allocation2 + $0x12] sm:$0xff]  ;;  %v5584_v34 = vld [vmem:[#allocation2 + $0x4a] sm:$0xff]  ;;  %s5779_s16 = sld [smem:[#allocation14 + $0x6e]] }
 0x388   : > { %2923 = vrot.lane.b32.xlu1 %v2919_v54, %s4169_s4  ;;  %v2236_v43 = vpop.permute.xlu1 %2235  ;;  %v2411_v3 = vmul.f32 %v2410_v41, %v5566_v23  ;;  %v2398_v15 = vmul.f32 %v2396_v8, %v5572_v61  ;;  %v3042_v33 = vstv %s5560_s19  ;;  %v3030_v39 = vmul.f32 %v3028_v9, %v5572_v61  ;;  %s5782_s19 = sld [smem:[#allocation14 + $0x6b]] }
 0x389   : > { %2897 = vrot.lane.b32.xlu0 %v2892_v44, %s4167_s23  ;;  %v2241_v42 = vadd.f32 %v2236_v43, %v2227_v62  ;;  %v2860_v49 = vadd.f32 %v2856_v19, %v2832_v4  ;;  %v3043_v54 = vmul.f32 %v3042_v33, %v5566_v23  ;;  %v2424_v44 = vstv %s5569_s27  ;;  %v5606_v62 = vld [vmem:[#allocation2 + $0x52] sm:$0xff] }
 0x38a   : > { %v5509_v60 = vpop.permute.xlu0 %2237  ;;  %v2425_v43 = vmul.f32 %v2424_v44, %v5584_v34  ;;  %v2412_v19 = vmul.f32 %v2410_v41, %v5590_v45  ;;  %v3056_v4 = vstv %s5578_s15  ;;  %s3593_s15 = sld [smem:[#allocation11 + $0xa]] }
 0x38c   : > { %2305 = vrot.lane.b32.xlu1 %v2301_v56, %s4169_s4  ;;  %v2868_v17 = vpop.permute.xlu1 %2867  ;;  %v3057_v56 = vmul.f32 %v3056_v4, %v5584_v34 }
 0x38d   : > { %2293 = vrot.lane.b32.xlu0 %v2288_v20, %s4169_s4  ;;  %v2873_v58 = vadd.f32 %v2868_v17, %v2859_v27  ;;  %v3044_v20 = vmul.f32 %v3042_v33, %v5590_v45  ;;  %v2438_v17 = vstv %s5587_s14  ;;  %v5621_v27 = vld [vmem:[#allocation2 + $0x72] sm:$0xff]  ;;  %s3647_s14 = sld [smem:[#allocation11 + $0xb]] }
 0x38e   : > { %v2870_v2 = vpop.permute.xlu0 %2869 }
 0x38f   : > { %v2874_v14 = vadd.f32 %v2870_v2, %v2860_v49  ;;  %v2466_v2 = vstv %s3624_s22  ;;  %s3608_s22 = sld [smem:[#allocation11 + $0x16]] }
 0x390   : > { %2937 = vrot.lane.b32.xlu1 %v2933_v26, %s4169_s4  ;;  %v2250_v18 = vpop.permute.xlu1 %2249  ;;  %v2439_v26 = vmul.f32 %v2438_v17, %v5602_v37 }
 0x391   : > { %v2255_v50 = vadd.f32 %v2250_v18, %v2241_v42  ;;  %2925 = vrot.lane.b32.xlu0 %v2920_v7, %s4169_s4  ;;  %v2426_v42 = vmul.f32 %v2424_v44, %v5606_v62  ;;  %v3070_v7 = vstv %s5596_s12  ;;  %v3058_v18 = vmul.f32 %v3056_v4, %v5606_v62  ;;  %s3603_s12 = sld [smem:[#allocation11 + $0x12]]  ;;  %v5696_v4 = vld [vmem:[#allocation2 + $0x64] sm:$0xff] }
 0x392   : > { %v5525_v25 = vpop.permute.xlu0 %2251  ;;  %v3071_v47 = vmul.f32 %v3070_v7, %v5602_v37  ;;  %v3072_v46 = vmul.f32 %v3070_v7, %v5621_v27 }
 0x394   : > { %2319 = vrot.lane.b32.xlu1 %v2315_v51, %s4169_s4  ;;  %v2882_v52 = vpop.permute.xlu1 %2881  ;;  %v2440_v51 = vmul.f32 %v2438_v17, %v5621_v27  ;;  %v2726_v17 = vstv %s3647_s14  ;;  %s5815_s14 = sld [smem:[#allocation11 + $0x2]] }
 0x395   : > { %v5527_v53 = vadd.f32 %v2882_v52, %v2873_v58  ;;  %2307 = vrot.lane.b32.xlu0 %v2302_v59, %s4169_s4  ;;  %v3098_v58 = vstv %s5612_s17  ;;  %v2480_v52 = vstv %s5618_s20  ;;  %s5719_s17 = sld [smem:[#allocation11 + $0x1e]]  ;;  %s5730_s20 = sld [smem:[#allocation11 + $0x1f]] }
 0x396   : > { %v2884_v40 = vpop.permute.xlu0 %2883  ;;  %v3099_v59 = vmul.f32 %v3098_v58, %v5550_v5  ;;  %v2481_v49 = vmul.f32 %v2480_v52, %v5566_v23  ;;  %v3100_v38 = vmul.f32 %v3098_v58, %v5572_v61 }
 0x397   : > { %v5538_v21 = vadd.f32 %v2884_v40, %v2874_v14  ;;  %v3112_v14 = vstv %s5627_s25  ;;  %s3623_s25 = sld [smem:[#allocation11 + $0x22]] }
 0x398   : > { %2951 = vrot.lane.b32.xlu1 %v2947_v28, %s4169_s4  ;;  %v2264_v29 = vpop.permute.xlu1 %2263  ;;  %v2468_v28 = vmul.f32 %v2466_v2, %v5572_v61  ;;  %v3114_v8 = vmul.f32 %v3112_v14, %v5590_v45 }
 0x399   : > { %v5536_v57 = vadd.f32 %v2264_v29, %v2255_v50  ;;  %2939 = vrot.lane.b32.xlu0 %v2934_v30, %s4169_s4  ;;  %v2467_v50 = vmul.f32 %v2466_v2, %v5550_v5  ;;  %v3113_v30 = vmul.f32 %v3112_v14, %v5566_v23  ;;  %v2494_v29 = vstv %s5634_s5  ;;  %s3677_s5 = sld [smem:[#allocation11 + $0x23]] }
 0x39a   : > { %v2495_v40 = vmul.f32 %v2494_v29, %v5584_v34  ;;  %v2727_v2 = vmul.f32 %v2726_v17, %v5696_v4 }
 0x39c   : > { %2333 = vrot.lane.b32.xlu1 %v2329_v22, %s4169_s4  ;;  %v2482_v22 = vmul.f32 %v2480_v52, %v5590_v45  ;;  %v2228_v52 = vadd.f32 %v5487_v10, %v5489_v24 }
 0x39d   : > { %2321 = vrot.lane.b32.xlu0 %v2316_v0, %s4169_s4  ;;  %v3126_v0 = vstv %s5641_s11  ;;  %s5767_s11 = sld [smem:[#allocation14 + $0x62]] }
 0x39e   : > { %v3127_v1 = vmul.f32 %v3126_v0, %v5584_v34 }
 0x3a0   : > { %2965 = vrot.lane.b32.xlu1 %v2961_v12, %s4169_s4 }
 0x3a1   : > { %2953 = vrot.lane.b32.xlu0 %v2948_v13, %s4169_s4 }
 0x3a4   : > { %2401 = vrot.lane.b32.xlu1 %v2397_v48, %s4167_s23  ;;  %v2508_v48 = vstv %s5647_s1  ;;  %s5770_s1 = sld [smem:[#allocation14 + $0x66]] }
 0x3a5   : > { %2335 = vrot.lane.b32.xlu0 %v2330_v36, %s4169_s4  ;;  %v2509_v9 = vmul.f32 %v2508_v48, %v5602_v37 }
 0x3a8   : > { %3033 = vrot.lane.b32.xlu1 %v3029_v11, %s4167_s23  ;;  %v2496_v11 = vmul.f32 %v2494_v29, %v5606_v62 }
 0x3a9   : > { %2967 = vrot.lane.b32.xlu0 %v2962_v55, %s4169_s4  ;;  %v3140_v55 = vstv %s5657_s29  ;;  %s5777_s29 = sld [smem:[#allocation14 + $0x67]] }
 0x3aa   : > { %v3141_v41 = vmul.f32 %v3140_v55, %v5602_v37 }
 0x3ac   : > { %2415 = vrot.lane.b32.xlu1 %v2411_v3, %s4167_s23  ;;  %v3128_v3 = vmul.f32 %v3126_v0, %v5606_v62 }
 0x3ad   : > { %2403 = vrot.lane.b32.xlu0 %v2398_v15, %s4167_s23  ;;  %v5681_v15 = vld [vmem:[#allocation2 + $0x4c] sm:$0xff] }
 0x3ae   : > { %v2026_v33 = vmul.f32 %v2024_v16, %v5681_v15  ;;  %v2094_v16 = vstv %s3593_s15  ;;  %s5812_s15 = sld [smem:[#allocation15 + $0x3]] }
 0x3b0   : > { %3047 = vrot.lane.b32.xlu1 %v3043_v54, %s4167_s23  ;;  %v2510_v54 = vmul.f32 %v2508_v48, %v5621_v27 }
 0x3b1   : > { %3035 = vrot.lane.b32.xlu0 %v3030_v39, %s4167_s23  ;;  %v5689_v39 = vld [vmem:[#allocation2 + $0x6c] sm:$0xff] }
 0x3b4   : > { %2429 = vrot.lane.b32.xlu1 %v2425_v43, %s4167_s23 }
 0x3b5   : > { %2417 = vrot.lane.b32.xlu0 %v2412_v19, %s4167_s23  ;;  %v3142_v19 = vmul.f32 %v3140_v55, %v5621_v27 }
 0x3b8   : > { %3061 = vrot.lane.b32.xlu1 %v3057_v56, %s4167_s23  ;;  %v2096_v56 = vmul.f32 %v2094_v16, %v5681_v15 }
 0x3b9   : > { %3049 = vrot.lane.b32.xlu0 %v3044_v20, %s4167_s23 }
 0x3bc   : > { %2443 = vrot.lane.b32.xlu1 %v2439_v26, %s4167_s23  ;;  %v2728_v26 = vmul.f32 %v2726_v17, %v5689_v39 }
 0x3bd   : > { %2431 = vrot.lane.b32.xlu0 %v2426_v42, %s4167_s23  ;;  %v5704_v42 = vld [vmem:[#allocation2 + $0x44] sm:$0xff] }
 0x3be   : > { %v2095_v7 = vmul.f32 %v5704_v42, %v2094_v16 }
 0x3c0   : > { %3075 = vrot.lane.b32.xlu1 %v3071_v47, %s4167_s23  ;;  %v2202_v47 = vstv %s3603_s12  ;;  %s5818_s12 = sld [smem:[#allocation11 + $0x3]] }
 0x3c1   : > { %3063 = vrot.lane.b32.xlu0 %v3058_v18, %s4167_s23  ;;  %v2204_v18 = vmul.f32 %v2202_v47, %v5368_v6  ;;  %v2203_v58 = vmul.f32 %v2202_v47, %v5360_v31 }
 0x3c4   : > { %2471 = vrot.lane.b32.xlu1 %v2467_v50, %s4169_s4  ;;  %v2834_v50 = vstv %s3657_s26  ;;  %s5820_s26 = sld [smem:[#allocation11 + $0xe]] }
 0x3c5   : > { %2445 = vrot.lane.b32.xlu0 %v2440_v51, %s4167_s23  ;;  %v2836_v51 = vmul.f32 %v2834_v50, %v5466_v32 }
 0x3c8   : > { %3103 = vrot.lane.b32.xlu1 %v3099_v59, %s4169_s4  ;;  %v2272_v59 = vstv %s3608_s22  ;;  %s5824_s22 = sld [smem:[#allocation11 + $0xf]] }
 0x3c9   : > { %3077 = vrot.lane.b32.xlu0 %v3072_v46, %s4167_s23  ;;  %s3698_s23 = sshll.u32 %s5965_s30, 3  ;;  %s3642_s30 = sld [smem:[#allocation11 + $0x7]]  ;;  %v2274_v46 = vmul.f32 %v2272_v59, %v5368_v6  ;;  %v2273_v24 = vmul.f32 %v2272_v59, %v5360_v31 }
 0x3ca   : > { %s5665_s27 = scalar_lea.vmem %s5900_s8, %s3698_s23  ;;  %s5774_s23 = sld [smem:[#allocation14 + $0x6a]] }
 0x3cc   : > { %2485 = vrot.lane.b32.xlu1 %v2481_v49, %s4169_s4  ;;  %v2835_v49 = vmul.f32 %v2834_v50, %v5374_v35 }
 0x3cd   : > { %2473 = vrot.lane.b32.xlu0 %v2468_v28, %s4169_s4 }
 0x3cf   : > { %v2656_v44 = vstv %s3642_s30  ;;  %s5785_s30 = sld [smem:[#allocation14 + $0x6f]] }
 0x3d0   : > { %3117 = vrot.lane.b32.xlu1 %v3113_v30, %s4169_s4  ;;  %v1342_v12 = vpop.xlane.xlu0 %1341  ;;  %v2658_v43 = vmul.f32 %v2656_v44, %v5689_v39  ;;  %v2657_v20 = vmul.f32 %v2656_v44, %v5696_v4 }
 0x3d1   : > { %3105 = vrot.lane.b32.xlu0 %v3100_v38, %s4169_s4  ;;  %v2242_v38 = vadd.f32 %v5509_v60, %v2228_v52 }
 0x3d3   : > { %v2256_v10 = vadd.f32 %v5525_v25, %v2242_v38  ;;  %v2368_v38 = vstv %s5774_s23 }
 0x3d4   : > { %2499 = vrot.lane.b32.xlu1 %v2495_v40, %s4169_s4  ;;  %v5737_v40 = vld [vmem:[#allocation2 + $0x4e] sm:$0xff] }
 0x3d5   : > { %2487 = vrot.lane.b32.xlu0 %v2482_v22, %s4169_s4 }
 0x3d7   : > { %v1346_v13 = vpop.xlane.xlu1 %1345 }
 0x3d8   : > { %3131 = vrot.lane.b32.xlu1 %v3127_v1, %s4169_s4  ;;  %v1348_v36 = vsel %vm1347_vm2, %v1342_v12, %v1346_v13  ;;  %v2382_v12 = vstv %s5719_s17  ;;  %s3667_s17 = sld [smem:[#allocation11 + $0x1b]] }
 0x3d9   : > { %1350 = vst.msk [vmem:[%s5665_s27] sm:$0x3] %vm1349_vm3, %v1348_v36  ;;  %3119 = vrot.lane.b32.xlu0 %v3114_v8, %s4169_s4  ;;  %v2384_v13 = vmul.f32 %v2382_v12, %v5737_v40  ;;  %v5745_v8 = vld [vmem:[#allocation2 + $0x6e] sm:$0xff]  ;;  %v5748_v36 = vld [vmem:[#allocation2 + $0x46] sm:$0xff] }
 0x3da   : > { %v2383_v55 = vmul.f32 %v2382_v12, %v5748_v36 }
 0x3dc   : > { %2513 = vrot.lane.b32.xlu1 %v2509_v9, %s4169_s4 }
 0x3dd   : > { %2501 = vrot.lane.b32.xlu0 %v2496_v11, %s4169_s4 }
 0x3e0   : > { %3145 = vrot.lane.b32.xlu1 %v3141_v41, %s4169_s4 }
 0x3e1   : > { %3133 = vrot.lane.b32.xlu0 %v3128_v3, %s4169_s4  ;;  %v5756_v3 = vld [vmem:[#allocation2 + $0x66] sm:$0xff] }
 0x3e4   : > { %2031 = vrot.lane.b32.xlu1 %v2026_v33, %s4166_s18  ;;  %v2452_v33 = vstv %s3623_s25 }
 0x3e5   : > { %2515 = vrot.lane.b32.xlu0 %v2510_v54, %s4169_s4  ;;  %v2454_v54 = vmul.f32 %v2452_v33, %v5737_v40 }
 0x3e8   : > { %2663 = vrot.lane.b32.xlu1 %v2658_v43, %s4166_s18 }
 0x3e9   : > { %3147 = vrot.lane.b32.xlu0 %v3142_v19, %s4169_s4  ;;  %s5711_s4 = sld [smem:[#allocation11 + $0x17]]  ;;  %v3084_v19 = vstv %s3677_s5 }
 0x3ea   : > { %v3086_v16 = vmul.f32 %v3084_v19, %v5745_v8 }
 0x3ec   : > { %2101 = vrot.lane.b32.xlu1 %v2096_v56, %s4168_s24  ;;  %v2453_v56 = vmul.f32 %v2452_v33, %v5748_v36 }
 0x3ed   : > { %2661 = vrot.lane.b32.xlu0 %v2657_v20, %s4166_s18 }
 0x3ef   : > { %v2904_v28 = vstv %s5711_s4  ;;  %s3613_s4 = sld [smem:[#allocation11 + $0x1a]] }
 0x3f0   : > { %2733 = vrot.lane.b32.xlu1 %v2728_v26, %s4168_s24  ;;  %v2906_v6 = vmul.f32 %v2904_v28, %v5466_v32  ;;  %v2905_v25 = vmul.f32 %v2904_v28, %v5374_v35  ;;  %v3085_v26 = vmul.f32 %v3084_v19, %v5756_v3 }
 0x3f1   : > { %2099 = vrot.lane.b32.xlu0 %v2095_v7, %s4168_s24 }
 0x3f4   : > { %2209 = vrot.lane.b32.xlu1 %v2204_v18, %s4166_s18 }
 0x3f5   : > { %2731 = vrot.lane.b32.xlu0 %v2727_v2, %s4168_s24 }
 0x3f8   : > { %2841 = vrot.lane.b32.xlu1 %v2836_v51, %s4166_s18 }
 0x3f9   : > { %2207 = vrot.lane.b32.xlu0 %v2203_v58, %s4166_s18  ;;  %v2352_v58 = vstv %s5767_s11 }
 0x3fc   : > { %2279 = vrot.lane.b32.xlu1 %v2274_v46, %s4168_s24  ;;  %v1979_v14 = vpop.xlane.xlu1 %1978  ;;  %v1976_v30 = vpop.xlane.xlu0 %1975 }
 0x3fd   : > { %v1980_v29 = vsel %vm1347_vm2, %v1976_v30, %v1979_v14  ;;  %2839 = vrot.lane.b32.xlu0 %v2835_v49, %s4166_s18  ;;  %v2360_v49 = vstv %s5770_s1 }
 0x3fe   : > { %3582 = vst.msk [vmem:[%s5665_s27 + $0x2] sm:$0x3] %vm1349_vm3, %v1980_v29 }
 0x400   : > { %2911 = vrot.lane.b32.xlu1 %v2906_v6, %s4168_s24  ;;  %v2896_v22 = vpop.permute.xlu1 %2895  ;;  %v2266_v60 = vpop.permute.xlu0 %2265  ;;  %v2353_v6 = vmul.f32 %v2352_v58, %v5550_v5 }
 0x401   : > { %v2901_v0 = vadd.f32 %v2896_v22, %v5527_v53  ;;  %v2270_v1 = vadd.f32 %v2266_v60, %v2256_v10  ;;  %2277 = vrot.lane.b32.xlu0 %v2273_v24, %s4168_s24  ;;  %v3014_v53 = vstv %s5730_s20  ;;  %v2361_v24 = vmul.f32 %v2360_v49, %v5566_v23 }
 0x402   : > { %v3016_v11 = vmul.f32 %v3014_v53, %v5745_v8  ;;  %v2992_v22 = vstv %s5777_s29  ;;  %v2376_v60 = vstv %s5779_s16 }
 0x404   : > { %2389 = vrot.lane.b32.xlu1 %v2384_v13, %s4166_s18  ;;  %v2292_v31 = vpop.permute.xlu1 %2291  ;;  %v2898_v48 = vpop.permute.xlu0 %2897 }
 0x405   : > { %v2902_v9 = vadd.f32 %v2898_v48, %v5538_v21  ;;  %2909 = vrot.lane.b32.xlu0 %v2905_v25, %s4168_s24  ;;  %v3015_v21 = vmul.f32 %v3014_v53, %v5756_v3  ;;  %v2297_v18 = vadd.f32 %v2292_v31, %v5536_v57  ;;  %v2354_v48 = vmul.f32 %v2352_v58, %v5572_v61 }
 0x408   : > { %3021 = vrot.lane.b32.xlu1 %v3016_v11, %s4166_s18  ;;  %v2924_v35 = vpop.permute.xlu1 %2923  ;;  %v2294_v41 = vpop.permute.xlu0 %2293  ;;  %v2369_v11 = vmul.f32 %v2368_v38, %v5584_v34 }
 0x409   : > { %2387 = vrot.lane.b32.xlu0 %v2383_v55, %s4166_s18  ;;  %v2929_v59 = vadd.f32 %v2924_v35, %v2901_v0  ;;  %v2298_v46 = vadd.f32 %v2294_v41, %v2270_v1  ;;  %v3000_v55 = vstv %s5782_s19 }
 0x40c   : > { %2459 = vrot.lane.b32.xlu1 %v2454_v54, %s4168_s24  ;;  %v2306_v44 = vpop.permute.xlu1 %2305  ;;  %v2926_v43 = vpop.permute.xlu0 %2925 }
 0x40d   : > { %3019 = vrot.lane.b32.xlu0 %v3015_v21, %s4166_s18  ;;  %s5772_s18 = sld [smem:[#allocation14 + $0x63]]  ;;  %v2311_v51 = vadd.f32 %v2306_v44, %v2297_v18  ;;  %v2930_v12 = vadd.f32 %v2926_v43, %v2902_v9  ;;  %v2993_v21 = vmul.f32 %v2992_v22, %v5566_v23  ;;  %v2362_v9 = vmul.f32 %v2360_v49, %v5590_v45 }
 0x40e   : > { %v2377_v44 = vmul.f32 %v2376_v60, %v5602_v37  ;;  %v3008_v43 = vstv %s5785_s30  ;;  %v2378_v49 = vmul.f32 %v2376_v60, %v5621_v27 }
 0x40f   : > { %v3009_v58 = vmul.f32 %v3008_v43, %v5602_v37 }
 0x410   : > { %3091 = vrot.lane.b32.xlu1 %v3086_v16, %s4168_s24  ;;  %v2938_v20 = vpop.permute.xlu1 %2937  ;;  %v2308_v17 = vpop.permute.xlu0 %2307 }
 0x411   : > { %2457 = vrot.lane.b32.xlu0 %v2453_v56, %s4168_s24  ;;  %v2943_v29 = vadd.f32 %v2938_v20, %v2929_v59  ;;  %v2312_v57 = vadd.f32 %v2308_v17, %v2298_v46 }
 0x413   : > { %v2984_v30 = vstv %s5772_s18 }
 0x414   : > { %v2320_v7 = vpop.permute.xlu1 %2319  ;;  %v2940_v47 = vpop.permute.xlu0 %2939  ;;  %v2985_v25 = vmul.f32 %v2984_v30, %v5550_v5  ;;  %v2986_v17 = vmul.f32 %v2984_v30, %v5572_v61 }
 0x415   : > { %3089 = vrot.lane.b32.xlu0 %v3085_v26, %s4168_s24  ;;  %v2325_v52 = vadd.f32 %v2320_v7, %v2311_v51  ;;  %v2944_v35 = vadd.f32 %v2940_v47, %v2930_v12  ;;  %v3001_v7 = vmul.f32 %v3000_v55, %v5584_v34  ;;  %v2370_v47 = vmul.f32 %v2368_v38, %v5606_v62  ;;  %s5810_s24 = sld [smem:[#allocation15 + $0x2]] }
 0x416   : > { %v2994_v51 = vmul.f32 %v2992_v22, %v5590_v45  ;;  %v3002_v38 = vmul.f32 %v3000_v55, %v5606_v62 }
 0x418   : > { %v2952_v2 = vpop.permute.xlu1 %2951  ;;  %v2322_v50 = vpop.permute.xlu0 %2321 }
 0x419   : > { %v2957_v13 = vadd.f32 %v2952_v2, %v2943_v29  ;;  %v2326_v0 = vadd.f32 %v2322_v50, %v2312_v57  ;;  %v3010_v57 = vmul.f32 %v3008_v43, %v5621_v27 }
 0x41c   : > { %v2334_v28 = vpop.permute.xlu1 %2333  ;;  %v2954_v14 = vpop.permute.xlu0 %2953 }
 0x41d   : > { %v2339_v10 = vadd.f32 %v2334_v28, %v2325_v52  ;;  %v2958_v19 = vadd.f32 %v2954_v14, %v2944_v35 }
 0x41f   : > { %v2355_v1 = vadd.f32 %v2353_v6, %v2339_v10 }
 0x420   : > { %v2966_v31 = vpop.permute.xlu1 %2965  ;;  %v2336_v53 = vpop.permute.xlu0 %2335 }
 0x421   : > { %v2363_v41 = vadd.f32 %v2361_v24, %v2355_v1  ;;  %v2971_v33 = vadd.f32 %v2966_v31, %v2957_v13  ;;  %v2340_v54 = vadd.f32 %v2336_v53, %v2326_v0 }
 0x423   : > { %v2987_v5 = vadd.f32 %v2985_v25, %v2971_v33  ;;  %v2356_v16 = vadd.f32 %v2354_v48, %v2340_v54  ;;  %v2371_v56 = vadd.f32 %v2369_v11, %v2363_v41 }
 0x424   : > { %v2402_v20 = vpop.permute.xlu1 %2401  ;;  %v2968_v26 = vpop.permute.xlu0 %2967 }
 0x425   : > { %v2995_v18 = vadd.f32 %v2993_v21, %v2987_v5  ;;  %v2364_v2 = vadd.f32 %v2362_v9, %v2356_v16  ;;  %v2379_v23 = vadd.f32 %v2377_v44, %v2371_v56  ;;  %v2972_v50 = vadd.f32 %v2968_v26, %v2958_v19 }
 0x427   : > { %v2988_v59 = vadd.f32 %v2986_v17, %v2972_v50  ;;  %v3003_v46 = vadd.f32 %v3001_v7, %v2995_v18  ;;  %v2372_v52 = vadd.f32 %v2370_v47, %v2364_v2  ;;  %v2407_v27 = vadd.f32 %v2402_v20, %v2379_v23 }
 0x428   : > { %v3034_v28 = vpop.permute.xlu1 %3033  ;;  %v2404_v61 = vpop.permute.xlu0 %2403 }
 0x429   : > { %v2996_v14 = vadd.f32 %v2994_v51, %v2988_v59  ;;  %v3011_v30 = vadd.f32 %v3009_v58, %v3003_v46  ;;  %v2380_v34 = vadd.f32 %v2378_v49, %v2372_v52 }
 0x42b   : > { %v3004_v29 = vadd.f32 %v3002_v38, %v2996_v14  ;;  %v3039_v21 = vadd.f32 %v3034_v28, %v3011_v30  ;;  %v2408_v9 = vadd.f32 %v2404_v61, %v2380_v34  ;;  %v2526_v28 = vstv %s5810_s24 }
 0x42c   : > { %v2416_v6 = vpop.permute.xlu1 %2415  ;;  %v3036_v10 = vpop.permute.xlu0 %3035 }
 0x42d   : > { %v3012_v45 = vadd.f32 %v3010_v57, %v3004_v29  ;;  %v2421_v54 = vadd.f32 %v2416_v6, %v2407_v27 }
 0x42f   : > { %v3040_v17 = vadd.f32 %v3036_v10, %v3012_v45 }
 0x430   : > { %v3048_v24 = vpop.permute.xlu1 %3047  ;;  %v2418_v37 = vpop.permute.xlu0 %2417 }
 0x431   : > { %v3053_v5 = vadd.f32 %v3048_v24, %v3039_v21  ;;  %v2422_v16 = vadd.f32 %v2418_v37, %v2408_v9  ;;  %v3158_v24 = vstv %s5812_s15 }
 0x434   : > { %v2430_v22 = vpop.permute.xlu1 %2429  ;;  %v3050_v12 = vpop.permute.xlu0 %3049 }
 0x435   : > { %v2435_v44 = vadd.f32 %v2430_v22, %v2421_v54  ;;  %v3054_v18 = vadd.f32 %v3050_v12, %v3040_v17  ;;  %v2618_v54 = vstv %s5818_s12 }
 0x438   : > { %v3062_v13 = vpop.permute.xlu1 %3061  ;;  %v2432_v0 = vpop.permute.xlu0 %2431 }
 0x439   : > { %v3067_v26 = vadd.f32 %v3062_v13, %v3053_v5  ;;  %v2436_v7 = vadd.f32 %v2432_v0, %v2422_v16  ;;  %v3632_v5 = vld [vmem:[%s4507_s13 + $0x20] sm:$0xff]  ;;  %v2166_v16 = vstv %s5820_s26 }
 0x43c   : > { %v2444_v60 = vpop.permute.xlu1 %2443  ;;  %v3064_v1 = vpop.permute.xlu0 %3063 }
 0x43d   : > { %v2449_v56 = vadd.f32 %v2444_v60, %v2435_v44  ;;  %v3068_v58 = vadd.f32 %v3064_v1, %v3054_v18 }
 0x440   : > { %v3076_v25 = vpop.permute.xlu1 %3075  ;;  %v2446_v31 = vpop.permute.xlu0 %2445 }
 0x441   : > { %v3081_v23 = vadd.f32 %v3076_v25, %v3067_v26  ;;  %v2450_v50 = vadd.f32 %v2446_v31, %v2436_v7  ;;  %v2620_v7 = vmul.f32 %v2618_v54, %v5689_v39 }
 0x444   : > { %v2472_v48 = vpop.permute.xlu1 %2471  ;;  %v3078_v53 = vpop.permute.xlu0 %3077 }
 0x445   : > { %v2477_v47 = vadd.f32 %v2472_v48, %v2449_v56  ;;  %v3082_v49 = vadd.f32 %v3078_v53, %v3068_v58  ;;  %v3633_v58 = vld [vmem:[%s4507_s13 + $0x28] sm:$0xff] }
 0x448   : > { %v3104_v11 = vpop.permute.xlu1 %3103  ;;  %v2474_v62 = vpop.permute.xlu0 %2473 }
 0x449   : > { %v3109_v59 = vadd.f32 %v3104_v11, %v3081_v23  ;;  %v2478_v46 = vadd.f32 %v2474_v62, %v2450_v50  ;;  %v3899_v50 = vld [vmem:[#allocation2 + $0x45] sm:$0xff] }
 0x44c   : > { %v2486_v55 = vpop.permute.xlu1 %2485  ;;  %v3106_v35 = vpop.permute.xlu0 %3105 }
 0x44d   : > { %v2491_v51 = vadd.f32 %v2486_v55, %v2477_v47  ;;  %v3110_v29 = vadd.f32 %v3106_v35, %v3082_v49  ;;  %v1986_v35 = vstv %s5815_s14  ;;  %v2619_v47 = vmul.f32 %v2618_v54, %v5696_v4 }
 0x44e   : > { %v1987_v44 = vmul.f32 %v5704_v42, %v1986_v35 }
 0x450   : > { %v3118_v41 = vpop.permute.xlu1 %3117  ;;  %v2488_v33 = vpop.permute.xlu0 %2487  ;;  %v2035_v56 = vadd.f32 %v5391_v63, %v1987_v44  ;;  %v2167_v63 = vmul.f32 %v3899_v50, %v2166_v16 }
 0x451   : > { %v3123_v30 = vadd.f32 %v3118_v41, %v3109_v59  ;;  %v2492_v34 = vadd.f32 %v2488_v33, %v2478_v46  ;;  %v2798_v59 = vstv %s5824_s22 }
 0x454   : > { %v2500_v43 = vpop.permute.xlu1 %2499  ;;  %v3120_v19 = vpop.permute.xlu0 %3119 }
 0x455   : > { %v2505_v52 = vadd.f32 %v2500_v43, %v2491_v51  ;;  %v3124_v45 = vadd.f32 %v3120_v19, %v3110_v29  ;;  %v1988_v43 = vmul.f32 %v1986_v35, %v5681_v15  ;;  %v3686_v51 = vld [vmem:[%s4507_s13 + $0x30] sm:$0xff]  ;;  %v3634_v29 = vld [vmem:[%s4495_s21 + $0x20] sm:$0xff] }
 0x458   : > { %v3132_v20 = vpop.permute.xlu1 %3131  ;;  %v2502_v2 = vpop.permute.xlu0 %2501 }
 0x459   : > { %v3137_v57 = vadd.f32 %v3132_v20, %v3123_v30  ;;  %v2506_v6 = vadd.f32 %v2502_v2, %v2492_v34  ;;  %v3898_v2 = vld [vmem:[#allocation2 + $0x4d] sm:$0xff]  ;;  %v2800_v30 = vmul.f32 %v2798_v59, %v5466_v32  ;;  %v3900_v34 = vld [vmem:[#allocation2 + $0x65] sm:$0xff]  ;;  %v3689_v32 = vld [vmem:[%s4495_s21 + $0x38] sm:$0xff] }
 0x45a   : > { %v2168_v23 = vmul.f32 %v3898_v2, %v2166_v16 }
 0x45c   : > { %v2514_v61 = vpop.permute.xlu1 %2513  ;;  %v3134_v14 = vpop.permute.xlu0 %3133 }
 0x45d   : > { %v2519_v38 = vadd.f32 %v2514_v61, %v2505_v52  ;;  %v3138_v60 = vadd.f32 %v3134_v14, %v3124_v45 }
 0x45f   : > { %v2527_v10 = vadd.f32 %v2526_v28, %v2519_v38  ;;  %v2799_v38 = vmul.f32 %v3900_v34, %v2798_v59 }
 0x460   : > { %v3146_v37 = vpop.permute.xlu1 %3145  ;;  %v2516_v22 = vpop.permute.xlu0 %2515 }
 0x461   : > { %v2537_v12 = vmul.f32 0.2, %v2527_v10  ;;  %v3151_v13 = vadd.f32 %v3146_v37, %v3137_v57  ;;  %v2520_v0 = vadd.f32 %v2516_v22, %v2506_v6  ;;  %vm2535_vm4 = vcmp.ge.f32.partialorder %v2527_v10, 0.0  ;;  %v3687_v57 = vld [vmem:[%s4507_s13 + $0x38] sm:$0xff]  ;;  %v3688_v37 = vld [vmem:[%s4495_s21 + $0x30] sm:$0xff]  ;;  %v3635_v22 = vld [vmem:[%s4495_s21 + $0x28] sm:$0xff] }
 0x462   : > { %s3628_s21 = sld [smem:[#allocation12 + $0x2]]  ;;  %s3682_s13 = sld [smem:[#allocation12 + $0x3]] }
 0x463   : > { %v3159_v1 = vadd.f32 %v3158_v24, %v3151_v13  ;;  %v2528_v25 = vadd.f32 %v2526_v28, %v2520_v0  ;;  %v2539_v31 = vsel %vm2535_vm4, %v2527_v10, %v2537_v12  ;;  %v2344_v0 = vstv %s3613_s4 }
 0x464   : > { %v2032_v48 = vpop.permute.xlu1 %2031  ;;  %2543 = vrot.lane.b32.xlu0 %v2539_v31, %s4170_s9  ;;  %v3148_v53 = vpop.permute.xlu0 %3147 }
 0x465   : > { %v3169_v11 = vmul.f32 0.2, %v3159_v1  ;;  %v2538_v62 = vmul.f32 0.2, %v2528_v25  ;;  %v3152_v55 = vadd.f32 %v3148_v53, %v3138_v60  ;;  %vm3167_vm5 = vcmp.ge.f32.partialorder %v3159_v1, 0.0 }
 0x466   : > { %vm2536_vm6 = vcmp.ge.f32.partialorder %v2528_v25, 0.0  ;;  %v2036_v17 = vadd.f32 %v2032_v48, %v1988_v43 }
 0x467   : > { %v3160_v27 = vadd.f32 %v3158_v24, %v3152_v55  ;;  %v3171_v41 = vsel %vm3167_vm5, %v3159_v1, %v3169_v11  ;;  %v2540_v33 = vsel %vm2536_vm6, %v2528_v25, %v2538_v62  ;;  %v2346_v11 = vmul.f32 %v2344_v0, %v5737_v40 }
 0x468   : > { %v2664_v21 = vpop.permute.xlu1 %2663  ;;  %3175 = vrot.lane.b32.xlu0 %v3171_v41, %s4170_s9  ;;  %2545 = vrot.lane.b32.xlu1 %v2540_v33, %s4170_s9  ;;  %v2662_v9 = vpop.permute.xlu0 %2661  ;;  %v2345_v62 = vmul.f32 %v2344_v0, %v5748_v36  ;;  %v2976_v55 = vstv %s3667_s17 }
 0x469   : > { %v3170_v19 = vmul.f32 0.2, %v3160_v27  ;;  %vm3168_vm7 = vcmp.ge.f32.partialorder %v3160_v27, 0.0  ;;  %v2668_v39 = vadd.f32 %v2664_v21, %v2620_v7  ;;  %v2667_v46 = vadd.f32 %v2662_v9, %v2619_v47 }
 0x46a   : > { %v2978_v43 = vmul.f32 %v2976_v55, %v5745_v8 }
 0x46b   : > { %v3172_v26 = vsel %vm3168_vm7, %v3160_v27, %v3170_v19  ;;  %v2977_v19 = vmul.f32 %v2976_v55, %v5756_v3  ;;  %v3154_v3 = vstv %s3682_s13 }
 0x46c   : > { %v2102_v18 = vpop.permute.xlu1 %2101  ;;  %3177 = vrot.lane.b32.xlu1 %v3172_v26, %s4170_s9  ;;  %v2100_v42 = vpop.permute.xlu0 %2099  ;;  %2570 = vrot.lane.b32.xlu0 %v3632_v5, %s4170_s9 }
 0x46d   : > { %v2106_v15 = vadd.f32 %v2102_v18, %v2036_v17  ;;  %v2105_v20 = vadd.f32 %v2100_v42, %v2035_v56  ;;  %v2522_v42 = vstv %s3628_s21 }
 0x46f   : > { %v2170_v4 = vadd.f32 %v2168_v23, %v2106_v15  ;;  %v2169_v52 = vadd.f32 %v2167_v63, %v2105_v20 }
 0x470   : > { %v2734_v49 = vpop.permute.xlu1 %2733  ;;  %v2732_v28 = vpop.permute.xlu0 %2731  ;;  %3202 = vrot.lane.b32.xlu0 %v3686_v51, %s4170_s9  ;;  %2572 = vrot.lane.b32.xlu1 %v3633_v58, %s4170_s9 }
 0x471   : > { %v2738_v61 = vadd.f32 %v2734_v49, %v2668_v39  ;;  %v2737_v14 = vadd.f32 %v2732_v28, %v2667_v46 }
 0x473   : > { %v2802_v6 = vadd.f32 %v2800_v30, %v2738_v61  ;;  %v2801_v10 = vadd.f32 %v2799_v38, %v2737_v14 }
 0x474   : > { %v2210_v45 = vpop.permute.xlu1 %2209  ;;  %v2208_v24 = vpop.permute.xlu0 %2207  ;;  %2583 = vrot.lane.b32.xlu0 %v3634_v29, %s4170_s9  ;;  %3204 = vrot.lane.b32.xlu1 %v3687_v57, %s4170_s9 }
 0x475   : > { %v2214_v60 = vadd.f32 %v2210_v45, %v2170_v4  ;;  %v2213_v1 = vadd.f32 %v2208_v24, %v2169_v52 }
 0x478   : > { %v2842_v12 = vpop.permute.xlu1 %2841  ;;  %v2840_v13 = vpop.permute.xlu0 %2839  ;;  %3215 = vrot.lane.b32.xlu0 %v3688_v37, %s4170_s9  ;;  %2585 = vrot.lane.b32.xlu1 %v3635_v22, %s4170_s9 }
 0x479   : > { %v2846_v35 = vadd.f32 %v2842_v12, %v2802_v6  ;;  %v2845_v27 = vadd.f32 %v2840_v13, %v2801_v10 }
 0x47c   : > { %v2280_v25 = vpop.permute.xlu1 %2279  ;;  %v2278_v31 = vpop.permute.xlu0 %2277  ;;  %3217 = vrot.lane.b32.xlu1 %v3689_v32, %s4170_s9 }
 0x47d   : > { %v2284_v48 = vadd.f32 %v2280_v25, %v2214_v60  ;;  %v2283_v53 = vadd.f32 %v2278_v31, %v2213_v1 }
 0x47f   : > { %v2348_v41 = vadd.f32 %v2346_v11, %v2284_v48  ;;  %v2347_v33 = vadd.f32 %v2345_v62, %v2283_v53 }
 0x480   : > { %v2912_v54 = vpop.permute.xlu1 %2911  ;;  %v2910_v21 = vpop.permute.xlu0 %2909 }
 0x481   : > { %v2916_v9 = vadd.f32 %v2912_v54, %v2846_v35  ;;  %v2915_v44 = vadd.f32 %v2910_v21, %v2845_v27 }
 0x483   : > { %v2980_v5 = vadd.f32 %v2978_v43, %v2916_v9  ;;  %v2979_v16 = vadd.f32 %v2977_v19, %v2915_v44 }
 0x484   : > { %v2388_v56 = vpop.permute.xlu0 %2387  ;;  %v2390_v17 = vpop.permute.xlu1 %2389 }
 0x485   : > { %v2393_v7 = vadd.f32 %v2388_v56, %v2347_v33  ;;  %v2394_v20 = vadd.f32 %v2390_v17, %v2348_v41 }
 0x488   : > { %v3020_v40 = vpop.permute.xlu0 %3019  ;;  %v3022_v26 = vpop.permute.xlu1 %3021 }
 0x489   : > { %v3025_v2 = vadd.f32 %v3020_v40, %v2979_v16  ;;  %v3026_v51 = vadd.f32 %v3022_v26, %v2980_v5 }
 0x48c   : > { %v2458_v36 = vpop.permute.xlu0 %2457  ;;  %v2460_v47 = vpop.permute.xlu1 %2459 }
 0x48d   : > { %v2463_v18 = vadd.f32 %v2458_v36, %v2393_v7  ;;  %v2464_v23 = vadd.f32 %v2460_v47, %v2394_v20 }
 0x48f   : > { %v2523_v8 = vadd.f32 %v2522_v42, %v2463_v18  ;;  %v2524_v58 = vadd.f32 %v2522_v42, %v2464_v23 }
 0x490   : > { %v3090_v15 = vpop.permute.xlu0 %3089  ;;  %v3092_v63 = vpop.permute.xlu1 %3091 }
 0x491   : > { %v3095_v50 = vadd.f32 %v3090_v15, %v3025_v2  ;;  %v3096_v59 = vadd.f32 %v3092_v63, %v3026_v51  ;;  %v2531_v46 = vmul.f32 0.2, %v2523_v8  ;;  %vm2529_vm8 = vcmp.ge.f32.partialorder %v2523_v8, 0.0 }
 0x492   : > { %v2532_v28 = vmul.f32 0.2, %v2524_v58  ;;  %vm2530_vm9 = vcmp.ge.f32.partialorder %v2524_v58, 0.0 }
 0x493   : > { %v3155_v39 = vadd.f32 %v3154_v3, %v3095_v50  ;;  %v3156_v4 = vadd.f32 %v3154_v3, %v3096_v59  ;;  %v2533_v52 = vsel %vm2529_vm8, %v2523_v8, %v2531_v46 }
 0x494   : > { %v2534_v34 = vsel %vm2530_vm9, %v2524_v58, %v2532_v28 }
 0x495   : > { %v3163_v61 = vmul.f32 0.2, %v3155_v39  ;;  %vm3161_vm10 = vcmp.ge.f32.partialorder %v3155_v39, 0.0  ;;  %v3164_v6 = vmul.f32 0.2, %v3156_v4  ;;  %vm3162_vm11 = vcmp.ge.f32.partialorder %v3156_v4, 0.0 }
 0x497   : > { %v3165_v29 = vsel %vm3161_vm10, %v3155_v39, %v3163_v61  ;;  %v3166_v12 = vsel %vm3162_vm11, %v3156_v4, %v3164_v6 }
 0x4d6   : > { %v2544_v49 = vpop.permute.xlu0 %2543 }
 0x4d7   : > { %v2549_v14 = vsub.f32 %v2533_v52, %v2544_v49 }
 0x4d9   : > { %v2551_v30 = vand.u32 2147483647, %v2549_v14 }
 0x4da   : > { %v2546_v38 = vpop.permute.xlu1 %2545  ;;  %v3176_v57 = vpop.permute.xlu0 %3175 }
 0x4db   : > { %v3630_v10 = vmul.f32 -1.442695, %v2551_v30  ;;  %v2550_v45 = vsub.f32 %v2534_v34, %v2546_v38  ;;  %v3181_v24 = vsub.f32 %v3165_v29, %v3176_v57 }
 0x4dd   : > { %3857 = vpow2.f32 %v3630_v10  ;;  %v2552_v37 = vand.u32 2147483647, %v2550_v45  ;;  %v3183_v22 = vand.u32 2147483647, %v3181_v24 }
 0x4de   : > { %v3178_v13 = vpop.permute.xlu1 %3177  ;;  %v2571_v48 = vpop.permute.xlu0 %2570 }
 0x4df   : > { %v3631_v32 = vmul.f32 -1.442695, %v2552_v37  ;;  %v3684_v0 = vmul.f32 -1.442695, %v3183_v22  ;;  %v3182_v60 = vsub.f32 %v3166_v12, %v3178_v13 }
 0x4e1   : > { %3859 = vpow2.f32 %v3631_v32  ;;  %v3184_v1 = vand.u32 2147483647, %v3182_v60 }
 0x4e2   : > { %3861 = vpow2.f32 %v3684_v0  ;;  %v2573_v11 = vpop.permute.xlu1 %2572  ;;  %v3203_v41 = vpop.permute.xlu0 %3202 }
 0x4e3   : > { %v3685_v25 = vmul.f32 -1.442695, %v3184_v1 }
 0x4e5   : > { %3863 = vpow2.f32 %v3685_v25 }
 0x4e6   : > { %v3205_v21 = vpop.permute.xlu1 %3204  ;;  %v2584_v9 = vpop.permute.xlu0 %2583 }
 0x4e7   : > { %v3858_v31 = vpop.eup %3857 }
 0x4e8   : > { %v2559_v53 = vadd.f32 1.0, %v3858_v31 }
 0x4ea   : > { %3865 = vrcp.f32 %v2559_v53  ;;  %v2586_v19 = vpop.permute.xlu1 %2585  ;;  %v3216_v26 = vpop.permute.xlu0 %3215 }
 0x4eb   : > { %v3860_v62 = vpop.eup %3859 }
 0x4ec   : > { %v3862_v55 = vpop.eup %3861  ;;  %v2560_v35 = vadd.f32 1.0, %v3860_v62 }
 0x4ed   : > { %v3191_v27 = vadd.f32 1.0, %v3862_v55 }
 0x4ee   : > { %3867 = vrcp.f32 %v2560_v35  ;;  %v3218_v20 = vpop.permute.xlu1 %3217 }
 0x4ef   : > { %v3864_v33 = vpop.eup %3863  ;;  %3869 = vrcp.f32 %v3191_v27 }
 0x4f0   : > { %v3192_v54 = vadd.f32 1.0, %v3864_v33 }
 0x4f2   : > { %3871 = vrcp.f32 %v3192_v54 }
 0x4f4   : > { %v3866_v44 = vpop.eup %3865 }
 0x4f5   : > { %v2576_v43 = vadd.f32 %v3866_v44, %v2571_v48 }
 0x4f7   : > { %v2589_v5 = vmul.f32 %v2584_v9, %v2576_v43 }
 0x4f8   : > { %v3868_v16 = vpop.eup %3867 }
 0x4f9   : > { %v3870_v56 = vpop.eup %3869  ;;  %v2577_v17 = vadd.f32 %v3868_v16, %v2573_v11  ;;  %v2591_v40 = vsel %vm1322_vm12, %v2589_v5, -inf }
 0x4fa   : > { %v3208_v36 = vadd.f32 %v3870_v56, %v3203_v41  ;;  %v2592_v7 = vrot.slane %v2591_v40, 4 }
 0x4fb   : > { %v2590_v47 = vmul.f32 %v2586_v19, %v2577_v17 }
 0x4fc   : > { %v3872_v18 = vpop.eup %3871  ;;  %v2593_v42 = vmax.f32 %v2591_v40, %v2592_v7  ;;  %v3221_v15 = vmul.f32 %v3216_v26, %v3208_v36 }
 0x4fd   : > { %v3209_v2 = vadd.f32 %v3872_v18, %v3205_v21  ;;  %v2598_v23 = vsel %vm1322_vm12, %v2590_v47, -inf }
 0x4fe   : > { %v2594_v8 = vrot.slane %v2593_v42, 2  ;;  %v2599_v50 = vrot.slane %v2598_v23, 4  ;;  %v3223_v3 = vsel %vm1322_vm12, %v3221_v15, -inf }
 0x4ff   : > { %v3224_v63 = vrot.slane %v3223_v3, 4  ;;  %v3222_v51 = vmul.f32 %v3218_v20, %v3209_v2 }
 0x500   : > { %v2595_v58 = vmax.f32 %v2593_v42, %v2594_v8  ;;  %v2600_v59 = vmax.f32 %v2598_v23, %v2599_v50 }
 0x501   : > { %v3225_v39 = vmax.f32 %v3223_v3, %v3224_v63  ;;  %v3230_v46 = vsel %vm1322_vm12, %v3222_v51, -inf }
 0x502   : > { %v2601_v4 = vrot.slane %v2600_v59, 2  ;;  %v3231_v52 = vrot.slane %v3230_v46, 4  ;;  %v2596_v28 = vrot.slane %v2595_v58, 1 }
 0x503   : > { %v3226_v49 = vrot.slane %v3225_v39, 2 }
 0x504   : > { %v2602_v61 = vmax.f32 %v2600_v59, %v2601_v4  ;;  %v3232_v14 = vmax.f32 %v3230_v46, %v3231_v52  ;;  %v2597_v6 = vmax.f32 %v2595_v58, %v2596_v28 }
 0x505   : > { %v3227_v30 = vmax.f32 %v3225_v39, %v3226_v49 }
 0x506   : > { %v2603_v34 = vrot.slane %v2602_v61, 1  ;;  %v3233_v38 = vrot.slane %v3232_v14, 2 }
 0x507   : > { %v3228_v29 = vrot.slane %v3227_v30, 1 }
 0x508   : > { %v3234_v57 = vmax.f32 %v3232_v14, %v3233_v38  ;;  %v2604_v10 = vmax.f32 %v2602_v61, %v2603_v34 }
 0x509   : > { %v3229_v12 = vmax.f32 %v3227_v30, %v3228_v29 }
 0x50a   : > { %v3235_v45 = vrot.slane %v3234_v57, 1  ;;  %v2605_v24 = vsel %vm1337_vm13, %v2597_v6, %v2604_v10 }
 0x50b   : > { %v2609_v37 = vsel %vm1343_vm1, %v2605_v24, -inf  ;;  %v2606_v22 = vsel %vm1339_vm0, %v2605_v24, -inf }
 0x50c   : > { %2610 = vmax.xlane.f32.xlu1 %v2609_v37  ;;  %2607 = vmax.xlane.f32.xlu0 %v2606_v22  ;;  %v3236_v13 = vmax.f32 %v3234_v57, %v3235_v45 }
 0x50e   : > { %v3237_v32 = vsel %vm1337_vm13, %v3229_v12, %v3236_v13 }
 0x50f   : > { %v3238_v0 = vsel %vm1339_vm0, %v3237_v32, -inf  ;;  %v3241_v60 = vsel %vm1343_vm1, %v3237_v32, -inf }
 0x510   : > { %3239 = vmax.xlane.f32.xlu0 %v3238_v0 }
 0x514   : > { %3242 = vmax.xlane.f32.xlu0 %v3241_v60 }
 0x599   : > { %v2611_v1 = vpop.xlane.xlu1 %2610  ;;  %v2608_v25 = vpop.xlane.xlu0 %2607 }
 0x59a   : > { %v2612_v31 = vsel %vm1347_vm2, %v2608_v25, %v2611_v1 }
 0x59b   : > { %3636 = vst.msk [vmem:[%s5665_s27 + $0x4] sm:$0x3] %vm1349_vm3, %v2612_v31 }
 0x59d   : > { %v3240_v48 = vpop.xlane.xlu0 %3239 }
 0x5a1   : > { %v3243_v53 = vpop.xlane.xlu0 %3242 }
 0x5a2   : > { %v3244_v11 = vsel %vm1347_vm2, %v3240_v48, %v3243_v53 }
 0x5a3   : > { %3690 = vst.msk [vmem:[%s5665_s27 + $0x6] sm:$0x3] %vm1349_vm3, %v3244_v11 }
 0x5a4 PF: > { %s30_s10 = sadd.s32 1, %s4151_s10   ;;  %s5955_s9 = sld [smem:[#allocation23_spill]] }
 0x5a5   : > { %p27_p8 = scmp.ge.s32.totalorder %s30_s10, 4   ;;  %s5956_s29 = sld [smem:[#allocation26_spill]] }
 0x5a6   : > { %s5957_s30 = sld [smem:[#allocation24_spill]]  ;;  %s5958_s20 = sld [smem:[#allocation25_spill]] }
 0x5a7   : > { %s5959_s27 = smov %s4135_s28  ;;  %29 = sbr.rel (!%p27_p8) target bundleno = 15 (0xf), region = 158 }
 0x5aa   : > { %s5960_s28 = smov %s5955_s9 }
 0x5ac   : > { %s5961_s9 = smov %s5958_s20 }
 0x5ae   :  { %3274 = vsyncpa [#allocation4], 1 }
 0x5af   :  { %3276 = vsyncpa [#allocation4 + $0x1], 1 }
 0x5b0   :  { %3277 = vsyncpa [#allocation7], 1 }
 0x5b1   :  { %3279 = vsyncpa [#allocation7 + $0x1], 1 }
 0x5b2   :  { %3280 = vsyncpa [#allocation10], 1 }
 0x5b3   :  { %3282 = vsyncpa [#allocation10 + $0x1], 1 }
 0x5b4   :  { %3283 = vsyncpa [#allocation5], 1 }
 0x5b5   :  { %3285 = vsyncpa [#allocation5 + $0x1], 1 }
 0x5b6   :  { %3286 = vsyncpa [#allocation13], 1 }
 0x5b7   :  { %3287 = vsyncpa [#allocation16], 1 }

</bundles_post_ra>
